<compile_context>
chip_gen: v7x
topology: tpu7x:2x2x1
jax: 0.10.0
libtpu: 0.0.40
codegen_flags: <defaults>
</compile_context>

<pallas_src>
import numpy as np
import jax
import jax.numpy as jnp
from jax.experimental import pallas as pl
from jax.experimental.pallas import tpu as pltpu


# ----------------------------- hyper parameters -----------------------------
class NetParameters:
    NUM_CHANNEL = 4
    PAST_HIDDEN = 4
    NET_SIZE = 32
    GOAL_REPR_SIZE = 8
    VECTOR_LEN = 8
    TIME_DEPT = 2
    GAIN = 0.01


class EnvParameters:
    FOV_SIZE = 8
    N_ACTIONS = 5


NET = NetParameters.NET_SIZE                     # 32
HALF = NET // 2                                  # 16
OUT_C = NET - NetParameters.GOAL_REPR_SIZE       # 24
GOAL = NetParameters.GOAL_REPR_SIZE              # 8
FOV = EnvParameters.FOV_SIZE                     # 8
HID = NetParameters.PAST_HIDDEN                  # 4
CIN = NetParameters.NUM_CHANNEL                  # 4
T_DEP = NetParameters.TIME_DEPT                  # 2
NA = EnvParameters.N_ACTIONS                     # 5
LN_EPS = 1e-5


# ----------------------------- in-kernel helpers -----------------------------
def _mm(a, b):
    """bf16 MXU matmul with f32 accumulation (autocast-style)."""
    return jnp.dot(a.astype(jnp.bfloat16), b.astype(jnp.bfloat16),
                   preferred_element_type=jnp.float32)


def _mm32(a, b):
    """Exact f32 matmul (used for pooling / selection matrices)."""
    return jnp.dot(a, b, preferred_element_type=jnp.float32)


def _layernorm(x, g, b):
    mu = jnp.mean(x, axis=-1, keepdims=True)
    xc = x - mu
    var = jnp.mean(xc * xc, axis=-1, keepdims=True)
    return xc * jax.lax.rsqrt(var + LN_EPS) * g + b


# ----------------------------- the fused kernel -----------------------------
def _fused_net_kernel(
        # data
        obs_ref, vec_ref, h0_ref, c0_ref,
        # constant shift / selection matrices
        sa_ref, sb_ref, sc_ref, pool_ref, e1_ref, e2_ref,
        # ConvLSTM weights (wide tap-packed, input/hidden split)
        cl_wx_ref, cl_wh_ref, cl_b_ref,
        # conv trunk weights (wide tap-packed)
        ds1_wh_ref, ds1_wo_ref, c1_wh_ref, c1_wo_ref,
        c2_w_ref, ds2_w_ref, c3_w_ref, c4_w_ref,
        # fully connected (pre-transposed)
        fc1_w_ref, fc1_b_ref, fc2_w_ref, fc2_b_ref, fc3_w_ref, fc3_b_ref,
        # layer norms
        fn_g_ref, fn_b_ref, ln1_g_ref, ln1_b_ref, ln2_g_ref, ln2_b_ref,
        ln4_g_ref, ln4_b_ref, ln5_g_ref, ln5_b_ref,
        # LSTMCell (pre-transposed, biases pre-summed)
        wih_ref, whh_ref, lstm_b_ref,
        # fused policy+value head (pre-transposed, columns = [NA logits, value])
        pv_w_ref, pv_b_ref,
        # outputs
        logits_ref, policy_ref, sig_ref, value_ref, hout_ref, cout_ref):
    f32 = jnp.float32
    rows = obs_ref.shape[1]       # N * FOV * FOV (full-res spatial rows)

    def conv_taps(shift_ref, y_wide, cout):
        """sum_tap  S_tap @ y_wide[:, tap*cout:(tap+1)*cout]."""
        acc = _mm(shift_ref[0], y_wide[:, :cout])
        for tap in range(1, 9):
            acc = acc + _mm(shift_ref[tap], y_wide[:, tap * cout:(tap + 1) * cout])
        return acc

    # -------- ConvLSTM over past frames (h/c held in vregs, T unrolled) --------
    h = jnp.zeros((rows, HID), f32)
    c = jnp.zeros((rows, HID), f32)
    for t in range(T_DEP):
        x_t = obs_ref[t]                                            # (rows, CIN)
        y = _mm(x_t, cl_wx_ref[...]) + _mm(h, cl_wh_ref[...])       # (rows, 9*4*HID)
        cc = conv_taps(sa_ref, y, 4 * HID) + cl_b_ref[...]
        ig = jax.nn.sigmoid(cc[:, 0 * HID:1 * HID])
        fg = jax.nn.sigmoid(cc[:, 1 * HID:2 * HID])
        og = jax.nn.sigmoid(cc[:, 2 * HID:3 * HID])
        gg = jnp.tanh(cc[:, 3 * HID:4 * HID])
        c = fg * c + ig * gg
        h = og * jnp.tanh(c)
    curr = obs_ref[T_DEP - 1]                                       # (rows, CIN)

    # -------- residual conv block 1 (8x8, stride 1); input = [h, curr] --------
    identity = _mm(h, ds1_wh_ref[...]) + _mm(curr, ds1_wo_ref[...])  # (rows, HALF)
    y = _mm(h, c1_wh_ref[...]) + _mm(curr, c1_wo_ref[...])           # (rows, 9*HALF)
    x = jnp.maximum(conv_taps(sa_ref, y, HALF), 0.0)                 # conv1 + relu
    y = _mm(x, c2_w_ref[...])                                        # (rows, 9*HALF)
    x = jnp.maximum(conv_taps(sa_ref, y, HALF) + identity, 0.0)      # conv2 + res + relu

    # -------- residual conv block 2 (8x8 -> 4x4, stride 2) --------
    identity = _mm(sb_ref[4], _mm(x, ds2_w_ref[...]))                # (rows2, OUT_C)
    y = _mm(x, c3_w_ref[...])                                        # (rows, 9*OUT_C)
    x = jnp.maximum(conv_taps(sb_ref, y, OUT_C), 0.0)                # conv3 + relu
    y = _mm(x, c4_w_ref[...])                                        # (rows2, 9*OUT_C)
    x = jnp.maximum(conv_taps(sc_ref, y, OUT_C) + identity, 0.0)     # conv4 + res + relu

    # -------- adaptive avg-pool (via pooling matrix) + layernorm --------
    x1 = _mm32(pool_ref[...], x)                                     # (N, OUT_C)
    x1 = _layernorm(x1, ln1_g_ref[...], ln1_b_ref[...])

    # -------- vector branch --------
    x2 = _layernorm(vec_ref[...], fn_g_ref[...], fn_b_ref[...])
    x2 = jnp.maximum(_mm(x2, fc1_w_ref[...]) + fc1_b_ref[...], 0.0)
    x2 = _layernorm(x2, ln2_g_ref[...], ln2_b_ref[...])

    # -------- fuse branches + MLP with residual --------
    x3 = _mm32(x1, e1_ref[...]) + _mm32(x2, e2_ref[...])             # == concat(x1, x2)
    h1 = jnp.maximum(_mm(x3, fc2_w_ref[...]) + fc2_b_ref[...], 0.0)
    h1 = _mm(h1, fc3_w_ref[...]) + fc3_b_ref[...]
    h2 = jnp.maximum(h1 + x3, 0.0)
    h2 = _layernorm(h2, ln4_g_ref[...], ln4_b_ref[...])

    # -------- LSTMCell (gate order i, f, g, o) --------
    gates = _mm(h2, wih_ref[...]) + _mm(h0_ref[...], whh_ref[...]) + lstm_b_ref[...]
    i_g = jax.nn.sigmoid(gates[:, 0 * NET:1 * NET])
    f_g = jax.nn.sigmoid(gates[:, 1 * NET:2 * NET])
    g_g = jnp.tanh(gates[:, 2 * NET:3 * NET])
    o_g = jax.nn.sigmoid(gates[:, 3 * NET:4 * NET])
    c_new = f_g * c0_ref[...] + i_g * g_g
    h_new = o_g * jnp.tanh(c_new)
    hout_ref[...] = h_new
    cout_ref[...] = c_new

    # -------- fused policy / value heads (single matmul epilogue) --------
    m = _layernorm(h_new, ln5_g_ref[...], ln5_b_ref[...])
    pv = _mm(m, pv_w_ref[...]) + pv_b_ref[...]                       # (N, NA+1)
    logits = pv[:, :NA]
    logits_ref[...] = logits
    z = logits - jnp.max(logits, axis=-1, keepdims=True)
    e = jnp.exp(z)
    policy_ref[...] = e * pl.reciprocal(jnp.sum(e, axis=-1, keepdims=True))
    sig_ref[...] = jax.nn.sigmoid(logits)
    value_ref[...] = pv[:, NA:NA + 1]


# ----------------------------- constant matrices -----------------------------
def _shift_matrices(n, h, w, ho, wo, stride, pad, k):
    """(k*k, n*ho*wo, n*h*w) 0/1 matrices: out_row -> zero-padded conv tap source row."""
    s = np.zeros((k * k, n * ho * wo, n * h * w), np.float32)
    for t in range(k * k):
        di, dj = t // k, t % k
        for b in range(n):
            for y in range(ho):
                for x in range(wo):
                    sy = stride * y + di - pad
                    sx = stride * x + dj - pad
                    if 0 <= sy < h and 0 <= sx < w:
                        s[t, b * ho * wo + y * wo + x, b * h * w + sy * w + sx] = 1.0
    return s


def build_constants(n):
    half = FOV // 2
    sa = jnp.asarray(_shift_matrices(n, FOV, FOV, FOV, FOV, 1, 1, 3), jnp.bfloat16)
    sb = jnp.asarray(_shift_matrices(n, FOV, FOV, half, half, 2, 1, 3), jnp.bfloat16)
    sc = jnp.asarray(_shift_matrices(n, half, half, half, half, 1, 1, 3), jnp.bfloat16)
    hw2 = half * half
    pool = np.zeros((n, n * hw2), np.float32)
    for b in range(n):
        pool[b, b * hw2:(b + 1) * hw2] = 1.0 / hw2
    e1 = np.zeros((OUT_C, NET), np.float32)
    e1[np.arange(OUT_C), np.arange(OUT_C)] = 1.0
    e2 = np.zeros((GOAL, NET), np.float32)
    e2[np.arange(GOAL), OUT_C + np.arange(GOAL)] = 1.0
    return sa, sb, sc, jnp.asarray(pool), jnp.asarray(e1), jnp.asarray(e2)


# ----------------------------- parameters -----------------------------
def init_params(key):
    ks = jax.random.split(key, 16)
    nrm = lambda k, shp, s=0.1: (s * jax.random.normal(k, shp)).astype(jnp.float32)
    P = NetParameters
    in_c = P.NUM_CHANNEL + P.PAST_HIDDEN
    return {
        "clstm_w": nrm(ks[0], (4 * P.PAST_HIDDEN, in_c, 3, 3)),
        "clstm_b": jnp.zeros((4 * P.PAST_HIDDEN,), jnp.float32),
        "ds1_w": nrm(ks[1], (HALF, in_c, 1, 1)),
        "conv1_w": nrm(ks[2], (HALF, in_c, 3, 3)),
        "conv2_w": nrm(ks[3], (HALF, HALF, 3, 3)),
        "ds2_w": nrm(ks[4], (OUT_C, HALF, 1, 1)),
        "conv3_w": nrm(ks[5], (OUT_C, HALF, 3, 3)),
        "conv4_w": nrm(ks[6], (OUT_C, OUT_C, 3, 3)),
        "fc1_w": nrm(ks[7], (P.GOAL_REPR_SIZE, P.VECTOR_LEN)),
        "fc1_b": jnp.zeros((P.GOAL_REPR_SIZE,), jnp.float32),
        "fc2_w": nrm(ks[8], (NET, NET)),
        "fc2_b": jnp.zeros((NET,), jnp.float32),
        "fc3_w": nrm(ks[9], (NET, NET)),
        "fc3_b": jnp.zeros((NET,), jnp.float32),
        "lstm_wih": nrm(ks[10], (4 * NET, NET)),
        "lstm_whh": nrm(ks[11], (4 * NET, NET)),
        "lstm_bih": jnp.zeros((4 * NET,), jnp.float32),
        "lstm_bhh": jnp.zeros((4 * NET,), jnp.float32),
        "pol_w": nrm(ks[12], (NA, NET), 0.01),
        "pol_b": jnp.zeros((NA,), jnp.float32),
        "val_w": nrm(ks[13], (1, NET)),
        "val_b": jnp.zeros((1,), jnp.float32),
        "fn_g": jnp.ones((P.VECTOR_LEN,), jnp.float32), "fn_b": jnp.zeros((P.VECTOR_LEN,), jnp.float32),
        "ln1_g": jnp.ones((OUT_C,), jnp.float32), "ln1_b": jnp.zeros((OUT_C,), jnp.float32),
        "ln2_g": jnp.ones((GOAL,), jnp.float32), "ln2_b": jnp.zeros((GOAL,), jnp.float32),
        "ln4_g": jnp.ones((NET,), jnp.float32), "ln4_b": jnp.zeros((NET,), jnp.float32),
        "ln5_g": jnp.ones((NET,), jnp.float32), "ln5_b": jnp.zeros((NET,), jnp.float32),
    }


def pack_params(params, n):
    """Pre-pack weights into matmul-ready bf16 layout + build the constant shift matrices."""
    bf16 = jnp.bfloat16

    def wide(w):   # (Cout, Cin, kh, kw) -> (Cin, kh*kw*Cout), tap-major columns
        co, ci, kh, kw = w.shape
        return jnp.transpose(w, (1, 2, 3, 0)).reshape(ci, kh * kw * co).astype(bf16)

    def mat(w):    # 1x1 conv (Cout, Cin, 1, 1) -> (Cin, Cout)
        return jnp.transpose(w[:, :, 0, 0]).astype(bf16)

    def row(v):
        return v.reshape(1, -1).astype(jnp.float32)

    cl = wide(params["clstm_w"])          # (CIN+HID, 9*4*HID); conv input order [x, h]
    c1 = wide(params["conv1_w"])          # (HID+CIN, 9*HALF);  block-1 input order [h, curr]
    ds1 = mat(params["ds1_w"])            # (HID+CIN, HALF)
    pv_w = jnp.concatenate([params["pol_w"].T, params["val_w"].T], axis=1).astype(bf16)
    pv_b = jnp.concatenate([params["pol_b"], params["val_b"]]).reshape(1, -1).astype(jnp.float32)
    return (
        *build_constants(n),
        # ConvLSTM: input channels [x_t (CIN), h (HID)]
        cl[:CIN, :], cl[CIN:, :], row(params["clstm_b"]),
        # conv block 1 input channels [convlstm_h (HID), curr_obs (CIN)]
        ds1[:HID, :], ds1[HID:, :],
        c1[:HID, :], c1[HID:, :],
        wide(params["conv2_w"]),
        mat(params["ds2_w"]),
        wide(params["conv3_w"]),
        wide(params["conv4_w"]),
        params["fc1_w"].T.astype(bf16), row(params["fc1_b"]),
        params["fc2_w"].T.astype(bf16), row(params["fc2_b"]),
        params["fc3_w"].T.astype(bf16), row(params["fc3_b"]),
        row(params["fn_g"]), row(params["fn_b"]),
        row(params["ln1_g"]), row(params["ln1_b"]),
        row(params["ln2_g"]), row(params["ln2_b"]),
        row(params["ln4_g"]), row(params["ln4_b"]),
        row(params["ln5_g"]), row(params["ln5_b"]),
        params["lstm_wih"].T.astype(bf16), params["lstm_whh"].T.astype(bf16),
        row(params["lstm_bih"] + params["lstm_bhh"]),
        pv_w, pv_b,
    )


# ----------------------------- forward pass -----------------------------
@jax.jit
def net_forward(packed, obs, vector, input_state):
    P = NetParameters
    B, A = obs.shape[0], obs.shape[1]
    n = B * A
    obs = obs.reshape(n, P.TIME_DEPT, P.NUM_CHANNEL, FOV, FOV)
    # boundary conversion only: channels-last, frame-flattened (T, N*H*W, C)
    obs_r = jnp.transpose(obs, (1, 0, 3, 4, 2)).reshape(
        P.TIME_DEPT, n * FOV * FOV, P.NUM_CHANNEL).astype(jnp.float32)
    vector = vector.reshape(n, P.VECTOR_LEN).astype(jnp.float32)
    h0, c0 = input_state

    vmem = pl.BlockSpec(memory_space=pltpu.MemorySpace.VMEM)
    out_shape = (
        jax.ShapeDtypeStruct((n, NA), jnp.float32),    # logits
        jax.ShapeDtypeStruct((n, NA), jnp.float32),    # policy (softmax)
        jax.ShapeDtypeStruct((n, NA), jnp.float32),    # policy (sigmoid)
        jax.ShapeDtypeStruct((n, 1), jnp.float32),     # value
        jax.ShapeDtypeStruct((n, NET), jnp.float32),   # lstm h
        jax.ShapeDtypeStruct((n, NET), jnp.float32),   # lstm c
    )
    logits, policy, policy_sig, value, h_new, c_new = pl.pallas_call(
        _fused_net_kernel,
        out_shape=out_shape,
        in_specs=[vmem] * (4 + len(packed)),
        out_specs=(vmem,) * len(out_shape),
    )(obs_r, vector, h0.astype(jnp.float32), c0.astype(jnp.float32), *packed)

    policy = policy.reshape(B, A, NA)
    policy_sig = policy_sig.reshape(B, A, NA)
    logits = logits.reshape(B, A, NA)
    value = value.reshape(B, A, 1)
    return policy, value, policy_sig, (h_new, c_new), logits


# ----------------------------- main -----------------------------
if __name__ == "__main__":
    key = jax.random.PRNGKey(0)
    kp, ko, kv, kh, kc = jax.random.split(key, 5)
    params = init_params(kp)

    B, A = 1, 2
    N = B * A
    packed = pack_params(params, N)

    obs = jax.random.normal(ko, (B, A, T_DEP, CIN, FOV, FOV), jnp.float32)
    vector = jax.random.normal(kv, (B, A, NetParameters.VECTOR_LEN), jnp.float32)
    h0 = jax.random.normal(kh, (N, NET), jnp.float32) * 0.1
    c0 = jax.random.normal(kc, (N, NET), jnp.float32) * 0.1

    policy, value, policy_sig, out_state, logits = net_forward(
        packed, obs, vector, (h0, c0))
    jax.block_until_ready((policy, value, policy_sig, out_state, logits))

    assert policy.shape == (B, A, NA)
    assert value.shape == (B, A, 1)
    assert policy_sig.shape == (B, A, NA)
    assert out_state[0].shape == (N, NET) and out_state[1].shape == (N, NET)
    assert logits.shape == (B, A, NA)
    assert bool(jnp.all(jnp.isfinite(policy)))
    assert bool(jnp.all(jnp.abs(jnp.sum(policy, axis=-1) - 1.0) < 1e-3))
    print("KERNEL_OK")
</pallas_src>

<mosaic_0001>
module attributes {stable_mosaic.version = 11 : i64} {
  func.func @_fused_net_kernel(%arg0: memref<2x128x4xf32, #tpu.memory_space<vmem>>, %arg1: memref<2x8xf32, #tpu.memory_space<vmem>>, %arg2: memref<2x32xf32, #tpu.memory_space<vmem>>, %arg3: memref<2x32xf32, #tpu.memory_space<vmem>>, %arg4: memref<9x128x128xbf16, #tpu.memory_space<vmem>>, %arg5: memref<9x32x128xbf16, #tpu.memory_space<vmem>>, %arg6: memref<9x32x32xbf16, #tpu.memory_space<vmem>>, %arg7: memref<2x32xf32, #tpu.memory_space<vmem>>, %arg8: memref<24x32xf32, #tpu.memory_space<vmem>>, %arg9: memref<8x32xf32, #tpu.memory_space<vmem>>, %arg10: memref<4x144xbf16, #tpu.memory_space<vmem>>, %arg11: memref<4x144xbf16, #tpu.memory_space<vmem>>, %arg12: memref<1x16xf32, #tpu.memory_space<vmem>>, %arg13: memref<4x16xbf16, #tpu.memory_space<vmem>>, %arg14: memref<4x16xbf16, #tpu.memory_space<vmem>>, %arg15: memref<4x144xbf16, #tpu.memory_space<vmem>>, %arg16: memref<4x144xbf16, #tpu.memory_space<vmem>>, %arg17: memref<16x144xbf16, #tpu.memory_space<vmem>>, %arg18: memref<16x24xbf16, #tpu.memory_space<vmem>>, %arg19: memref<16x216xbf16, #tpu.memory_space<vmem>>, %arg20: memref<24x216xbf16, #tpu.memory_space<vmem>>, %arg21: memref<8x8xbf16, #tpu.memory_space<vmem>>, %arg22: memref<1x8xf32, #tpu.memory_space<vmem>>, %arg23: memref<32x32xbf16, #tpu.memory_space<vmem>>, %arg24: memref<1x32xf32, #tpu.memory_space<vmem>>, %arg25: memref<32x32xbf16, #tpu.memory_space<vmem>>, %arg26: memref<1x32xf32, #tpu.memory_space<vmem>>, %arg27: memref<1x8xf32, #tpu.memory_space<vmem>>, %arg28: memref<1x8xf32, #tpu.memory_space<vmem>>, %arg29: memref<1x24xf32, #tpu.memory_space<vmem>>, %arg30: memref<1x24xf32, #tpu.memory_space<vmem>>, %arg31: memref<1x8xf32, #tpu.memory_space<vmem>>, %arg32: memref<1x8xf32, #tpu.memory_space<vmem>>, %arg33: memref<1x32xf32, #tpu.memory_space<vmem>>, %arg34: memref<1x32xf32, #tpu.memory_space<vmem>>, %arg35: memref<1x32xf32, #tpu.memory_space<vmem>>, %arg36: memref<1x32xf32, #tpu.memory_space<vmem>>, %arg37: memref<32x128xbf16, #tpu.memory_space<vmem>>, %arg38: memref<32x128xbf16, #tpu.memory_space<vmem>>, %arg39: memref<1x128xf32, #tpu.memory_space<vmem>>, %arg40: memref<32x6xbf16, #tpu.memory_space<vmem>>, %arg41: memref<1x6xf32, #tpu.memory_space<vmem>>, %arg42: memref<2x5xf32, #tpu.memory_space<vmem>>, %arg43: memref<2x5xf32, #tpu.memory_space<vmem>>, %arg44: memref<2x5xf32, #tpu.memory_space<vmem>>, %arg45: memref<2x1xf32, #tpu.memory_space<vmem>>, %arg46: memref<2x32xf32, #tpu.memory_space<vmem>>, %arg47: memref<2x32xf32, #tpu.memory_space<vmem>>) attributes {dimension_semantics = [], scalar_prefetch = 0 : i64, scratch_operands = 0 : i64, tpu.core_type = #tpu.core_type<tc>} {
    %cst = arith.constant 0.000000e+00 : f32
    %0 = vector.broadcast %cst : f32 to vector<128x4xf32>
    %cst_0 = arith.constant 0.000000e+00 : f32
    %1 = vector.broadcast %cst_0 : f32 to vector<128x4xf32>
    %c0 = arith.constant 0 : index
    %c0_1 = arith.constant 0 : index
    %c0_2 = arith.constant 0 : index
    %2 = vector.load %arg0[%c0, %c0_1, %c0_2] : memref<2x128x4xf32, #tpu.memory_space<vmem>>, vector<1x128x4xf32>
    %3 = vector.shape_cast %2 : vector<1x128x4xf32> to vector<128x4xf32>
    %c0_3 = arith.constant 0 : index
    %c0_4 = arith.constant 0 : index
    %4 = vector.load %arg10[%c0_3, %c0_4] : memref<4x144xbf16, #tpu.memory_space<vmem>>, vector<4x144xbf16>
    %5 = arith.truncf %3 : vector<128x4xf32> to vector<128x4xbf16>
    %cst_5 = arith.constant dense<0.000000e+00> : vector<128x144xf32>
    %6 = tpu.matmul %5, %4, %cst_5 {dimension_numbers = #tpu.dot_dimension_numbers<[1], [0], [0], [1], [0, 0, 1, 1], [], []>} : vector<128x4xbf16>, vector<4x144xbf16>, vector<128x144xf32> -> vector<128x144xf32>
    %c0_6 = arith.constant 0 : index
    %c0_7 = arith.constant 0 : index
    %7 = vector.load %arg11[%c0_6, %c0_7] : memref<4x144xbf16, #tpu.memory_space<vmem>>, vector<4x144xbf16>
    %8 = arith.truncf %0 : vector<128x4xf32> to vector<128x4xbf16>
    %cst_8 = arith.constant dense<0.000000e+00> : vector<128x144xf32>
    %9 = tpu.matmul %8, %7, %cst_8 {dimension_numbers = #tpu.dot_dimension_numbers<[1], [0], [0], [1], [0, 0, 1, 1], [], []>} : vector<128x4xbf16>, vector<4x144xbf16>, vector<128x144xf32> -> vector<128x144xf32>
    %10 = arith.addf %6, %9 : vector<128x144xf32>
    %c0_9 = arith.constant 0 : index
    %c0_10 = arith.constant 0 : index
    %c0_11 = arith.constant 0 : index
    %11 = vector.load %arg4[%c0_9, %c0_10, %c0_11] : memref<9x128x128xbf16, #tpu.memory_space<vmem>>, vector<1x128x128xbf16>
    %12 = vector.shape_cast %11 : vector<1x128x128xbf16> to vector<128x128xbf16>
    %13 = vector.extract_strided_slice %10 {offsets = [0, 0], sizes = [128, 16], strides = [1, 1]} : vector<128x144xf32> to vector<128x16xf32>
    %14 = arith.truncf %13 : vector<128x16xf32> to vector<128x16xbf16>
    %cst_12 = arith.constant dense<0.000000e+00> : vector<128x16xf32>
    %15 = tpu.matmul %12, %14, %cst_12 {dimension_numbers = #tpu.dot_dimension_numbers<[1], [0], [0], [1], [0, 0, 1, 1], [], []>} : vector<128x128xbf16>, vector<128x16xbf16>, vector<128x16xf32> -> vector<128x16xf32>
    %c1 = arith.constant 1 : index
    %c0_13 = arith.constant 0 : index
    %c0_14 = arith.constant 0 : index
    %16 = vector.load %arg4[%c1, %c0_13, %c0_14] : memref<9x128x128xbf16, #tpu.memory_space<vmem>>, vector<1x128x128xbf16>
    %17 = vector.shape_cast %16 : vector<1x128x128xbf16> to vector<128x128xbf16>
    %18 = vector.extract_strided_slice %10 {offsets = [0, 16], sizes = [128, 16], strides = [1, 1]} : vector<128x144xf32> to vector<128x16xf32>
    %19 = arith.truncf %18 : vector<128x16xf32> to vector<128x16xbf16>
    %cst_15 = arith.constant dense<0.000000e+00> : vector<128x16xf32>
    %20 = tpu.matmul %17, %19, %cst_15 {dimension_numbers = #tpu.dot_dimension_numbers<[1], [0], [0], [1], [0, 0, 1, 1], [], []>} : vector<128x128xbf16>, vector<128x16xbf16>, vector<128x16xf32> -> vector<128x16xf32>
    %21 = arith.addf %15, %20 : vector<128x16xf32>
    %c2 = arith.constant 2 : index
    %c0_16 = arith.constant 0 : index
    %c0_17 = arith.constant 0 : index
    %22 = vector.load %arg4[%c2, %c0_16, %c0_17] : memref<9x128x128xbf16, #tpu.memory_space<vmem>>, vector<1x128x128xbf16>
    %23 = vector.shape_cast %22 : vector<1x128x128xbf16> to vector<128x128xbf16>
    %24 = vector.extract_strided_slice %10 {offsets = [0, 32], sizes = [128, 16], strides = [1, 1]} : vector<128x144xf32> to vector<128x16xf32>
    %25 = arith.truncf %24 : vector<128x16xf32> to vector<128x16xbf16>
    %cst_18 = arith.constant dense<0.000000e+00> : vector<128x16xf32>
    %26 = tpu.matmul %23, %25, %cst_18 {dimension_numbers = #tpu.dot_dimension_numbers<[1], [0], [0], [1], [0, 0, 1, 1], [], []>} : vector<128x128xbf16>, vector<128x16xbf16>, vector<128x16xf32> -> vector<128x16xf32>
    %27 = arith.addf %21, %26 : vector<128x16xf32>
    %c3 = arith.constant 3 : index
    %c0_19 = arith.constant 0 : index
    %c0_20 = arith.constant 0 : index
    %28 = vector.load %arg4[%c3, %c0_19, %c0_20] : memref<9x128x128xbf16, #tpu.memory_space<vmem>>, vector<1x128x128xbf16>
    %29 = vector.shape_cast %28 : vector<1x128x128xbf16> to vector<128x128xbf16>
    %30 = vector.extract_strided_slice %10 {offsets = [0, 48], sizes = [128, 16], strides = [1, 1]} : vector<128x144xf32> to vector<128x16xf32>
    %31 = arith.truncf %30 : vector<128x16xf32> to vector<128x16xbf16>
    %cst_21 = arith.constant dense<0.000000e+00> : vector<128x16xf32>
    %32 = tpu.matmul %29, %31, %cst_21 {dimension_numbers = #tpu.dot_dimension_numbers<[1], [0], [0], [1], [0, 0, 1, 1], [], []>} : vector<128x128xbf16>, vector<128x16xbf16>, vector<128x16xf32> -> vector<128x16xf32>
    %33 = arith.addf %27, %32 : vector<128x16xf32>
    %c4 = arith.constant 4 : index
    %c0_22 = arith.constant 0 : index
    %c0_23 = arith.constant 0 : index
    %34 = vector.load %arg4[%c4, %c0_22, %c0_23] : memref<9x128x128xbf16, #tpu.memory_space<vmem>>, vector<1x128x128xbf16>
    %35 = vector.shape_cast %34 : vector<1x128x128xbf16> to vector<128x128xbf16>
    %36 = vector.extract_strided_slice %10 {offsets = [0, 64], sizes = [128, 16], strides = [1, 1]} : vector<128x144xf32> to vector<128x16xf32>
    %37 = arith.truncf %36 : vector<128x16xf32> to vector<128x16xbf16>
    %cst_24 = arith.constant dense<0.000000e+00> : vector<128x16xf32>
    %38 = tpu.matmul %35, %37, %cst_24 {dimension_numbers = #tpu.dot_dimension_numbers<[1], [0], [0], [1], [0, 0, 1, 1], [], []>} : vector<128x128xbf16>, vector<128x16xbf16>, vector<128x16xf32> -> vector<128x16xf32>
    %39 = arith.addf %33, %38 : vector<128x16xf32>
    %c5 = arith.constant 5 : index
    %c0_25 = arith.constant 0 : index
    %c0_26 = arith.constant 0 : index
    %40 = vector.load %arg4[%c5, %c0_25, %c0_26] : memref<9x128x128xbf16, #tpu.memory_space<vmem>>, vector<1x128x128xbf16>
    %41 = vector.shape_cast %40 : vector<1x128x128xbf16> to vector<128x128xbf16>
    %42 = vector.extract_strided_slice %10 {offsets = [0, 80], sizes = [128, 16], strides = [1, 1]} : vector<128x144xf32> to vector<128x16xf32>
    %43 = arith.truncf %42 : vector<128x16xf32> to vector<128x16xbf16>
    %cst_27 = arith.constant dense<0.000000e+00> : vector<128x16xf32>
    %44 = tpu.matmul %41, %43, %cst_27 {dimension_numbers = #tpu.dot_dimension_numbers<[1], [0], [0], [1], [0, 0, 1, 1], [], []>} : vector<128x128xbf16>, vector<128x16xbf16>, vector<128x16xf32> -> vector<128x16xf32>
    %45 = arith.addf %39, %44 : vector<128x16xf32>
    %c6 = arith.constant 6 : index
    %c0_28 = arith.constant 0 : index
    %c0_29 = arith.constant 0 : index
    %46 = vector.load %arg4[%c6, %c0_28, %c0_29] : memref<9x128x128xbf16, #tpu.memory_space<vmem>>, vector<1x128x128xbf16>
    %47 = vector.shape_cast %46 : vector<1x128x128xbf16> to vector<128x128xbf16>
    %48 = vector.extract_strided_slice %10 {offsets = [0, 96], sizes = [128, 16], strides = [1, 1]} : vector<128x144xf32> to vector<128x16xf32>
    %49 = arith.truncf %48 : vector<128x16xf32> to vector<128x16xbf16>
    %cst_30 = arith.constant dense<0.000000e+00> : vector<128x16xf32>
    %50 = tpu.matmul %47, %49, %cst_30 {dimension_numbers = #tpu.dot_dimension_numbers<[1], [0], [0], [1], [0, 0, 1, 1], [], []>} : vector<128x128xbf16>, vector<128x16xbf16>, vector<128x16xf32> -> vector<128x16xf32>
    %51 = arith.addf %45, %50 : vector<128x16xf32>
    %c7 = arith.constant 7 : index
    %c0_31 = arith.constant 0 : index
    %c0_32 = arith.constant 0 : index
    %52 = vector.load %arg4[%c7, %c0_31, %c0_32] : memref<9x128x128xbf16, #tpu.memory_space<vmem>>, vector<1x128x128xbf16>
    %53 = vector.shape_cast %52 : vector<1x128x128xbf16> to vector<128x128xbf16>
    %54 = vector.extract_strided_slice %10 {offsets = [0, 112], sizes = [128, 16], strides = [1, 1]} : vector<128x144xf32> to vector<128x16xf32>
    %55 = arith.truncf %54 : vector<128x16xf32> to vector<128x16xbf16>
    %cst_33 = arith.constant dense<0.000000e+00> : vector<128x16xf32>
    %56 = tpu.matmul %53, %55, %cst_33 {dimension_numbers = #tpu.dot_dimension_numbers<[1], [0], [0], [1], [0, 0, 1, 1], [], []>} : vector<128x128xbf16>, vector<128x16xbf16>, vector<128x16xf32> -> vector<128x16xf32>
    %57 = arith.addf %51, %56 : vector<128x16xf32>
    %c8 = arith.constant 8 : index
    %c0_34 = arith.constant 0 : index
    %c0_35 = arith.constant 0 : index
    %58 = vector.load %arg4[%c8, %c0_34, %c0_35] : memref<9x128x128xbf16, #tpu.memory_space<vmem>>, vector<1x128x128xbf16>
    %59 = vector.shape_cast %58 : vector<1x128x128xbf16> to vector<128x128xbf16>
    %60 = vector.extract_strided_slice %10 {offsets = [0, 128], sizes = [128, 16], strides = [1, 1]} : vector<128x144xf32> to vector<128x16xf32>
    %61 = arith.truncf %60 : vector<128x16xf32> to vector<128x16xbf16>
    %cst_36 = arith.constant dense<0.000000e+00> : vector<128x16xf32>
    %62 = tpu.matmul %59, %61, %cst_36 {dimension_numbers = #tpu.dot_dimension_numbers<[1], [0], [0], [1], [0, 0, 1, 1], [], []>} : vector<128x128xbf16>, vector<128x16xbf16>, vector<128x16xf32> -> vector<128x16xf32>
    %63 = arith.addf %57, %62 : vector<128x16xf32>
    %c0_37 = arith.constant 0 : index
    %c0_38 = arith.constant 0 : index
    %64 = vector.load %arg12[%c0_37, %c0_38] : memref<1x16xf32, #tpu.memory_space<vmem>>, vector<1x16xf32>
    %65 = vector.broadcast %64 : vector<1x16xf32> to vector<128x16xf32>
    %66 = arith.addf %63, %65 : vector<128x16xf32>
    %67 = vector.extract_strided_slice %66 {offsets = [0, 0], sizes = [128, 4], strides = [1, 1]} : vector<128x16xf32> to vector<128x4xf32>
    %68 = arith.negf %67 : vector<128x4xf32>
    %69 = math.exp %68 : vector<128x4xf32>
    %cst_39 = arith.constant 1.000000e+00 : f32
    %70 = vector.broadcast %cst_39 : f32 to vector<128x4xf32>
    %71 = arith.addf %70, %69 : vector<128x4xf32>
    %72 = arith.divf %70, %71 : vector<128x4xf32>
    %73 = vector.extract_strided_slice %66 {offsets = [0, 4], sizes = [128, 4], strides = [1, 1]} : vector<128x16xf32> to vector<128x4xf32>
    %74 = arith.negf %73 : vector<128x4xf32>
    %75 = math.exp %74 : vector<128x4xf32>
    %cst_40 = arith.constant 1.000000e+00 : f32
    %76 = vector.broadcast %cst_40 : f32 to vector<128x4xf32>
    %77 = arith.addf %76, %75 : vector<128x4xf32>
    %78 = arith.divf %76, %77 : vector<128x4xf32>
    %79 = vector.extract_strided_slice %66 {offsets = [0, 8], sizes = [128, 4], strides = [1, 1]} : vector<128x16xf32> to vector<128x4xf32>
    %80 = arith.negf %79 : vector<128x4xf32>
    %81 = math.exp %80 : vector<128x4xf32>
    %cst_41 = arith.constant 1.000000e+00 : f32
    %82 = vector.broadcast %cst_41 : f32 to vector<128x4xf32>
    %83 = arith.addf %82, %81 : vector<128x4xf32>
    %84 = arith.divf %82, %83 : vector<128x4xf32>
    %85 = vector.extract_strided_slice %66 {offsets = [0, 12], sizes = [128, 4], strides = [1, 1]} : vector<128x16xf32> to vector<128x4xf32>
    %86 = math.tanh %85 : vector<128x4xf32>
    %87 = arith.mulf %78, %1 : vector<128x4xf32>
    %88 = arith.mulf %72, %86 : vector<128x4xf32>
    %89 = arith.addf %87, %88 : vector<128x4xf32>
    %90 = math.tanh %89 : vector<128x4xf32>
    %91 = arith.mulf %84, %90 : vector<128x4xf32>
    %c1_42 = arith.constant 1 : index
    %c0_43 = arith.constant 0 : index
    %c0_44 = arith.constant 0 : index
    %92 = vector.load %arg0[%c1_42, %c0_43, %c0_44] : memref<2x128x4xf32, #tpu.memory_space<vmem>>, vector<1x128x4xf32>
    %93 = vector.shape_cast %92 : vector<1x128x4xf32> to vector<128x4xf32>
    %c0_45 = arith.constant 0 : index
    %c0_46 = arith.constant 0 : index
    %94 = vector.load %arg10[%c0_45, %c0_46] : memref<4x144xbf16, #tpu.memory_space<vmem>>, vector<4x144xbf16>
    %95 = arith.truncf %93 : vector<128x4xf32> to vector<128x4xbf16>
    %cst_47 = arith.constant dense<0.000000e+00> : vector<128x144xf32>
    %96 = tpu.matmul %95, %94, %cst_47 {dimension_numbers = #tpu.dot_dimension_numbers<[1], [0], [0], [1], [0, 0, 1, 1], [], []>} : vector<128x4xbf16>, vector<4x144xbf16>, vector<128x144xf32> -> vector<128x144xf32>
    %c0_48 = arith.constant 0 : index
    %c0_49 = arith.constant 0 : index
    %97 = vector.load %arg11[%c0_48, %c0_49] : memref<4x144xbf16, #tpu.memory_space<vmem>>, vector<4x144xbf16>
    %98 = arith.truncf %91 : vector<128x4xf32> to vector<128x4xbf16>
    %cst_50 = arith.constant dense<0.000000e+00> : vector<128x144xf32>
    %99 = tpu.matmul %98, %97, %cst_50 {dimension_numbers = #tpu.dot_dimension_numbers<[1], [0], [0], [1], [0, 0, 1, 1], [], []>} : vector<128x4xbf16>, vector<4x144xbf16>, vector<128x144xf32> -> vector<128x144xf32>
    %100 = arith.addf %96, %99 : vector<128x144xf32>
    %c0_51 = arith.constant 0 : index
    %c0_52 = arith.constant 0 : index
    %c0_53 = arith.constant 0 : index
    %101 = vector.load %arg4[%c0_51, %c0_52, %c0_53] : memref<9x128x128xbf16, #tpu.memory_space<vmem>>, vector<1x128x128xbf16>
    %102 = vector.shape_cast %101 : vector<1x128x128xbf16> to vector<128x128xbf16>
    %103 = vector.extract_strided_slice %100 {offsets = [0, 0], sizes = [128, 16], strides = [1, 1]} : vector<128x144xf32> to vector<128x16xf32>
    %104 = arith.truncf %103 : vector<128x16xf32> to vector<128x16xbf16>
    %cst_54 = arith.constant dense<0.000000e+00> : vector<128x16xf32>
    %105 = tpu.matmul %102, %104, %cst_54 {dimension_numbers = #tpu.dot_dimension_numbers<[1], [0], [0], [1], [0, 0, 1, 1], [], []>} : vector<128x128xbf16>, vector<128x16xbf16>, vector<128x16xf32> -> vector<128x16xf32>
    %c1_55 = arith.constant 1 : index
    %c0_56 = arith.constant 0 : index
    %c0_57 = arith.constant 0 : index
    %106 = vector.load %arg4[%c1_55, %c0_56, %c0_57] : memref<9x128x128xbf16, #tpu.memory_space<vmem>>, vector<1x128x128xbf16>
    %107 = vector.shape_cast %106 : vector<1x128x128xbf16> to vector<128x128xbf16>
    %108 = vector.extract_strided_slice %100 {offsets = [0, 16], sizes = [128, 16], strides = [1, 1]} : vector<128x144xf32> to vector<128x16xf32>
    %109 = arith.truncf %108 : vector<128x16xf32> to vector<128x16xbf16>
    %cst_58 = arith.constant dense<0.000000e+00> : vector<128x16xf32>
    %110 = tpu.matmul %107, %109, %cst_58 {dimension_numbers = #tpu.dot_dimension_numbers<[1], [0], [0], [1], [0, 0, 1, 1], [], []>} : vector<128x128xbf16>, vector<128x16xbf16>, vector<128x16xf32> -> vector<128x16xf32>
    %111 = arith.addf %105, %110 : vector<128x16xf32>
    %c2_59 = arith.constant 2 : index
    %c0_60 = arith.constant 0 : index
    %c0_61 = arith.constant 0 : index
    %112 = vector.load %arg4[%c2_59, %c0_60, %c0_61] : memref<9x128x128xbf16, #tpu.memory_space<vmem>>, vector<1x128x128xbf16>
    %113 = vector.shape_cast %112 : vector<1x128x128xbf16> to vector<128x128xbf16>
    %114 = vector.extract_strided_slice %100 {offsets = [0, 32], sizes = [128, 16], strides = [1, 1]} : vector<128x144xf32> to vector<128x16xf32>
    %115 = arith.truncf %114 : vector<128x16xf32> to vector<128x16xbf16>
    %cst_62 = arith.constant dense<0.000000e+00> : vector<128x16xf32>
    %116 = tpu.matmul %113, %115, %cst_62 {dimension_numbers = #tpu.dot_dimension_numbers<[1], [0], [0], [1], [0, 0, 1, 1], [], []>} : vector<128x128xbf16>, vector<128x16xbf16>, vector<128x16xf32> -> vector<128x16xf32>
    %117 = arith.addf %111, %116 : vector<128x16xf32>
    %c3_63 = arith.constant 3 : index
    %c0_64 = arith.constant 0 : index
    %c0_65 = arith.constant 0 : index
    %118 = vector.load %arg4[%c3_63, %c0_64, %c0_65] : memref<9x128x128xbf16, #tpu.memory_space<vmem>>, vector<1x128x128xbf16>
    %119 = vector.shape_cast %118 : vector<1x128x128xbf16> to vector<128x128xbf16>
    %120 = vector.extract_strided_slice %100 {offsets = [0, 48], sizes = [128, 16], strides = [1, 1]} : vector<128x144xf32> to vector<128x16xf32>
    %121 = arith.truncf %120 : vector<128x16xf32> to vector<128x16xbf16>
    %cst_66 = arith.constant dense<0.000000e+00> : vector<128x16xf32>
    %122 = tpu.matmul %119, %121, %cst_66 {dimension_numbers = #tpu.dot_dimension_numbers<[1], [0], [0], [1], [0, 0, 1, 1], [], []>} : vector<128x128xbf16>, vector<128x16xbf16>, vector<128x16xf32> -> vector<128x16xf32>
    %123 = arith.addf %117, %122 : vector<128x16xf32>
    %c4_67 = arith.constant 4 : index
    %c0_68 = arith.constant 0 : index
    %c0_69 = arith.constant 0 : index
    %124 = vector.load %arg4[%c4_67, %c0_68, %c0_69] : memref<9x128x128xbf16, #tpu.memory_space<vmem>>, vector<1x128x128xbf16>
    %125 = vector.shape_cast %124 : vector<1x128x128xbf16> to vector<128x128xbf16>
    %126 = vector.extract_strided_slice %100 {offsets = [0, 64], sizes = [128, 16], strides = [1, 1]} : vector<128x144xf32> to vector<128x16xf32>
    %127 = arith.truncf %126 : vector<128x16xf32> to vector<128x16xbf16>
    %cst_70 = arith.constant dense<0.000000e+00> : vector<128x16xf32>
    %128 = tpu.matmul %125, %127, %cst_70 {dimension_numbers = #tpu.dot_dimension_numbers<[1], [0], [0], [1], [0, 0, 1, 1], [], []>} : vector<128x128xbf16>, vector<128x16xbf16>, vector<128x16xf32> -> vector<128x16xf32>
    %129 = arith.addf %123, %128 : vector<128x16xf32>
    %c5_71 = arith.constant 5 : index
    %c0_72 = arith.constant 0 : index
    %c0_73 = arith.constant 0 : index
    %130 = vector.load %arg4[%c5_71, %c0_72, %c0_73] : memref<9x128x128xbf16, #tpu.memory_space<vmem>>, vector<1x128x128xbf16>
    %131 = vector.shape_cast %130 : vector<1x128x128xbf16> to vector<128x128xbf16>
    %132 = vector.extract_strided_slice %100 {offsets = [0, 80], sizes = [128, 16], strides = [1, 1]} : vector<128x144xf32> to vector<128x16xf32>
    %133 = arith.truncf %132 : vector<128x16xf32> to vector<128x16xbf16>
    %cst_74 = arith.constant dense<0.000000e+00> : vector<128x16xf32>
    %134 = tpu.matmul %131, %133, %cst_74 {dimension_numbers = #tpu.dot_dimension_numbers<[1], [0], [0], [1], [0, 0, 1, 1], [], []>} : vector<128x128xbf16>, vector<128x16xbf16>, vector<128x16xf32> -> vector<128x16xf32>
    %135 = arith.addf %129, %134 : vector<128x16xf32>
    %c6_75 = arith.constant 6 : index
    %c0_76 = arith.constant 0 : index
    %c0_77 = arith.constant 0 : index
    %136 = vector.load %arg4[%c6_75, %c0_76, %c0_77] : memref<9x128x128xbf16, #tpu.memory_space<vmem>>, vector<1x128x128xbf16>
    %137 = vector.shape_cast %136 : vector<1x128x128xbf16> to vector<128x128xbf16>
    %138 = vector.extract_strided_slice %100 {offsets = [0, 96], sizes = [128, 16], strides = [1, 1]} : vector<128x144xf32> to vector<128x16xf32>
    %139 = arith.truncf %138 : vector<128x16xf32> to vector<128x16xbf16>
    %cst_78 = arith.constant dense<0.000000e+00> : vector<128x16xf32>
    %140 = tpu.matmul %137, %139, %cst_78 {dimension_numbers = #tpu.dot_dimension_numbers<[1], [0], [0], [1], [0, 0, 1, 1], [], []>} : vector<128x128xbf16>, vector<128x16xbf16>, vector<128x16xf32> -> vector<128x16xf32>
    %141 = arith.addf %135, %140 : vector<128x16xf32>
    %c7_79 = arith.constant 7 : index
    %c0_80 = arith.constant 0 : index
    %c0_81 = arith.constant 0 : index
    %142 = vector.load %arg4[%c7_79, %c0_80, %c0_81] : memref<9x128x128xbf16, #tpu.memory_space<vmem>>, vector<1x128x128xbf16>
    %143 = vector.shape_cast %142 : vector<1x128x128xbf16> to vector<128x128xbf16>
    %144 = vector.extract_strided_slice %100 {offsets = [0, 112], sizes = [128, 16], strides = [1, 1]} : vector<128x144xf32> to vector<128x16xf32>
    %145 = arith.truncf %144 : vector<128x16xf32> to vector<128x16xbf16>
    %cst_82 = arith.constant dense<0.000000e+00> : vector<128x16xf32>
    %146 = tpu.matmul %143, %145, %cst_82 {dimension_numbers = #tpu.dot_dimension_numbers<[1], [0], [0], [1], [0, 0, 1, 1], [], []>} : vector<128x128xbf16>, vector<128x16xbf16>, vector<128x16xf32> -> vector<128x16xf32>
    %147 = arith.addf %141, %146 : vector<128x16xf32>
    %c8_83 = arith.constant 8 : index
    %c0_84 = arith.constant 0 : index
    %c0_85 = arith.constant 0 : index
    %148 = vector.load %arg4[%c8_83, %c0_84, %c0_85] : memref<9x128x128xbf16, #tpu.memory_space<vmem>>, vector<1x128x128xbf16>
    %149 = vector.shape_cast %148 : vector<1x128x128xbf16> to vector<128x128xbf16>
    %150 = vector.extract_strided_slice %100 {offsets = [0, 128], sizes = [128, 16], strides = [1, 1]} : vector<128x144xf32> to vector<128x16xf32>
    %151 = arith.truncf %150 : vector<128x16xf32> to vector<128x16xbf16>
    %cst_86 = arith.constant dense<0.000000e+00> : vector<128x16xf32>
    %152 = tpu.matmul %149, %151, %cst_86 {dimension_numbers = #tpu.dot_dimension_numbers<[1], [0], [0], [1], [0, 0, 1, 1], [], []>} : vector<128x128xbf16>, vector<128x16xbf16>, vector<128x16xf32> -> vector<128x16xf32>
    %153 = arith.addf %147, %152 : vector<128x16xf32>
    %c0_87 = arith.constant 0 : index
    %c0_88 = arith.constant 0 : index
    %154 = vector.load %arg12[%c0_87, %c0_88] : memref<1x16xf32, #tpu.memory_space<vmem>>, vector<1x16xf32>
    %155 = vector.broadcast %154 : vector<1x16xf32> to vector<128x16xf32>
    %156 = arith.addf %153, %155 : vector<128x16xf32>
    %157 = vector.extract_strided_slice %156 {offsets = [0, 0], sizes = [128, 4], strides = [1, 1]} : vector<128x16xf32> to vector<128x4xf32>
    %158 = arith.negf %157 : vector<128x4xf32>
    %159 = math.exp %158 : vector<128x4xf32>
    %cst_89 = arith.constant 1.000000e+00 : f32
    %160 = vector.broadcast %cst_89 : f32 to vector<128x4xf32>
    %161 = arith.addf %160, %159 : vector<128x4xf32>
    %162 = arith.divf %160, %161 : vector<128x4xf32>
    %163 = vector.extract_strided_slice %156 {offsets = [0, 4], sizes = [128, 4], strides = [1, 1]} : vector<128x16xf32> to vector<128x4xf32>
    %164 = arith.negf %163 : vector<128x4xf32>
    %165 = math.exp %164 : vector<128x4xf32>
    %cst_90 = arith.constant 1.000000e+00 : f32
    %166 = vector.broadcast %cst_90 : f32 to vector<128x4xf32>
    %167 = arith.addf %166, %165 : vector<128x4xf32>
    %168 = arith.divf %166, %167 : vector<128x4xf32>
    %169 = vector.extract_strided_slice %156 {offsets = [0, 8], sizes = [128, 4], strides = [1, 1]} : vector<128x16xf32> to vector<128x4xf32>
    %170 = arith.negf %169 : vector<128x4xf32>
    %171 = math.exp %170 : vector<128x4xf32>
    %cst_91 = arith.constant 1.000000e+00 : f32
    %172 = vector.broadcast %cst_91 : f32 to vector<128x4xf32>
    %173 = arith.addf %172, %171 : vector<128x4xf32>
    %174 = arith.divf %172, %173 : vector<128x4xf32>
    %175 = vector.extract_strided_slice %156 {offsets = [0, 12], sizes = [128, 4], strides = [1, 1]} : vector<128x16xf32> to vector<128x4xf32>
    %176 = math.tanh %175 : vector<128x4xf32>
    %177 = arith.mulf %168, %89 : vector<128x4xf32>
    %178 = arith.mulf %162, %176 : vector<128x4xf32>
    %179 = arith.addf %177, %178 : vector<128x4xf32>
    %180 = math.tanh %179 : vector<128x4xf32>
    %181 = arith.mulf %174, %180 : vector<128x4xf32>
    %c1_92 = arith.constant 1 : index
    %c0_93 = arith.constant 0 : index
    %c0_94 = arith.constant 0 : index
    %182 = vector.load %arg0[%c1_92, %c0_93, %c0_94] : memref<2x128x4xf32, #tpu.memory_space<vmem>>, vector<1x128x4xf32>
    %183 = vector.shape_cast %182 : vector<1x128x4xf32> to vector<128x4xf32>
    %c0_95 = arith.constant 0 : index
    %c0_96 = arith.constant 0 : index
    %184 = vector.load %arg13[%c0_95, %c0_96] : memref<4x16xbf16, #tpu.memory_space<vmem>>, vector<4x16xbf16>
    %185 = arith.truncf %181 : vector<128x4xf32> to vector<128x4xbf16>
    %cst_97 = arith.constant dense<0.000000e+00> : vector<128x16xf32>
    %186 = tpu.matmul %185, %184, %cst_97 {dimension_numbers = #tpu.dot_dimension_numbers<[1], [0], [0], [1], [0, 0, 1, 1], [], []>} : vector<128x4xbf16>, vector<4x16xbf16>, vector<128x16xf32> -> vector<128x16xf32>
    %c0_98 = arith.constant 0 : index
    %c0_99 = arith.constant 0 : index
    %187 = vector.load %arg14[%c0_98, %c0_99] : memref<4x16xbf16, #tpu.memory_space<vmem>>, vector<4x16xbf16>
    %188 = arith.truncf %183 : vector<128x4xf32> to vector<128x4xbf16>
    %cst_100 = arith.constant dense<0.000000e+00> : vector<128x16xf32>
    %189 = tpu.matmul %188, %187, %cst_100 {dimension_numbers = #tpu.dot_dimension_numbers<[1], [0], [0], [1], [0, 0, 1, 1], [], []>} : vector<128x4xbf16>, vector<4x16xbf16>, vector<128x16xf32> -> vector<128x16xf32>
    %190 = arith.addf %186, %189 : vector<128x16xf32>
    %c0_101 = arith.constant 0 : index
    %c0_102 = arith.constant 0 : index
    %191 = vector.load %arg15[%c0_101, %c0_102] : memref<4x144xbf16, #tpu.memory_space<vmem>>, vector<4x144xbf16>
    %192 = arith.truncf %181 : vector<128x4xf32> to vector<128x4xbf16>
    %cst_103 = arith.constant dense<0.000000e+00> : vector<128x144xf32>
    %193 = tpu.matmul %192, %191, %cst_103 {dimension_numbers = #tpu.dot_dimension_numbers<[1], [0], [0], [1], [0, 0, 1, 1], [], []>} : vector<128x4xbf16>, vector<4x144xbf16>, vector<128x144xf32> -> vector<128x144xf32>
    %c0_104 = arith.constant 0 : index
    %c0_105 = arith.constant 0 : index
    %194 = vector.load %arg16[%c0_104, %c0_105] : memref<4x144xbf16, #tpu.memory_space<vmem>>, vector<4x144xbf16>
    %195 = arith.truncf %183 : vector<128x4xf32> to vector<128x4xbf16>
    %cst_106 = arith.constant dense<0.000000e+00> : vector<128x144xf32>
    %196 = tpu.matmul %195, %194, %cst_106 {dimension_numbers = #tpu.dot_dimension_numbers<[1], [0], [0], [1], [0, 0, 1, 1], [], []>} : vector<128x4xbf16>, vector<4x144xbf16>, vector<128x144xf32> -> vector<128x144xf32>
    %197 = arith.addf %193, %196 : vector<128x144xf32>
    %c0_107 = arith.constant 0 : index
    %c0_108 = arith.constant 0 : index
    %c0_109 = arith.constant 0 : index
    %198 = vector.load %arg4[%c0_107, %c0_108, %c0_109] : memref<9x128x128xbf16, #tpu.memory_space<vmem>>, vector<1x128x128xbf16>
    %199 = vector.shape_cast %198 : vector<1x128x128xbf16> to vector<128x128xbf16>
    %200 = vector.extract_strided_slice %197 {offsets = [0, 0], sizes = [128, 16], strides = [1, 1]} : vector<128x144xf32> to vector<128x16xf32>
    %201 = arith.truncf %200 : vector<128x16xf32> to vector<128x16xbf16>
    %cst_110 = arith.constant dense<0.000000e+00> : vector<128x16xf32>
    %202 = tpu.matmul %199, %201, %cst_110 {dimension_numbers = #tpu.dot_dimension_numbers<[1], [0], [0], [1], [0, 0, 1, 1], [], []>} : vector<128x128xbf16>, vector<128x16xbf16>, vector<128x16xf32> -> vector<128x16xf32>
    %c1_111 = arith.constant 1 : index
    %c0_112 = arith.constant 0 : index
    %c0_113 = arith.constant 0 : index
    %203 = vector.load %arg4[%c1_111, %c0_112, %c0_113] : memref<9x128x128xbf16, #tpu.memory_space<vmem>>, vector<1x128x128xbf16>
    %204 = vector.shape_cast %203 : vector<1x128x128xbf16> to vector<128x128xbf16>
    %205 = vector.extract_strided_slice %197 {offsets = [0, 16], sizes = [128, 16], strides = [1, 1]} : vector<128x144xf32> to vector<128x16xf32>
    %206 = arith.truncf %205 : vector<128x16xf32> to vector<128x16xbf16>
    %cst_114 = arith.constant dense<0.000000e+00> : vector<128x16xf32>
    %207 = tpu.matmul %204, %206, %cst_114 {dimension_numbers = #tpu.dot_dimension_numbers<[1], [0], [0], [1], [0, 0, 1, 1], [], []>} : vector<128x128xbf16>, vector<128x16xbf16>, vector<128x16xf32> -> vector<128x16xf32>
    %208 = arith.addf %202, %207 : vector<128x16xf32>
    %c2_115 = arith.constant 2 : index
    %c0_116 = arith.constant 0 : index
    %c0_117 = arith.constant 0 : index
    %209 = vector.load %arg4[%c2_115, %c0_116, %c0_117] : memref<9x128x128xbf16, #tpu.memory_space<vmem>>, vector<1x128x128xbf16>
    %210 = vector.shape_cast %209 : vector<1x128x128xbf16> to vector<128x128xbf16>
    %211 = vector.extract_strided_slice %197 {offsets = [0, 32], sizes = [128, 16], strides = [1, 1]} : vector<128x144xf32> to vector<128x16xf32>
    %212 = arith.truncf %211 : vector<128x16xf32> to vector<128x16xbf16>
    %cst_118 = arith.constant dense<0.000000e+00> : vector<128x16xf32>
    %213 = tpu.matmul %210, %212, %cst_118 {dimension_numbers = #tpu.dot_dimension_numbers<[1], [0], [0], [1], [0, 0, 1, 1], [], []>} : vector<128x128xbf16>, vector<128x16xbf16>, vector<128x16xf32> -> vector<128x16xf32>
    %214 = arith.addf %208, %213 : vector<128x16xf32>
    %c3_119 = arith.constant 3 : index
    %c0_120 = arith.constant 0 : index
    %c0_121 = arith.constant 0 : index
    %215 = vector.load %arg4[%c3_119, %c0_120, %c0_121] : memref<9x128x128xbf16, #tpu.memory_space<vmem>>, vector<1x128x128xbf16>
    %216 = vector.shape_cast %215 : vector<1x128x128xbf16> to vector<128x128xbf16>
    %217 = vector.extract_strided_slice %197 {offsets = [0, 48], sizes = [128, 16], strides = [1, 1]} : vector<128x144xf32> to vector<128x16xf32>
    %218 = arith.truncf %217 : vector<128x16xf32> to vector<128x16xbf16>
    %cst_122 = arith.constant dense<0.000000e+00> : vector<128x16xf32>
    %219 = tpu.matmul %216, %218, %cst_122 {dimension_numbers = #tpu.dot_dimension_numbers<[1], [0], [0], [1], [0, 0, 1, 1], [], []>} : vector<128x128xbf16>, vector<128x16xbf16>, vector<128x16xf32> -> vector<128x16xf32>
    %220 = arith.addf %214, %219 : vector<128x16xf32>
    %c4_123 = arith.constant 4 : index
    %c0_124 = arith.constant 0 : index
    %c0_125 = arith.constant 0 : index
    %221 = vector.load %arg4[%c4_123, %c0_124, %c0_125] : memref<9x128x128xbf16, #tpu.memory_space<vmem>>, vector<1x128x128xbf16>
    %222 = vector.shape_cast %221 : vector<1x128x128xbf16> to vector<128x128xbf16>
    %223 = vector.extract_strided_slice %197 {offsets = [0, 64], sizes = [128, 16], strides = [1, 1]} : vector<128x144xf32> to vector<128x16xf32>
    %224 = arith.truncf %223 : vector<128x16xf32> to vector<128x16xbf16>
    %cst_126 = arith.constant dense<0.000000e+00> : vector<128x16xf32>
    %225 = tpu.matmul %222, %224, %cst_126 {dimension_numbers = #tpu.dot_dimension_numbers<[1], [0], [0], [1], [0, 0, 1, 1], [], []>} : vector<128x128xbf16>, vector<128x16xbf16>, vector<128x16xf32> -> vector<128x16xf32>
    %226 = arith.addf %220, %225 : vector<128x16xf32>
    %c5_127 = arith.constant 5 : index
    %c0_128 = arith.constant 0 : index
    %c0_129 = arith.constant 0 : index
    %227 = vector.load %arg4[%c5_127, %c0_128, %c0_129] : memref<9x128x128xbf16, #tpu.memory_space<vmem>>, vector<1x128x128xbf16>
    %228 = vector.shape_cast %227 : vector<1x128x128xbf16> to vector<128x128xbf16>
    %229 = vector.extract_strided_slice %197 {offsets = [0, 80], sizes = [128, 16], strides = [1, 1]} : vector<128x144xf32> to vector<128x16xf32>
    %230 = arith.truncf %229 : vector<128x16xf32> to vector<128x16xbf16>
    %cst_130 = arith.constant dense<0.000000e+00> : vector<128x16xf32>
    %231 = tpu.matmul %228, %230, %cst_130 {dimension_numbers = #tpu.dot_dimension_numbers<[1], [0], [0], [1], [0, 0, 1, 1], [], []>} : vector<128x128xbf16>, vector<128x16xbf16>, vector<128x16xf32> -> vector<128x16xf32>
    %232 = arith.addf %226, %231 : vector<128x16xf32>
    %c6_131 = arith.constant 6 : index
    %c0_132 = arith.constant 0 : index
    %c0_133 = arith.constant 0 : index
    %233 = vector.load %arg4[%c6_131, %c0_132, %c0_133] : memref<9x128x128xbf16, #tpu.memory_space<vmem>>, vector<1x128x128xbf16>
    %234 = vector.shape_cast %233 : vector<1x128x128xbf16> to vector<128x128xbf16>
    %235 = vector.extract_strided_slice %197 {offsets = [0, 96], sizes = [128, 16], strides = [1, 1]} : vector<128x144xf32> to vector<128x16xf32>
    %236 = arith.truncf %235 : vector<128x16xf32> to vector<128x16xbf16>
    %cst_134 = arith.constant dense<0.000000e+00> : vector<128x16xf32>
    %237 = tpu.matmul %234, %236, %cst_134 {dimension_numbers = #tpu.dot_dimension_numbers<[1], [0], [0], [1], [0, 0, 1, 1], [], []>} : vector<128x128xbf16>, vector<128x16xbf16>, vector<128x16xf32> -> vector<128x16xf32>
    %238 = arith.addf %232, %237 : vector<128x16xf32>
    %c7_135 = arith.constant 7 : index
    %c0_136 = arith.constant 0 : index
    %c0_137 = arith.constant 0 : index
    %239 = vector.load %arg4[%c7_135, %c0_136, %c0_137] : memref<9x128x128xbf16, #tpu.memory_space<vmem>>, vector<1x128x128xbf16>
    %240 = vector.shape_cast %239 : vector<1x128x128xbf16> to vector<128x128xbf16>
    %241 = vector.extract_strided_slice %197 {offsets = [0, 112], sizes = [128, 16], strides = [1, 1]} : vector<128x144xf32> to vector<128x16xf32>
    %242 = arith.truncf %241 : vector<128x16xf32> to vector<128x16xbf16>
    %cst_138 = arith.constant dense<0.000000e+00> : vector<128x16xf32>
    %243 = tpu.matmul %240, %242, %cst_138 {dimension_numbers = #tpu.dot_dimension_numbers<[1], [0], [0], [1], [0, 0, 1, 1], [], []>} : vector<128x128xbf16>, vector<128x16xbf16>, vector<128x16xf32> -> vector<128x16xf32>
    %244 = arith.addf %238, %243 : vector<128x16xf32>
    %c8_139 = arith.constant 8 : index
    %c0_140 = arith.constant 0 : index
    %c0_141 = arith.constant 0 : index
    %245 = vector.load %arg4[%c8_139, %c0_140, %c0_141] : memref<9x128x128xbf16, #tpu.memory_space<vmem>>, vector<1x128x128xbf16>
    %246 = vector.shape_cast %245 : vector<1x128x128xbf16> to vector<128x128xbf16>
    %247 = vector.extract_strided_slice %197 {offsets = [0, 128], sizes = [128, 16], strides = [1, 1]} : vector<128x144xf32> to vector<128x16xf32>
    %248 = arith.truncf %247 : vector<128x16xf32> to vector<128x16xbf16>
    %cst_142 = arith.constant dense<0.000000e+00> : vector<128x16xf32>
    %249 = tpu.matmul %246, %248, %cst_142 {dimension_numbers = #tpu.dot_dimension_numbers<[1], [0], [0], [1], [0, 0, 1, 1], [], []>} : vector<128x128xbf16>, vector<128x16xbf16>, vector<128x16xf32> -> vector<128x16xf32>
    %250 = arith.addf %244, %249 : vector<128x16xf32>
    %cst_143 = arith.constant 0.000000e+00 : f32
    %251 = vector.broadcast %cst_143 : f32 to vector<128x16xf32>
    %252 = arith.maximumf %250, %251 : vector<128x16xf32>
    %c0_144 = arith.constant 0 : index
    %c0_145 = arith.constant 0 : index
    %253 = vector.load %arg17[%c0_144, %c0_145] : memref<16x144xbf16, #tpu.memory_space<vmem>>, vector<16x144xbf16>
    %254 = arith.truncf %252 : vector<128x16xf32> to vector<128x16xbf16>
    %cst_146 = arith.constant dense<0.000000e+00> : vector<128x144xf32>
    %255 = tpu.matmul %254, %253, %cst_146 {dimension_numbers = #tpu.dot_dimension_numbers<[1], [0], [0], [1], [0, 0, 1, 1], [], []>} : vector<128x16xbf16>, vector<16x144xbf16>, vector<128x144xf32> -> vector<128x144xf32>
    %c0_147 = arith.constant 0 : index
    %c0_148 = arith.constant 0 : index
    %c0_149 = arith.constant 0 : index
    %256 = vector.load %arg4[%c0_147, %c0_148, %c0_149] : memref<9x128x128xbf16, #tpu.memory_space<vmem>>, vector<1x128x128xbf16>
    %257 = vector.shape_cast %256 : vector<1x128x128xbf16> to vector<128x128xbf16>
    %258 = vector.extract_strided_slice %255 {offsets = [0, 0], sizes = [128, 16], strides = [1, 1]} : vector<128x144xf32> to vector<128x16xf32>
    %259 = arith.truncf %258 : vector<128x16xf32> to vector<128x16xbf16>
    %cst_150 = arith.constant dense<0.000000e+00> : vector<128x16xf32>
    %260 = tpu.matmul %257, %259, %cst_150 {dimension_numbers = #tpu.dot_dimension_numbers<[1], [0], [0], [1], [0, 0, 1, 1], [], []>} : vector<128x128xbf16>, vector<128x16xbf16>, vector<128x16xf32> -> vector<128x16xf32>
    %c1_151 = arith.constant 1 : index
    %c0_152 = arith.constant 0 : index
    %c0_153 = arith.constant 0 : index
    %261 = vector.load %arg4[%c1_151, %c0_152, %c0_153] : memref<9x128x128xbf16, #tpu.memory_space<vmem>>, vector<1x128x128xbf16>
    %262 = vector.shape_cast %261 : vector<1x128x128xbf16> to vector<128x128xbf16>
    %263 = vector.extract_strided_slice %255 {offsets = [0, 16], sizes = [128, 16], strides = [1, 1]} : vector<128x144xf32> to vector<128x16xf32>
    %264 = arith.truncf %263 : vector<128x16xf32> to vector<128x16xbf16>
    %cst_154 = arith.constant dense<0.000000e+00> : vector<128x16xf32>
    %265 = tpu.matmul %262, %264, %cst_154 {dimension_numbers = #tpu.dot_dimension_numbers<[1], [0], [0], [1], [0, 0, 1, 1], [], []>} : vector<128x128xbf16>, vector<128x16xbf16>, vector<128x16xf32> -> vector<128x16xf32>
    %266 = arith.addf %260, %265 : vector<128x16xf32>
    %c2_155 = arith.constant 2 : index
    %c0_156 = arith.constant 0 : index
    %c0_157 = arith.constant 0 : index
    %267 = vector.load %arg4[%c2_155, %c0_156, %c0_157] : memref<9x128x128xbf16, #tpu.memory_space<vmem>>, vector<1x128x128xbf16>
    %268 = vector.shape_cast %267 : vector<1x128x128xbf16> to vector<128x128xbf16>
    %269 = vector.extract_strided_slice %255 {offsets = [0, 32], sizes = [128, 16], strides = [1, 1]} : vector<128x144xf32> to vector<128x16xf32>
    %270 = arith.truncf %269 : vector<128x16xf32> to vector<128x16xbf16>
    %cst_158 = arith.constant dense<0.000000e+00> : vector<128x16xf32>
    %271 = tpu.matmul %268, %270, %cst_158 {dimension_numbers = #tpu.dot_dimension_numbers<[1], [0], [0], [1], [0, 0, 1, 1], [], []>} : vector<128x128xbf16>, vector<128x16xbf16>, vector<128x16xf32> -> vector<128x16xf32>
    %272 = arith.addf %266, %271 : vector<128x16xf32>
    %c3_159 = arith.constant 3 : index
    %c0_160 = arith.constant 0 : index
    %c0_161 = arith.constant 0 : index
    %273 = vector.load %arg4[%c3_159, %c0_160, %c0_161] : memref<9x128x128xbf16, #tpu.memory_space<vmem>>, vector<1x128x128xbf16>
    %274 = vector.shape_cast %273 : vector<1x128x128xbf16> to vector<128x128xbf16>
    %275 = vector.extract_strided_slice %255 {offsets = [0, 48], sizes = [128, 16], strides = [1, 1]} : vector<128x144xf32> to vector<128x16xf32>
    %276 = arith.truncf %275 : vector<128x16xf32> to vector<128x16xbf16>
    %cst_162 = arith.constant dense<0.000000e+00> : vector<128x16xf32>
    %277 = tpu.matmul %274, %276, %cst_162 {dimension_numbers = #tpu.dot_dimension_numbers<[1], [0], [0], [1], [0, 0, 1, 1], [], []>} : vector<128x128xbf16>, vector<128x16xbf16>, vector<128x16xf32> -> vector<128x16xf32>
    %278 = arith.addf %272, %277 : vector<128x16xf32>
    %c4_163 = arith.constant 4 : index
    %c0_164 = arith.constant 0 : index
    %c0_165 = arith.constant 0 : index
    %279 = vector.load %arg4[%c4_163, %c0_164, %c0_165] : memref<9x128x128xbf16, #tpu.memory_space<vmem>>, vector<1x128x128xbf16>
    %280 = vector.shape_cast %279 : vector<1x128x128xbf16> to vector<128x128xbf16>
    %281 = vector.extract_strided_slice %255 {offsets = [0, 64], sizes = [128, 16], strides = [1, 1]} : vector<128x144xf32> to vector<128x16xf32>
    %282 = arith.truncf %281 : vector<128x16xf32> to vector<128x16xbf16>
    %cst_166 = arith.constant dense<0.000000e+00> : vector<128x16xf32>
    %283 = tpu.matmul %280, %282, %cst_166 {dimension_numbers = #tpu.dot_dimension_numbers<[1], [0], [0], [1], [0, 0, 1, 1], [], []>} : vector<128x128xbf16>, vector<128x16xbf16>, vector<128x16xf32> -> vector<128x16xf32>
    %284 = arith.addf %278, %283 : vector<128x16xf32>
    %c5_167 = arith.constant 5 : index
    %c0_168 = arith.constant 0 : index
    %c0_169 = arith.constant 0 : index
    %285 = vector.load %arg4[%c5_167, %c0_168, %c0_169] : memref<9x128x128xbf16, #tpu.memory_space<vmem>>, vector<1x128x128xbf16>
    %286 = vector.shape_cast %285 : vector<1x128x128xbf16> to vector<128x128xbf16>
    %287 = vector.extract_strided_slice %255 {offsets = [0, 80], sizes = [128, 16], strides = [1, 1]} : vector<128x144xf32> to vector<128x16xf32>
    %288 = arith.truncf %287 : vector<128x16xf32> to vector<128x16xbf16>
    %cst_170 = arith.constant dense<0.000000e+00> : vector<128x16xf32>
    %289 = tpu.matmul %286, %288, %cst_170 {dimension_numbers = #tpu.dot_dimension_numbers<[1], [0], [0], [1], [0, 0, 1, 1], [], []>} : vector<128x128xbf16>, vector<128x16xbf16>, vector<128x16xf32> -> vector<128x16xf32>
    %290 = arith.addf %284, %289 : vector<128x16xf32>
    %c6_171 = arith.constant 6 : index
    %c0_172 = arith.constant 0 : index
    %c0_173 = arith.constant 0 : index
    %291 = vector.load %arg4[%c6_171, %c0_172, %c0_173] : memref<9x128x128xbf16, #tpu.memory_space<vmem>>, vector<1x128x128xbf16>
    %292 = vector.shape_cast %291 : vector<1x128x128xbf16> to vector<128x128xbf16>
    %293 = vector.extract_strided_slice %255 {offsets = [0, 96], sizes = [128, 16], strides = [1, 1]} : vector<128x144xf32> to vector<128x16xf32>
    %294 = arith.truncf %293 : vector<128x16xf32> to vector<128x16xbf16>
    %cst_174 = arith.constant dense<0.000000e+00> : vector<128x16xf32>
    %295 = tpu.matmul %292, %294, %cst_174 {dimension_numbers = #tpu.dot_dimension_numbers<[1], [0], [0], [1], [0, 0, 1, 1], [], []>} : vector<128x128xbf16>, vector<128x16xbf16>, vector<128x16xf32> -> vector<128x16xf32>
    %296 = arith.addf %290, %295 : vector<128x16xf32>
    %c7_175 = arith.constant 7 : index
    %c0_176 = arith.constant 0 : index
    %c0_177 = arith.constant 0 : index
    %297 = vector.load %arg4[%c7_175, %c0_176, %c0_177] : memref<9x128x128xbf16, #tpu.memory_space<vmem>>, vector<1x128x128xbf16>
    %298 = vector.shape_cast %297 : vector<1x128x128xbf16> to vector<128x128xbf16>
    %299 = vector.extract_strided_slice %255 {offsets = [0, 112], sizes = [128, 16], strides = [1, 1]} : vector<128x144xf32> to vector<128x16xf32>
    %300 = arith.truncf %299 : vector<128x16xf32> to vector<128x16xbf16>
    %cst_178 = arith.constant dense<0.000000e+00> : vector<128x16xf32>
    %301 = tpu.matmul %298, %300, %cst_178 {dimension_numbers = #tpu.dot_dimension_numbers<[1], [0], [0], [1], [0, 0, 1, 1], [], []>} : vector<128x128xbf16>, vector<128x16xbf16>, vector<128x16xf32> -> vector<128x16xf32>
    %302 = arith.addf %296, %301 : vector<128x16xf32>
    %c8_179 = arith.constant 8 : index
    %c0_180 = arith.constant 0 : index
    %c0_181 = arith.constant 0 : index
    %303 = vector.load %arg4[%c8_179, %c0_180, %c0_181] : memref<9x128x128xbf16, #tpu.memory_space<vmem>>, vector<1x128x128xbf16>
    %304 = vector.shape_cast %303 : vector<1x128x128xbf16> to vector<128x128xbf16>
    %305 = vector.extract_strided_slice %255 {offsets = [0, 128], sizes = [128, 16], strides = [1, 1]} : vector<128x144xf32> to vector<128x16xf32>
    %306 = arith.truncf %305 : vector<128x16xf32> to vector<128x16xbf16>
    %cst_182 = arith.constant dense<0.000000e+00> : vector<128x16xf32>
    %307 = tpu.matmul %304, %306, %cst_182 {dimension_numbers = #tpu.dot_dimension_numbers<[1], [0], [0], [1], [0, 0, 1, 1], [], []>} : vector<128x128xbf16>, vector<128x16xbf16>, vector<128x16xf32> -> vector<128x16xf32>
    %308 = arith.addf %302, %307 : vector<128x16xf32>
    %309 = arith.addf %308, %190 : vector<128x16xf32>
    %cst_183 = arith.constant 0.000000e+00 : f32
    %310 = vector.broadcast %cst_183 : f32 to vector<128x16xf32>
    %311 = arith.maximumf %309, %310 : vector<128x16xf32>
    %c4_184 = arith.constant 4 : index
    %c0_185 = arith.constant 0 : index
    %c0_186 = arith.constant 0 : index
    %312 = vector.load %arg5[%c4_184, %c0_185, %c0_186] : memref<9x32x128xbf16, #tpu.memory_space<vmem>>, vector<1x32x128xbf16>
    %313 = vector.shape_cast %312 : vector<1x32x128xbf16> to vector<32x128xbf16>
    %c0_187 = arith.constant 0 : index
    %c0_188 = arith.constant 0 : index
    %314 = vector.load %arg18[%c0_187, %c0_188] : memref<16x24xbf16, #tpu.memory_space<vmem>>, vector<16x24xbf16>
    %315 = arith.truncf %311 : vector<128x16xf32> to vector<128x16xbf16>
    %cst_189 = arith.constant dense<0.000000e+00> : vector<128x24xf32>
    %316 = tpu.matmul %315, %314, %cst_189 {dimension_numbers = #tpu.dot_dimension_numbers<[1], [0], [0], [1], [0, 0, 1, 1], [], []>} : vector<128x16xbf16>, vector<16x24xbf16>, vector<128x24xf32> -> vector<128x24xf32>
    %317 = arith.truncf %316 : vector<128x24xf32> to vector<128x24xbf16>
    %cst_190 = arith.constant dense<0.000000e+00> : vector<32x24xf32>
    %318 = tpu.matmul %313, %317, %cst_190 {dimension_numbers = #tpu.dot_dimension_numbers<[1], [0], [0], [1], [0, 0, 1, 1], [], []>} : vector<32x128xbf16>, vector<128x24xbf16>, vector<32x24xf32> -> vector<32x24xf32>
    %c0_191 = arith.constant 0 : index
    %c0_192 = arith.constant 0 : index
    %319 = vector.load %arg19[%c0_191, %c0_192] : memref<16x216xbf16, #tpu.memory_space<vmem>>, vector<16x216xbf16>
    %320 = arith.truncf %311 : vector<128x16xf32> to vector<128x16xbf16>
    %cst_193 = arith.constant dense<0.000000e+00> : vector<128x216xf32>
    %321 = tpu.matmul %320, %319, %cst_193 {dimension_numbers = #tpu.dot_dimension_numbers<[1], [0], [0], [1], [0, 0, 1, 1], [], []>} : vector<128x16xbf16>, vector<16x216xbf16>, vector<128x216xf32> -> vector<128x216xf32>
    %c0_194 = arith.constant 0 : index
    %c0_195 = arith.constant 0 : index
    %c0_196 = arith.constant 0 : index
    %322 = vector.load %arg5[%c0_194, %c0_195, %c0_196] : memref<9x32x128xbf16, #tpu.memory_space<vmem>>, vector<1x32x128xbf16>
    %323 = vector.shape_cast %322 : vector<1x32x128xbf16> to vector<32x128xbf16>
    %324 = vector.extract_strided_slice %321 {offsets = [0, 0], sizes = [128, 24], strides = [1, 1]} : vector<128x216xf32> to vector<128x24xf32>
    %325 = arith.truncf %324 : vector<128x24xf32> to vector<128x24xbf16>
    %cst_197 = arith.constant dense<0.000000e+00> : vector<32x24xf32>
    %326 = tpu.matmul %323, %325, %cst_197 {dimension_numbers = #tpu.dot_dimension_numbers<[1], [0], [0], [1], [0, 0, 1, 1], [], []>} : vector<32x128xbf16>, vector<128x24xbf16>, vector<32x24xf32> -> vector<32x24xf32>
    %c1_198 = arith.constant 1 : index
    %c0_199 = arith.constant 0 : index
    %c0_200 = arith.constant 0 : index
    %327 = vector.load %arg5[%c1_198, %c0_199, %c0_200] : memref<9x32x128xbf16, #tpu.memory_space<vmem>>, vector<1x32x128xbf16>
    %328 = vector.shape_cast %327 : vector<1x32x128xbf16> to vector<32x128xbf16>
    %329 = vector.extract_strided_slice %321 {offsets = [0, 24], sizes = [128, 24], strides = [1, 1]} : vector<128x216xf32> to vector<128x24xf32>
    %330 = arith.truncf %329 : vector<128x24xf32> to vector<128x24xbf16>
    %cst_201 = arith.constant dense<0.000000e+00> : vector<32x24xf32>
    %331 = tpu.matmul %328, %330, %cst_201 {dimension_numbers = #tpu.dot_dimension_numbers<[1], [0], [0], [1], [0, 0, 1, 1], [], []>} : vector<32x128xbf16>, vector<128x24xbf16>, vector<32x24xf32> -> vector<32x24xf32>
    %332 = arith.addf %326, %331 : vector<32x24xf32>
    %c2_202 = arith.constant 2 : index
    %c0_203 = arith.constant 0 : index
    %c0_204 = arith.constant 0 : index
    %333 = vector.load %arg5[%c2_202, %c0_203, %c0_204] : memref<9x32x128xbf16, #tpu.memory_space<vmem>>, vector<1x32x128xbf16>
    %334 = vector.shape_cast %333 : vector<1x32x128xbf16> to vector<32x128xbf16>
    %335 = vector.extract_strided_slice %321 {offsets = [0, 48], sizes = [128, 24], strides = [1, 1]} : vector<128x216xf32> to vector<128x24xf32>
    %336 = arith.truncf %335 : vector<128x24xf32> to vector<128x24xbf16>
    %cst_205 = arith.constant dense<0.000000e+00> : vector<32x24xf32>
    %337 = tpu.matmul %334, %336, %cst_205 {dimension_numbers = #tpu.dot_dimension_numbers<[1], [0], [0], [1], [0, 0, 1, 1], [], []>} : vector<32x128xbf16>, vector<128x24xbf16>, vector<32x24xf32> -> vector<32x24xf32>
    %338 = arith.addf %332, %337 : vector<32x24xf32>
    %c3_206 = arith.constant 3 : index
    %c0_207 = arith.constant 0 : index
    %c0_208 = arith.constant 0 : index
    %339 = vector.load %arg5[%c3_206, %c0_207, %c0_208] : memref<9x32x128xbf16, #tpu.memory_space<vmem>>, vector<1x32x128xbf16>
    %340 = vector.shape_cast %339 : vector<1x32x128xbf16> to vector<32x128xbf16>
    %341 = vector.extract_strided_slice %321 {offsets = [0, 72], sizes = [128, 24], strides = [1, 1]} : vector<128x216xf32> to vector<128x24xf32>
    %342 = arith.truncf %341 : vector<128x24xf32> to vector<128x24xbf16>
    %cst_209 = arith.constant dense<0.000000e+00> : vector<32x24xf32>
    %343 = tpu.matmul %340, %342, %cst_209 {dimension_numbers = #tpu.dot_dimension_numbers<[1], [0], [0], [1], [0, 0, 1, 1], [], []>} : vector<32x128xbf16>, vector<128x24xbf16>, vector<32x24xf32> -> vector<32x24xf32>
    %344 = arith.addf %338, %343 : vector<32x24xf32>
    %c4_210 = arith.constant 4 : index
    %c0_211 = arith.constant 0 : index
    %c0_212 = arith.constant 0 : index
    %345 = vector.load %arg5[%c4_210, %c0_211, %c0_212] : memref<9x32x128xbf16, #tpu.memory_space<vmem>>, vector<1x32x128xbf16>
    %346 = vector.shape_cast %345 : vector<1x32x128xbf16> to vector<32x128xbf16>
    %347 = vector.extract_strided_slice %321 {offsets = [0, 96], sizes = [128, 24], strides = [1, 1]} : vector<128x216xf32> to vector<128x24xf32>
    %348 = arith.truncf %347 : vector<128x24xf32> to vector<128x24xbf16>
    %cst_213 = arith.constant dense<0.000000e+00> : vector<32x24xf32>
    %349 = tpu.matmul %346, %348, %cst_213 {dimension_numbers = #tpu.dot_dimension_numbers<[1], [0], [0], [1], [0, 0, 1, 1], [], []>} : vector<32x128xbf16>, vector<128x24xbf16>, vector<32x24xf32> -> vector<32x24xf32>
    %350 = arith.addf %344, %349 : vector<32x24xf32>
    %c5_214 = arith.constant 5 : index
    %c0_215 = arith.constant 0 : index
    %c0_216 = arith.constant 0 : index
    %351 = vector.load %arg5[%c5_214, %c0_215, %c0_216] : memref<9x32x128xbf16, #tpu.memory_space<vmem>>, vector<1x32x128xbf16>
    %352 = vector.shape_cast %351 : vector<1x32x128xbf16> to vector<32x128xbf16>
    %353 = vector.extract_strided_slice %321 {offsets = [0, 120], sizes = [128, 24], strides = [1, 1]} : vector<128x216xf32> to vector<128x24xf32>
    %354 = arith.truncf %353 : vector<128x24xf32> to vector<128x24xbf16>
    %cst_217 = arith.constant dense<0.000000e+00> : vector<32x24xf32>
    %355 = tpu.matmul %352, %354, %cst_217 {dimension_numbers = #tpu.dot_dimension_numbers<[1], [0], [0], [1], [0, 0, 1, 1], [], []>} : vector<32x128xbf16>, vector<128x24xbf16>, vector<32x24xf32> -> vector<32x24xf32>
    %356 = arith.addf %350, %355 : vector<32x24xf32>
    %c6_218 = arith.constant 6 : index
    %c0_219 = arith.constant 0 : index
    %c0_220 = arith.constant 0 : index
    %357 = vector.load %arg5[%c6_218, %c0_219, %c0_220] : memref<9x32x128xbf16, #tpu.memory_space<vmem>>, vector<1x32x128xbf16>
    %358 = vector.shape_cast %357 : vector<1x32x128xbf16> to vector<32x128xbf16>
    %359 = vector.extract_strided_slice %321 {offsets = [0, 144], sizes = [128, 24], strides = [1, 1]} : vector<128x216xf32> to vector<128x24xf32>
    %360 = arith.truncf %359 : vector<128x24xf32> to vector<128x24xbf16>
    %cst_221 = arith.constant dense<0.000000e+00> : vector<32x24xf32>
    %361 = tpu.matmul %358, %360, %cst_221 {dimension_numbers = #tpu.dot_dimension_numbers<[1], [0], [0], [1], [0, 0, 1, 1], [], []>} : vector<32x128xbf16>, vector<128x24xbf16>, vector<32x24xf32> -> vector<32x24xf32>
    %362 = arith.addf %356, %361 : vector<32x24xf32>
    %c7_222 = arith.constant 7 : index
    %c0_223 = arith.constant 0 : index
    %c0_224 = arith.constant 0 : index
    %363 = vector.load %arg5[%c7_222, %c0_223, %c0_224] : memref<9x32x128xbf16, #tpu.memory_space<vmem>>, vector<1x32x128xbf16>
    %364 = vector.shape_cast %363 : vector<1x32x128xbf16> to vector<32x128xbf16>
    %365 = vector.extract_strided_slice %321 {offsets = [0, 168], sizes = [128, 24], strides = [1, 1]} : vector<128x216xf32> to vector<128x24xf32>
    %366 = arith.truncf %365 : vector<128x24xf32> to vector<128x24xbf16>
    %cst_225 = arith.constant dense<0.000000e+00> : vector<32x24xf32>
    %367 = tpu.matmul %364, %366, %cst_225 {dimension_numbers = #tpu.dot_dimension_numbers<[1], [0], [0], [1], [0, 0, 1, 1], [], []>} : vector<32x128xbf16>, vector<128x24xbf16>, vector<32x24xf32> -> vector<32x24xf32>
    %368 = arith.addf %362, %367 : vector<32x24xf32>
    %c8_226 = arith.constant 8 : index
    %c0_227 = arith.constant 0 : index
    %c0_228 = arith.constant 0 : index
    %369 = vector.load %arg5[%c8_226, %c0_227, %c0_228] : memref<9x32x128xbf16, #tpu.memory_space<vmem>>, vector<1x32x128xbf16>
    %370 = vector.shape_cast %369 : vector<1x32x128xbf16> to vector<32x128xbf16>
    %371 = vector.extract_strided_slice %321 {offsets = [0, 192], sizes = [128, 24], strides = [1, 1]} : vector<128x216xf32> to vector<128x24xf32>
    %372 = arith.truncf %371 : vector<128x24xf32> to vector<128x24xbf16>
    %cst_229 = arith.constant dense<0.000000e+00> : vector<32x24xf32>
    %373 = tpu.matmul %370, %372, %cst_229 {dimension_numbers = #tpu.dot_dimension_numbers<[1], [0], [0], [1], [0, 0, 1, 1], [], []>} : vector<32x128xbf16>, vector<128x24xbf16>, vector<32x24xf32> -> vector<32x24xf32>
    %374 = arith.addf %368, %373 : vector<32x24xf32>
    %cst_230 = arith.constant 0.000000e+00 : f32
    %375 = vector.broadcast %cst_230 : f32 to vector<32x24xf32>
    %376 = arith.maximumf %374, %375 : vector<32x24xf32>
    %c0_231 = arith.constant 0 : index
    %c0_232 = arith.constant 0 : index
    %377 = vector.load %arg20[%c0_231, %c0_232] : memref<24x216xbf16, #tpu.memory_space<vmem>>, vector<24x216xbf16>
    %378 = arith.truncf %376 : vector<32x24xf32> to vector<32x24xbf16>
    %cst_233 = arith.constant dense<0.000000e+00> : vector<32x216xf32>
    %379 = tpu.matmul %378, %377, %cst_233 {dimension_numbers = #tpu.dot_dimension_numbers<[1], [0], [0], [1], [0, 0, 1, 1], [], []>} : vector<32x24xbf16>, vector<24x216xbf16>, vector<32x216xf32> -> vector<32x216xf32>
    %c0_234 = arith.constant 0 : index
    %c0_235 = arith.constant 0 : index
    %c0_236 = arith.constant 0 : index
    %380 = vector.load %arg6[%c0_234, %c0_235, %c0_236] : memref<9x32x32xbf16, #tpu.memory_space<vmem>>, vector<1x32x32xbf16>
    %381 = vector.shape_cast %380 : vector<1x32x32xbf16> to vector<32x32xbf16>
    %382 = vector.extract_strided_slice %379 {offsets = [0, 0], sizes = [32, 24], strides = [1, 1]} : vector<32x216xf32> to vector<32x24xf32>
    %383 = arith.truncf %382 : vector<32x24xf32> to vector<32x24xbf16>
    %cst_237 = arith.constant dense<0.000000e+00> : vector<32x24xf32>
    %384 = tpu.matmul %381, %383, %cst_237 {dimension_numbers = #tpu.dot_dimension_numbers<[1], [0], [0], [1], [0, 0, 1, 1], [], []>} : vector<32x32xbf16>, vector<32x24xbf16>, vector<32x24xf32> -> vector<32x24xf32>
    %c1_238 = arith.constant 1 : index
    %c0_239 = arith.constant 0 : index
    %c0_240 = arith.constant 0 : index
    %385 = vector.load %arg6[%c1_238, %c0_239, %c0_240] : memref<9x32x32xbf16, #tpu.memory_space<vmem>>, vector<1x32x32xbf16>
    %386 = vector.shape_cast %385 : vector<1x32x32xbf16> to vector<32x32xbf16>
    %387 = vector.extract_strided_slice %379 {offsets = [0, 24], sizes = [32, 24], strides = [1, 1]} : vector<32x216xf32> to vector<32x24xf32>
    %388 = arith.truncf %387 : vector<32x24xf32> to vector<32x24xbf16>
    %cst_241 = arith.constant dense<0.000000e+00> : vector<32x24xf32>
    %389 = tpu.matmul %386, %388, %cst_241 {dimension_numbers = #tpu.dot_dimension_numbers<[1], [0], [0], [1], [0, 0, 1, 1], [], []>} : vector<32x32xbf16>, vector<32x24xbf16>, vector<32x24xf32> -> vector<32x24xf32>
    %390 = arith.addf %384, %389 : vector<32x24xf32>
    %c2_242 = arith.constant 2 : index
    %c0_243 = arith.constant 0 : index
    %c0_244 = arith.constant 0 : index
    %391 = vector.load %arg6[%c2_242, %c0_243, %c0_244] : memref<9x32x32xbf16, #tpu.memory_space<vmem>>, vector<1x32x32xbf16>
    %392 = vector.shape_cast %391 : vector<1x32x32xbf16> to vector<32x32xbf16>
    %393 = vector.extract_strided_slice %379 {offsets = [0, 48], sizes = [32, 24], strides = [1, 1]} : vector<32x216xf32> to vector<32x24xf32>
    %394 = arith.truncf %393 : vector<32x24xf32> to vector<32x24xbf16>
    %cst_245 = arith.constant dense<0.000000e+00> : vector<32x24xf32>
    %395 = tpu.matmul %392, %394, %cst_245 {dimension_numbers = #tpu.dot_dimension_numbers<[1], [0], [0], [1], [0, 0, 1, 1], [], []>} : vector<32x32xbf16>, vector<32x24xbf16>, vector<32x24xf32> -> vector<32x24xf32>
    %396 = arith.addf %390, %395 : vector<32x24xf32>
    %c3_246 = arith.constant 3 : index
    %c0_247 = arith.constant 0 : index
    %c0_248 = arith.constant 0 : index
    %397 = vector.load %arg6[%c3_246, %c0_247, %c0_248] : memref<9x32x32xbf16, #tpu.memory_space<vmem>>, vector<1x32x32xbf16>
    %398 = vector.shape_cast %397 : vector<1x32x32xbf16> to vector<32x32xbf16>
    %399 = vector.extract_strided_slice %379 {offsets = [0, 72], sizes = [32, 24], strides = [1, 1]} : vector<32x216xf32> to vector<32x24xf32>
    %400 = arith.truncf %399 : vector<32x24xf32> to vector<32x24xbf16>
    %cst_249 = arith.constant dense<0.000000e+00> : vector<32x24xf32>
    %401 = tpu.matmul %398, %400, %cst_249 {dimension_numbers = #tpu.dot_dimension_numbers<[1], [0], [0], [1], [0, 0, 1, 1], [], []>} : vector<32x32xbf16>, vector<32x24xbf16>, vector<32x24xf32> -> vector<32x24xf32>
    %402 = arith.addf %396, %401 : vector<32x24xf32>
    %c4_250 = arith.constant 4 : index
    %c0_251 = arith.constant 0 : index
    %c0_252 = arith.constant 0 : index
    %403 = vector.load %arg6[%c4_250, %c0_251, %c0_252] : memref<9x32x32xbf16, #tpu.memory_space<vmem>>, vector<1x32x32xbf16>
    %404 = vector.shape_cast %403 : vector<1x32x32xbf16> to vector<32x32xbf16>
    %405 = vector.extract_strided_slice %379 {offsets = [0, 96], sizes = [32, 24], strides = [1, 1]} : vector<32x216xf32> to vector<32x24xf32>
    %406 = arith.truncf %405 : vector<32x24xf32> to vector<32x24xbf16>
    %cst_253 = arith.constant dense<0.000000e+00> : vector<32x24xf32>
    %407 = tpu.matmul %404, %406, %cst_253 {dimension_numbers = #tpu.dot_dimension_numbers<[1], [0], [0], [1], [0, 0, 1, 1], [], []>} : vector<32x32xbf16>, vector<32x24xbf16>, vector<32x24xf32> -> vector<32x24xf32>
    %408 = arith.addf %402, %407 : vector<32x24xf32>
    %c5_254 = arith.constant 5 : index
    %c0_255 = arith.constant 0 : index
    %c0_256 = arith.constant 0 : index
    %409 = vector.load %arg6[%c5_254, %c0_255, %c0_256] : memref<9x32x32xbf16, #tpu.memory_space<vmem>>, vector<1x32x32xbf16>
    %410 = vector.shape_cast %409 : vector<1x32x32xbf16> to vector<32x32xbf16>
    %411 = vector.extract_strided_slice %379 {offsets = [0, 120], sizes = [32, 24], strides = [1, 1]} : vector<32x216xf32> to vector<32x24xf32>
    %412 = arith.truncf %411 : vector<32x24xf32> to vector<32x24xbf16>
    %cst_257 = arith.constant dense<0.000000e+00> : vector<32x24xf32>
    %413 = tpu.matmul %410, %412, %cst_257 {dimension_numbers = #tpu.dot_dimension_numbers<[1], [0], [0], [1], [0, 0, 1, 1], [], []>} : vector<32x32xbf16>, vector<32x24xbf16>, vector<32x24xf32> -> vector<32x24xf32>
    %414 = arith.addf %408, %413 : vector<32x24xf32>
    %c6_258 = arith.constant 6 : index
    %c0_259 = arith.constant 0 : index
    %c0_260 = arith.constant 0 : index
    %415 = vector.load %arg6[%c6_258, %c0_259, %c0_260] : memref<9x32x32xbf16, #tpu.memory_space<vmem>>, vector<1x32x32xbf16>
    %416 = vector.shape_cast %415 : vector<1x32x32xbf16> to vector<32x32xbf16>
    %417 = vector.extract_strided_slice %379 {offsets = [0, 144], sizes = [32, 24], strides = [1, 1]} : vector<32x216xf32> to vector<32x24xf32>
    %418 = arith.truncf %417 : vector<32x24xf32> to vector<32x24xbf16>
    %cst_261 = arith.constant dense<0.000000e+00> : vector<32x24xf32>
    %419 = tpu.matmul %416, %418, %cst_261 {dimension_numbers = #tpu.dot_dimension_numbers<[1], [0], [0], [1], [0, 0, 1, 1], [], []>} : vector<32x32xbf16>, vector<32x24xbf16>, vector<32x24xf32> -> vector<32x24xf32>
    %420 = arith.addf %414, %419 : vector<32x24xf32>
    %c7_262 = arith.constant 7 : index
    %c0_263 = arith.constant 0 : index
    %c0_264 = arith.constant 0 : index
    %421 = vector.load %arg6[%c7_262, %c0_263, %c0_264] : memref<9x32x32xbf16, #tpu.memory_space<vmem>>, vector<1x32x32xbf16>
    %422 = vector.shape_cast %421 : vector<1x32x32xbf16> to vector<32x32xbf16>
    %423 = vector.extract_strided_slice %379 {offsets = [0, 168], sizes = [32, 24], strides = [1, 1]} : vector<32x216xf32> to vector<32x24xf32>
    %424 = arith.truncf %423 : vector<32x24xf32> to vector<32x24xbf16>
    %cst_265 = arith.constant dense<0.000000e+00> : vector<32x24xf32>
    %425 = tpu.matmul %422, %424, %cst_265 {dimension_numbers = #tpu.dot_dimension_numbers<[1], [0], [0], [1], [0, 0, 1, 1], [], []>} : vector<32x32xbf16>, vector<32x24xbf16>, vector<32x24xf32> -> vector<32x24xf32>
    %426 = arith.addf %420, %425 : vector<32x24xf32>
    %c8_266 = arith.constant 8 : index
    %c0_267 = arith.constant 0 : index
    %c0_268 = arith.constant 0 : index
    %427 = vector.load %arg6[%c8_266, %c0_267, %c0_268] : memref<9x32x32xbf16, #tpu.memory_space<vmem>>, vector<1x32x32xbf16>
    %428 = vector.shape_cast %427 : vector<1x32x32xbf16> to vector<32x32xbf16>
    %429 = vector.extract_strided_slice %379 {offsets = [0, 192], sizes = [32, 24], strides = [1, 1]} : vector<32x216xf32> to vector<32x24xf32>
    %430 = arith.truncf %429 : vector<32x24xf32> to vector<32x24xbf16>
    %cst_269 = arith.constant dense<0.000000e+00> : vector<32x24xf32>
    %431 = tpu.matmul %428, %430, %cst_269 {dimension_numbers = #tpu.dot_dimension_numbers<[1], [0], [0], [1], [0, 0, 1, 1], [], []>} : vector<32x32xbf16>, vector<32x24xbf16>, vector<32x24xf32> -> vector<32x24xf32>
    %432 = arith.addf %426, %431 : vector<32x24xf32>
    %433 = arith.addf %432, %318 : vector<32x24xf32>
    %cst_270 = arith.constant 0.000000e+00 : f32
    %434 = vector.broadcast %cst_270 : f32 to vector<32x24xf32>
    %435 = arith.maximumf %433, %434 : vector<32x24xf32>
    %c0_271 = arith.constant 0 : index
    %c0_272 = arith.constant 0 : index
    %436 = vector.load %arg7[%c0_271, %c0_272] : memref<2x32xf32, #tpu.memory_space<vmem>>, vector<2x32xf32>
    %cst_273 = arith.constant dense<0.000000e+00> : vector<2x24xf32>
    %437 = tpu.matmul %436, %435, %cst_273 {dimension_numbers = #tpu.dot_dimension_numbers<[1], [0], [0], [1], [0, 0, 1, 1], [], []>} : vector<2x32xf32>, vector<32x24xf32>, vector<2x24xf32> -> vector<2x24xf32>
    %c0_274 = arith.constant 0 : index
    %c0_275 = arith.constant 0 : index
    %438 = vector.load %arg29[%c0_274, %c0_275] : memref<1x24xf32, #tpu.memory_space<vmem>>, vector<1x24xf32>
    %c0_276 = arith.constant 0 : index
    %c0_277 = arith.constant 0 : index
    %439 = vector.load %arg30[%c0_276, %c0_277] : memref<1x24xf32, #tpu.memory_space<vmem>>, vector<1x24xf32>
    %cst_278 = arith.constant dense<0.000000e+00> : vector<2xf32>
    %440 = vector.multi_reduction <add>, %437, %cst_278 [1] : vector<2x24xf32> to vector<2xf32>
    %441 = vector.shape_cast %440 : vector<2xf32> to vector<2x1xf32>
    %cst_279 = arith.constant 2.400000e+01 : f32
    %442 = vector.broadcast %cst_279 : f32 to vector<2x1xf32>
    %443 = arith.divf %441, %442 : vector<2x1xf32>
    %444 = vector.broadcast %443 : vector<2x1xf32> to vector<2x24xf32>
    %445 = arith.subf %437, %444 : vector<2x24xf32>
    %446 = arith.mulf %445, %445 : vector<2x24xf32>
    %cst_280 = arith.constant dense<0.000000e+00> : vector<2xf32>
    %447 = vector.multi_reduction <add>, %446, %cst_280 [1] : vector<2x24xf32> to vector<2xf32>
    %448 = vector.shape_cast %447 : vector<2xf32> to vector<2x1xf32>
    %cst_281 = arith.constant 2.400000e+01 : f32
    %449 = vector.broadcast %cst_281 : f32 to vector<2x1xf32>
    %450 = arith.divf %448, %449 : vector<2x1xf32>
    %cst_282 = arith.constant 9.99999974E-6 : f32
    %451 = vector.broadcast %cst_282 : f32 to vector<2x1xf32>
    %452 = arith.addf %450, %451 : vector<2x1xf32>
    %453 = math.rsqrt %452 : vector<2x1xf32>
    %454 = vector.broadcast %453 : vector<2x1xf32> to vector<2x24xf32>
    %455 = arith.mulf %445, %454 : vector<2x24xf32>
    %456 = vector.broadcast %438 : vector<1x24xf32> to vector<2x24xf32>
    %457 = arith.mulf %455, %456 : vector<2x24xf32>
    %458 = vector.broadcast %439 : vector<1x24xf32> to vector<2x24xf32>
    %459 = arith.addf %457, %458 : vector<2x24xf32>
    %c0_283 = arith.constant 0 : index
    %c0_284 = arith.constant 0 : index
    %460 = vector.load %arg1[%c0_283, %c0_284] : memref<2x8xf32, #tpu.memory_space<vmem>>, vector<2x8xf32>
    %c0_285 = arith.constant 0 : index
    %c0_286 = arith.constant 0 : index
    %461 = vector.load %arg27[%c0_285, %c0_286] : memref<1x8xf32, #tpu.memory_space<vmem>>, vector<1x8xf32>
    %c0_287 = arith.constant 0 : index
    %c0_288 = arith.constant 0 : index
    %462 = vector.load %arg28[%c0_287, %c0_288] : memref<1x8xf32, #tpu.memory_space<vmem>>, vector<1x8xf32>
    %cst_289 = arith.constant dense<0.000000e+00> : vector<2xf32>
    %463 = vector.multi_reduction <add>, %460, %cst_289 [1] : vector<2x8xf32> to vector<2xf32>
    %464 = vector.shape_cast %463 : vector<2xf32> to vector<2x1xf32>
    %cst_290 = arith.constant 8.000000e+00 : f32
    %465 = vector.broadcast %cst_290 : f32 to vector<2x1xf32>
    %466 = arith.divf %464, %465 : vector<2x1xf32>
    %467 = vector.broadcast %466 : vector<2x1xf32> to vector<2x8xf32>
    %468 = arith.subf %460, %467 : vector<2x8xf32>
    %469 = arith.mulf %468, %468 : vector<2x8xf32>
    %cst_291 = arith.constant dense<0.000000e+00> : vector<2xf32>
    %470 = vector.multi_reduction <add>, %469, %cst_291 [1] : vector<2x8xf32> to vector<2xf32>
    %471 = vector.shape_cast %470 : vector<2xf32> to vector<2x1xf32>
    %cst_292 = arith.constant 8.000000e+00 : f32
    %472 = vector.broadcast %cst_292 : f32 to vector<2x1xf32>
    %473 = arith.divf %471, %472 : vector<2x1xf32>
    %cst_293 = arith.constant 9.99999974E-6 : f32
    %474 = vector.broadcast %cst_293 : f32 to vector<2x1xf32>
    %475 = arith.addf %473, %474 : vector<2x1xf32>
    %476 = math.rsqrt %475 : vector<2x1xf32>
    %477 = vector.broadcast %476 : vector<2x1xf32> to vector<2x8xf32>
    %478 = arith.mulf %468, %477 : vector<2x8xf32>
    %479 = vector.broadcast %461 : vector<1x8xf32> to vector<2x8xf32>
    %480 = arith.mulf %478, %479 : vector<2x8xf32>
    %481 = vector.broadcast %462 : vector<1x8xf32> to vector<2x8xf32>
    %482 = arith.addf %480, %481 : vector<2x8xf32>
    %c0_294 = arith.constant 0 : index
    %c0_295 = arith.constant 0 : index
    %483 = vector.load %arg21[%c0_294, %c0_295] : memref<8x8xbf16, #tpu.memory_space<vmem>>, vector<8x8xbf16>
    %484 = arith.truncf %482 : vector<2x8xf32> to vector<2x8xbf16>
    %cst_296 = arith.constant dense<0.000000e+00> : vector<2x8xf32>
    %485 = tpu.matmul %484, %483, %cst_296 {dimension_numbers = #tpu.dot_dimension_numbers<[1], [0], [0], [1], [0, 0, 1, 1], [], []>} : vector<2x8xbf16>, vector<8x8xbf16>, vector<2x8xf32> -> vector<2x8xf32>
    %c0_297 = arith.constant 0 : index
    %c0_298 = arith.constant 0 : index
    %486 = vector.load %arg22[%c0_297, %c0_298] : memref<1x8xf32, #tpu.memory_space<vmem>>, vector<1x8xf32>
    %487 = vector.broadcast %486 : vector<1x8xf32> to vector<2x8xf32>
    %488 = arith.addf %485, %487 : vector<2x8xf32>
    %cst_299 = arith.constant 0.000000e+00 : f32
    %489 = vector.broadcast %cst_299 : f32 to vector<2x8xf32>
    %490 = arith.maximumf %488, %489 : vector<2x8xf32>
    %c0_300 = arith.constant 0 : index
    %c0_301 = arith.constant 0 : index
    %491 = vector.load %arg31[%c0_300, %c0_301] : memref<1x8xf32, #tpu.memory_space<vmem>>, vector<1x8xf32>
    %c0_302 = arith.constant 0 : index
    %c0_303 = arith.constant 0 : index
    %492 = vector.load %arg32[%c0_302, %c0_303] : memref<1x8xf32, #tpu.memory_space<vmem>>, vector<1x8xf32>
    %cst_304 = arith.constant dense<0.000000e+00> : vector<2xf32>
    %493 = vector.multi_reduction <add>, %490, %cst_304 [1] : vector<2x8xf32> to vector<2xf32>
    %494 = vector.shape_cast %493 : vector<2xf32> to vector<2x1xf32>
    %cst_305 = arith.constant 8.000000e+00 : f32
    %495 = vector.broadcast %cst_305 : f32 to vector<2x1xf32>
    %496 = arith.divf %494, %495 : vector<2x1xf32>
    %497 = vector.broadcast %496 : vector<2x1xf32> to vector<2x8xf32>
    %498 = arith.subf %490, %497 : vector<2x8xf32>
    %499 = arith.mulf %498, %498 : vector<2x8xf32>
    %cst_306 = arith.constant dense<0.000000e+00> : vector<2xf32>
    %500 = vector.multi_reduction <add>, %499, %cst_306 [1] : vector<2x8xf32> to vector<2xf32>
    %501 = vector.shape_cast %500 : vector<2xf32> to vector<2x1xf32>
    %cst_307 = arith.constant 8.000000e+00 : f32
    %502 = vector.broadcast %cst_307 : f32 to vector<2x1xf32>
    %503 = arith.divf %501, %502 : vector<2x1xf32>
    %cst_308 = arith.constant 9.99999974E-6 : f32
    %504 = vector.broadcast %cst_308 : f32 to vector<2x1xf32>
    %505 = arith.addf %503, %504 : vector<2x1xf32>
    %506 = math.rsqrt %505 : vector<2x1xf32>
    %507 = vector.broadcast %506 : vector<2x1xf32> to vector<2x8xf32>
    %508 = arith.mulf %498, %507 : vector<2x8xf32>
    %509 = vector.broadcast %491 : vector<1x8xf32> to vector<2x8xf32>
    %510 = arith.mulf %508, %509 : vector<2x8xf32>
    %511 = vector.broadcast %492 : vector<1x8xf32> to vector<2x8xf32>
    %512 = arith.addf %510, %511 : vector<2x8xf32>
    %c0_309 = arith.constant 0 : index
    %c0_310 = arith.constant 0 : index
    %513 = vector.load %arg8[%c0_309, %c0_310] : memref<24x32xf32, #tpu.memory_space<vmem>>, vector<24x32xf32>
    %cst_311 = arith.constant dense<0.000000e+00> : vector<2x32xf32>
    %514 = tpu.matmul %459, %513, %cst_311 {dimension_numbers = #tpu.dot_dimension_numbers<[1], [0], [0], [1], [0, 0, 1, 1], [], []>} : vector<2x24xf32>, vector<24x32xf32>, vector<2x32xf32> -> vector<2x32xf32>
    %c0_312 = arith.constant 0 : index
    %c0_313 = arith.constant 0 : index
    %515 = vector.load %arg9[%c0_312, %c0_313] : memref<8x32xf32, #tpu.memory_space<vmem>>, vector<8x32xf32>
    %cst_314 = arith.constant dense<0.000000e+00> : vector<2x32xf32>
    %516 = tpu.matmul %512, %515, %cst_314 {dimension_numbers = #tpu.dot_dimension_numbers<[1], [0], [0], [1], [0, 0, 1, 1], [], []>} : vector<2x8xf32>, vector<8x32xf32>, vector<2x32xf32> -> vector<2x32xf32>
    %517 = arith.addf %514, %516 : vector<2x32xf32>
    %c0_315 = arith.constant 0 : index
    %c0_316 = arith.constant 0 : index
    %518 = vector.load %arg23[%c0_315, %c0_316] : memref<32x32xbf16, #tpu.memory_space<vmem>>, vector<32x32xbf16>
    %519 = arith.truncf %517 : vector<2x32xf32> to vector<2x32xbf16>
    %cst_317 = arith.constant dense<0.000000e+00> : vector<2x32xf32>
    %520 = tpu.matmul %519, %518, %cst_317 {dimension_numbers = #tpu.dot_dimension_numbers<[1], [0], [0], [1], [0, 0, 1, 1], [], []>} : vector<2x32xbf16>, vector<32x32xbf16>, vector<2x32xf32> -> vector<2x32xf32>
    %c0_318 = arith.constant 0 : index
    %c0_319 = arith.constant 0 : index
    %521 = vector.load %arg24[%c0_318, %c0_319] : memref<1x32xf32, #tpu.memory_space<vmem>>, vector<1x32xf32>
    %522 = vector.broadcast %521 : vector<1x32xf32> to vector<2x32xf32>
    %523 = arith.addf %520, %522 : vector<2x32xf32>
    %cst_320 = arith.constant 0.000000e+00 : f32
    %524 = vector.broadcast %cst_320 : f32 to vector<2x32xf32>
    %525 = arith.maximumf %523, %524 : vector<2x32xf32>
    %c0_321 = arith.constant 0 : index
    %c0_322 = arith.constant 0 : index
    %526 = vector.load %arg25[%c0_321, %c0_322] : memref<32x32xbf16, #tpu.memory_space<vmem>>, vector<32x32xbf16>
    %527 = arith.truncf %525 : vector<2x32xf32> to vector<2x32xbf16>
    %cst_323 = arith.constant dense<0.000000e+00> : vector<2x32xf32>
    %528 = tpu.matmul %527, %526, %cst_323 {dimension_numbers = #tpu.dot_dimension_numbers<[1], [0], [0], [1], [0, 0, 1, 1], [], []>} : vector<2x32xbf16>, vector<32x32xbf16>, vector<2x32xf32> -> vector<2x32xf32>
    %c0_324 = arith.constant 0 : index
    %c0_325 = arith.constant 0 : index
    %529 = vector.load %arg26[%c0_324, %c0_325] : memref<1x32xf32, #tpu.memory_space<vmem>>, vector<1x32xf32>
    %530 = vector.broadcast %529 : vector<1x32xf32> to vector<2x32xf32>
    %531 = arith.addf %528, %530 : vector<2x32xf32>
    %532 = arith.addf %531, %517 : vector<2x32xf32>
    %cst_326 = arith.constant 0.000000e+00 : f32
    %533 = vector.broadcast %cst_326 : f32 to vector<2x32xf32>
    %534 = arith.maximumf %532, %533 : vector<2x32xf32>
    %c0_327 = arith.constant 0 : index
    %c0_328 = arith.constant 0 : index
    %535 = vector.load %arg33[%c0_327, %c0_328] : memref<1x32xf32, #tpu.memory_space<vmem>>, vector<1x32xf32>
    %c0_329 = arith.constant 0 : index
    %c0_330 = arith.constant 0 : index
    %536 = vector.load %arg34[%c0_329, %c0_330] : memref<1x32xf32, #tpu.memory_space<vmem>>, vector<1x32xf32>
    %cst_331 = arith.constant dense<0.000000e+00> : vector<2xf32>
    %537 = vector.multi_reduction <add>, %534, %cst_331 [1] : vector<2x32xf32> to vector<2xf32>
    %538 = vector.shape_cast %537 : vector<2xf32> to vector<2x1xf32>
    %cst_332 = arith.constant 3.200000e+01 : f32
    %539 = vector.broadcast %cst_332 : f32 to vector<2x1xf32>
    %540 = arith.divf %538, %539 : vector<2x1xf32>
    %541 = vector.broadcast %540 : vector<2x1xf32> to vector<2x32xf32>
    %542 = arith.subf %534, %541 : vector<2x32xf32>
    %543 = arith.mulf %542, %542 : vector<2x32xf32>
    %cst_333 = arith.constant dense<0.000000e+00> : vector<2xf32>
    %544 = vector.multi_reduction <add>, %543, %cst_333 [1] : vector<2x32xf32> to vector<2xf32>
    %545 = vector.shape_cast %544 : vector<2xf32> to vector<2x1xf32>
    %cst_334 = arith.constant 3.200000e+01 : f32
    %546 = vector.broadcast %cst_334 : f32 to vector<2x1xf32>
    %547 = arith.divf %545, %546 : vector<2x1xf32>
    %cst_335 = arith.constant 9.99999974E-6 : f32
    %548 = vector.broadcast %cst_335 : f32 to vector<2x1xf32>
    %549 = arith.addf %547, %548 : vector<2x1xf32>
    %550 = math.rsqrt %549 : vector<2x1xf32>
    %551 = vector.broadcast %550 : vector<2x1xf32> to vector<2x32xf32>
    %552 = arith.mulf %542, %551 : vector<2x32xf32>
    %553 = vector.broadcast %535 : vector<1x32xf32> to vector<2x32xf32>
    %554 = arith.mulf %552, %553 : vector<2x32xf32>
    %555 = vector.broadcast %536 : vector<1x32xf32> to vector<2x32xf32>
    %556 = arith.addf %554, %555 : vector<2x32xf32>
    %c0_336 = arith.constant 0 : index
    %c0_337 = arith.constant 0 : index
    %557 = vector.load %arg37[%c0_336, %c0_337] : memref<32x128xbf16, #tpu.memory_space<vmem>>, vector<32x128xbf16>
    %558 = arith.truncf %556 : vector<2x32xf32> to vector<2x32xbf16>
    %cst_338 = arith.constant dense<0.000000e+00> : vector<2x128xf32>
    %559 = tpu.matmul %558, %557, %cst_338 {dimension_numbers = #tpu.dot_dimension_numbers<[1], [0], [0], [1], [0, 0, 1, 1], [], []>} : vector<2x32xbf16>, vector<32x128xbf16>, vector<2x128xf32> -> vector<2x128xf32>
    %c0_339 = arith.constant 0 : index
    %c0_340 = arith.constant 0 : index
    %560 = vector.load %arg2[%c0_339, %c0_340] : memref<2x32xf32, #tpu.memory_space<vmem>>, vector<2x32xf32>
    %c0_341 = arith.constant 0 : index
    %c0_342 = arith.constant 0 : index
    %561 = vector.load %arg38[%c0_341, %c0_342] : memref<32x128xbf16, #tpu.memory_space<vmem>>, vector<32x128xbf16>
    %562 = arith.truncf %560 : vector<2x32xf32> to vector<2x32xbf16>
    %cst_343 = arith.constant dense<0.000000e+00> : vector<2x128xf32>
    %563 = tpu.matmul %562, %561, %cst_343 {dimension_numbers = #tpu.dot_dimension_numbers<[1], [0], [0], [1], [0, 0, 1, 1], [], []>} : vector<2x32xbf16>, vector<32x128xbf16>, vector<2x128xf32> -> vector<2x128xf32>
    %564 = arith.addf %559, %563 : vector<2x128xf32>
    %c0_344 = arith.constant 0 : index
    %c0_345 = arith.constant 0 : index
    %565 = vector.load %arg39[%c0_344, %c0_345] : memref<1x128xf32, #tpu.memory_space<vmem>>, vector<1x128xf32>
    %566 = vector.broadcast %565 : vector<1x128xf32> to vector<2x128xf32>
    %567 = arith.addf %564, %566 : vector<2x128xf32>
    %568 = vector.extract_strided_slice %567 {offsets = [0, 0], sizes = [2, 32], strides = [1, 1]} : vector<2x128xf32> to vector<2x32xf32>
    %569 = arith.negf %568 : vector<2x32xf32>
    %570 = math.exp %569 : vector<2x32xf32>
    %cst_346 = arith.constant 1.000000e+00 : f32
    %571 = vector.broadcast %cst_346 : f32 to vector<2x32xf32>
    %572 = arith.addf %571, %570 : vector<2x32xf32>
    %573 = arith.divf %571, %572 : vector<2x32xf32>
    %574 = vector.extract_strided_slice %567 {offsets = [0, 32], sizes = [2, 32], strides = [1, 1]} : vector<2x128xf32> to vector<2x32xf32>
    %575 = arith.negf %574 : vector<2x32xf32>
    %576 = math.exp %575 : vector<2x32xf32>
    %cst_347 = arith.constant 1.000000e+00 : f32
    %577 = vector.broadcast %cst_347 : f32 to vector<2x32xf32>
    %578 = arith.addf %577, %576 : vector<2x32xf32>
    %579 = arith.divf %577, %578 : vector<2x32xf32>
    %580 = vector.extract_strided_slice %567 {offsets = [0, 64], sizes = [2, 32], strides = [1, 1]} : vector<2x128xf32> to vector<2x32xf32>
    %581 = math.tanh %580 : vector<2x32xf32>
    %582 = vector.extract_strided_slice %567 {offsets = [0, 96], sizes = [2, 32], strides = [1, 1]} : vector<2x128xf32> to vector<2x32xf32>
    %583 = arith.negf %582 : vector<2x32xf32>
    %584 = math.exp %583 : vector<2x32xf32>
    %cst_348 = arith.constant 1.000000e+00 : f32
    %585 = vector.broadcast %cst_348 : f32 to vector<2x32xf32>
    %586 = arith.addf %585, %584 : vector<2x32xf32>
    %587 = arith.divf %585, %586 : vector<2x32xf32>
    %c0_349 = arith.constant 0 : index
    %c0_350 = arith.constant 0 : index
    %588 = vector.load %arg3[%c0_349, %c0_350] : memref<2x32xf32, #tpu.memory_space<vmem>>, vector<2x32xf32>
    %589 = arith.mulf %579, %588 : vector<2x32xf32>
    %590 = arith.mulf %573, %581 : vector<2x32xf32>
    %591 = arith.addf %589, %590 : vector<2x32xf32>
    %592 = math.tanh %591 : vector<2x32xf32>
    %593 = arith.mulf %587, %592 : vector<2x32xf32>
    %c0_351 = arith.constant 0 : index
    %c0_352 = arith.constant 0 : index
    %594 = vector.load %arg46[%c0_351, %c0_352] : memref<2x32xf32, #tpu.memory_space<vmem>>, vector<2x32xf32>
    tpu.vector_store %arg46[%c0_351, %c0_352], %593 {strides = array<i32>} : memref<2x32xf32, #tpu.memory_space<vmem>>, vector<2x32xf32>,
    %c0_353 = arith.constant 0 : index
    %c0_354 = arith.constant 0 : index
    %595 = vector.load %arg47[%c0_353, %c0_354] : memref<2x32xf32, #tpu.memory_space<vmem>>, vector<2x32xf32>
    tpu.vector_store %arg47[%c0_353, %c0_354], %591 {strides = array<i32>} : memref<2x32xf32, #tpu.memory_space<vmem>>, vector<2x32xf32>,
    %c0_355 = arith.constant 0 : index
    %c0_356 = arith.constant 0 : index
    %596 = vector.load %arg35[%c0_355, %c0_356] : memref<1x32xf32, #tpu.memory_space<vmem>>, vector<1x32xf32>
    %c0_357 = arith.constant 0 : index
    %c0_358 = arith.constant 0 : index
    %597 = vector.load %arg36[%c0_357, %c0_358] : memref<1x32xf32, #tpu.memory_space<vmem>>, vector<1x32xf32>
    %cst_359 = arith.constant dense<0.000000e+00> : vector<2xf32>
    %598 = vector.multi_reduction <add>, %593, %cst_359 [1] : vector<2x32xf32> to vector<2xf32>
    %599 = vector.shape_cast %598 : vector<2xf32> to vector<2x1xf32>
    %cst_360 = arith.constant 3.200000e+01 : f32
    %600 = vector.broadcast %cst_360 : f32 to vector<2x1xf32>
    %601 = arith.divf %599, %600 : vector<2x1xf32>
    %602 = vector.broadcast %601 : vector<2x1xf32> to vector<2x32xf32>
    %603 = arith.subf %593, %602 : vector<2x32xf32>
    %604 = arith.mulf %603, %603 : vector<2x32xf32>
    %cst_361 = arith.constant dense<0.000000e+00> : vector<2xf32>
    %605 = vector.multi_reduction <add>, %604, %cst_361 [1] : vector<2x32xf32> to vector<2xf32>
    %606 = vector.shape_cast %605 : vector<2xf32> to vector<2x1xf32>
    %cst_362 = arith.constant 3.200000e+01 : f32
    %607 = vector.broadcast %cst_362 : f32 to vector<2x1xf32>
    %608 = arith.divf %606, %607 : vector<2x1xf32>
    %cst_363 = arith.constant 9.99999974E-6 : f32
    %609 = vector.broadcast %cst_363 : f32 to vector<2x1xf32>
    %610 = arith.addf %608, %609 : vector<2x1xf32>
    %611 = math.rsqrt %610 : vector<2x1xf32>
    %612 = vector.broadcast %611 : vector<2x1xf32> to vector<2x32xf32>
    %613 = arith.mulf %603, %612 : vector<2x32xf32>
    %614 = vector.broadcast %596 : vector<1x32xf32> to vector<2x32xf32>
    %615 = arith.mulf %613, %614 : vector<2x32xf32>
    %616 = vector.broadcast %597 : vector<1x32xf32> to vector<2x32xf32>
    %617 = arith.addf %615, %616 : vector<2x32xf32>
    %c0_364 = arith.constant 0 : index
    %c0_365 = arith.constant 0 : index
    %618 = vector.load %arg40[%c0_364, %c0_365] : memref<32x6xbf16, #tpu.memory_space<vmem>>, vector<32x6xbf16>
    %619 = arith.truncf %617 : vector<2x32xf32> to vector<2x32xbf16>
    %cst_366 = arith.constant dense<0.000000e+00> : vector<2x6xf32>
    %620 = tpu.matmul %619, %618, %cst_366 {dimension_numbers = #tpu.dot_dimension_numbers<[1], [0], [0], [1], [0, 0, 1, 1], [], []>} : vector<2x32xbf16>, vector<32x6xbf16>, vector<2x6xf32> -> vector<2x6xf32>
    %c0_367 = arith.constant 0 : index
    %c0_368 = arith.constant 0 : index
    %621 = vector.load %arg41[%c0_367, %c0_368] : memref<1x6xf32, #tpu.memory_space<vmem>>, vector<1x6xf32>
    %622 = vector.broadcast %621 : vector<1x6xf32> to vector<2x6xf32>
    %623 = arith.addf %620, %622 : vector<2x6xf32>
    %624 = vector.extract_strided_slice %623 {offsets = [0, 0], sizes = [2, 5], strides = [1, 1]} : vector<2x6xf32> to vector<2x5xf32>
    %c0_369 = arith.constant 0 : index
    %c0_370 = arith.constant 0 : index
    %625 = vector.load %arg42[%c0_369, %c0_370] : memref<2x5xf32, #tpu.memory_space<vmem>>, vector<2x5xf32>
    tpu.vector_store %arg42[%c0_369, %c0_370], %624 {strides = array<i32>} : memref<2x5xf32, #tpu.memory_space<vmem>>, vector<2x5xf32>,
    %cst_371 = arith.constant dense<0xFF800000> : vector<2xf32>
    %626 = vector.multi_reduction <maximumf>, %624, %cst_371 [1] : vector<2x5xf32> to vector<2xf32>
    %627 = vector.shape_cast %626 : vector<2xf32> to vector<2x1xf32>
    %628 = vector.broadcast %627 : vector<2x1xf32> to vector<2x5xf32>
    %629 = arith.subf %624, %628 : vector<2x5xf32>
    %630 = math.exp %629 : vector<2x5xf32>
    %cst_372 = arith.constant dense<0.000000e+00> : vector<2xf32>
    %631 = vector.multi_reduction <add>, %630, %cst_372 [1] : vector<2x5xf32> to vector<2xf32>
    %632 = vector.shape_cast %631 : vector<2xf32> to vector<2x1xf32>
    %633 = tpu.reciprocal %632 : vector<2x1xf32> -> vector<2x1xf32>
    %634 = vector.broadcast %633 : vector<2x1xf32> to vector<2x5xf32>
    %635 = arith.mulf %630, %634 : vector<2x5xf32>
    %c0_373 = arith.constant 0 : index
    %c0_374 = arith.constant 0 : index
    %636 = vector.load %arg43[%c0_373, %c0_374] : memref<2x5xf32, #tpu.memory_space<vmem>>, vector<2x5xf32>
    tpu.vector_store %arg43[%c0_373, %c0_374], %635 {strides = array<i32>} : memref<2x5xf32, #tpu.memory_space<vmem>>, vector<2x5xf32>,
    %637 = arith.negf %624 : vector<2x5xf32>
    %638 = math.exp %637 : vector<2x5xf32>
    %cst_375 = arith.constant 1.000000e+00 : f32
    %639 = vector.broadcast %cst_375 : f32 to vector<2x5xf32>
    %640 = arith.addf %639, %638 : vector<2x5xf32>
    %641 = arith.divf %639, %640 : vector<2x5xf32>
    %c0_376 = arith.constant 0 : index
    %c0_377 = arith.constant 0 : index
    %642 = vector.load %arg44[%c0_376, %c0_377] : memref<2x5xf32, #tpu.memory_space<vmem>>, vector<2x5xf32>
    tpu.vector_store %arg44[%c0_376, %c0_377], %641 {strides = array<i32>} : memref<2x5xf32, #tpu.memory_space<vmem>>, vector<2x5xf32>,
    %643 = vector.extract_strided_slice %623 {offsets = [0, 5], sizes = [2, 1], strides = [1, 1]} : vector<2x6xf32> to vector<2x1xf32>
    %c0_378 = arith.constant 0 : index
    %c0_379 = arith.constant 0 : index
    %644 = vector.load %arg45[%c0_378, %c0_379] : memref<2x1xf32, #tpu.memory_space<vmem>>, vector<2x1xf32>
    tpu.vector_store %arg45[%c0_378, %c0_379], %643 {strides = array<i32>} : memref<2x1xf32, #tpu.memory_space<vmem>>, vector<2x1xf32>,
    return
  }
}

</mosaic_0001>

<bundles_post_ra>
// kernel: net_forward.1
= control target key start
LH: loop header
LB: loop body
LE: loop exit
PB: predicated region body
PF: predicated region fallthrough
CT: control target
= control target key end

     0   :  { %s15688_s6 = smov 1   ;;  %s15689_s10 = smov 2   ;;  %s18315_s0 = inlined_call_operand.smem [shape: u32[48], index: -1, kind: input, shape index: {}] }
   0x1   :  { %s15792_s5 = sld [smem:[%s18315_s0]]   ;;  %s15690_s14 = smov 3  }
   0x2   :  { %s15797_s9 = sld [smem:[%s18315_s0 + %s15688_s6]]   ;;  %s15691_s18 = smov 4  }
   0x3   :  { %s15802_s13 = sld [smem:[%s18315_s0 + %s15689_s10]]   ;;  %s15692_s22 = smov 5  }
   0x4   :  { %s15807_s17 = sld [smem:[%s18315_s0 + %s15690_s14]]   ;;  %s15693_s26 = smov 6  }
   0x5   :  { %s15812_s21 = sld [smem:[%s18315_s0 + %s15691_s18]]   ;;  %s15694_s30 = smov 7  }
   0x6   :  { %s15817_s25 = sld [smem:[%s18315_s0 + %s15692_s22]]   ;;  %s15695_s4 = smov 8  }
   0x7   :  { %18375 = sst [smem:[#allocation64_spill]] %s15792_s5  ;;  %s15696_s10 = smov 9  }
   0x8   :  { %18376 = sst [smem:[#allocation65_spill]] %s15797_s9  ;;  %s15697_s15 = smov 10  }
   0x9   :  { %18377 = sst [smem:[#allocation66_spill]] %s15802_s13  ;;  %s15698_s20 = smov 11  }
   0xa   :  { %18378 = sst [smem:[#allocation67_spill]] %s15807_s17  ;;  %s15700_s1 = smov 13  }
   0xb   :  { %s15822_s29 = sld [smem:[%s18315_s0 + %s15693_s26]]   ;;  %s15699_s26 = smov 12  }
   0xc   :  { %18379 = sst [smem:[#allocation68_spill]] %s15817_s25  ;;  %s15701_s7 = smov 14  }
   0xd   :  { %s15827_s3 = sld [smem:[%s18315_s0 + %s15694_s30]]   ;;  %s15703_s22 = smov 16  }
   0xe   :  { %s15832_s8 = sld [smem:[%s18315_s0 + %s15695_s4]]   ;;  %s15704_s28 = smov 17  }
   0xf   :  { %s15837_s14 = sld [smem:[%s18315_s0 + %s15696_s10]]  }
  0x10   :  { %s15842_s19 = sld [smem:[%s18315_s0 + %s15697_s15]]   ;;  %s15702_s15 = smov 15  }
  0x11   :  { %18380 = sst [smem:[#allocation69_spill]] %s15822_s29 }
  0x12   :  { %s15847_s24 = sld [smem:[%s18315_s0 + %s15698_s20]]  }
  0x13   :  { %s15852_s30 = sld [smem:[%s18315_s0 + %s15699_s26]]  }
  0x14   :  { %18381 = sst [smem:[#allocation70_spill]] %s15832_s8 }
  0x15   :  { %18382 = sst [smem:[#allocation71_spill]] %s15837_s14 }
  0x16   :  { %18383 = sst [smem:[#allocation72_spill]] %s15842_s19 }
  0x17   :  { %s15857_s6 = sld [smem:[%s18315_s0 + %s15700_s1]]  }
  0x18   :  { %s15862_s12 = sld [smem:[%s18315_s0 + %s15701_s7]]   ;;  %s15705_s7 = smov 18  }
  0x19   :  { %18384 = sst [smem:[#allocation73_spill]] %s15852_s30 }
  0x1a   :  { %s15867_s20 = sld [smem:[%s18315_s0 + %s15702_s15]]   ;;  %s15706_s15 = smov 19  }
  0x1b   :  { %s15872_s27 = sld [smem:[%s18315_s0 + %s15703_s22]]   ;;  %s15707_s22 = smov 20  }
  0x1c   :  { %s15877_s4 = sld [smem:[%s18315_s0 + %s15704_s28]]   ;;  %s15708_s28 = smov 21  }
  0x1d   :  { %s15882_s17 = sld [smem:[%s18315_s0 + %s15705_s7]]   ;;  %s15709_s7 = smov 22  }
  0x1e   :  { %18385 = sst [smem:[#allocation74_spill]] %s15862_s12 }
  0x1f   :  { %s15887_s13 = sld [smem:[%s18315_s0 + %s15706_s15]]   ;;  %s15710_s15 = smov 23  }
  0x20   :  { %s15892_s8 = sld [smem:[%s18315_s0 + %s15707_s22]]   ;;  %s15711_s22 = smov 24  }
  0x21   :  { %18386 = sst [smem:[#allocation75_spill]] %s15872_s27 }
  0x22   :  { %18387 = sst [smem:[#allocation76_spill]] %s15877_s4 }
  0x23   :  { %s15897_s14 = sld [smem:[%s18315_s0 + %s15708_s28]]   ;;  %s15712_s28 = smov 25  }
  0x24   :  { %s15902_s9 = sld [smem:[%s18315_s0 + %s15709_s7]]   ;;  %s15713_s7 = smov 26  }
  0x25   :  { %18388 = sst [smem:[#allocation77_spill]] %s15887_s13 }
  0x26   :  { %18389 = sst [smem:[#allocation78_spill]] %s15892_s8 }
  0x27   :  { %s15907_s29 = sld [smem:[%s18315_s0 + %s15710_s15]]   ;;  %s15714_s15 = smov 27  }
  0x28   :  { %s15912_s8 = sld [smem:[%s18315_s0 + %s15711_s22]]   ;;  %s15715_s22 = smov 28  }
  0x29   :  { %18390 = sst [smem:[#allocation79_spill]] %s15897_s14 }
  0x2a   :  { %s15917_s13 = sld [smem:[%s18315_s0 + %s15712_s28]]   ;;  %s15716_s28 = smov 29  }
  0x2b   :  { %s15922_s25 = sld [smem:[%s18315_s0 + %s15713_s7]]   ;;  %s15717_s7 = smov 30  }
  0x2c   :  { %s15932_s4 = sld [smem:[%s18315_s0 + %s15715_s22]]   ;;  %s15719_s22 = smov 32  }
  0x2d   :  { %18391 = sst [smem:[#allocation80_spill]] %s15907_s29 }
  0x2e   :  { %18392 = sst [smem:[#allocation81_spill]] %s15912_s8 }
  0x2f   :  { %s15927_s29 = sld [smem:[%s18315_s0 + %s15714_s15]]   ;;  %s15718_s15 = smov 31  }
  0x30   :  { %18393 = sst [smem:[#allocation82_spill]] %s15917_s13 }
  0x31   :  { %s15937_s13 = sld [smem:[%s18315_s0 + %s15716_s28]]   ;;  %s15720_s28 = smov 33  }
  0x32   :  { %s15942_s30 = sld [smem:[%s18315_s0 + %s15717_s7]]   ;;  %s15721_s7 = smov 34  }
  0x33   :  { %s15947_s5 = sld [smem:[%s18315_s0 + %s15718_s15]]   ;;  %s15722_s15 = smov 35  }
  0x34   :  { %s15952_s19 = sld [smem:[%s18315_s0 + %s15719_s22]]   ;;  %s15723_s22 = smov 36  }
  0x35   :  { %18394 = sst [smem:[#allocation83_spill]] %s15927_s29 }
  0x36   :  { %s15962_s29 = sld [smem:[%s18315_s0 + %s15721_s7]]   ;;  %s15725_s7 = smov 38  }
  0x37   :  { %18395 = sst [smem:[#allocation84_spill]] %s15937_s13 }
  0x38   :  { %s15957_s13 = sld [smem:[%s18315_s0 + %s15720_s28]]   ;;  %s15724_s28 = smov 37  }
  0x39   :  { %18396 = sst [smem:[#allocation85_spill]] %s15947_s5 }
  0x3a   :  { %s15967_s5 = sld [smem:[%s18315_s0 + %s15722_s15]]   ;;  %s15726_s15 = smov 39  }
  0x3b   :  { %s15972_s8 = sld [smem:[%s18315_s0 + %s15723_s22]]   ;;  %s15727_s22 = smov 40  }
  0x3c   :  { %s15982_s14 = sld [smem:[%s18315_s0 + %s15725_s7]]   ;;  %s15729_s7 = smov 42  }
  0x3d   :  { %s15992_s27 = sld [smem:[%s18315_s0 + %s15727_s22]]   ;;  %s15731_s22 = smov 44  }
  0x3e   :  { %18397 = sst [smem:[#allocation86_spill]] %s15957_s13 }
  0x3f   :  { %s15977_s13 = sld [smem:[%s18315_s0 + %s15724_s28]]   ;;  %s15728_s28 = smov 41  }
  0x40   :  { %18398 = sst [smem:[#allocation87_spill]] %s15967_s5 }
  0x41   :  { %s15987_s5 = sld [smem:[%s18315_s0 + %s15726_s15]]   ;;  %s15730_s15 = smov 43  }
  0x42   :  { %18400 = sst [smem:[#allocation89_spill]] %s15982_s14 }
  0x43   :  { %18401 = sst [smem:[#allocation90_spill]] %s15992_s27 }
  0x44   :  { %s16002_s14 = sld [smem:[%s18315_s0 + %s15729_s7]]   ;;  %s15733_s7 = smov 46  }
  0x45   :  { %18399 = sst [smem:[#allocation88_spill]] %s15977_s13 }
  0x46   :  { %s15997_s13 = sld [smem:[%s18315_s0 + %s15728_s28]]   ;;  %s15732_s28 = smov 45  }
  0x47   :  { %s16007_s12 = sld [smem:[%s18315_s0 + %s15730_s15]]   ;;  %s15734_s15 = smov 47  }
  0x48   :  { %s16012_s27 = sld [smem:[%s18315_s0 + %s15731_s22]]  }
  0x4a   :  { %18403 = sst [smem:[#allocation92_spill]] %s16002_s14 }
  0x4b   :  { %s16022_s14 = sld [smem:[%s18315_s0 + %s15733_s7]]  }
  0x4c   :  { %18402 = sst [smem:[#allocation91_spill]] %s15997_s13 }
  0x4d   :  { %18404 = sst [smem:[#allocation93_spill]] %s16007_s12 }
  0x4e   :  { %s16017_s13 = sld [smem:[%s18315_s0 + %s15732_s28]]  }
  0x4f   :  { %s16027_s12 = sld [smem:[%s18315_s0 + %s15734_s15]]  }
  0x50   :  { %101 = vsyncpa [#allocation3], 0 }
  0x51   :  { %102 = vsyncpa [#allocation6], 0 }
  0x52   :  { %103 = vsyncpa [#allocation9], 0 }
  0x53   :  { %104 = vsyncpa [#allocation12], 0 }
  0x54   :  { %105 = vsyncpa [#allocation15], 0 }
  0x55   :  { %106 = vsyncpa [#allocation18], 0 }
  0x56   :  { %107 = vsyncpa [#allocation21], 0 }
  0x57   :  { %108 = vsyncpa [#allocation24], 0 }
  0x58   :  { %109 = vsyncpa [#allocation27], 0 }
  0x59   :  { %110 = vsyncpa [#allocation30], 0 }
  0x5a   :  { %111 = vsyncpa [#allocation33], 0 }
  0x5b   :  { %112 = vsyncpa [#allocation36], 0 }
  0x5c   :  { %113 = vsyncpa [#allocation39], 0 }
  0x5d   :  { %114 = vsyncpa [#allocation4], 0 }
  0x5e   :  { %115 = vsyncpa [#allocation43], 0 }
  0x5f   :  { %116 = vsyncpa [#allocation46], 0  ;;  %s15735_s0 = smov [#allocation5]   ;;  %s15736_s23 = smov [#allocation8]  }
  0x60   :  { %s147_s22 = sshll.u32 %s15735_s0, 4  ;;  %s175_s26 = sshll.u32 %s15736_s23, 4  ;;  %s148_s22 = int_to_ptr.vmem [resolvable:$true] %s147_s22  ;;  %s176_s26 = int_to_ptr.vmem [resolvable:$true] %s175_s26 }
  0x61   :  { %s14996_s28 = scalar_lea.hbm %s15827_s3, 32 }
  0x62   :  { %p14997_p0 = scmp.ne.s32.totalorder %s15827_s3, %s14996_s28  ;;  %p15000_p1 = scmp.lt.u32.totalorder %s14996_s28, %s15827_s3 }
  0x64   :  { %p15002_p2 = pnand %p15000_p1, %p14997_p0 }
  0x66   :  { %15005 = shalt.err (!%p15002_p2)
}
  0x67   :  { %s15006_s1 = scalar_lea.vmem %s148_s22, 32  ;;  %p15011_p4 = scmp.lt.s32.totalorder %s148_s22, %s148_s22 }
  0x68   :  { %p15007_p3 = scmp.ne.s32.totalorder %s148_s22, %s15006_s1  ;;  %p15012_p5 = scmp.lt.s32.totalorder %s15006_s1, %s15006_s1 }
  0x6a   :  { %p15013_p6 = por %p15012_p5, %p15011_p4 }
  0x6c   :  { %p15014_p7 = pnand %p15013_p6, %p15007_p3 }
  0x6e   :  { %15017 = shalt.err (!%p15014_p7)
}
  0x6f   :  { %150 = dma.hbm_to_vmem [thread:$0]  %s15827_s3, 32, %s148_s22, [#allocation6]  }
  0x70   :  { %s15018_s2 = scalar_lea.hbm %s15857_s6, 32 }
  0x71   :  { %p15019_p8 = scmp.ne.s32.totalorder %s15857_s6, %s15018_s2  ;;  %p15022_p9 = scmp.lt.u32.totalorder %s15018_s2, %s15857_s6 }
  0x73   :  { %p15024_p10 = pnand %p15022_p9, %p15019_p8 }
  0x75   :  { %15027 = shalt.err (!%p15024_p10)
}
  0x76   :  { %s15028_s7 = scalar_lea.vmem %s176_s26, 32  ;;  %p15033_p12 = scmp.lt.s32.totalorder %s176_s26, %s176_s26 }
  0x77   :  { %p15029_p11 = scmp.ne.s32.totalorder %s176_s26, %s15028_s7  ;;  %p15034_p13 = scmp.lt.s32.totalorder %s15028_s7, %s15028_s7 }
  0x79   :  { %p15035_p0 = por %p15034_p13, %p15033_p12 }
  0x7b   :  { %p15036_p1 = pnand %p15035_p0, %p15029_p11 }
  0x7d   :  { %15039 = shalt.err (!%p15036_p1)
}
  0x7e   :  { %178 = dma.hbm_to_vmem [thread:$0]  %s15857_s6, 32, %s176_s26, [#allocation9]  }
  0x7f   :  { %s15737_s10 = smov [#allocation11]   ;;  %s15040_s3 = scalar_lea.hbm %s15867_s20, 64 }
  0x80   :  { %s195_s11 = sshll.u32 %s15737_s10, 4  ;;  %p15041_p2 = scmp.ne.s32.totalorder %s15867_s20, %s15040_s3  ;;  %s196_s11 = int_to_ptr.vmem [resolvable:$true] %s195_s11 }
  0x81   :  { %p15044_p3 = scmp.lt.u32.totalorder %s15040_s3, %s15867_s20 }
  0x83   :  { %p15046_p4 = pnand %p15044_p3, %p15041_p2 }
  0x85   :  { %15049 = shalt.err (!%p15046_p4)
}
  0x86   :  { %s15050_s15 = scalar_lea.vmem %s196_s11, 64  ;;  %p15055_p6 = scmp.lt.s32.totalorder %s196_s11, %s196_s11 }
  0x87   :  { %p15051_p5 = scmp.ne.s32.totalorder %s196_s11, %s15050_s15  ;;  %p15056_p7 = scmp.lt.s32.totalorder %s15050_s15, %s15050_s15 }
  0x89   :  { %p15057_p8 = por %p15056_p7, %p15055_p6 }
  0x8b   :  { %p15058_p9 = pnand %p15057_p8, %p15051_p5 }
  0x8d   :  { %15061 = shalt.err (!%p15058_p9)
}
  0x8e   :  { %198 = dma.hbm_to_vmem [thread:$0]  %s15867_s20, 64, %s196_s11, [#allocation12]  }
  0x8f   :  { %s15738_s6 = smov [#allocation14]   ;;  %s15739_s18 = smov [#allocation17]  }
  0x90   :  { %s216_s16 = sshll.u32 %s15738_s6, 4  ;;  %s243_s0 = sshll.u32 %s15739_s18, 4  ;;  %s217_s16 = int_to_ptr.vmem [resolvable:$true] %s216_s16  ;;  %s244_s0 = int_to_ptr.vmem [resolvable:$true] %s243_s0 }
  0x91   :  { %s15062_s22 = scalar_lea.hbm %s15882_s17, 128 }
  0x92   :  { %p15063_p10 = scmp.ne.s32.totalorder %s15882_s17, %s15062_s22  ;;  %p15066_p11 = scmp.lt.u32.totalorder %s15062_s22, %s15882_s17 }
  0x94   :  { %p15068_p12 = pnand %p15066_p11, %p15063_p10 }
  0x96   :  { %15071 = shalt.err (!%p15068_p12)
}
  0x97   :  { %s15072_s23 = scalar_lea.vmem %s217_s16, 128  ;;  %p15077_p0 = scmp.lt.s32.totalorder %s217_s16, %s217_s16 }
  0x98   :  { %p15073_p13 = scmp.ne.s32.totalorder %s217_s16, %s15072_s23  ;;  %p15078_p1 = scmp.lt.s32.totalorder %s15072_s23, %s15072_s23 }
  0x9a   :  { %p15079_p2 = por %p15078_p1, %p15077_p0 }
  0x9c   :  { %p15080_p3 = pnand %p15079_p2, %p15073_p13 }
  0x9e   :  { %15083 = shalt.err (!%p15080_p3)
}
  0x9f   :  { %s15740_s26 = smov 64   ;;  %s15741_s20 = smov 4  }
  0xa0   :  { %222 = dma.hbm_to_vmem [thread:$0]  %s15882_s17, 128, %s217_s16, [#allocation15], %s15740_s26, %s15740_s26, %s15741_s20  }
  0xa1   :  { %s15084_s28 = scalar_lea.hbm %s15902_s9, 16 }
  0xa2   :  { %p15085_p4 = scmp.ne.s32.totalorder %s15902_s9, %s15084_s28  ;;  %p15088_p5 = scmp.lt.u32.totalorder %s15084_s28, %s15902_s9 }
  0xa4   :  { %p15090_p6 = pnand %p15088_p5, %p15085_p4 }
  0xa6   :  { %15093 = shalt.err (!%p15090_p6)
}
  0xa7   :  { %s15094_s1 = scalar_lea.vmem %s244_s0, 16  ;;  %s15098_s2 = scalar_lea.vmem %s244_s0, 32 }
  0xa8   :  { %p15095_p7 = scmp.ne.s32.totalorder %s244_s0, %s15094_s1  ;;  %p15099_p8 = scmp.lt.s32.totalorder %s244_s0, %s244_s0 }
  0xa9   :  { %p15100_p9 = scmp.lt.s32.totalorder %s15098_s2, %s15094_s1 }
  0xab   :  { %p15101_p10 = por %p15100_p9, %p15099_p8 }
  0xad   :  { %p15102_p11 = pnand %p15101_p10, %p15095_p7 }
  0xaf   :  { %15105 = shalt.err (!%p15102_p11)
}
  0xb0   :  { %246 = dma.hbm_to_vmem [thread:$0]  %s15902_s9, 16, %s244_s0, [#allocation18]  }
  0xb1   :  { %s15742_s17 = smov [#allocation20]   ;;  %s15743_s10 = smov [#allocation23]  }
  0xb2   :  { %s267_s7 = sshll.u32 %s15742_s17, 4  ;;  %s287_s11 = sshll.u32 %s15743_s10, 4  ;;  %s268_s7 = int_to_ptr.vmem [resolvable:$true] %s267_s7  ;;  %s288_s11 = int_to_ptr.vmem [resolvable:$true] %s287_s11 }
  0xb3   :  { %s15106_s3 = scalar_lea.hbm %s15922_s25, 16 }
  0xb4   :  { %p15107_p12 = scmp.ne.s32.totalorder %s15922_s25, %s15106_s3  ;;  %p15110_p13 = scmp.lt.u32.totalorder %s15106_s3, %s15922_s25 }
  0xb6   :  { %p15112_p0 = pnand %p15110_p13, %p15107_p12 }
  0xb8   :  { %15115 = shalt.err (!%p15112_p0)
}
  0xb9   :  { %s15116_s15 = scalar_lea.vmem %s268_s7, 16  ;;  %s15120_s6 = scalar_lea.vmem %s268_s7, 32 }
  0xba   :  { %p15117_p1 = scmp.ne.s32.totalorder %s268_s7, %s15116_s15  ;;  %p15121_p2 = scmp.lt.s32.totalorder %s268_s7, %s268_s7 }
  0xbb   :  { %p15122_p3 = scmp.lt.s32.totalorder %s15120_s6, %s15116_s15 }
  0xbd   :  { %p15123_p4 = por %p15122_p3, %p15121_p2 }
  0xbf   :  { %p15124_p5 = pnand %p15123_p4, %p15117_p1 }
  0xc1   :  { %15127 = shalt.err (!%p15124_p5)
}
  0xc2   :  { %270 = dma.hbm_to_vmem [thread:$0]  %s15922_s25, 16, %s268_s7, [#allocation21]  }
  0xc3   :  { %s15128_s9 = scalar_lea.hbm %s15932_s4, 16 }
  0xc4   :  { %p15129_p6 = scmp.ne.s32.totalorder %s15932_s4, %s15128_s9  ;;  %p15132_p7 = scmp.lt.u32.totalorder %s15128_s9, %s15932_s4 }
  0xc6   :  { %p15134_p8 = pnand %p15132_p7, %p15129_p6 }
  0xc8   :  { %15137 = shalt.err (!%p15134_p8)
}
  0xc9   :  { %s15138_s16 = scalar_lea.vmem %s288_s11, 16  ;;  %s15142_s18 = scalar_lea.vmem %s288_s11, 32 }
  0xca   :  { %p15139_p9 = scmp.ne.s32.totalorder %s288_s11, %s15138_s16  ;;  %p15143_p10 = scmp.lt.s32.totalorder %s288_s11, %s288_s11 }
  0xcb   :  { %p15144_p11 = scmp.lt.s32.totalorder %s15142_s18, %s15138_s16 }
  0xcd   :  { %p15145_p12 = por %p15144_p11, %p15143_p10 }
  0xcf   :  { %p15146_p13 = pnand %p15145_p12, %p15139_p9 }
  0xd1   :  { %15149 = shalt.err (!%p15146_p13)
}
  0xd2   :  { %290 = dma.hbm_to_vmem [thread:$0]  %s15932_s4, 16, %s288_s11, [#allocation24]  }
  0xd3   :  { %s15744_s25 = smov [#allocation26]   ;;  %s15745_s22 = smov [#allocation29]  }
  0xd4   :  { %s307_s0 = sshll.u32 %s15744_s25, 4  ;;  %s327_s23 = sshll.u32 %s15745_s22, 4  ;;  %s308_s0 = int_to_ptr.vmem [resolvable:$true] %s307_s0  ;;  %s328_s23 = int_to_ptr.vmem [resolvable:$true] %s327_s23 }
  0xd5   :  { %s15150_s28 = scalar_lea.hbm %s15942_s30, 16 }
  0xd6   :  { %p15151_p0 = scmp.ne.s32.totalorder %s15942_s30, %s15150_s28  ;;  %p15154_p1 = scmp.lt.u32.totalorder %s15150_s28, %s15942_s30 }
  0xd8   :  { %p15156_p2 = pnand %p15154_p1, %p15151_p0 }
  0xda   :  { %15159 = shalt.err (!%p15156_p2)
}
  0xdb   :  { %s15160_s1 = scalar_lea.vmem %s308_s0, 16  ;;  %s15164_s2 = scalar_lea.vmem %s308_s0, 32 }
  0xdc   :  { %p15161_p3 = scmp.ne.s32.totalorder %s308_s0, %s15160_s1  ;;  %p15165_p4 = scmp.lt.s32.totalorder %s308_s0, %s308_s0 }
  0xdd   :  { %p15166_p5 = scmp.lt.s32.totalorder %s15164_s2, %s15160_s1 }
  0xdf   :  { %p15167_p6 = por %p15166_p5, %p15165_p4 }
  0xe1   :  { %p15168_p7 = pnand %p15167_p6, %p15161_p3 }
  0xe3   :  { %15171 = shalt.err (!%p15168_p7)
}
  0xe4   :  { %310 = dma.hbm_to_vmem [thread:$0]  %s15942_s30, 16, %s308_s0, [#allocation27]  }
  0xe5   :  { %s15172_s4 = scalar_lea.hbm %s15952_s19, 16 }
  0xe6   :  { %p15173_p8 = scmp.ne.s32.totalorder %s15952_s19, %s15172_s4  ;;  %p15176_p9 = scmp.lt.u32.totalorder %s15172_s4, %s15952_s19 }
  0xe8   :  { %p15178_p10 = pnand %p15176_p9, %p15173_p8 }
  0xea   :  { %15181 = shalt.err (!%p15178_p10)
}
  0xeb   :  { %s15182_s17 = scalar_lea.vmem %s328_s23, 16  ;;  %s15186_s7 = scalar_lea.vmem %s328_s23, 32 }
  0xec   :  { %p15183_p11 = scmp.ne.s32.totalorder %s328_s23, %s15182_s17  ;;  %p15187_p12 = scmp.lt.s32.totalorder %s328_s23, %s328_s23 }
  0xed   :  { %p15188_p13 = scmp.lt.s32.totalorder %s15186_s7, %s15182_s17 }
  0xef   :  { %p15189_p0 = por %p15188_p13, %p15187_p12 }
  0xf1   :  { %p15190_p1 = pnand %p15189_p0, %p15183_p11 }
  0xf3   :  { %15193 = shalt.err (!%p15190_p1)
}
  0xf4   :  { %330 = dma.hbm_to_vmem [thread:$0]  %s15952_s19, 16, %s328_s23, [#allocation30]  }
  0xf5   :  { %s15746_s30 = smov [#allocation32]   ;;  %s15747_s11 = smov [#allocation35]  }
  0xf6   :  { %s347_s10 = sshll.u32 %s15746_s30, 4  ;;  %s367_s3 = sshll.u32 %s15747_s11, 4  ;;  %s348_s10 = int_to_ptr.vmem [resolvable:$true] %s347_s10  ;;  %s368_s3 = int_to_ptr.vmem [resolvable:$true] %s367_s3 }
  0xf7   :  { %s15194_s15 = scalar_lea.hbm %s15962_s29, 16 }
  0xf8   :  { %p15195_p2 = scmp.ne.s32.totalorder %s15962_s29, %s15194_s15  ;;  %p15198_p3 = scmp.lt.u32.totalorder %s15194_s15, %s15962_s29 }
  0xfa   :  { %p15200_p4 = pnand %p15198_p3, %p15195_p2 }
  0xfc   :  { %15203 = shalt.err (!%p15200_p4)
}
  0xfd   :  { %s15204_s6 = scalar_lea.vmem %s348_s10, 16  ;;  %s15208_s9 = scalar_lea.vmem %s348_s10, 32 }
  0xfe   :  { %p15205_p5 = scmp.ne.s32.totalorder %s348_s10, %s15204_s6  ;;  %p15209_p6 = scmp.lt.s32.totalorder %s348_s10, %s348_s10 }
  0xff   :  { %p15210_p7 = scmp.lt.s32.totalorder %s15208_s9, %s15204_s6 }
 0x101   :  { %p15211_p8 = por %p15210_p7, %p15209_p6 }
 0x103   :  { %p15212_p9 = pnand %p15211_p8, %p15205_p5 }
 0x105   :  { %15215 = shalt.err (!%p15212_p9)
}
 0x106   :  { %350 = dma.hbm_to_vmem [thread:$0]  %s15962_s29, 16, %s348_s10, [#allocation33]  }
 0x107   :  { %s15216_s19 = scalar_lea.hbm %s15972_s8, 16 }
 0x108   :  { %p15217_p10 = scmp.ne.s32.totalorder %s15972_s8, %s15216_s19  ;;  %p15220_p11 = scmp.lt.u32.totalorder %s15216_s19, %s15972_s8 }
 0x10a   :  { %p15222_p12 = pnand %p15220_p11, %p15217_p10 }
 0x10c   :  { %15225 = shalt.err (!%p15222_p12)
}
 0x10d   :  { %s15226_s16 = scalar_lea.vmem %s368_s3, 16  ;;  %s15230_s18 = scalar_lea.vmem %s368_s3, 32 }
 0x10e   :  { %p15227_p13 = scmp.ne.s32.totalorder %s368_s3, %s15226_s16  ;;  %p15231_p0 = scmp.lt.s32.totalorder %s368_s3, %s368_s3 }
 0x10f   :  { %p15232_p1 = scmp.lt.s32.totalorder %s15230_s18, %s15226_s16 }
 0x111   :  { %p15233_p2 = por %p15232_p1, %p15231_p0 }
 0x113   :  { %p15234_p3 = pnand %p15233_p2, %p15227_p13 }
 0x115   :  { %15237 = shalt.err (!%p15234_p3)
}
 0x116   :  { %370 = dma.hbm_to_vmem [thread:$0]  %s15972_s8, 16, %s368_s3, [#allocation36]  }
 0x117   :  { %s15748_s29 = smov [#allocation38]   ;;  %s15749_s0 = smov [#allocation2]  }
 0x118   :  { %s391_s25 = sshll.u32 %s15748_s29, 4  ;;  %s130_s22 = sshll.u32 %s15749_s0, 4  ;;  %s392_s25 = int_to_ptr.vmem [resolvable:$true] %s391_s25  ;;  %s131_s22 = int_to_ptr.vmem [resolvable:$true] %s130_s22 }
 0x119   :  { %s15238_s23 = scalar_lea.hbm %s15987_s5, 16 }
 0x11a   :  { %p15239_p4 = scmp.ne.s32.totalorder %s15987_s5, %s15238_s23  ;;  %p15242_p5 = scmp.lt.u32.totalorder %s15238_s23, %s15987_s5 }
 0x11c   :  { %p15244_p6 = pnand %p15242_p5, %p15239_p4 }
 0x11e   :  { %15247 = shalt.err (!%p15244_p6)
}
 0x11f   :  { %s15248_s28 = scalar_lea.vmem %s392_s25, 16  ;;  %s15252_s1 = scalar_lea.vmem %s392_s25, 32 }
 0x120   :  { %p15249_p7 = scmp.ne.s32.totalorder %s392_s25, %s15248_s28  ;;  %p15253_p8 = scmp.lt.s32.totalorder %s392_s25, %s392_s25 }
 0x121   :  { %p15254_p9 = scmp.lt.s32.totalorder %s15252_s1, %s15248_s28 }
 0x123   :  { %p15255_p10 = por %p15254_p9, %p15253_p8 }
 0x125   :  { %p15256_p11 = pnand %p15255_p10, %p15249_p7 }
 0x127   :  { %15259 = shalt.err (!%p15256_p11)
}
 0x128   :  { %394 = dma.hbm_to_vmem [thread:$0]  %s15987_s5, 16, %s392_s25, [#allocation39]  }
 0x129   :  { %s15260_s8 = scalar_lea.hbm %s15812_s21, 9216 }
 0x12a   :  { %p15261_p12 = scmp.ne.s32.totalorder %s15812_s21, %s15260_s8  ;;  %p15264_p13 = scmp.lt.u32.totalorder %s15260_s8, %s15812_s21 }
 0x12c   :  { %p15266_p0 = pnand %p15264_p13, %p15261_p12 }
 0x12e   :  { %15269 = shalt.err (!%p15266_p0)
}
 0x12f   :  { %s15270_s2 = scalar_lea.vmem %s131_s22, 9216  ;;  %p15275_p2 = scmp.lt.s32.totalorder %s131_s22, %s131_s22 }
 0x130   :  { %p15271_p1 = scmp.ne.s32.totalorder %s131_s22, %s15270_s2  ;;  %p15276_p3 = scmp.lt.s32.totalorder %s15270_s2, %s15270_s2 }
 0x132   :  { %p15277_p4 = por %p15276_p3, %p15275_p2 }
 0x134   :  { %p15278_p5 = pnand %p15277_p4, %p15271_p1 }
 0x136   :  { %15281 = shalt.err (!%p15278_p5)
}
 0x137   :  { %136 = dma.hbm_to_vmem [thread:$0]  %s15812_s21, 9216, %s131_s22, [#allocation3], %s15740_s26, %s15740_s26, %s15741_s20  }
 0x138   :  { %s15750_s5 = smov [#allocation7]   ;;  %s15751_s17 = smov [#allocation10]  }
 0x139   :  { %s163_s4 = sshll.u32 %s15750_s5, 4  ;;  %s185_s7 = sshll.u32 %s15751_s17, 4  ;;  %s164_s4 = int_to_ptr.vmem [resolvable:$true] %s163_s4  ;;  %s186_s7 = int_to_ptr.vmem [resolvable:$true] %s185_s7 }
 0x13a   :  { %s15282_s30 = scalar_lea.hbm %s15847_s24, 64 }
 0x13b   :  { %p15283_p6 = scmp.ne.s32.totalorder %s15847_s24, %s15282_s30  ;;  %p15286_p7 = scmp.lt.u32.totalorder %s15282_s30, %s15847_s24 }
 0x13d   :  { %p15288_p8 = pnand %p15286_p7, %p15283_p6 }
 0x13f   :  { %15291 = shalt.err (!%p15288_p8)
}
 0x140   :  { %s15292_s10 = scalar_lea.vmem %s164_s4, 64  ;;  %p15297_p10 = scmp.lt.s32.totalorder %s164_s4, %s164_s4 }
 0x141   :  { %p15293_p9 = scmp.ne.s32.totalorder %s164_s4, %s15292_s10  ;;  %p15298_p11 = scmp.lt.s32.totalorder %s15292_s10, %s15292_s10 }
 0x143   :  { %p15299_p12 = por %p15298_p11, %p15297_p10 }
 0x145   :  { %p15300_p13 = pnand %p15299_p12, %p15293_p9 }
 0x147   :  { %15303 = shalt.err (!%p15300_p13)
}
 0x148   :  { %s18405_s11 = sld [smem:[#allocation74_spill]] }
 0x149   :  { %166 = dma.hbm_to_vmem [thread:$0]  %s15847_s24, 64, %s164_s4, [#allocation6]  }
 0x14e   :  { %s15304_s21 = scalar_lea.hbm %s18405_s11, 32 }
 0x14f   :  { %p15305_p0 = scmp.ne.s32.totalorder %s18405_s11, %s15304_s21  ;;  %p15308_p1 = scmp.lt.u32.totalorder %s15304_s21, %s18405_s11 }
 0x151   :  { %p15310_p2 = pnand %p15308_p1, %p15305_p0 }
 0x153   :  { %15313 = shalt.err (!%p15310_p2)
}
 0x154   :  { %s15314_s3 = scalar_lea.vmem %s186_s7, 32  ;;  %p15319_p4 = scmp.lt.s32.totalorder %s186_s7, %s186_s7 }
 0x155   :  { %p15315_p3 = scmp.ne.s32.totalorder %s186_s7, %s15314_s3  ;;  %p15320_p5 = scmp.lt.s32.totalorder %s15314_s3, %s15314_s3 }
 0x157   :  { %p15321_p6 = por %p15320_p5, %p15319_p4 }
 0x159   :  { %p15322_p7 = pnand %p15321_p6, %p15315_p3 }
 0x15b   :  { %15325 = shalt.err (!%p15322_p7)
}
 0x15c   :  { %s18406_s15 = sld [smem:[#allocation75_spill]]  ;;  %s15752_s6 = smov [#allocation13]  }
 0x15d   :  { %188 = dma.hbm_to_vmem [thread:$0]  %s18405_s11, 32, %s186_s7, [#allocation9]  }
 0x15e   :  { %s205_s24 = sshll.u32 %s15752_s6, 4  ;;  %s15753_s9 = smov [#allocation16]   ;;  %s206_s24 = int_to_ptr.vmem [resolvable:$true] %s205_s24 }
 0x15f   :  { %s233_s19 = sshll.u32 %s15753_s9, 4  ;;  %s234_s19 = int_to_ptr.vmem [resolvable:$true] %s233_s19 }
 0x162   :  { %s15326_s16 = scalar_lea.hbm %s18406_s15, 64 }
 0x163   :  { %p15327_p8 = scmp.ne.s32.totalorder %s18406_s15, %s15326_s16  ;;  %p15330_p9 = scmp.lt.u32.totalorder %s15326_s16, %s18406_s15 }
 0x165   :  { %p15332_p10 = pnand %p15330_p9, %p15327_p8 }
 0x167   :  { %15335 = shalt.err (!%p15332_p10)
}
 0x168   :  { %s15336_s18 = scalar_lea.vmem %s206_s24, 64  ;;  %p15341_p12 = scmp.lt.s32.totalorder %s206_s24, %s206_s24 }
 0x169   :  { %p15337_p11 = scmp.ne.s32.totalorder %s206_s24, %s15336_s18  ;;  %p15342_p13 = scmp.lt.s32.totalorder %s15336_s18, %s15336_s18 }
 0x16b   :  { %p15343_p0 = por %p15342_p13, %p15341_p12 }
 0x16d   :  { %p15344_p1 = pnand %p15343_p0, %p15337_p11 }
 0x16f   :  { %15347 = shalt.err (!%p15344_p1)
}
 0x170   :  { %s18407_s29 = sld [smem:[#allocation79_spill]] }
 0x171   :  { %208 = dma.hbm_to_vmem [thread:$0]  %s18406_s15, 64, %s206_s24, [#allocation12]  }
 0x176   :  { %s15348_s25 = scalar_lea.hbm %s18407_s29, 64 }
 0x177   :  { %p15349_p2 = scmp.ne.s32.totalorder %s18407_s29, %s15348_s25  ;;  %p15352_p3 = scmp.lt.u32.totalorder %s15348_s25, %s18407_s29 }
 0x179   :  { %p15354_p4 = pnand %p15352_p3, %p15349_p2 }
 0x17b   :  { %15357 = shalt.err (!%p15354_p4)
}
 0x17c   :  { %s15358_s0 = scalar_lea.vmem %s234_s19, 64  ;;  %p15363_p6 = scmp.lt.s32.totalorder %s234_s19, %s234_s19 }
 0x17d   :  { %p15359_p5 = scmp.ne.s32.totalorder %s234_s19, %s15358_s0  ;;  %p15364_p7 = scmp.lt.s32.totalorder %s15358_s0, %s15358_s0 }
 0x17f   :  { %p15365_p8 = por %p15364_p7, %p15363_p6 }
 0x181   :  { %p15366_p9 = pnand %p15365_p8, %p15359_p5 }
 0x183   :  { %15369 = shalt.err (!%p15366_p9)
}
 0x184   :  { %s18408_s22 = sld [smem:[#allocation81_spill]]  ;;  %s15754_s23 = smov [#allocation19]  }
 0x185   :  { %236 = dma.hbm_to_vmem [thread:$0]  %s18407_s29, 64, %s234_s19, [#allocation15]  }
 0x186   :  { %s255_s28 = sshll.u32 %s15754_s23, 4  ;;  %s15755_s1 = smov [#allocation22]   ;;  %s256_s28 = int_to_ptr.vmem [resolvable:$true] %s255_s28 }
 0x187   :  { %s277_s8 = sshll.u32 %s15755_s1, 4  ;;  %s278_s8 = int_to_ptr.vmem [resolvable:$true] %s277_s8 }
 0x18a   :  { %s15370_s2 = scalar_lea.hbm %s18408_s22, 16 }
 0x18b   :  { %p15371_p10 = scmp.ne.s32.totalorder %s18408_s22, %s15370_s2  ;;  %p15374_p11 = scmp.lt.u32.totalorder %s15370_s2, %s18408_s22 }
 0x18d   :  { %p15376_p12 = pnand %p15374_p11, %p15371_p10 }
 0x18f   :  { %15379 = shalt.err (!%p15376_p12)
}
 0x190   :  { %s15380_s5 = scalar_lea.vmem %s256_s28, 16  ;;  %s15384_s4 = scalar_lea.vmem %s256_s28, 32 }
 0x191   :  { %p15381_p13 = scmp.ne.s32.totalorder %s256_s28, %s15380_s5  ;;  %p15385_p0 = scmp.lt.s32.totalorder %s256_s28, %s256_s28 }
 0x192   :  { %p15386_p1 = scmp.lt.s32.totalorder %s15384_s4, %s15380_s5 }
 0x194   :  { %p15387_p2 = por %p15386_p1, %p15385_p0 }
 0x196   :  { %p15388_p3 = pnand %p15387_p2, %p15381_p13 }
 0x198   :  { %15391 = shalt.err (!%p15388_p3)
}
 0x199   :  { %s18409_s17 = sld [smem:[#allocation83_spill]] }
 0x19a   :  { %258 = dma.hbm_to_vmem [thread:$0]  %s18408_s22, 16, %s256_s28, [#allocation18]  }
 0x19f   :  { %s15392_s7 = scalar_lea.hbm %s18409_s17, 16 }
 0x1a0   :  { %p15393_p4 = scmp.ne.s32.totalorder %s18409_s17, %s15392_s7  ;;  %p15396_p5 = scmp.lt.u32.totalorder %s15392_s7, %s18409_s17 }
 0x1a2   :  { %p15398_p6 = pnand %p15396_p5, %p15393_p4 }
 0x1a4   :  { %15401 = shalt.err (!%p15398_p6)
}
 0x1a5   :  { %s15402_s30 = scalar_lea.vmem %s278_s8, 16  ;;  %s15406_s10 = scalar_lea.vmem %s278_s8, 32 }
 0x1a6   :  { %p15403_p7 = scmp.ne.s32.totalorder %s278_s8, %s15402_s30  ;;  %p15407_p8 = scmp.lt.s32.totalorder %s278_s8, %s278_s8 }
 0x1a7   :  { %p15408_p9 = scmp.lt.s32.totalorder %s15406_s10, %s15402_s30 }
 0x1a9   :  { %p15409_p10 = por %p15408_p9, %p15407_p8 }
 0x1ab   :  { %p15410_p11 = pnand %p15409_p10, %p15403_p7 }
 0x1ad   :  { %15413 = shalt.err (!%p15410_p11)
}
 0x1ae   :  { %s18410_s11 = sld [smem:[#allocation84_spill]]  ;;  %s15756_s21 = smov [#allocation25]  }
 0x1af   :  { %280 = dma.hbm_to_vmem [thread:$0]  %s18409_s17, 16, %s278_s8, [#allocation21]  }
 0x1b0   :  { %s297_s3 = sshll.u32 %s15756_s21, 4  ;;  %s15757_s15 = smov [#allocation28]   ;;  %s298_s3 = int_to_ptr.vmem [resolvable:$true] %s297_s3 }
 0x1b1   :  { %s317_s6 = sshll.u32 %s15757_s15, 4  ;;  %s318_s6 = int_to_ptr.vmem [resolvable:$true] %s317_s6 }
 0x1b4   :  { %s15414_s24 = scalar_lea.hbm %s18410_s11, 16 }
 0x1b5   :  { %p15415_p12 = scmp.ne.s32.totalorder %s18410_s11, %s15414_s24  ;;  %p15418_p13 = scmp.lt.u32.totalorder %s15414_s24, %s18410_s11 }
 0x1b7   :  { %p15420_p0 = pnand %p15418_p13, %p15415_p12 }
 0x1b9   :  { %15423 = shalt.err (!%p15420_p0)
}
 0x1ba   :  { %s15424_s9 = scalar_lea.vmem %s298_s3, 16  ;;  %s15428_s19 = scalar_lea.vmem %s298_s3, 32 }
 0x1bb   :  { %p15425_p1 = scmp.ne.s32.totalorder %s298_s3, %s15424_s9  ;;  %p15429_p2 = scmp.lt.s32.totalorder %s298_s3, %s298_s3 }
 0x1bc   :  { %p15430_p3 = scmp.lt.s32.totalorder %s15428_s19, %s15424_s9 }
 0x1be   :  { %p15431_p4 = por %p15430_p3, %p15429_p2 }
 0x1c0   :  { %p15432_p5 = pnand %p15431_p4, %p15425_p1 }
 0x1c2   :  { %15435 = shalt.err (!%p15432_p5)
}
 0x1c3   :  { %s18411_s16 = sld [smem:[#allocation85_spill]] }
 0x1c4   :  { %300 = dma.hbm_to_vmem [thread:$0]  %s18410_s11, 16, %s298_s3, [#allocation24]  }
 0x1c9   :  { %s15436_s18 = scalar_lea.hbm %s18411_s16, 16 }
 0x1ca   :  { %p15437_p6 = scmp.ne.s32.totalorder %s18411_s16, %s15436_s18  ;;  %p15440_p7 = scmp.lt.u32.totalorder %s15436_s18, %s18411_s16 }
 0x1cc   :  { %p15442_p8 = pnand %p15440_p7, %p15437_p6 }
 0x1ce   :  { %15445 = shalt.err (!%p15442_p8)
}
 0x1cf   :  { %s15446_s29 = scalar_lea.vmem %s318_s6, 16  ;;  %s15450_s25 = scalar_lea.vmem %s318_s6, 32 }
 0x1d0   :  { %p15447_p9 = scmp.ne.s32.totalorder %s318_s6, %s15446_s29  ;;  %p15451_p10 = scmp.lt.s32.totalorder %s318_s6, %s318_s6 }
 0x1d1   :  { %p15452_p11 = scmp.lt.s32.totalorder %s15450_s25, %s15446_s29 }
 0x1d3   :  { %p15453_p12 = por %p15452_p11, %p15451_p10 }
 0x1d5   :  { %p15454_p13 = pnand %p15453_p12, %p15447_p9 }
 0x1d7   :  { %15457 = shalt.err (!%p15454_p13)
}
 0x1d8   :  { %s18412_s0 = sld [smem:[#allocation86_spill]]  ;;  %s15758_s22 = smov [#allocation31]  }
 0x1d9   :  { %320 = dma.hbm_to_vmem [thread:$0]  %s18411_s16, 16, %s318_s6, [#allocation27]  }
 0x1da   :  { %s337_s23 = sshll.u32 %s15758_s22, 4  ;;  %s15759_s28 = smov [#allocation34]   ;;  %s338_s23 = int_to_ptr.vmem [resolvable:$true] %s337_s23 }
 0x1db   :  { %s357_s1 = sshll.u32 %s15759_s28, 4  ;;  %s358_s1 = int_to_ptr.vmem [resolvable:$true] %s357_s1 }
 0x1de   :  { %s15458_s8 = scalar_lea.hbm %s18412_s0, 16 }
 0x1df   :  { %p15459_p0 = scmp.ne.s32.totalorder %s18412_s0, %s15458_s8  ;;  %p15462_p1 = scmp.lt.u32.totalorder %s15458_s8, %s18412_s0 }
 0x1e1   :  { %p15464_p2 = pnand %p15462_p1, %p15459_p0 }
 0x1e3   :  { %15467 = shalt.err (!%p15464_p2)
}
 0x1e4   :  { %s15468_s2 = scalar_lea.vmem %s338_s23, 16  ;;  %s15472_s5 = scalar_lea.vmem %s338_s23, 32 }
 0x1e5   :  { %p15469_p3 = scmp.ne.s32.totalorder %s338_s23, %s15468_s2  ;;  %p15473_p4 = scmp.lt.s32.totalorder %s338_s23, %s338_s23 }
 0x1e6   :  { %p15474_p5 = scmp.lt.s32.totalorder %s15472_s5, %s15468_s2 }
 0x1e8   :  { %p15475_p6 = por %p15474_p5, %p15473_p4 }
 0x1ea   :  { %p15476_p7 = pnand %p15475_p6, %p15469_p3 }
 0x1ec   :  { %15479 = shalt.err (!%p15476_p7)
}
 0x1ed   :  { %s18413_s4 = sld [smem:[#allocation87_spill]] }
 0x1ee   :  { %340 = dma.hbm_to_vmem [thread:$0]  %s18412_s0, 16, %s338_s23, [#allocation30]  }
 0x1f3   :  { %s15480_s17 = scalar_lea.hbm %s18413_s4, 16 }
 0x1f4   :  { %p15481_p8 = scmp.ne.s32.totalorder %s18413_s4, %s15480_s17  ;;  %p15484_p9 = scmp.lt.u32.totalorder %s15480_s17, %s18413_s4 }
 0x1f6   :  { %p15486_p10 = pnand %p15484_p9, %p15481_p8 }
 0x1f8   :  { %15489 = shalt.err (!%p15486_p10)
}
 0x1f9   :  { %s15490_s7 = scalar_lea.vmem %s358_s1, 16  ;;  %s15494_s30 = scalar_lea.vmem %s358_s1, 32 }
 0x1fa   :  { %p15491_p11 = scmp.ne.s32.totalorder %s358_s1, %s15490_s7  ;;  %p15495_p12 = scmp.lt.s32.totalorder %s358_s1, %s358_s1 }
 0x1fb   :  { %p15496_p13 = scmp.lt.s32.totalorder %s15494_s30, %s15490_s7 }
 0x1fd   :  { %p15497_p0 = por %p15496_p13, %p15495_p12 }
 0x1ff   :  { %p15498_p1 = pnand %p15497_p0, %p15491_p11 }
 0x201   :  { %15501 = shalt.err (!%p15498_p1)
}
 0x202   :  { %s18414_s10 = sld [smem:[#allocation89_spill]]  ;;  %s15760_s11 = smov [#allocation37]  }
 0x203   :  { %360 = dma.hbm_to_vmem [thread:$0]  %s18413_s4, 16, %s358_s1, [#allocation33]  }
 0x204   :  { %s378_s21 = sshll.u32 %s15760_s11, 4  ;;  %s15761_s3 = smov [#allocation40]   ;;  %s379_s21 = int_to_ptr.vmem [resolvable:$true] %s378_s21 }
 0x205   :  { %s403_s15 = sshll.u32 %s15761_s3, 4  ;;  %s404_s15 = int_to_ptr.vmem [resolvable:$true] %s403_s15 }
 0x208   :  { %s15502_s6 = scalar_lea.hbm %s18414_s10, 256 }
 0x209   :  { %p15503_p2 = scmp.ne.s32.totalorder %s18414_s10, %s15502_s6  ;;  %p15506_p3 = scmp.lt.u32.totalorder %s15502_s6, %s18414_s10 }
 0x20b   :  { %p15508_p4 = pnand %p15506_p3, %p15503_p2 }
 0x20d   :  { %15511 = shalt.err (!%p15508_p4)
}
 0x20e   :  { %s15512_s24 = scalar_lea.vmem %s379_s21, 256  ;;  %p15517_p6 = scmp.lt.s32.totalorder %s379_s21, %s379_s21 }
 0x20f   :  { %p15513_p5 = scmp.ne.s32.totalorder %s379_s21, %s15512_s24  ;;  %p15518_p7 = scmp.lt.s32.totalorder %s15512_s24, %s15512_s24 }
 0x211   :  { %p15519_p8 = por %p15518_p7, %p15517_p6 }
 0x213   :  { %p15520_p9 = pnand %p15519_p8, %p15513_p5 }
 0x215   :  { %15523 = shalt.err (!%p15520_p9)
}
 0x216   :  { %s18415_s9 = sld [smem:[#allocation91_spill]] }
 0x217   :  { %384 = dma.hbm_to_vmem [thread:$0]  %s18414_s10, 256, %s379_s21, [#allocation36], %s15740_s26, %s15740_s26, %s15741_s20  }
 0x21c   :  { %s15524_s19 = scalar_lea.hbm %s18415_s9, 16 }
 0x21d   :  { %p15525_p10 = scmp.ne.s32.totalorder %s18415_s9, %s15524_s19  ;;  %p15528_p11 = scmp.lt.u32.totalorder %s15524_s19, %s18415_s9 }
 0x21f   :  { %p15530_p12 = pnand %p15528_p11, %p15525_p10 }
 0x221   :  { %15533 = shalt.err (!%p15530_p12)
}
 0x222   :  { %s15534_s16 = scalar_lea.vmem %s404_s15, 16  ;;  %s15538_s18 = scalar_lea.vmem %s404_s15, 32 }
 0x223   :  { %p15535_p13 = scmp.ne.s32.totalorder %s404_s15, %s15534_s16  ;;  %p15539_p0 = scmp.lt.s32.totalorder %s404_s15, %s404_s15 }
 0x224   :  { %p15540_p1 = scmp.lt.s32.totalorder %s15538_s18, %s15534_s16 }
 0x226   :  { %p15541_p2 = por %p15540_p1, %p15539_p0 }
 0x228   :  { %p15542_p3 = pnand %p15541_p2, %p15535_p13 }
 0x22a   :  { %15545 = shalt.err (!%p15542_p3)
}
 0x22b   :  { %406 = dma.hbm_to_vmem [thread:$0]  %s18415_s9, 16, %s404_s15, [#allocation39]  }
 0x22c   :  { %15656 = dma.done.wait [#allocation3], 9216  }
 0x22d   :  { %15657 = vsyncadd [#allocation3], 4294958080 }
 0x22e   :  { %15658 = dma.done.wait [#allocation6], 96  }
 0x22f   :  { %15659 = vsyncadd [#allocation6], 4294967200 }
 0x230   :  { %15660 = dma.done.wait [#allocation9], 64  }
 0x231   :  { %15661 = vsyncadd [#allocation9], 4294967232 }
 0x232   :  { %15662 = dma.done.wait [#allocation12], 128  }
 0x233   :  { %15663 = vsyncadd [#allocation12], 4294967168 }
 0x234   :  { %15664 = dma.done.wait [#allocation15], 192  }
 0x235   :  { %15665 = vsyncadd [#allocation15], 4294967104 }
 0x236   :  { %15666 = dma.done.wait [#allocation18], 32  }
 0x237   :  { %15667 = vsyncadd [#allocation18], 4294967264 }
 0x238   :  { %15668 = dma.done.wait [#allocation21], 32  }
 0x239   :  { %15669 = vsyncadd [#allocation21], 4294967264 }
 0x23a   :  { %15670 = dma.done.wait [#allocation24], 32  }
 0x23b   :  { %15671 = vsyncadd [#allocation24], 4294967264 }
 0x23c   :  { %15672 = dma.done.wait [#allocation27], 32  }
 0x23d   :  { %15673 = vsyncadd [#allocation27], 4294967264 }
 0x23e   :  { %15674 = dma.done.wait [#allocation30], 32  }
 0x23f   :  { %15675 = vsyncadd [#allocation30], 4294967264 }
 0x240   :  { %15676 = dma.done.wait [#allocation33], 32  }
 0x241   :  { %15677 = vsyncadd [#allocation33], 4294967264 }
 0x242   :  { %15678 = dma.done.wait [#allocation36], 272  }
 0x243   :  { %15679 = vsyncadd [#allocation36], 4294967024 }
 0x244   :  { %15680 = dma.done.wait [#allocation39], 32  }
 0x245   :  { %15681 = vsyncadd [#allocation39], 4294967264  ;;  %s18416_s29 = sld [smem:[#allocation72_spill]]  ;;  %v18341_v0 = vmov 0   ;;  %vm522_vm0 = vcmask 1041408   ;;  %vm518_vm1 = vcmask 31744  }
 0x246   :  { %561 = vmatprep.mubr.bf16.mxu0 %v18341_v0  ;;  %v10929_v1 = vld.sshfl [vmem:[#allocation7] sm:$0x33 pattern:$0x76325410]  ;;  %s18417_s25 = sld [smem:[#allocation64_spill]]  ;;  %s15763_s0 = smov 112  }
 0x247   :  { %v517_v2 = vcombine.high %v10929_v1, %v10929_v1  ;;  %v524_v3 = vsel %vm522_vm0, %v10929_v1, 0  ;;  %s15764_s22 = smov 96   ;;  %s15765_s23 = smov 80   ;;  %vm6599_vm2 = vcmask 130048   ;;  %vm8783_vm3 = vcmask 64512  }
 0x248   :  { %s15766_s28 = smov 48   ;;  %s15767_s1 = smov 32   ;;  %vm9166_vm4 = vcmask 1043456   ;;  %vm9159_vm5 = vcmask 195584   ;;  %vm9255_vm6 = vcmask 261120   ;;  %vm10062_vm7 = vcmask 58368  }
 0x249   :  { %10930 = vmatprep.subr.msk.bf16.mxu0 %vm522_vm0, %v517_v2  ;;  %s15768_s8 = smov 16   ;;  %s18418_s2 = sld [smem:[#allocation73_spill]]  ;;  %vm15776_vm8 = vmmov 0   ;;  %vm10030_vm9 = vcmask 189440   ;;  %vm10466_vm10 = vcmask 254976   ;;  %vm10770_vm11 = vcmask 33792  }
 0x24a   :  { %530 = vmatpush1.bf16.msra.mxu0 %v524_v3  ;;  %s15769_s5 = smov 116   ;;  %s15770_s4 = smov 120   ;;  %vm10795_vm12 = vcmask 1024  }
 0x24b   :  { %v10931_v4 = vld.sshfl [vmem:[%s18416_s29] sm:$0x33 pattern:$0x76325410]  ;;  %s18483_s17 = sld [smem:[#allocation68_spill]]  ;;  %s18484_s7 = sld [smem:[#allocation77_spill]] }
 0x24c   :  { %v650_v5 = vcombine.high %v10931_v4, %v10931_v4  ;;  %v16144_v6 = vsel %vm522_vm0, %v10931_v4, 0  ;;  %v483_v7 = vld [vmem:[%s18417_s25] sm:$0xff]  ;;  %v484_v8 = vld [vmem:[%s18417_s25 + $0x8] sm:$0xff]  ;;  %v485_v10 = vld [vmem:[%s18417_s25 + $0x10] sm:$0xff]  ;;  %s15771_s30 = smov 104   ;;  %s15772_s10 = smov 56  }
 0x24d   :  { %562 = vmatmul.mubr.bf16.vlgmr.msra.gmra.mrb[0].mxu0 %v18341_v0  ;;  %v500_v9 = vpack.c.bf16 %v484_v8, %v483_v7  ;;  %v486_v11 = vld [vmem:[%s18417_s25 + $0x18] sm:$0xff]  ;;  %v487_v13 = vld [vmem:[%s18417_s25 + $0x20] sm:$0xff]  ;;  %v488_v14 = vld [vmem:[%s18417_s25 + $0x28] sm:$0xff]  ;;  %s15773_s11 = smov 8   ;;  %s15774_s21 = smov 88  }
 0x24e   :  { %10932 = vmatprep.subr.msk.bf16.mxu0 %vm522_vm0, %v650_v5  ;;  %571 = vmatprep.mubr.bf16.mxu0 %v18341_v0  ;;  %v501_v12 = vpack.c.bf16 %v486_v11, %v485_v10  ;;  %v502_v15 = vpack.c.bf16 %v488_v14, %v487_v13  ;;  %v489_v16 = vld [vmem:[%s18417_s25 + $0x30] sm:$0xff]  ;;  %v490_v17 = vld [vmem:[%s18417_s25 + $0x38] sm:$0xff]  ;;  %v491_v19 = vld [vmem:[%s18417_s25 + $0x40] sm:$0xff]  ;;  %s18486_s3 = sld [smem:[#allocation78_spill]]  ;;  %s18487_s15 = sld [smem:[#allocation69_spill]] }
 0x24f   :  { %682 = vmatpush1.bf16.msra.mxu0 %v16144_v6  ;;  %v503_v18 = vpack.c.bf16 %v490_v17, %v489_v16  ;;  %v492_v20 = vld [vmem:[%s18417_s25 + $0x48] sm:$0xff]  ;;  %v493_v22 = vld [vmem:[%s18417_s25 + $0x50] sm:$0xff]  ;;  %v494_v23 = vld [vmem:[%s18417_s25 + $0x58] sm:$0xff]  ;;  %s18488_s6 = sld [smem:[#allocation65_spill]]  ;;  %s18489_s24 = sld [smem:[#allocation71_spill]] }
 0x250   :  { %11046 = vmatprep.subr.msk.bf16.mxu0 %vm522_vm0, %v517_v2  ;;  %v504_v21 = vpack.c.bf16 %v492_v20, %v491_v19  ;;  %v505_v24 = vpack.c.bf16 %v494_v23, %v493_v22  ;;  %v495_v25 = vld [vmem:[%s18417_s25 + $0x60] sm:$0xff]  ;;  %v496_v26 = vld [vmem:[%s18417_s25 + $0x68] sm:$0xff]  ;;  %v497_v28 = vld [vmem:[%s18417_s25 + $0x70] sm:$0xff]  ;;  %s18490_s9 = sld [smem:[#allocation80_spill]]  ;;  %s18491_s19 = sld [smem:[#allocation70_spill]] }
 0x251   :  { %v506_v27 = vpack.c.bf16 %v496_v26, %v495_v25  ;;  %v498_v29 = vld [vmem:[%s18417_s25 + $0x78] sm:$0xff]  ;;  %v14439_v8 = vld [vmem:[#allocation2 + $0x40] sm:$0xff]   ;;  %v14440_v26 = vld [vmem:[#allocation2 + $0x48] sm:$0xff]   ;;  %s18492_s16 = sld [smem:[#allocation82_spill]]  ;;  %s18493_s18 = sld [smem:[#allocation88_spill]] }
 0x252   :  { %v507_v30 = vpack.c.bf16 %v498_v29, %v497_v28  ;;  %12089 = vmatprep.mubr.bf16.mxu1 %v14439_v8  ;;  %v14442_v28 = vld [vmem:[#allocation2 + $0x58] sm:$0xff]   ;;  %v14443_v29 = vld [vmem:[#allocation2 + $0x60] sm:$0xff]   ;;  %s18494_s29 = sld [smem:[#allocation66_spill]] }
 0x253   :  { %v14463_v8 = vld [vmem:[#allocation2 + $0xc0] sm:$0xff]  }
 0x255   :  { %572 = vmatmul.mubr.bf16.gmra.mrb[4].mxu0 %v18341_v0 }
 0x256   :  { %581 = vmatprep.mubr.bf16.mxu0 %v18341_v0 }
 0x25d   :  { %582 = vmatmul.mubr.bf16.gmra.mrb[8].mxu0 %v18341_v0 }
 0x25e   :  { %591 = vmatprep.mubr.bf16.mxu0 %v18341_v0 }
 0x265   :  { %592 = vmatmul.mubr.bf16.gmra.mrb[12].mxu0 %v18341_v0 }
 0x266   :  { %601 = vmatprep.mubr.bf16.mxu0 %v18341_v0 }
 0x26d   :  { %602 = vmatmul.mubr.bf16.gmra.mrb[16].mxu0 %v18341_v0 }
 0x26e   :  { %611 = vmatprep.mubr.bf16.mxu0 %v18341_v0 }
 0x275   :  { %612 = vmatmul.mubr.bf16.gmra.mrb[20].mxu0 %v18341_v0 }
 0x276   :  { %621 = vmatprep.mubr.bf16.mxu0 %v18341_v0 }
 0x27d   :  { %622 = vmatmul.mubr.bf16.gmra.mrb[24].mxu0 %v18341_v0 }
 0x27e   :  { %631 = vmatprep.mubr.bf16.mxu0 %v18341_v0 }
 0x285   :  { %632 = vmatmul.mubr.bf16.gmra.mrb[28].mxu0 %v18341_v0 }
 0x286   :  { %713 = vmatprep.mubr.bf16.mxu0 %v18341_v0 }
 0x28d   :  { %10933 = vmatmul.mubr.msk.bf16.vlgmr.msra.gmra.mrb[0].mxu0 %vm518_vm1, %v500_v9 }
 0x28e   :  { %723 = vmatprep.mubr.bf16.mxu0 %v18341_v0  ;;  %3044 = vmatpush1.bf16.msra.mxu0 %v524_v3 }
 0x28f   :  { %11055 = vmatprep.subr.msk.bf16.mxu0 %vm522_vm0, %v650_v5 }
 0x295   :  { %10934 = vmatmul.mubr.msk.bf16.gmra.mrb[4].mxu0 %vm518_vm1, %v501_v12 }
 0x296   :  { %733 = vmatprep.mubr.bf16.mxu0 %v18341_v0 }
 0x29d   :  { %10935 = vmatmul.mubr.msk.bf16.gmra.mrb[8].mxu0 %vm518_vm1, %v502_v15 }
 0x29e   :  { %743 = vmatprep.mubr.bf16.mxu0 %v18341_v0 }
 0x2a5   :  { %10936 = vmatmul.mubr.msk.bf16.gmra.mrb[12].mxu0 %vm518_vm1, %v503_v18 }
 0x2a6   :  { %753 = vmatprep.mubr.bf16.mxu0 %v18341_v0 }
 0x2ad   :  { %10937 = vmatmul.mubr.msk.bf16.gmra.mrb[16].mxu0 %vm518_vm1, %v504_v21 }
 0x2ae   :  { %763 = vmatprep.mubr.bf16.mxu0 %v18341_v0 }
 0x2b5   :  { %10938 = vmatmul.mubr.msk.bf16.gmra.mrb[20].mxu0 %vm518_vm1, %v505_v24 }
 0x2b6   :  { %773 = vmatprep.mubr.bf16.mxu0 %v18341_v0 }
 0x2bd   :  { %10939 = vmatmul.mubr.msk.bf16.gmra.mrb[24].mxu0 %vm518_vm1, %v506_v27  ;;  %v14441_v27 = vld [vmem:[#allocation2 + $0x50] sm:$0xff]  }
 0x2be   :  { %783 = vmatprep.mubr.bf16.mxu0 %v18341_v0 }
 0x2c5   :  { %10940 = vmatmul.mubr.msk.bf16.gmra.mrb[28].mxu0 %vm518_vm1, %v507_v30  ;;  %v14444_v30 = vld [vmem:[#allocation2 + $0x68] sm:$0xff]  }
 0x2c6   :  { %3075 = vmatprep.mubr.bf16.mxu0 %v18341_v0 }
 0x360   :  { %v715_v31 = vpop.f32.mrb[0].mxu0 }
 0x361   :  { %v717_v32 = vpop.f32.mrb[1].mxu0 }
 0x362   :  { %v719_v33 = vpop.f32.mrb[2].mxu0 }
 0x363   :  { %v16197_v34 = vpack.c.bf16 %v719_v33, %v715_v31  ;;  %v721_v35 = vpop.f32.mrb[3].mxu0  ;;  %v14445_v31 = vld [vmem:[#allocation2 + $0x70] sm:$0xff]   ;;  %v14447_v33 = vld [vmem:[#allocation2] sm:$0xff]  }
 0x364   :  { %v16199_v36 = vpack.c.bf16 %v721_v35, %v717_v32  ;;  %v14446_v32 = vld [vmem:[#allocation2 + $0x78] sm:$0xff]  }
 0x365   :  { %891 = vrot.lane.b32.xlu0 %v16197_v34, %s15763_s0 }
 0x368   :  { %v725_v37 = vpop.f32.mrb[4].mxu0 }
 0x369   :  { %v727_v38 = vpop.f32.mrb[5].mxu0 }
 0x36a   :  { %v729_v39 = vpop.f32.mrb[6].mxu0 }
 0x36b   :  { %v16203_v40 = vpack.c.bf16 %v729_v39, %v725_v37  ;;  %v731_v41 = vpop.f32.mrb[7].mxu0  ;;  %v14449_v37 = vld [vmem:[#allocation2 + $0x10] sm:$0xff]   ;;  %v14450_v39 = vld [vmem:[#allocation2 + $0x18] sm:$0xff]  }
 0x36c   :  { %v16205_v42 = vpack.c.bf16 %v731_v41, %v727_v38  ;;  %v14451_v41 = vld [vmem:[#allocation2 + $0x20] sm:$0xff]  }
 0x36d   :  { %893 = vrot.lane.b32.xlu0 %v16203_v40, %s15763_s0 }
 0x370   :  { %v735_v43 = vpop.f32.mrb[8].mxu0 }
 0x371   :  { %v737_v44 = vpop.f32.mrb[9].mxu0 }
 0x372   :  { %v739_v45 = vpop.f32.mrb[10].mxu0 }
 0x373   :  { %v16209_v46 = vpack.c.bf16 %v739_v45, %v735_v43  ;;  %v741_v47 = vpop.f32.mrb[11].mxu0 }
 0x374   :  { %v16211_v48 = vpack.c.bf16 %v741_v47, %v737_v44  ;;  %v14452_v44 = vld [vmem:[#allocation2 + $0x28] sm:$0xff]  }
 0x375   :  { %895 = vrot.lane.b32.xlu1 %v16209_v46, %s15763_s0 }
 0x378   :  { %v745_v49 = vpop.f32.mrb[12].mxu0 }
 0x379   :  { %v747_v50 = vpop.f32.mrb[13].mxu0 }
 0x37a   :  { %v749_v51 = vpop.f32.mrb[14].mxu0 }
 0x37b   :  { %v16215_v52 = vpack.c.bf16 %v749_v51, %v745_v49  ;;  %v751_v53 = vpop.f32.mrb[15].mxu0  ;;  %v14454_v49 = vld [vmem:[#allocation2 + $0x38] sm:$0xff]   ;;  %v14455_v51 = vld [vmem:[#allocation2 + $0x80] sm:$0xff]  }
 0x37c   :  { %v16217_v54 = vpack.c.bf16 %v751_v53, %v747_v50  ;;  %v14456_v53 = vld [vmem:[#allocation2 + $0x88] sm:$0xff]  }
 0x37d   :  { %897 = vrot.lane.b32.xlu1 %v16215_v52, %s15763_s0 }
 0x380   :  { %v755_v55 = vpop.f32.mrb[16].mxu0 }
 0x381   :  { %v757_v56 = vpop.f32.mrb[17].mxu0 }
 0x382   :  { %v759_v57 = vpop.f32.mrb[18].mxu0 }
 0x383   :  { %v16221_v58 = vpack.c.bf16 %v759_v57, %v755_v55  ;;  %v761_v59 = vpop.f32.mrb[19].mxu0 }
 0x384   :  { %v16223_v60 = vpack.c.bf16 %v761_v59, %v757_v56  ;;  %v14457_v56 = vld [vmem:[#allocation2 + $0x90] sm:$0xff]  }
 0x385   :  { %899 = vrot.lane.b32.xlu0 %v16221_v58, %s15763_s0 }
 0x388   :  { %v765_v61 = vpop.f32.mrb[20].mxu0 }
 0x389   :  { %v767_v62 = vpop.f32.mrb[21].mxu0 }
 0x38a   :  { %v769_v63 = vpop.f32.mrb[22].mxu0 }
 0x38b   :  { %v16227_v1 = vpack.c.bf16 %v769_v63, %v765_v61  ;;  %v771_v2 = vpop.f32.mrb[23].mxu0  ;;  %v14459_v61 = vld [vmem:[#allocation2 + $0xa0] sm:$0xff]   ;;  %v14460_v63 = vld [vmem:[#allocation2 + $0xa8] sm:$0xff]  }
 0x38c   :  { %v16229_v3 = vpack.c.bf16 %v771_v2, %v767_v62  ;;  %v14461_v2 = vld [vmem:[#allocation2 + $0xb0] sm:$0xff]  }
 0x38d   :  { %901 = vrot.lane.b32.xlu1 %v16227_v1, %s15763_s0 }
 0x390   :  { %v775_v4 = vpop.f32.mrb[24].mxu0 }
 0x391   :  { %v777_v5 = vpop.f32.mrb[25].mxu0 }
 0x392   :  { %v779_v7 = vpop.f32.mrb[26].mxu0 }
 0x393   :  { %v16233_v9 = vpack.c.bf16 %v779_v7, %v775_v4  ;;  %v781_v10 = vpop.f32.mrb[27].mxu0 }
 0x394   :  { %v16235_v11 = vpack.c.bf16 %v781_v10, %v777_v5  ;;  %v14462_v5 = vld [vmem:[#allocation2 + $0xb8] sm:$0xff]   ;;  %v14464_v10 = vld [vmem:[#allocation2 + $0xc8] sm:$0xff]  }
 0x395   :  { %903 = vrot.lane.b32.xlu0 %v16233_v9, %s15763_s0 }
 0x398   :  { %v785_v12 = vpop.f32.mrb[28].mxu0 }
 0x399   :  { %1222 = vrot.lane.b32.xlu0 %v16197_v34, %s15764_s22  ;;  %v787_v13 = vpop.f32.mrb[29].mxu0 }
 0x39a   :  { %v789_v14 = vpop.f32.mrb[30].mxu0 }
 0x39b   :  { %v16241_v15 = vpack.c.bf16 %v789_v14, %v785_v12  ;;  %v791_v16 = vpop.f32.mrb[31].mxu0 }
 0x39c   :  { %v16243_v17 = vpack.c.bf16 %v791_v16, %v787_v13  ;;  %v14465_v13 = vld [vmem:[#allocation2 + $0xd0] sm:$0xff]  }
 0x39d   :  { %1226 = vrot.lane.b32.xlu0 %v16209_v46, %s15764_s22  ;;  %905 = vrot.lane.b32.xlu1 %v16241_v15, %s15763_s0 }
 0x3a1   :  { %1230 = vrot.lane.b32.xlu0 %v16221_v58, %s15764_s22  ;;  %1224 = vrot.lane.b32.xlu1 %v16203_v40, %s15764_s22 }
 0x3a5   :  { %1234 = vrot.lane.b32.xlu0 %v16233_v9, %s15764_s22  ;;  %1228 = vrot.lane.b32.xlu1 %v16215_v52, %s15764_s22 }
 0x3a9   :  { %1424 = vrot.lane.b32.xlu0 %v16197_v34, %s15765_s23  ;;  %1232 = vrot.lane.b32.xlu1 %v16227_v1, %s15764_s22 }
 0x3ad   :  { %1428 = vrot.lane.b32.xlu0 %v16209_v46, %s15765_s23  ;;  %1236 = vrot.lane.b32.xlu1 %v16241_v15, %s15764_s22 }
 0x3b1   :  { %1432 = vrot.lane.b32.xlu0 %v16221_v58, %s15765_s23  ;;  %1426 = vrot.lane.b32.xlu1 %v16203_v40, %s15765_s23 }
 0x3b5   :  { %1436 = vrot.lane.b32.xlu0 %v16233_v9, %s15765_s23  ;;  %1430 = vrot.lane.b32.xlu1 %v16215_v52, %s15765_s23 }
 0x3b9   :  { %1626 = vrot.lane.b32.xlu0 %v16197_v34, %s15740_s26  ;;  %1434 = vrot.lane.b32.xlu1 %v16227_v1, %s15765_s23 }
 0x3bd   :  { %1630 = vrot.lane.b32.xlu0 %v16209_v46, %s15740_s26  ;;  %1438 = vrot.lane.b32.xlu1 %v16241_v15, %s15765_s23 }
 0x3c1   :  { %1634 = vrot.lane.b32.xlu0 %v16221_v58, %s15740_s26  ;;  %1628 = vrot.lane.b32.xlu1 %v16203_v40, %s15740_s26 }
 0x3c5   :  { %1638 = vrot.lane.b32.xlu0 %v16233_v9, %s15740_s26  ;;  %1632 = vrot.lane.b32.xlu1 %v16215_v52, %s15740_s26 }
 0x3c9   :  { %1828 = vrot.lane.b32.xlu0 %v16197_v34, %s15766_s28  ;;  %1636 = vrot.lane.b32.xlu1 %v16227_v1, %s15740_s26 }
 0x3cd   :  { %1832 = vrot.lane.b32.xlu0 %v16209_v46, %s15766_s28  ;;  %1640 = vrot.lane.b32.xlu1 %v16241_v15, %s15740_s26 }
 0x3d1   :  { %1836 = vrot.lane.b32.xlu0 %v16221_v58, %s15766_s28  ;;  %1830 = vrot.lane.b32.xlu1 %v16203_v40, %s15766_s28 }
 0x3d5   :  { %1840 = vrot.lane.b32.xlu0 %v16233_v9, %s15766_s28  ;;  %1834 = vrot.lane.b32.xlu1 %v16215_v52, %s15766_s28 }
 0x3d7   :  { %v892_v18 = vpop.permute.xlu0 %891 }
 0x3d8   :  { %12073 = vmatprep.subr.bf16.mxu1 %v892_v18 }
 0x3d9   :  { %12074 = vmatpush3.bf16.msra.mxu1 %v892_v18  ;;  %2030 = vrot.lane.b32.xlu0 %v16197_v34, %s15767_s1  ;;  %v14467_v18 = vld [vmem:[#allocation2 + $0xe0] sm:$0xff]  }
 0x3da   :  { %1838 = vrot.lane.b32.xlu1 %v16227_v1, %s15766_s28 }
 0x3dd   :  { %2034 = vrot.lane.b32.xlu0 %v16209_v46, %s15767_s1 }
 0x3de   :  { %1842 = vrot.lane.b32.xlu1 %v16241_v15, %s15766_s28 }
 0x3df   :  { %v894_v19 = vpop.permute.xlu0 %893 }
 0x3e0   :  { %12075 = vmatprep.subr.bf16.mxu1 %v894_v19 }
 0x3e1   :  { %12076 = vmatpush3.bf16.msra.mxu1 %v894_v19  ;;  %2038 = vrot.lane.b32.xlu0 %v16221_v58, %s15767_s1 }
 0x3e2   :  { %2032 = vrot.lane.b32.xlu1 %v16203_v40, %s15767_s1 }
 0x3e5   :  { %2042 = vrot.lane.b32.xlu0 %v16233_v9, %s15767_s1 }
 0x3e6   :  { %2036 = vrot.lane.b32.xlu1 %v16215_v52, %s15767_s1 }
 0x3e7   :  { %v896_v20 = vpop.permute.xlu1 %895 }
 0x3e8   :  { %12077 = vmatprep.subr.bf16.mxu1 %v896_v20 }
 0x3e9   :  { %12078 = vmatpush3.bf16.msra.mxu1 %v896_v20  ;;  %2232 = vrot.lane.b32.xlu0 %v16197_v34, %s15768_s8  ;;  %v14468_v20 = vld [vmem:[#allocation2 + $0xe8] sm:$0xff]  }
 0x3ea   :  { %2040 = vrot.lane.b32.xlu1 %v16227_v1, %s15767_s1 }
 0x3ed   :  { %2236 = vrot.lane.b32.xlu0 %v16209_v46, %s15768_s8 }
 0x3ee   :  { %2044 = vrot.lane.b32.xlu1 %v16241_v15, %s15767_s1 }
 0x3ef   :  { %v898_v21 = vpop.permute.xlu1 %897 }
 0x3f0   :  { %12079 = vmatprep.subr.bf16.mxu1 %v898_v21 }
 0x3f1   :  { %12080 = vmatpush3.bf16.msra.mxu1 %v898_v21  ;;  %2240 = vrot.lane.b32.xlu0 %v16221_v58, %s15768_s8 }
 0x3f2   :  { %2234 = vrot.lane.b32.xlu1 %v16203_v40, %s15768_s8 }
 0x3f5   :  { %2244 = vrot.lane.b32.xlu0 %v16233_v9, %s15768_s8 }
 0x3f6   :  { %2238 = vrot.lane.b32.xlu1 %v16215_v52, %s15768_s8 }
 0x3f7   :  { %v900_v22 = vpop.permute.xlu0 %899 }
 0x3f8   :  { %12081 = vmatprep.subr.bf16.mxu1 %v900_v22 }
 0x3f9   :  { %12082 = vmatpush3.bf16.msra.mxu1 %v900_v22  ;;  %v14469_v22 = vld [vmem:[#allocation2 + $0xf0] sm:$0xff]  }
 0x3fa   :  { %2242 = vrot.lane.b32.xlu1 %v16227_v1, %s15768_s8 }
 0x3fe   :  { %2246 = vrot.lane.b32.xlu1 %v16241_v15, %s15768_s8 }
 0x3ff   :  { %v902_v23 = vpop.permute.xlu1 %901 }
 0x400   :  { %12083 = vmatprep.subr.bf16.mxu1 %v902_v23 }
 0x401   :  { %12084 = vmatpush3.bf16.msra.mxu1 %v902_v23 }
 0x407   :  { %v904_v24 = vpop.permute.xlu0 %903 }
 0x408   :  { %12085 = vmatprep.subr.bf16.mxu1 %v904_v24 }
 0x409   :  { %12086 = vmatpush3.bf16.msra.mxu1 %v904_v24  ;;  %v14470_v24 = vld [vmem:[#allocation2 + $0xf8] sm:$0xff]  }
 0x40b   :  { %v1223_v35 = vpop.permute.xlu0 %1222 }
 0x40f   :  { %v906_v25 = vpop.permute.xlu1 %905 }
 0x410   :  { %12087 = vmatprep.subr.bf16.mxu1 %v906_v25 }
 0x411   :  { %12088 = vmatpush3.bf16.msra.mxu1 %v906_v25 }
 0x412   :  { %12105 = vmatprep.subr.bf16.mxu1 %v16197_v34 }
 0x413   :  { %v1225_v38 = vpop.permute.xlu1 %1224 }
 0x414   :  { %12090 = vmatmul.mubr.bf16.vlgmr.msra.gmra.mrb[0].mxu1 %v14440_v26  ;;  %v14471_v26 = vld [vmem:[#allocation2 + $0x100] sm:$0xff]  }
 0x415   :  { %12106 = vmatpush3.bf16.msra.mxu1 %v16197_v34  ;;  %12093 = vmatprep.mubr.bf16.mxu1 %v14441_v27  ;;  %v14448_v34 = vld [vmem:[#allocation2 + $0x8] sm:$0xff]  }
 0x416   :  { %12107 = vmatprep.subr.bf16.mxu1 %v16203_v40 }
 0x417   :  { %v1229_v43 = vpop.permute.xlu1 %1228 }
 0x419   :  { %12108 = vmatpush3.bf16.msra.mxu1 %v16203_v40  ;;  %v1227_v40 = vpop.permute.xlu0 %1226 }
 0x41a   :  { %12109 = vmatprep.subr.bf16.mxu1 %v16209_v46 }
 0x41b   :  { %v1233_v47 = vpop.permute.xlu1 %1232 }
 0x41c   :  { %12094 = vmatmul.mubr.bf16.gmra.mrb[4].mxu1 %v14442_v28  ;;  %v14472_v28 = vld [vmem:[#allocation2 + $0x108] sm:$0xff]  }
 0x41d   :  { %12110 = vmatpush3.bf16.msra.mxu1 %v16209_v46  ;;  %12097 = vmatprep.mubr.bf16.mxu1 %v14443_v29  ;;  %v1231_v45 = vpop.permute.xlu0 %1230  ;;  %v14453_v46 = vld [vmem:[#allocation2 + $0x30] sm:$0xff]  }
 0x41e   :  { %12111 = vmatprep.subr.bf16.mxu1 %v16215_v52 }
 0x421   :  { %12112 = vmatpush3.bf16.msra.mxu1 %v16215_v52  ;;  %v1235_v50 = vpop.permute.xlu0 %1234  ;;  %v1237_v52 = vpop.permute.xlu1 %1236 }
 0x422   :  { %12113 = vmatprep.subr.bf16.mxu1 %v16221_v58 }
 0x424   :  { %12098 = vmatmul.mubr.bf16.gmra.mrb[8].mxu1 %v14444_v30  ;;  %v14473_v30 = vld [vmem:[#allocation2 + $0x110] sm:$0xff]  }
 0x425   :  { %12114 = vmatpush3.bf16.msra.mxu1 %v16221_v58  ;;  %12101 = vmatprep.mubr.bf16.mxu1 %v14445_v31  ;;  %v1425_v55 = vpop.permute.xlu0 %1424  ;;  %v1427_v57 = vpop.permute.xlu1 %1426  ;;  %v14458_v58 = vld [vmem:[#allocation2 + $0x98] sm:$0xff]  }
 0x426   :  { %12115 = vmatprep.subr.bf16.mxu1 %v16227_v1 }
 0x429   :  { %12116 = vmatpush3.bf16.msra.mxu1 %v16227_v1  ;;  %v1429_v59 = vpop.permute.xlu0 %1428  ;;  %v1431_v62 = vpop.permute.xlu1 %1430 }
 0x42a   :  { %12117 = vmatprep.subr.bf16.mxu1 %v16233_v9 }
 0x42c   :  { %12102 = vmatmul.mubr.bf16.gmra.mrb[12].mxu1 %v14446_v32  ;;  %v14474_v32 = vld [vmem:[#allocation2 + $0x118] sm:$0xff]  }
 0x42d   :  { %12118 = vmatpush3.bf16.msra.mxu1 %v16233_v9  ;;  %12121 = vmatprep.mubr.bf16.mxu1 %v14447_v33  ;;  %v1433_v1 = vpop.permute.xlu0 %1432  ;;  %v1435_v4 = vpop.permute.xlu1 %1434 }
 0x42e   :  { %12119 = vmatprep.subr.bf16.mxu1 %v16241_v15 }
 0x431   :  { %12120 = vmatpush3.bf16.msra.mxu1 %v16241_v15  ;;  %v1437_v7 = vpop.permute.xlu0 %1436  ;;  %v1439_v9 = vpop.permute.xlu1 %1438  ;;  %v14466_v15 = vld [vmem:[#allocation2 + $0xd8] sm:$0xff]  }
 0x432   :  { %12137 = vmatprep.subr.bf16.mxu1 %v1223_v35 }
 0x434   :  { %12122 = vmatmul.mubr.bf16.vlgmr.msra.gmra.mrb[0].mxu1 %v14448_v34  ;;  %v14475_v34 = vld [vmem:[#allocation2 + $0x120] sm:$0xff]  }
 0x435   :  { %12138 = vmatpush3.bf16.msra.mxu1 %v1223_v35  ;;  %12125 = vmatprep.mubr.bf16.mxu1 %v14449_v37  ;;  %v1627_v12 = vpop.permute.xlu0 %1626  ;;  %v1629_v14 = vpop.permute.xlu1 %1628  ;;  %v14476_v37 = vld [vmem:[#allocation2 + $0x128] sm:$0xff]  }
 0x436   :  { %12139 = vmatprep.subr.bf16.mxu1 %v1225_v38 }
 0x439   :  { %12140 = vmatpush3.bf16.msra.mxu1 %v1225_v38  ;;  %v1631_v16 = vpop.permute.xlu0 %1630  ;;  %v1633_v19 = vpop.permute.xlu1 %1632 }
 0x43a   :  { %12141 = vmatprep.subr.bf16.mxu1 %v1227_v40 }
 0x43c   :  { %12126 = vmatmul.mubr.bf16.gmra.mrb[4].mxu1 %v14450_v39  ;;  %v14477_v39 = vld [vmem:[#allocation2 + $0x130] sm:$0xff]  }
 0x43d   :  { %12142 = vmatpush3.bf16.msra.mxu1 %v1227_v40  ;;  %12129 = vmatprep.mubr.bf16.mxu1 %v14451_v41  ;;  %v1635_v21 = vpop.permute.xlu0 %1634  ;;  %v1637_v23 = vpop.permute.xlu1 %1636  ;;  %v14478_v41 = vld [vmem:[#allocation2 + $0x138] sm:$0xff]  }
 0x43e   :  { %12143 = vmatprep.subr.bf16.mxu1 %v1229_v43 }
 0x441   :  { %12144 = vmatpush3.bf16.msra.mxu1 %v1229_v43  ;;  %v1639_v25 = vpop.permute.xlu0 %1638  ;;  %v1641_v27 = vpop.permute.xlu1 %1640 }
 0x442   :  { %12145 = vmatprep.subr.bf16.mxu1 %v1231_v45 }
 0x444   :  { %12130 = vmatmul.mubr.bf16.gmra.mrb[8].mxu1 %v14452_v44  ;;  %v14479_v44 = vld [vmem:[#allocation2 + $0x140] sm:$0xff]  }
 0x445   :  { %12146 = vmatpush3.bf16.msra.mxu1 %v1231_v45  ;;  %12133 = vmatprep.mubr.bf16.mxu1 %v14453_v46  ;;  %v1829_v29 = vpop.permute.xlu0 %1828  ;;  %v1831_v31 = vpop.permute.xlu1 %1830  ;;  %v14480_v46 = vld [vmem:[#allocation2 + $0x148] sm:$0xff]  }
 0x446   :  { %12147 = vmatprep.subr.bf16.mxu1 %v1233_v47 }
 0x449   :  { %12148 = vmatpush3.bf16.msra.mxu1 %v1233_v47  ;;  %v1833_v33 = vpop.permute.xlu0 %1832  ;;  %v1835_v35 = vpop.permute.xlu1 %1834 }
 0x44a   :  { %12149 = vmatprep.subr.bf16.mxu1 %v1235_v50 }
 0x44c   :  { %12134 = vmatmul.mubr.bf16.gmra.mrb[12].mxu1 %v14454_v49  ;;  %v14481_v49 = vld [vmem:[#allocation2 + $0x150] sm:$0xff]  }
 0x44d   :  { %12150 = vmatpush3.bf16.msra.mxu1 %v1235_v50  ;;  %12153 = vmatprep.mubr.bf16.mxu1 %v14455_v51  ;;  %v1837_v38 = vpop.permute.xlu0 %1836  ;;  %v1839_v40 = vpop.permute.xlu1 %1838  ;;  %v14482_v51 = vld [vmem:[#allocation2 + $0x158] sm:$0xff]  }
 0x44e   :  { %12151 = vmatprep.subr.bf16.mxu1 %v1237_v52 }
 0x451   :  { %12152 = vmatpush3.bf16.msra.mxu1 %v1237_v52  ;;  %v1841_v43 = vpop.permute.xlu0 %1840  ;;  %v1843_v45 = vpop.permute.xlu1 %1842 }
 0x452   :  { %12169 = vmatprep.subr.bf16.mxu1 %v1425_v55 }
 0x454   :  { %12154 = vmatmul.mubr.bf16.vlgmr.msra.gmra.mrb[0].mxu1 %v14456_v53  ;;  %v14483_v53 = vld [vmem:[#allocation2 + $0x160] sm:$0xff]  }
 0x455   :  { %12170 = vmatpush3.bf16.msra.mxu1 %v1425_v55  ;;  %12157 = vmatprep.mubr.bf16.mxu1 %v14457_v56  ;;  %v2031_v47 = vpop.permute.xlu0 %2030  ;;  %v2033_v50 = vpop.permute.xlu1 %2032  ;;  %v14484_v56 = vld [vmem:[#allocation2 + $0x168] sm:$0xff]  }
 0x456   :  { %12171 = vmatprep.subr.bf16.mxu1 %v1427_v57 }
 0x459   :  { %12172 = vmatpush3.bf16.msra.mxu1 %v1427_v57  ;;  %v2035_v52 = vpop.permute.xlu0 %2034  ;;  %v2037_v55 = vpop.permute.xlu1 %2036 }
 0x45a   :  { %12173 = vmatprep.subr.bf16.mxu1 %v1429_v59 }
 0x45c   :  { %12158 = vmatmul.mubr.bf16.gmra.mrb[4].mxu1 %v14458_v58  ;;  %v14485_v58 = vld [vmem:[#allocation2 + $0x170] sm:$0xff]  }
 0x45d   :  { %12174 = vmatpush3.bf16.msra.mxu1 %v1429_v59  ;;  %12161 = vmatprep.mubr.bf16.mxu1 %v14459_v61  ;;  %v2039_v57 = vpop.permute.xlu0 %2038  ;;  %v2041_v59 = vpop.permute.xlu1 %2040  ;;  %v14486_v61 = vld [vmem:[#allocation2 + $0x178] sm:$0xff]  }
 0x45e   :  { %12175 = vmatprep.subr.bf16.mxu1 %v1431_v62 }
 0x461   :  { %12176 = vmatpush3.bf16.msra.mxu1 %v1431_v62  ;;  %v2043_v62 = vpop.permute.xlu0 %2042 }
 0x462   :  { %12177 = vmatprep.subr.bf16.mxu1 %v1433_v1 }
 0x464   :  { %12162 = vmatmul.mubr.bf16.gmra.mrb[8].mxu1 %v14460_v63  ;;  %v14487_v63 = vld [vmem:[#allocation2 + $0x180] sm:$0xff]  }
 0x465   :  { %12178 = vmatpush3.bf16.msra.mxu1 %v1433_v1  ;;  %12165 = vmatprep.mubr.bf16.mxu1 %v14461_v2  ;;  %v2045_v1 = vpop.permute.xlu1 %2044  ;;  %v14488_v2 = vld [vmem:[#allocation2 + $0x188] sm:$0xff]  }
 0x466   :  { %12179 = vmatprep.subr.bf16.mxu1 %v1435_v4 }
 0x469   :  { %12180 = vmatpush3.bf16.msra.mxu1 %v1435_v4  ;;  %v2233_v4 = vpop.permute.xlu0 %2232 }
 0x46a   :  { %12181 = vmatprep.subr.bf16.mxu1 %v1437_v7 }
 0x46c   :  { %12166 = vmatmul.mubr.bf16.gmra.mrb[12].mxu1 %v14462_v5  ;;  %v14489_v5 = vld [vmem:[#allocation2 + $0x190] sm:$0xff]  }
 0x46d   :  { %12182 = vmatpush3.bf16.msra.mxu1 %v1437_v7  ;;  %12185 = vmatprep.mubr.bf16.mxu1 %v14463_v8  ;;  %v2235_v7 = vpop.permute.xlu1 %2234  ;;  %v14490_v8 = vld [vmem:[#allocation2 + $0x198] sm:$0xff]  }
 0x46e   :  { %12183 = vmatprep.subr.bf16.mxu1 %v1439_v9 }
 0x471   :  { %12184 = vmatpush3.bf16.msra.mxu1 %v1439_v9  ;;  %v2237_v9 = vpop.permute.xlu0 %2236 }
 0x472   :  { %12201 = vmatprep.subr.bf16.mxu1 %v1627_v12 }
 0x474   :  { %12186 = vmatmul.mubr.bf16.vlgmr.msra.gmra.mrb[0].mxu1 %v14464_v10  ;;  %v14491_v10 = vld [vmem:[#allocation2 + $0x1a0] sm:$0xff]  }
 0x475   :  { %12202 = vmatpush3.bf16.msra.mxu1 %v1627_v12  ;;  %12189 = vmatprep.mubr.bf16.mxu1 %v14465_v13  ;;  %v2239_v12 = vpop.permute.xlu1 %2238  ;;  %v14492_v13 = vld [vmem:[#allocation2 + $0x1a8] sm:$0xff]  }
 0x476   :  { %12203 = vmatprep.subr.bf16.mxu1 %v1629_v14 }
 0x479   :  { %12204 = vmatpush3.bf16.msra.mxu1 %v1629_v14  ;;  %v2241_v14 = vpop.permute.xlu0 %2240 }
 0x47a   :  { %12205 = vmatprep.subr.bf16.mxu1 %v1631_v16 }
 0x47c   :  { %12190 = vmatmul.mubr.bf16.gmra.mrb[4].mxu1 %v14466_v15  ;;  %v14493_v15 = vld [vmem:[#allocation2 + $0x1b0] sm:$0xff]  }
 0x47d   :  { %12206 = vmatpush3.bf16.msra.mxu1 %v1631_v16  ;;  %12193 = vmatprep.mubr.bf16.mxu1 %v14467_v18  ;;  %v2243_v16 = vpop.permute.xlu1 %2242  ;;  %v14494_v18 = vld [vmem:[#allocation2 + $0x1b8] sm:$0xff]  }
 0x47e   :  { %12207 = vmatprep.subr.bf16.mxu1 %v1633_v19 }
 0x481   :  { %12208 = vmatpush3.bf16.msra.mxu1 %v1633_v19  ;;  %v2245_v19 = vpop.permute.xlu0 %2244 }
 0x482   :  { %12209 = vmatprep.subr.bf16.mxu1 %v1635_v21 }
 0x484   :  { %12194 = vmatmul.mubr.bf16.gmra.mrb[8].mxu1 %v14468_v20  ;;  %v14495_v20 = vld [vmem:[#allocation2 + $0x1c0] sm:$0xff]  }
 0x485   :  { %12210 = vmatpush3.bf16.msra.mxu1 %v1635_v21  ;;  %12197 = vmatprep.mubr.bf16.mxu1 %v14469_v22  ;;  %v2247_v21 = vpop.permute.xlu1 %2246  ;;  %v14496_v22 = vld [vmem:[#allocation2 + $0x1c8] sm:$0xff]  }
 0x486   :  { %12211 = vmatprep.subr.bf16.mxu1 %v1637_v23 }
 0x489   :  { %12212 = vmatpush3.bf16.msra.mxu1 %v1637_v23  ;;  %v14497_v23 = vld [vmem:[#allocation2 + $0x1d0] sm:$0xff]  }
 0x48a   :  { %12213 = vmatprep.subr.bf16.mxu1 %v1639_v25 }
 0x48c   :  { %12198 = vmatmul.mubr.bf16.gmra.mrb[12].mxu1 %v14470_v24  ;;  %v14498_v24 = vld [vmem:[#allocation2 + $0x1d8] sm:$0xff]  }
 0x48d   :  { %12214 = vmatpush3.bf16.msra.mxu1 %v1639_v25  ;;  %12217 = vmatprep.mubr.bf16.mxu1 %v14471_v26  ;;  %v14499_v25 = vld [vmem:[#allocation2 + $0x1e0] sm:$0xff]   ;;  %v14500_v26 = vld [vmem:[#allocation2 + $0x1e8] sm:$0xff]  }
 0x48e   :  { %12215 = vmatprep.subr.bf16.mxu1 %v1641_v27 }
 0x491   :  { %12216 = vmatpush3.bf16.msra.mxu1 %v1641_v27  ;;  %v14501_v27 = vld [vmem:[#allocation2 + $0x1f0] sm:$0xff]  }
 0x492   :  { %12233 = vmatprep.subr.bf16.mxu1 %v1829_v29 }
 0x494   :  { %12218 = vmatmul.mubr.bf16.vlgmr.msra.gmra.mrb[0].mxu1 %v14472_v28  ;;  %v14507_v28 = vld [vmem:[#allocation2 + $0x220] sm:$0xff]  }
 0x495   :  { %12234 = vmatpush3.bf16.msra.mxu1 %v1829_v29  ;;  %12221 = vmatprep.mubr.bf16.mxu1 %v14473_v30  ;;  %v14509_v29 = vld [vmem:[#allocation2 + $0x230] sm:$0xff]   ;;  %v14510_v30 = vld [vmem:[#allocation2 + $0x238] sm:$0xff]  }
 0x496   :  { %12235 = vmatprep.subr.bf16.mxu1 %v1831_v31 }
 0x499   :  { %12236 = vmatpush3.bf16.msra.mxu1 %v1831_v31 }
 0x49a   :  { %12237 = vmatprep.subr.bf16.mxu1 %v1833_v33 }
 0x49c   :  { %12222 = vmatmul.mubr.bf16.gmra.mrb[4].mxu1 %v14474_v32 }
 0x49d   :  { %12238 = vmatpush3.bf16.msra.mxu1 %v1833_v33  ;;  %12225 = vmatprep.mubr.bf16.mxu1 %v14475_v34 }
 0x49e   :  { %12239 = vmatprep.subr.bf16.mxu1 %v1835_v35 }
 0x4a1   :  { %12240 = vmatpush3.bf16.msra.mxu1 %v1835_v35 }
 0x4a2   :  { %12241 = vmatprep.subr.bf16.mxu1 %v1837_v38 }
 0x4a4   :  { %12226 = vmatmul.mubr.bf16.gmra.mrb[8].mxu1 %v14476_v37 }
 0x4a5   :  { %12242 = vmatpush3.bf16.msra.mxu1 %v1837_v38  ;;  %12229 = vmatprep.mubr.bf16.mxu1 %v14477_v39 }
 0x4a6   :  { %12243 = vmatprep.subr.bf16.mxu1 %v1839_v40 }
 0x4a9   :  { %12244 = vmatpush3.bf16.msra.mxu1 %v1839_v40 }
 0x4aa   :  { %12245 = vmatprep.subr.bf16.mxu1 %v1841_v43 }
 0x4ac   :  { %12230 = vmatmul.mubr.bf16.gmra.mrb[12].mxu1 %v14478_v41 }
 0x4ad   :  { %12246 = vmatpush3.bf16.msra.mxu1 %v1841_v43  ;;  %12249 = vmatprep.mubr.bf16.mxu1 %v14479_v44 }
 0x4ae   :  { %12247 = vmatprep.subr.bf16.mxu1 %v1843_v45 }
 0x4b1   :  { %12248 = vmatpush3.bf16.msra.mxu1 %v1843_v45 }
 0x4b2   :  { %12265 = vmatprep.subr.bf16.mxu1 %v2031_v47 }
 0x4b4   :  { %12250 = vmatmul.mubr.bf16.vlgmr.msra.gmra.mrb[0].mxu1 %v14480_v46 }
 0x4b5   :  { %12266 = vmatpush3.bf16.msra.mxu1 %v2031_v47  ;;  %12253 = vmatprep.mubr.bf16.mxu1 %v14481_v49 }
 0x4b6   :  { %12267 = vmatprep.subr.bf16.mxu1 %v2033_v50 }
 0x4b9   :  { %12268 = vmatpush3.bf16.msra.mxu1 %v2033_v50 }
 0x4ba   :  { %12269 = vmatprep.subr.bf16.mxu1 %v2035_v52 }
 0x4bc   :  { %12254 = vmatmul.mubr.bf16.gmra.mrb[4].mxu1 %v14482_v51 }
 0x4bd   :  { %12270 = vmatpush3.bf16.msra.mxu1 %v2035_v52  ;;  %12257 = vmatprep.mubr.bf16.mxu1 %v14483_v53 }
 0x4be   :  { %12271 = vmatprep.subr.bf16.mxu1 %v2037_v55 }
 0x4c1   :  { %12272 = vmatpush3.bf16.msra.mxu1 %v2037_v55 }
 0x4c2   :  { %12273 = vmatprep.subr.bf16.mxu1 %v2039_v57 }
 0x4c4   :  { %12258 = vmatmul.mubr.bf16.gmra.mrb[8].mxu1 %v14484_v56 }
 0x4c5   :  { %12274 = vmatpush3.bf16.msra.mxu1 %v2039_v57  ;;  %12261 = vmatprep.mubr.bf16.mxu1 %v14485_v58 }
 0x4c6   :  { %12275 = vmatprep.subr.bf16.mxu1 %v2041_v59 }
 0x4c9   :  { %12276 = vmatpush3.bf16.msra.mxu1 %v2041_v59 }
 0x4ca   :  { %12277 = vmatprep.subr.bf16.mxu1 %v2043_v62 }
 0x4cc   :  { %12262 = vmatmul.mubr.bf16.gmra.mrb[12].mxu1 %v14486_v61 }
 0x4cd   :  { %12278 = vmatpush3.bf16.msra.mxu1 %v2043_v62  ;;  %12281 = vmatprep.mubr.bf16.mxu1 %v14487_v63 }
 0x4ce   :  { %12279 = vmatprep.subr.bf16.mxu1 %v2045_v1 }
 0x4d1   :  { %12280 = vmatpush3.bf16.msra.mxu1 %v2045_v1 }
 0x4d2   :  { %12297 = vmatprep.subr.bf16.mxu1 %v2233_v4 }
 0x4d4   :  { %12282 = vmatmul.mubr.bf16.vlgmr.msra.gmra.mrb[0].mxu1 %v14488_v2 }
 0x4d5   :  { %12298 = vmatpush3.bf16.msra.mxu1 %v2233_v4  ;;  %12285 = vmatprep.mubr.bf16.mxu1 %v14489_v5 }
 0x4d6   :  { %12299 = vmatprep.subr.bf16.mxu1 %v2235_v7 }
 0x4d9   :  { %12300 = vmatpush3.bf16.msra.mxu1 %v2235_v7 }
 0x4da   :  { %12301 = vmatprep.subr.bf16.mxu1 %v2237_v9 }
 0x4dc   :  { %12286 = vmatmul.mubr.bf16.gmra.mrb[4].mxu1 %v14490_v8 }
 0x4dd   :  { %12302 = vmatpush3.bf16.msra.mxu1 %v2237_v9  ;;  %12289 = vmatprep.mubr.bf16.mxu1 %v14491_v10 }
 0x4de   :  { %12303 = vmatprep.subr.bf16.mxu1 %v2239_v12 }
 0x4e1   :  { %12304 = vmatpush3.bf16.msra.mxu1 %v2239_v12 }
 0x4e2   :  { %12305 = vmatprep.subr.bf16.mxu1 %v2241_v14 }
 0x4e4   :  { %12290 = vmatmul.mubr.bf16.gmra.mrb[8].mxu1 %v14492_v13 }
 0x4e5   :  { %12306 = vmatpush3.bf16.msra.mxu1 %v2241_v14  ;;  %12293 = vmatprep.mubr.bf16.mxu1 %v14493_v15 }
 0x4e6   :  { %12307 = vmatprep.subr.bf16.mxu1 %v2243_v16 }
 0x4e9   :  { %12308 = vmatpush3.bf16.msra.mxu1 %v2243_v16 }
 0x4ea   :  { %12309 = vmatprep.subr.bf16.mxu1 %v2245_v19 }
 0x4ec   :  { %12294 = vmatmul.mubr.bf16.gmra.mrb[12].mxu1 %v14494_v18 }
 0x4ed   :  { %12310 = vmatpush3.bf16.msra.mxu1 %v2245_v19  ;;  %12313 = vmatprep.mubr.bf16.mxu1 %v14495_v20 }
 0x4ee   :  { %12311 = vmatprep.subr.bf16.mxu1 %v2247_v21 }
 0x4f1   :  { %12312 = vmatpush3.bf16.msra.mxu1 %v2247_v21 }
 0x4f2   :  { %12329 = vmatprep.subr.bf16.mxu1 %v16199_v36 }
 0x4f4   :  { %12314 = vmatmul.mubr.bf16.vlgmr.msra.gmra.mrb[0].mxu1 %v14496_v22 }
 0x4f5   :  { %12330 = vmatpush3.bf16.msra.mxu1 %v16199_v36  ;;  %12317 = vmatprep.mubr.bf16.mxu1 %v14497_v23  ;;  %v14502_v36 = vld [vmem:[#allocation2 + $0x1f8] sm:$0xff]  }
 0x4f6   :  { %12331 = vmatprep.subr.bf16.mxu1 %v16205_v42 }
 0x4f9   :  { %12332 = vmatpush3.bf16.msra.mxu1 %v16205_v42  ;;  %v14503_v42 = vld [vmem:[#allocation2 + $0x200] sm:$0xff]  }
 0x4fa   :  { %12333 = vmatprep.subr.bf16.mxu1 %v16211_v48 }
 0x4fc   :  { %12318 = vmatmul.mubr.bf16.gmra.mrb[4].mxu1 %v14498_v24 }
 0x4fd   :  { %12334 = vmatpush3.bf16.msra.mxu1 %v16211_v48  ;;  %12321 = vmatprep.mubr.bf16.mxu1 %v14499_v25  ;;  %v14504_v48 = vld [vmem:[#allocation2 + $0x208] sm:$0xff]  }
 0x4fe   :  { %12335 = vmatprep.subr.bf16.mxu1 %v16217_v54 }
 0x501   :  { %12336 = vmatpush3.bf16.msra.mxu1 %v16217_v54  ;;  %v14505_v54 = vld [vmem:[#allocation2 + $0x210] sm:$0xff]  }
 0x502   :  { %12337 = vmatprep.subr.bf16.mxu1 %v16223_v60 }
 0x504   :  { %12322 = vmatmul.mubr.bf16.gmra.mrb[8].mxu1 %v14500_v26 }
 0x505   :  { %12338 = vmatpush3.bf16.msra.mxu1 %v16223_v60  ;;  %12325 = vmatprep.mubr.bf16.mxu1 %v14501_v27  ;;  %v14506_v60 = vld [vmem:[#allocation2 + $0x218] sm:$0xff]  }
 0x506   :  { %12339 = vmatprep.subr.bf16.mxu1 %v16229_v3 }
 0x509   :  { %12340 = vmatpush3.bf16.msra.mxu1 %v16229_v3  ;;  %v14508_v3 = vld [vmem:[#allocation2 + $0x228] sm:$0xff]  }
 0x50a   :  { %12341 = vmatprep.subr.bf16.mxu1 %v16235_v11 }
 0x50c   :  { %12326 = vmatmul.mubr.bf16.gmra.mrb[12].mxu1 %v14502_v36 }
 0x50d   :  { %12342 = vmatpush3.bf16.msra.mxu1 %v16235_v11  ;;  %12345 = vmatprep.mubr.bf16.mxu1 %v14503_v42  ;;  %v16374_v11 = vld [vmem:[%s18418_s2] ss:$0 sm:$0xff] }
 0x50e   :  { %12343 = vmatprep.subr.bf16.mxu1 %v16243_v17 }
 0x511   :  { %12344 = vmatpush3.bf16.msra.mxu1 %v16243_v17 }
 0x514   :  { %12346 = vmatmul.mubr.bf16.vlgmr.msra.gmra.mrb[0].mxu1 %v14504_v48 }
 0x515   :  { %12349 = vmatprep.mubr.bf16.mxu1 %v14505_v54 }
 0x51c   :  { %12350 = vmatmul.mubr.bf16.gmra.mrb[4].mxu1 %v14506_v60 }
 0x51d   :  { %12353 = vmatprep.mubr.bf16.mxu1 %v14507_v28 }
 0x524   :  { %12354 = vmatmul.mubr.bf16.gmra.mrb[8].mxu1 %v14508_v3 }
 0x525   :  { %12357 = vmatprep.mubr.bf16.mxu1 %v14509_v29 }
 0x52c   :  { %12358 = vmatmul.mubr.bf16.gmra.mrb[12].mxu1 %v14510_v30 }
 0x5e7   :  { %v12347_v31 = vpop.f32.mrb[0].mxu1 }
 0x5e8   :  { %v2476_v32 = vpop.f32.mrb[1].mxu1  ;;  %v16380_v35 = vadd.f32 %v12347_v31, %v16374_v11 }
 0x5e9   :  { %v16377_v33 = vadd.f32 %v16374_v11, %v2476_v32  ;;  %v12348_v17 = vpop.f32.mrb[2].mxu1 }
 0x5ea   :  { %v2479_v34 = vpop.f32.mrb[3].mxu1  ;;  %v16388_v40 = vadd.f32 %v12348_v17, %v16374_v11  ;;  %v11016_v25 = vmul.f32 -1.442695, %v16380_v35 }
 0x5eb   :  { %14569 = vtanh.f32 %v16377_v33  ;;  %v16384_v37 = vadd.f32 %v16374_v11, %v2479_v34  ;;  %v11014_v24 = vmul.f32 -1.442695, %v16377_v33 }
 0x5ec   :  { %14571 = vtanh.f32 %v16380_v35  ;;  %v11017_v36 = vmul.f32 -1.442695, %v16388_v40 }
 0x5ed   :  { %14573 = vtanh.f32 %v16384_v37  ;;  %v11015_v26 = vmul.f32 -1.442695, %v16384_v37 }
 0x5ef   :  { %v12351_v38 = vpop.f32.mrb[4].mxu1 }
 0x5f0   :  { %v2492_v39 = vpop.f32.mrb[5].mxu1  ;;  %v16395_v45 = vadd.f32 %v12351_v38, %v16374_v11 }
 0x5f1   :  { %v16392_v41 = vadd.f32 %v16374_v11, %v2492_v39  ;;  %v12352_v43 = vpop.f32.mrb[6].mxu1 }
 0x5f2   :  { %v2495_v44 = vpop.f32.mrb[7].mxu1  ;;  %v16406_v56 = vadd.f32 %v12352_v43, %v16374_v11  ;;  %v11020_v42 = vmul.f32 -1.442695, %v16395_v45 }
 0x5f3   :  { %14575 = vtanh.f32 %v16392_v41  ;;  %v16402_v49 = vadd.f32 %v16374_v11, %v2495_v44  ;;  %v11018_v27 = vmul.f32 -1.442695, %v16392_v41 }
 0x5f4   :  { %14577 = vtanh.f32 %v16388_v40  ;;  %v11021_v29 = vmul.f32 -1.442695, %v16406_v56 }
 0x5f5   :  { %v14570_v46 = vpop.eup %14569  ;;  %14579 = vtanh.f32 %v16395_v45  ;;  %v11019_v54 = vmul.f32 -1.442695, %v16402_v49 }
 0x5f6   :  { %2722 = vrot.lane.b32.xlu0 %v14570_v46, %s15769_s5  ;;  %v14572_v51 = vpop.eup %14571  ;;  %14581 = vtanh.f32 %v16402_v49 }
 0x5f7   :  { %v12355_v47 = vpop.f32.mrb[8].mxu1  ;;  %v14574_v55 = vpop.eup %14573  ;;  %14583 = vtanh.f32 %v16406_v56 }
 0x5f8   :  { %v2508_v50 = vpop.f32.mrb[9].mxu1  ;;  %2724 = vrot.lane.b32.xlu1 %v14574_v55, %s15769_s5  ;;  %v16418_v4 = vadd.f32 %v12355_v47, %v16374_v11 }
 0x5f9   :  { %v12356_v52 = vpop.f32.mrb[10].mxu1  ;;  %v16413_v61 = vadd.f32 %v16374_v11, %v2508_v50 }
 0x5fa   :  { %2726 = vrot.lane.b32.xlu0 %v14572_v51, %s15769_s5  ;;  %v2511_v53 = vpop.f32.mrb[11].mxu1  ;;  %v16427_v8 = vadd.f32 %v12356_v52, %v16374_v11  ;;  %v11024_v37 = vmul.f32 -1.442695, %v16418_v4 }
 0x5fb   :  { %14585 = vtanh.f32 %v16413_v61  ;;  %v16422_v5 = vadd.f32 %v16374_v11, %v2511_v53  ;;  %v11022_v33 = vmul.f32 -1.442695, %v16413_v61 }
 0x5fc   :  { %14587 = vtanh.f32 %v16418_v4  ;;  %v11025_v47 = vmul.f32 -1.442695, %v16427_v8 }
 0x5fd   :  { %v14576_v57 = vpop.eup %14575  ;;  %14589 = vtanh.f32 %v16422_v5  ;;  %v11023_v40 = vmul.f32 -1.442695, %v16422_v5 }
 0x5fe   :  { %2730 = vrot.lane.b32.xlu0 %v14576_v57, %s15769_s5  ;;  %v14578_v58 = vpop.eup %14577  ;;  %14591 = vtanh.f32 %v16427_v8 }
 0x5ff   :  { %v12359_v59 = vpop.f32.mrb[12].mxu1  ;;  %2728 = vrot.lane.b32.xlu1 %v14578_v58, %s15769_s5  ;;  %v14580_v63 = vpop.eup %14579 }
 0x600   :  { %v2524_v62 = vpop.f32.mrb[13].mxu1  ;;  %v14582_v7 = vpop.eup %14581  ;;  %v16436_v13 = vadd.f32 %v12359_v59, %v16374_v11 }
 0x601   :  { %v12360_v1 = vpop.f32.mrb[14].mxu1  ;;  %v14584_v9 = vpop.eup %14583  ;;  %v16431_v10 = vadd.f32 %v16374_v11, %v2524_v62 }
 0x602   :  { %2734 = vrot.lane.b32.xlu0 %v14580_v63, %s15769_s5  ;;  %v2527_v2 = vpop.f32.mrb[15].mxu1  ;;  %v16446_v18 = vadd.f32 %v12360_v1, %v16374_v11  ;;  %v11028_v62 = vmul.f32 -1.442695, %v16436_v13 }
 0x603   :  { %2732 = vrot.lane.b32.xlu1 %v14582_v7, %s15769_s5  ;;  %14593 = vtanh.f32 %v16431_v10  ;;  %v16441_v14 = vadd.f32 %v16374_v11, %v2527_v2  ;;  %v11026_v51 = vmul.f32 -1.442695, %v16431_v10 }
 0x604   :  { %14595 = vtanh.f32 %v16436_v13 }
 0x605   :  { %v14586_v12 = vpop.eup %14585  ;;  %14597 = vtanh.f32 %v16441_v14  ;;  %v11027_v2 = vmul.f32 -1.442695, %v16441_v14 }
 0x606   :  { %2738 = vrot.lane.b32.xlu0 %v14586_v12, %s15769_s5  ;;  %v14588_v15 = vpop.eup %14587  ;;  %14599 = vtanh.f32 %v16446_v18 }
 0x607   :  { %2736 = vrot.lane.b32.xlu1 %v14584_v9, %s15769_s5  ;;  %v14590_v16 = vpop.eup %14589  ;;  %14601 = vpow2.f32 %v11014_v24 }
 0x608   :  { %v14592_v19 = vpop.eup %14591  ;;  %14603 = vpow2.f32 %v11016_v25 }
 0x609   :  { %14605 = vpow2.f32 %v11015_v26 }
 0x60a   :  { %2742 = vrot.lane.b32.xlu0 %v14588_v15, %s15769_s5  ;;  %14607 = vpow2.f32 %v11018_v27  ;;  %v11029_v15 = vmul.f32 -1.442695, %v16446_v18 }
 0x60b   :  { %2740 = vrot.lane.b32.xlu1 %v14590_v16, %s15769_s5  ;;  %14609 = vpow2.f32 %v11017_v36 }
 0x60c   :  { %14611 = vpow2.f32 %v11020_v42 }
 0x60d   :  { %v14594_v20 = vpop.eup %14593  ;;  %14613 = vpow2.f32 %v11019_v54 }
 0x60e   :  { %2746 = vrot.lane.b32.xlu0 %v14594_v20, %s15769_s5  ;;  %v14596_v21 = vpop.eup %14595 }
 0x60f   :  { %2744 = vrot.lane.b32.xlu1 %v14592_v19, %s15769_s5  ;;  %v14598_v22 = vpop.eup %14597 }
 0x610   :  { %v14600_v23 = vpop.eup %14599 }
 0x611   :  { %v14602_v48 = vpop.eup %14601 }
 0x612   :  { %2750 = vrot.lane.b32.xlu0 %v14596_v21, %s15769_s5  ;;  %v2626_v60 = vadd.f32 1.0, %v14602_v48  ;;  %v14604_v28 = vpop.eup %14603 }
 0x613   :  { %2748 = vrot.lane.b32.xlu1 %v14598_v22, %s15769_s5  ;;  %v14606_v3 = vpop.eup %14605  ;;  %v2628_v30 = vadd.f32 1.0, %v14604_v28 }
 0x614   :  { %14615 = vrcp.f32 %v2626_v60  ;;  %v14608_v11 = vpop.eup %14607  ;;  %v2627_v31 = vadd.f32 1.0, %v14606_v3 }
 0x615   :  { %v14610_v32 = vpop.eup %14609  ;;  %14617 = vpow2.f32 %v11021_v29  ;;  %v2630_v17 = vadd.f32 1.0, %v14608_v11 }
 0x616   :  { %14619 = vrcp.f32 %v2628_v30  ;;  %v14612_v34 = vpop.eup %14611  ;;  %v2629_v35 = vadd.f32 1.0, %v14610_v32 }
 0x617   :  { %2752 = vrot.lane.b32.xlu1 %v14600_v23, %s15769_s5  ;;  %14621 = vrcp.f32 %v2627_v31  ;;  %v2632_v38 = vadd.f32 1.0, %v14612_v34  ;;  %v14614_v39 = vpop.eup %14613 }
 0x618   :  { %14623 = vpow2.f32 %v11022_v33  ;;  %v2631_v45 = vadd.f32 1.0, %v14614_v39 }
 0x619   :  { %14625 = vrcp.f32 %v2630_v17 }
 0x61a   :  { %14627 = vrcp.f32 %v2629_v35 }
 0x61b   :  { %14629 = vpow2.f32 %v11024_v37 }
 0x61c   :  { %14631 = vrcp.f32 %v2632_v38 }
 0x61d   :  { %14633 = vpow2.f32 %v11023_v40 }
 0x61e   :  { %v16467_v41 = vpop.eup %14615  ;;  %14635 = vrcp.f32 %v2631_v45 }
 0x61f   :  { %v14618_v46 = vpop.eup %14617  ;;  %14637 = vpow2.f32 %v11025_v47 }
 0x620   :  { %v16472_v49 = vpop.eup %14619  ;;  %v2633_v57 = vadd.f32 1.0, %v14618_v46  ;;  %14639 = vpow2.f32 %v11026_v51 }
 0x621   :  { %v16476_v53 = vpop.eup %14621 }
 0x622   :  { %v14624_v56 = vpop.eup %14623  ;;  %14641 = vrcp.f32 %v2633_v57  ;;  %v2690_v57 = vmul.f32 0.0, %v16467_v41 }
 0x623   :  { %v16480_v59 = vpop.eup %14625  ;;  %v2634_v7 = vadd.f32 1.0, %v14624_v56  ;;  %14643 = vpow2.f32 %v11028_v62  ;;  %v2692_v62 = vmul.f32 0.0, %v16472_v49 }
 0x624   :  { %v16485_v1 = vpop.eup %14627  ;;  %14645 = vpow2.f32 %v11027_v2  ;;  %v2691_v2 = vmul.f32 0.0, %v16476_v53 }
 0x625   :  { %v14630_v5 = vpop.eup %14629  ;;  %14647 = vrcp.f32 %v2634_v7 }
 0x626   :  { %v16490_v9 = vpop.eup %14631  ;;  %v2636_v14 = vadd.f32 1.0, %v14630_v5  ;;  %14649 = vpow2.f32 %v11029_v15 }
 0x627   :  { %v14634_v12 = vpop.eup %14633 }
 0x628   :  { %v16496_v16 = vpop.eup %14635  ;;  %v2635_v19 = vadd.f32 1.0, %v14634_v12  ;;  %14651 = vrcp.f32 %v2636_v14  ;;  %v2693_v12 = vmul.f32 0.0, %v16485_v1 }
 0x629   :  { %v14638_v20 = vpop.eup %14637 }
 0x62a   :  { %v14640_v23 = vpop.eup %14639  ;;  %v2637_v24 = vadd.f32 1.0, %v14638_v20  ;;  %14653 = vrcp.f32 %v2635_v19  ;;  %v2696_v19 = vmul.f32 0.0, %v16490_v9 }
 0x62b   :  { %v2638_v26 = vadd.f32 1.0, %v14640_v23  ;;  %v2695_v23 = vmul.f32 0.0, %v16496_v16 }
 0x62c   :  { %v16500_v18 = vpop.eup %14641  ;;  %14655 = vrcp.f32 %v2637_v24 }
 0x62d   :  { %v14644_v36 = vpop.eup %14643  ;;  %14657 = vrcp.f32 %v2638_v26 }
 0x62e   :  { %v14646_v42 = vpop.eup %14645  ;;  %v2640_v60 = vadd.f32 1.0, %v14644_v36  ;;  %v2697_v36 = vmul.f32 0.0, %v16500_v18 }
 0x62f   :  { %v16504_v48 = vpop.eup %14647  ;;  %v2639_v3 = vadd.f32 1.0, %v14646_v42 }
 0x630   :  { %v14650_v29 = vpop.eup %14649  ;;  %14659 = vrcp.f32 %v2640_v60 }
 0x631   :  { %v2641_v17 = vadd.f32 1.0, %v14650_v29  ;;  %14661 = vrcp.f32 %v2639_v3  ;;  %v2698_v3 = vmul.f32 0.0, %v16504_v48 }
 0x632   :  { %v16508_v30 = vpop.eup %14651 }
 0x633   :  { %14663 = vrcp.f32 %v2641_v17 }
 0x634   :  { %v16510_v31 = vpop.eup %14653 }
 0x635   :  { %v2699_v17 = vmul.f32 0.0, %v16510_v31 }
 0x636   :  { %v16516_v35 = vpop.eup %14655 }
 0x637   :  { %v16519_v39 = vpop.eup %14657 }
 0x668   :  { %v2723_v43 = vpop.permute.xlu0 %2722 }
 0x669   :  { %v2770_v44 = vmul.f32 %v16467_v41, %v2723_v43 }
 0x66a   :  { %v2725_v55 = vpop.permute.xlu1 %2724 }
 0x66b   :  { %2802 = vrot.lane.b32.xlu0 %v2770_v44, %s15741_s20  ;;  %v2771_v58 = vmul.f32 %v16476_v53, %v2725_v55  ;;  %v16524_v44 = vpop.eup %14659 }
 0x66c   :  { %v2727_v50 = vpop.permute.xlu0 %2726  ;;  %v16526_v46 = vpop.eup %14661 }
 0x66d   :  { %v2772_v52 = vmul.f32 %v16472_v49, %v2727_v50  ;;  %2804 = vrot.lane.b32.xlu1 %v2771_v58, %s15741_s20 }
 0x66f   :  { %2806 = vrot.lane.b32.xlu0 %v2772_v52, %s15741_s20  ;;  %v16532_v52 = vpop.eup %14663 }
 0x670   :  { %v2731_v61 = vpop.permute.xlu0 %2730 }
 0x671   :  { %v2774_v63 = vmul.f32 %v16480_v59, %v2731_v61  ;;  %v2729_v4 = vpop.permute.xlu1 %2728 }
 0x672   :  { %v2773_v8 = vmul.f32 %v16485_v1, %v2729_v4 }
 0x673   :  { %2810 = vrot.lane.b32.xlu0 %v2774_v63, %s15741_s20 }
 0x674   :  { %v2735_v10 = vpop.permute.xlu0 %2734  ;;  %2808 = vrot.lane.b32.xlu1 %v2773_v8, %s15741_s20  ;;  %v2694_v8 = vmul.f32 0.0, %v16480_v59 }
 0x675   :  { %v2776_v13 = vmul.f32 %v16490_v9, %v2735_v10  ;;  %v2733_v21 = vpop.permute.xlu1 %2732 }
 0x676   :  { %v2775_v22 = vmul.f32 %v16496_v16, %v2733_v21 }
 0x677   :  { %2814 = vrot.lane.b32.xlu0 %v2776_v13, %s15741_s20 }
 0x678   :  { %2812 = vrot.lane.b32.xlu1 %v2775_v22, %s15741_s20  ;;  %v2739_v54 = vpop.permute.xlu0 %2738 }
 0x679   :  { %v2737_v25 = vpop.permute.xlu1 %2736  ;;  %v2778_v28 = vmul.f32 %v16504_v48, %v2739_v54 }
 0x67a   :  { %v2777_v27 = vmul.f32 %v16500_v18, %v2737_v25 }
 0x67b   :  { %2818 = vrot.lane.b32.xlu0 %v2778_v28, %s15741_s20 }
 0x67c   :  { %2816 = vrot.lane.b32.xlu1 %v2777_v27, %s15741_s20  ;;  %v2743_v11 = vpop.permute.xlu0 %2742 }
 0x67d   :  { %v2741_v32 = vpop.permute.xlu1 %2740  ;;  %v2780_v33 = vmul.f32 %v16508_v30, %v2743_v11 }
 0x67e   :  { %v2779_v34 = vmul.f32 %v16510_v31, %v2741_v32 }
 0x67f   :  { %2822 = vrot.lane.b32.xlu0 %v2780_v33, %s15741_s20  ;;  %v2700_v33 = vmul.f32 0.0, %v16508_v30 }
 0x680   :  { %2820 = vrot.lane.b32.xlu1 %v2779_v34, %s15741_s20  ;;  %v2747_v40 = vpop.permute.xlu0 %2746 }
 0x681   :  { %v2745_v37 = vpop.permute.xlu1 %2744  ;;  %v2782_v43 = vmul.f32 %v16519_v39, %v2747_v40 }
 0x682   :  { %v2781_v38 = vmul.f32 %v16516_v35, %v2745_v37 }
 0x683   :  { %2826 = vrot.lane.b32.xlu0 %v2782_v43, %s15741_s20 }
 0x684   :  { %2824 = vrot.lane.b32.xlu1 %v2781_v38, %s15741_s20  ;;  %v2751_v45 = vpop.permute.xlu0 %2750 }
 0x685   :  { %v2749_v47 = vpop.permute.xlu1 %2748  ;;  %v2784_v50 = vmul.f32 %v16524_v44, %v2751_v45  ;;  %v2701_v45 = vmul.f32 0.0, %v16516_v35 }
 0x686   :  { %v2783_v51 = vmul.f32 %v16526_v46, %v2749_v47 }
 0x687   :  { %2830 = vrot.lane.b32.xlu0 %v2784_v50, %s15741_s20 }
 0x688   :  { %2828 = vrot.lane.b32.xlu1 %v2783_v51, %s15741_s20 }
 0x689   :  { %v2753_v55 = vpop.permute.xlu1 %2752 }
 0x68a   :  { %v2785_v56 = vmul.f32 %v16532_v52, %v2753_v55  ;;  %v2702_v55 = vmul.f32 0.0, %v16519_v39 }
 0x68c   :  { %2832 = vrot.lane.b32.xlu1 %v2785_v56, %s15741_s20 }
 0x6dd   :  { %v2803_v58 = vpop.permute.xlu0 %2802 }
 0x6de   :  { %v16537_v61 = vadd.f32 %v2803_v58, %v2690_v57 }
 0x6df   :  { %v2805_v5 = vpop.permute.xlu1 %2804 }
 0x6e0   :  { %14665 = vtanh.f32 %v16537_v61  ;;  %v16544_v7 = vadd.f32 %v2805_v5, %v2691_v2 }
 0x6e1   :  { %v2807_v63 = vpop.permute.xlu0 %2806 }
 0x6e2   :  { %v16542_v4 = vadd.f32 %v2807_v63, %v2692_v62  ;;  %v2704_v62 = vmul.f32 0.0, %v16524_v44  ;;  %v2703_v63 = vmul.f32 0.0, %v16526_v46 }
 0x6e4   :  { %14667 = vtanh.f32 %v16542_v4 }
 0x6e5   :  { %v2811_v10 = vpop.permute.xlu0 %2810  ;;  %14669 = vtanh.f32 %v16544_v7 }
 0x6e6   :  { %v16550_v13 = vadd.f32 %v2811_v10, %v2694_v8  ;;  %v2809_v15 = vpop.permute.xlu1 %2808 }
 0x6e7   :  { %v16552_v14 = vadd.f32 %v2809_v15, %v2693_v12 }
 0x6e8   :  { %14671 = vtanh.f32 %v16550_v13 }
 0x6e9   :  { %v2815_v20 = vpop.permute.xlu0 %2814  ;;  %14673 = vtanh.f32 %v16552_v14 }
 0x6ea   :  { %v14666_v21 = vpop.eup %14665  ;;  %v16557_v22 = vadd.f32 %v2815_v20, %v2696_v19  ;;  %v2813_v25 = vpop.permute.xlu1 %2812  ;;  %v2705_v19 = vmul.f32 0.0, %v16532_v52 }
 0x6eb   :  { %2898 = vrot.lane.b32.xlu0 %v14666_v21, %s15741_s20  ;;  %v16562_v26 = vadd.f32 %v2813_v25, %v2695_v23 }
 0x6ec   :  { %14675 = vtanh.f32 %v16557_v22 }
 0x6ed   :  { %14677 = vtanh.f32 %v16562_v26  ;;  %v2819_v11 = vpop.permute.xlu0 %2818 }
 0x6ee   :  { %v14668_v24 = vpop.eup %14667  ;;  %v2817_v54 = vpop.permute.xlu1 %2816  ;;  %v16574_v32 = vadd.f32 %v2819_v11, %v2698_v3 }
 0x6ef   :  { %2902 = vrot.lane.b32.xlu0 %v14668_v24, %s15741_s20  ;;  %v14670_v27 = vpop.eup %14669  ;;  %v16568_v60 = vadd.f32 %v2817_v54, %v2697_v36 }
 0x6f0   :  { %2900 = vrot.lane.b32.xlu1 %v14670_v27, %s15741_s20 }
 0x6f1   :  { %14679 = vtanh.f32 %v16568_v60  ;;  %v2823_v34 = vpop.permute.xlu0 %2822 }
 0x6f2   :  { %v14672_v42 = vpop.eup %14671  ;;  %14681 = vtanh.f32 %v16574_v32  ;;  %v2821_v38 = vpop.permute.xlu1 %2820  ;;  %v16580_v40 = vadd.f32 %v2823_v34, %v2700_v33 }
 0x6f3   :  { %2906 = vrot.lane.b32.xlu0 %v14672_v42, %s15741_s20  ;;  %v14674_v28 = vpop.eup %14673  ;;  %v16582_v43 = vadd.f32 %v2821_v38, %v2699_v17 }
 0x6f4   :  { %2904 = vrot.lane.b32.xlu1 %v14674_v28, %s15741_s20  ;;  %14683 = vtanh.f32 %v16580_v40 }
 0x6f5   :  { %14685 = vtanh.f32 %v16582_v43  ;;  %v2827_v56 = vpop.permute.xlu0 %2826 }
 0x6f6   :  { %v14676_v29 = vpop.eup %14675  ;;  %v2825_v50 = vpop.permute.xlu1 %2824  ;;  %v16593_v57 = vadd.f32 %v2827_v56, %v2702_v55 }
 0x6f7   :  { %2910 = vrot.lane.b32.xlu0 %v14676_v29, %s15741_s20  ;;  %v14678_v37 = vpop.eup %14677  ;;  %v16588_v51 = vadd.f32 %v2825_v50, %v2701_v45 }
 0x6f8   :  { %2908 = vrot.lane.b32.xlu1 %v14678_v37, %s15741_s20 }
 0x6f9   :  { %14687 = vtanh.f32 %v16588_v51  ;;  %v2831_v2 = vpop.permute.xlu0 %2830 }
 0x6fa   :  { %14689 = vtanh.f32 %v16593_v57  ;;  %v2829_v5 = vpop.permute.xlu1 %2828  ;;  %v16599_v8 = vadd.f32 %v2831_v2, %v2704_v62 }
 0x6fb   :  { %v14680_v47 = vpop.eup %14679  ;;  %v16601_v12 = vadd.f32 %v2829_v5, %v2703_v63 }
 0x6fc   :  { %2912 = vrot.lane.b32.xlu1 %v14680_v47, %s15741_s20  ;;  %v14682_v58 = vpop.eup %14681  ;;  %14691 = vtanh.f32 %v16599_v8 }
 0x6fd   :  { %2914 = vrot.lane.b32.xlu0 %v14682_v58, %s15741_s20  ;;  %14693 = vtanh.f32 %v16601_v12 }
 0x6fe   :  { %v14684_v10 = vpop.eup %14683  ;;  %v2833_v20 = vpop.permute.xlu1 %2832 }
 0x6ff   :  { %v14686_v15 = vpop.eup %14685  ;;  %v16608_v21 = vadd.f32 %v2833_v20, %v2705_v19 }
 0x700   :  { %2916 = vrot.lane.b32.xlu1 %v14686_v15, %s15741_s20 }
 0x701   :  { %2918 = vrot.lane.b32.xlu0 %v14684_v10, %s15741_s20  ;;  %14695 = vtanh.f32 %v16608_v21 }
 0x703   :  { %v14688_v23 = vpop.eup %14687 }
 0x704   :  { %2920 = vrot.lane.b32.xlu1 %v14688_v23, %s15741_s20  ;;  %v14690_v24 = vpop.eup %14689 }
 0x705   :  { %2922 = vrot.lane.b32.xlu0 %v14690_v24, %s15741_s20 }
 0x706   :  { %v14692_v25 = vpop.eup %14691 }
 0x707   :  { %v14694_v27 = vpop.eup %14693 }
 0x708   :  { %2924 = vrot.lane.b32.xlu1 %v14694_v27, %s15741_s20  ;;  %v11030_v27 = vld [vmem:[%s18417_s25 + $0x80] sm:$0xff] }
 0x709   :  { %2926 = vrot.lane.b32.xlu0 %v14692_v25, %s15741_s20 }
 0x70b   :  { %v14696_v36 = vpop.eup %14695 }
 0x70c   :  { %2928 = vrot.lane.b32.xlu1 %v14696_v36, %s15741_s20  ;;  %v11031_v36 = vld [vmem:[%s18417_s25 + $0x88] sm:$0xff] }
 0x75d   :  { %v2899_v42 = vpop.permute.xlu0 %2898 }
 0x75e   :  { %v2946_v28 = vmul.f32 %v16467_v41, %v2899_v42  ;;  %v16642_v42 = vpack.c.bf16 %v11031_v36, %v11030_v27 }
 0x760   :  { %12651 = vmatprep.mubr.msk.bf16.mxu1 %vm518_vm1, %v16642_v42 }
 0x761   :  { %v2903_v29 = vpop.permute.xlu0 %2902 }
 0x762   :  { %v2901_v54 = vpop.permute.xlu1 %2900  ;;  %v2948_v17 = vmul.f32 %v16472_v49, %v2903_v29  ;;  %v11032_v29 = vld [vmem:[%s18417_s25 + $0x90] sm:$0xff] }
 0x763   :  { %v2947_v3 = vmul.f32 %v16476_v53, %v2901_v54 }
 0x765   :  { %v2987_v11 = vpack.c.bf16 %v2947_v3, %v2946_v28  ;;  %v2907_v38 = vpop.permute.xlu0 %2906 }
 0x766   :  { %v2905_v33 = vpop.permute.xlu1 %2904  ;;  %v2950_v47 = vmul.f32 %v16480_v59, %v2907_v38  ;;  %v11036_v38 = vld [vmem:[%s18417_s25 + $0xb0] sm:$0xff] }
 0x767   :  { %v2949_v34 = vmul.f32 %v16485_v1, %v2905_v33  ;;  %3003 = vrot.lane.b32.xlu0 %v2987_v11, %s15770_s4  ;;  %v11033_v11 = vld [vmem:[%s18417_s25 + $0x98] sm:$0xff] }
 0x768   :  { %v16668_v33 = vpack.c.bf16 %v11033_v11, %v11032_v29 }
 0x769   :  { %v2988_v37 = vpack.c.bf16 %v2949_v34, %v2948_v17  ;;  %v2911_v53 = vpop.permute.xlu0 %2910  ;;  %v11034_v17 = vld [vmem:[%s18417_s25 + $0xa0] sm:$0xff]  ;;  %v11035_v34 = vld [vmem:[%s18417_s25 + $0xa8] sm:$0xff] }
 0x76a   :  { %v2909_v45 = vpop.permute.xlu1 %2908  ;;  %v2952_v56 = vmul.f32 %v16490_v9, %v2911_v53  ;;  %v11039_v53 = vld [vmem:[%s18417_s25 + $0xc8] sm:$0xff] }
 0x76b   :  { %3005 = vrot.lane.b32.xlu1 %v2988_v37, %s15770_s4  ;;  %v2951_v41 = vmul.f32 %v16496_v16, %v2909_v45  ;;  %v16675_v37 = vpack.c.bf16 %v11035_v34, %v11034_v17  ;;  %v11037_v45 = vld [vmem:[%s18417_s25 + $0xb8] sm:$0xff] }
 0x76d   :  { %v2989_v50 = vpack.c.bf16 %v2951_v41, %v2950_v47  ;;  %v16682_v47 = vpack.c.bf16 %v11037_v45, %v11036_v38  ;;  %v11038_v41 = vld [vmem:[%s18417_s25 + $0xc0] sm:$0xff] }
 0x76e   :  { %v2913_v55 = vpop.permute.xlu1 %2912 }
 0x76f   :  { %v2953_v49 = vmul.f32 %v16500_v18, %v2913_v55  ;;  %3007 = vrot.lane.b32.xlu0 %v2989_v50, %s15770_s4  ;;  %v2915_v58 = vpop.permute.xlu0 %2914  ;;  %v16689_v50 = vpack.c.bf16 %v11039_v53, %v11038_v41  ;;  %v11040_v55 = vld [vmem:[%s18417_s25 + $0xd0] sm:$0xff] }
 0x770   :  { %v2954_v63 = vmul.f32 %v16504_v48, %v2915_v58  ;;  %v11043_v58 = vld [vmem:[%s18417_s25 + $0xe8] sm:$0xff] }
 0x771   :  { %v2990_v1 = vpack.c.bf16 %v2953_v49, %v2952_v56  ;;  %v11041_v56 = vld [vmem:[%s18417_s25 + $0xd8] sm:$0xff] }
 0x772   :  { %v2917_v62 = vpop.permute.xlu1 %2916  ;;  %v16696_v49 = vpack.c.bf16 %v11041_v56, %v11040_v55 }
 0x773   :  { %3009 = vrot.lane.b32.xlu1 %v2990_v1, %s15770_s4  ;;  %v2955_v59 = vmul.f32 %v16510_v31, %v2917_v62  ;;  %v2919_v2 = vpop.permute.xlu0 %2918  ;;  %v11042_v1 = vld [vmem:[%s18417_s25 + $0xe0] sm:$0xff] }
 0x774   :  { %v2956_v10 = vmul.f32 %v16508_v30, %v2919_v2  ;;  %v16703_v62 = vpack.c.bf16 %v11043_v58, %v11042_v1 }
 0x775   :  { %v2991_v16 = vpack.c.bf16 %v2955_v59, %v2954_v63  ;;  %v11044_v63 = vld [vmem:[%s18417_s25 + $0xf0] sm:$0xff]  ;;  %v11045_v59 = vld [vmem:[%s18417_s25 + $0xf8] sm:$0xff]  ;;  %s18495_s25 = sld [smem:[#allocation67_spill]] }
 0x776   :  { %v2921_v5 = vpop.permute.xlu1 %2920  ;;  %v16710_v2 = vpack.c.bf16 %v11045_v59, %v11044_v63 }
 0x777   :  { %v2957_v9 = vmul.f32 %v16516_v35, %v2921_v5  ;;  %3011 = vrot.lane.b32.xlu0 %v2991_v16, %s15770_s4  ;;  %v2923_v15 = vpop.permute.xlu0 %2922  ;;  %v14851_v16 = vld [vmem:[#allocation2 + $0x40] sm:$0xff]  }
 0x778   :  { %v2958_v48 = vmul.f32 %v16519_v39, %v2923_v15 }
 0x779   :  { %v2992_v18 = vpack.c.bf16 %v2957_v9, %v2956_v10 }
 0x77a   :  { %v2925_v19 = vpop.permute.xlu1 %2924 }
 0x77b   :  { %3013 = vrot.lane.b32.xlu1 %v2992_v18, %s15770_s4  ;;  %v2959_v31 = vmul.f32 %v16526_v46, %v2925_v19  ;;  %v2927_v20 = vpop.permute.xlu0 %2926 }
 0x77c   :  { %v2960_v30 = vmul.f32 %v16524_v44, %v2927_v20 }
 0x77d   :  { %v2993_v23 = vpack.c.bf16 %v2959_v31, %v2958_v48 }
 0x77e   :  { %v2929_v24 = vpop.permute.xlu1 %2928 }
 0x77f   :  { %v2961_v35 = vmul.f32 %v16532_v52, %v2929_v24  ;;  %3015 = vrot.lane.b32.xlu0 %v2993_v23, %s15770_s4 }
 0x781   :  { %v2994_v25 = vpack.c.bf16 %v2961_v35, %v2960_v30 }
 0x783   :  { %3017 = vrot.lane.b32.xlu1 %v2994_v25, %s15770_s4 }
 0x7d9   :  { %v3004_v39 = vpop.permute.xlu0 %3003 }
 0x7da   :  { %11047 = vmatmul.mubr.msk.bf16.vlgmr.msra.gmra.mrb[32].mxu0 %vm518_vm1, %v3004_v39 }
 0x7db   :  { %3181 = vmatpush1.bf16.msra.mxu0 %v16144_v6  ;;  %3085 = vmatprep.mubr.bf16.mxu0 %v18341_v0 }
 0x7dd   :  { %v3006_v44 = vpop.permute.xlu1 %3005 }
 0x7e1   :  { %v3008_v46 = vpop.permute.xlu0 %3007 }
 0x7e2   :  { %11048 = vmatmul.mubr.msk.bf16.gmra.mrb[36].mxu0 %vm518_vm1, %v3006_v44 }
 0x7e3   :  { %3095 = vmatprep.mubr.bf16.mxu0 %v18341_v0 }
 0x7e5   :  { %v3010_v52 = vpop.permute.xlu1 %3009 }
 0x7e9   :  { %v3012_v6 = vpop.permute.xlu0 %3011 }
 0x7ea   :  { %11049 = vmatmul.mubr.msk.bf16.gmra.mrb[40].mxu0 %vm518_vm1, %v3008_v46 }
 0x7eb   :  { %3105 = vmatprep.mubr.bf16.mxu0 %v18341_v0 }
 0x7ed   :  { %v3014_v54 = vpop.permute.xlu1 %3013 }
 0x7f1   :  { %v3016_v28 = vpop.permute.xlu0 %3015 }
 0x7f2   :  { %11050 = vmatmul.mubr.msk.bf16.gmra.mrb[44].mxu0 %vm518_vm1, %v3010_v52 }
 0x7f3   :  { %3115 = vmatprep.mubr.bf16.mxu0 %v18341_v0 }
 0x7f5   :  { %v3018_v3 = vpop.permute.xlu1 %3017 }
 0x7fa   :  { %11051 = vmatmul.mubr.msk.bf16.gmra.mrb[48].mxu0 %vm518_vm1, %v3012_v6 }
 0x7fb   :  { %3125 = vmatprep.mubr.bf16.mxu0 %v18341_v0 }
 0x802   :  { %11052 = vmatmul.mubr.msk.bf16.gmra.mrb[52].mxu0 %vm518_vm1, %v3014_v54 }
 0x803   :  { %3135 = vmatprep.mubr.bf16.mxu0 %v18341_v0 }
 0x80a   :  { %11053 = vmatmul.mubr.msk.bf16.gmra.mrb[56].mxu0 %vm518_vm1, %v3016_v28 }
 0x80b   :  { %3145 = vmatprep.mubr.bf16.mxu0 %v18341_v0 }
 0x812   :  { %11054 = vmatmul.mubr.msk.bf16.gmra.mrb[60].mxu0 %vm518_vm1, %v3018_v3 }
 0x813   :  { %3212 = vmatprep.mubr.bf16.mxu0 %v18341_v0 }
 0x81a   :  { %11056 = vmatmul.mubr.msk.bf16.vlgmr.msra.gmra.mrb[32].mxu0 %vm518_vm1, %v16642_v42 }
 0x81b   :  { %3222 = vmatprep.mubr.bf16.mxu0 %v18341_v0 }
 0x822   :  { %11057 = vmatmul.mubr.msk.bf16.gmra.mrb[36].mxu0 %vm518_vm1, %v16668_v33 }
 0x823   :  { %3232 = vmatprep.mubr.bf16.mxu0 %v18341_v0 }
 0x82a   :  { %11058 = vmatmul.mubr.msk.bf16.gmra.mrb[40].mxu0 %vm518_vm1, %v16675_v37 }
 0x82b   :  { %3242 = vmatprep.mubr.bf16.mxu0 %v18341_v0 }
 0x832   :  { %11059 = vmatmul.mubr.msk.bf16.gmra.mrb[44].mxu0 %vm518_vm1, %v16682_v47 }
 0x833   :  { %3252 = vmatprep.mubr.bf16.mxu0 %v18341_v0 }
 0x83a   :  { %11060 = vmatmul.mubr.msk.bf16.gmra.mrb[48].mxu0 %vm518_vm1, %v16689_v50 }
 0x83b   :  { %3262 = vmatprep.mubr.bf16.mxu0 %v18341_v0 }
 0x842   :  { %11061 = vmatmul.mubr.msk.bf16.gmra.mrb[52].mxu0 %vm518_vm1, %v16696_v49 }
 0x843   :  { %3272 = vmatprep.mubr.bf16.mxu0 %v18341_v0 }
 0x84a   :  { %11062 = vmatmul.mubr.msk.bf16.gmra.mrb[56].mxu0 %vm518_vm1, %v16703_v62 }
 0x84b   :  { %3282 = vmatprep.mubr.bf16.mxu0 %v18341_v0 }
 0x852   :  { %11063 = vmatmul.mubr.msk.bf16.gmra.mrb[60].mxu0 %vm518_vm1, %v16710_v2 }
 0x853   :  { %12377 = vmatprep.mubr.bf16.mxu0 %v14851_v16 }
 0x8ed   :  { %v3214_v5 = vpop.f32.mrb[32].mxu0 }
 0x8ee   :  { %v3216_v10 = vpop.f32.mrb[33].mxu0 }
 0x8ef   :  { %v3218_v9 = vpop.f32.mrb[34].mxu0 }
 0x8f0   :  { %v16714_v18 = vpack.c.bf16 %v3218_v9, %v3214_v5  ;;  %v3220_v15 = vpop.f32.mrb[35].mxu0 }
 0x8f1   :  { %v16716_v19 = vpack.c.bf16 %v3220_v15, %v3216_v10 }
 0x8f2   :  { %3309 = vrot.lane.b32.xlu0 %v16714_v18, %s15763_s0 }
 0x8f5   :  { %v3224_v48 = vpop.f32.mrb[36].mxu0 }
 0x8f6   :  { %v3226_v31 = vpop.f32.mrb[37].mxu0 }
 0x8f7   :  { %v3228_v20 = vpop.f32.mrb[38].mxu0 }
 0x8f8   :  { %v16720_v23 = vpack.c.bf16 %v3228_v20, %v3224_v48  ;;  %v3230_v24 = vpop.f32.mrb[39].mxu0 }
 0x8f9   :  { %v16722_v30 = vpack.c.bf16 %v3230_v24, %v3226_v31 }
 0x8fa   :  { %3311 = vrot.lane.b32.xlu1 %v16720_v23, %s15763_s0 }
 0x8fd   :  { %v3234_v35 = vpop.f32.mrb[40].mxu0 }
 0x8fe   :  { %v3236_v25 = vpop.f32.mrb[41].mxu0 }
 0x8ff   :  { %v3238_v27 = vpop.f32.mrb[42].mxu0 }
 0x900   :  { %v16726_v36 = vpack.c.bf16 %v3238_v27, %v3234_v35  ;;  %v3240_v39 = vpop.f32.mrb[43].mxu0 }
 0x901   :  { %v16728_v44 = vpack.c.bf16 %v3240_v39, %v3236_v25 }
 0x902   :  { %3313 = vrot.lane.b32.xlu0 %v16726_v36, %s15763_s0 }
 0x905   :  { %v3244_v46 = vpop.f32.mrb[44].mxu0 }
 0x906   :  { %v3246_v52 = vpop.f32.mrb[45].mxu0 }
 0x907   :  { %v3248_v6 = vpop.f32.mrb[46].mxu0 }
 0x908   :  { %v16732_v54 = vpack.c.bf16 %v3248_v6, %v3244_v46  ;;  %v3250_v28 = vpop.f32.mrb[47].mxu0 }
 0x909   :  { %v16734_v3 = vpack.c.bf16 %v3250_v28, %v3246_v52 }
 0x90a   :  { %3315 = vrot.lane.b32.xlu1 %v16732_v54, %s15763_s0 }
 0x90d   :  { %v3254_v29 = vpop.f32.mrb[48].mxu0 }
 0x90e   :  { %v3256_v11 = vpop.f32.mrb[49].mxu0 }
 0x90f   :  { %v3258_v17 = vpop.f32.mrb[50].mxu0 }
 0x910   :  { %v16738_v34 = vpack.c.bf16 %v3258_v17, %v3254_v29  ;;  %v3260_v38 = vpop.f32.mrb[51].mxu0  ;;  %v14853_v17 = vld [vmem:[#allocation2 + $0x50] sm:$0xff]  }
 0x911   :  { %v16740_v45 = vpack.c.bf16 %v3260_v38, %v3256_v11  ;;  %v14852_v11 = vld [vmem:[#allocation2 + $0x48] sm:$0xff]   ;;  %v14854_v38 = vld [vmem:[#allocation2 + $0x58] sm:$0xff]  }
 0x912   :  { %3317 = vrot.lane.b32.xlu0 %v16738_v34, %s15763_s0 }
 0x915   :  { %v3264_v41 = vpop.f32.mrb[52].mxu0 }
 0x916   :  { %v3266_v53 = vpop.f32.mrb[53].mxu0 }
 0x917   :  { %v3268_v55 = vpop.f32.mrb[54].mxu0 }
 0x918   :  { %v16744_v56 = vpack.c.bf16 %v3268_v55, %v3264_v41  ;;  %v3270_v1 = vpop.f32.mrb[55].mxu0  ;;  %v14855_v41 = vld [vmem:[#allocation2 + $0x60] sm:$0xff]  }
 0x919   :  { %v16746_v58 = vpack.c.bf16 %v3270_v1, %v3266_v53  ;;  %v14857_v53 = vld [vmem:[#allocation2 + $0x70] sm:$0xff]  }
 0x91a   :  { %3319 = vrot.lane.b32.xlu1 %v16744_v56, %s15763_s0  ;;  %v14861_v1 = vld [vmem:[#allocation2 + $0x10] sm:$0xff]  }
 0x91d   :  { %v3274_v63 = vpop.f32.mrb[56].mxu0 }
 0x91e   :  { %v3276_v59 = vpop.f32.mrb[57].mxu0 }
 0x91f   :  { %v3278_v16 = vpop.f32.mrb[58].mxu0 }
 0x920   :  { %v16750_v5 = vpack.c.bf16 %v3278_v16, %v3274_v63  ;;  %v3280_v10 = vpop.f32.mrb[59].mxu0  ;;  %v14862_v63 = vld [vmem:[#allocation2 + $0x18] sm:$0xff]   ;;  %v14863_v16 = vld [vmem:[#allocation2 + $0x20] sm:$0xff]  }
 0x921   :  { %v16752_v9 = vpack.c.bf16 %v3280_v10, %v3276_v59  ;;  %v14864_v10 = vld [vmem:[#allocation2 + $0x28] sm:$0xff]  }
 0x922   :  { %3321 = vrot.lane.b32.xlu0 %v16750_v5, %s15763_s0 }
 0x925   :  { %v3284_v15 = vpop.f32.mrb[60].mxu0 }
 0x926   :  { %3527 = vrot.lane.b32.xlu0 %v16714_v18, %s15764_s22  ;;  %v3286_v48 = vpop.f32.mrb[61].mxu0 }
 0x927   :  { %v3288_v31 = vpop.f32.mrb[62].mxu0 }
 0x928   :  { %v16758_v20 = vpack.c.bf16 %v3288_v31, %v3284_v15  ;;  %v3290_v24 = vpop.f32.mrb[63].mxu0 }
 0x929   :  { %v16760_v35 = vpack.c.bf16 %v3290_v24, %v3286_v48  ;;  %v14865_v48 = vld [vmem:[#allocation2 + $0x30] sm:$0xff]  }
 0x92a   :  { %3531 = vrot.lane.b32.xlu0 %v16726_v36, %s15764_s22  ;;  %3323 = vrot.lane.b32.xlu1 %v16758_v20, %s15763_s0 }
 0x92e   :  { %3535 = vrot.lane.b32.xlu0 %v16738_v34, %s15764_s22  ;;  %3529 = vrot.lane.b32.xlu1 %v16720_v23, %s15764_s22 }
 0x932   :  { %3539 = vrot.lane.b32.xlu0 %v16750_v5, %s15764_s22  ;;  %3533 = vrot.lane.b32.xlu1 %v16732_v54, %s15764_s22 }
 0x936   :  { %3664 = vrot.lane.b32.xlu0 %v16714_v18, %s15765_s23  ;;  %3537 = vrot.lane.b32.xlu1 %v16744_v56, %s15764_s22 }
 0x93a   :  { %3668 = vrot.lane.b32.xlu0 %v16726_v36, %s15765_s23  ;;  %3541 = vrot.lane.b32.xlu1 %v16758_v20, %s15764_s22 }
 0x93e   :  { %3672 = vrot.lane.b32.xlu0 %v16738_v34, %s15765_s23  ;;  %3666 = vrot.lane.b32.xlu1 %v16720_v23, %s15765_s23 }
 0x942   :  { %3676 = vrot.lane.b32.xlu0 %v16750_v5, %s15765_s23  ;;  %3670 = vrot.lane.b32.xlu1 %v16732_v54, %s15765_s23 }
 0x946   :  { %3801 = vrot.lane.b32.xlu0 %v16714_v18, %s15740_s26  ;;  %3674 = vrot.lane.b32.xlu1 %v16744_v56, %s15765_s23 }
 0x94a   :  { %3805 = vrot.lane.b32.xlu0 %v16726_v36, %s15740_s26  ;;  %3678 = vrot.lane.b32.xlu1 %v16758_v20, %s15765_s23 }
 0x94e   :  { %3809 = vrot.lane.b32.xlu0 %v16738_v34, %s15740_s26  ;;  %3803 = vrot.lane.b32.xlu1 %v16720_v23, %s15740_s26 }
 0x952   :  { %3813 = vrot.lane.b32.xlu0 %v16750_v5, %s15740_s26  ;;  %3807 = vrot.lane.b32.xlu1 %v16732_v54, %s15740_s26 }
 0x956   :  { %3938 = vrot.lane.b32.xlu0 %v16714_v18, %s15766_s28  ;;  %3811 = vrot.lane.b32.xlu1 %v16744_v56, %s15740_s26 }
 0x95a   :  { %3942 = vrot.lane.b32.xlu0 %v16726_v36, %s15766_s28  ;;  %3815 = vrot.lane.b32.xlu1 %v16758_v20, %s15740_s26 }
 0x95e   :  { %3946 = vrot.lane.b32.xlu0 %v16738_v34, %s15766_s28  ;;  %3940 = vrot.lane.b32.xlu1 %v16720_v23, %s15766_s28 }
 0x962   :  { %3950 = vrot.lane.b32.xlu0 %v16750_v5, %s15766_s28  ;;  %3944 = vrot.lane.b32.xlu1 %v16732_v54, %s15766_s28 }
 0x964   :  { %v3310_v25 = vpop.permute.xlu0 %3309 }
 0x965   :  { %12361 = vmatprep.subr.bf16.mxu0 %v3310_v25 }
 0x966   :  { %12362 = vmatpush3.bf16.msra.mxu0 %v3310_v25  ;;  %4075 = vrot.lane.b32.xlu0 %v16714_v18, %s15767_s1  ;;  %v14867_v25 = vld [vmem:[#allocation2 + $0x80] sm:$0xff]  }
 0x967   :  { %3948 = vrot.lane.b32.xlu1 %v16744_v56, %s15766_s28 }
 0x96a   :  { %4079 = vrot.lane.b32.xlu0 %v16726_v36, %s15767_s1 }
 0x96b   :  { %3952 = vrot.lane.b32.xlu1 %v16758_v20, %s15766_s28 }
 0x96c   :  { %v3312_v27 = vpop.permute.xlu1 %3311 }
 0x96d   :  { %12363 = vmatprep.subr.bf16.mxu0 %v3312_v27 }
 0x96e   :  { %12364 = vmatpush3.bf16.msra.mxu0 %v3312_v27  ;;  %4083 = vrot.lane.b32.xlu0 %v16738_v34, %s15767_s1 }
 0x96f   :  { %4077 = vrot.lane.b32.xlu1 %v16720_v23, %s15767_s1 }
 0x972   :  { %4087 = vrot.lane.b32.xlu0 %v16750_v5, %s15767_s1 }
 0x973   :  { %4081 = vrot.lane.b32.xlu1 %v16732_v54, %s15767_s1 }
 0x974   :  { %v3314_v39 = vpop.permute.xlu0 %3313 }
 0x975   :  { %12365 = vmatprep.subr.bf16.mxu0 %v3314_v39 }
 0x976   :  { %12366 = vmatpush3.bf16.msra.mxu0 %v3314_v39  ;;  %4212 = vrot.lane.b32.xlu0 %v16714_v18, %s15768_s8  ;;  %v14868_v39 = vld [vmem:[#allocation2 + $0x88] sm:$0xff]  }
 0x977   :  { %4085 = vrot.lane.b32.xlu1 %v16744_v56, %s15767_s1 }
 0x97a   :  { %4216 = vrot.lane.b32.xlu0 %v16726_v36, %s15768_s8 }
 0x97b   :  { %4089 = vrot.lane.b32.xlu1 %v16758_v20, %s15767_s1 }
 0x97c   :  { %v3316_v46 = vpop.permute.xlu1 %3315 }
 0x97d   :  { %12367 = vmatprep.subr.bf16.mxu0 %v3316_v46 }
 0x97e   :  { %12368 = vmatpush3.bf16.msra.mxu0 %v3316_v46  ;;  %4220 = vrot.lane.b32.xlu0 %v16738_v34, %s15768_s8 }
 0x97f   :  { %4214 = vrot.lane.b32.xlu1 %v16720_v23, %s15768_s8 }
 0x982   :  { %4224 = vrot.lane.b32.xlu0 %v16750_v5, %s15768_s8 }
 0x983   :  { %4218 = vrot.lane.b32.xlu1 %v16732_v54, %s15768_s8 }
 0x984   :  { %v3318_v52 = vpop.permute.xlu0 %3317 }
 0x985   :  { %12369 = vmatprep.subr.bf16.mxu0 %v3318_v52 }
 0x986   :  { %12370 = vmatpush3.bf16.msra.mxu0 %v3318_v52  ;;  %v14869_v52 = vld [vmem:[#allocation2 + $0x90] sm:$0xff]  }
 0x987   :  { %4222 = vrot.lane.b32.xlu1 %v16744_v56, %s15768_s8 }
 0x98b   :  { %4226 = vrot.lane.b32.xlu1 %v16758_v20, %s15768_s8 }
 0x98c   :  { %v3320_v6 = vpop.permute.xlu1 %3319 }
 0x98d   :  { %12371 = vmatprep.subr.bf16.mxu0 %v3320_v6 }
 0x98e   :  { %12372 = vmatpush3.bf16.msra.mxu0 %v3320_v6 }
 0x994   :  { %v3322_v28 = vpop.permute.xlu0 %3321 }
 0x995   :  { %12373 = vmatprep.subr.bf16.mxu0 %v3322_v28 }
 0x996   :  { %12374 = vmatpush3.bf16.msra.mxu0 %v3322_v28  ;;  %v14870_v28 = vld [vmem:[#allocation2 + $0x98] sm:$0xff]  }
 0x99c   :  { %v3324_v29 = vpop.permute.xlu1 %3323 }
 0x99d   :  { %12375 = vmatprep.subr.bf16.mxu0 %v3324_v29 }
 0x99e   :  { %12376 = vmatpush3.bf16.msra.mxu0 %v3324_v29 }
 0x99f   :  { %12393 = vmatprep.subr.bf16.mxu0 %v16714_v18 }
 0x9a0   :  { %v3530_v55 = vpop.permute.xlu1 %3529 }
 0x9a1   :  { %12378 = vmatmul.mubr.bf16.vlgmr.msra.gmra.mrb[64].mxu0 %v14852_v11  ;;  %v14871_v11 = vld [vmem:[#allocation2 + $0xa0] sm:$0xff]  }
 0x9a2   :  { %12394 = vmatpush3.bf16.msra.mxu0 %v16714_v18  ;;  %12381 = vmatprep.mubr.bf16.mxu0 %v14853_v17  ;;  %v14856_v18 = vld [vmem:[#allocation2 + $0x68] sm:$0xff]  }
 0x9a3   :  { %12395 = vmatprep.subr.bf16.mxu0 %v16720_v23 }
 0x9a4   :  { %v3534_v59 = vpop.permute.xlu1 %3533 }
 0x9a6   :  { %12396 = vmatpush3.bf16.msra.mxu0 %v16720_v23  ;;  %v14858_v23 = vld [vmem:[#allocation2 + $0x78] sm:$0xff]  }
 0x9a7   :  { %12397 = vmatprep.subr.bf16.mxu0 %v16726_v36 }
 0x9a8   :  { %v3538_v15 = vpop.permute.xlu1 %3537 }
 0x9a9   :  { %12382 = vmatmul.mubr.bf16.gmra.mrb[68].mxu0 %v14854_v38  ;;  %v14872_v38 = vld [vmem:[#allocation2 + $0xa8] sm:$0xff]  }
 0x9aa   :  { %12398 = vmatpush3.bf16.msra.mxu0 %v16726_v36  ;;  %12385 = vmatprep.mubr.bf16.mxu0 %v14855_v41  ;;  %v14859_v36 = vld [vmem:[#allocation2] sm:$0xff]  }
 0x9ab   :  { %12399 = vmatprep.subr.bf16.mxu0 %v16732_v54 }
 0x9ac   :  { %v3542_v24 = vpop.permute.xlu1 %3541 }
 0x9ae   :  { %12400 = vmatpush3.bf16.msra.mxu0 %v16732_v54  ;;  %v3528_v54 = vpop.permute.xlu0 %3527 }
 0x9af   :  { %12401 = vmatprep.subr.bf16.mxu0 %v16738_v34 }
 0x9b0   :  { %v3667_v46 = vpop.permute.xlu1 %3666 }
 0x9b1   :  { %12386 = vmatmul.mubr.bf16.gmra.mrb[72].mxu0 %v14856_v18  ;;  %v14873_v18 = vld [vmem:[#allocation2 + $0xb0] sm:$0xff]  }
 0x9b2   :  { %12402 = vmatpush3.bf16.msra.mxu0 %v16738_v34  ;;  %12389 = vmatprep.mubr.bf16.mxu0 %v14857_v53  ;;  %v14860_v34 = vld [vmem:[#allocation2 + $0x8] sm:$0xff]  }
 0x9b3   :  { %12403 = vmatprep.subr.bf16.mxu0 %v16744_v56 }
 0x9b4   :  { %v3671_v29 = vpop.permute.xlu1 %3670 }
 0x9b6   :  { %12404 = vmatpush3.bf16.msra.mxu0 %v16744_v56  ;;  %v3532_v56 = vpop.permute.xlu0 %3531 }
 0x9b7   :  { %12405 = vmatprep.subr.bf16.mxu0 %v16750_v5 }
 0x9b8   :  { %v3675_v41 = vpop.permute.xlu1 %3674 }
 0x9b9   :  { %12390 = vmatmul.mubr.bf16.gmra.mrb[76].mxu0 %v14858_v23  ;;  %v14874_v23 = vld [vmem:[#allocation2 + $0xb8] sm:$0xff]  }
 0x9ba   :  { %12406 = vmatpush3.bf16.msra.mxu0 %v16750_v5  ;;  %12409 = vmatprep.mubr.bf16.mxu0 %v14859_v36  ;;  %v3536_v5 = vpop.permute.xlu0 %3535 }
 0x9bb   :  { %12407 = vmatprep.subr.bf16.mxu0 %v16758_v20 }
 0x9bc   :  { %v3679_v36 = vpop.permute.xlu1 %3678 }
 0x9be   :  { %12408 = vmatpush3.bf16.msra.mxu0 %v16758_v20  ;;  %v3540_v31 = vpop.permute.xlu0 %3539  ;;  %v14866_v20 = vld [vmem:[#allocation2 + $0x38] sm:$0xff]  }
 0x9bf   :  { %12425 = vmatprep.subr.bf16.mxu0 %v3528_v54 }
 0x9c1   :  { %12410 = vmatmul.mubr.bf16.vlgmr.msra.gmra.mrb[64].mxu0 %v14860_v34 }
 0x9c2   :  { %12426 = vmatpush3.bf16.msra.mxu0 %v3528_v54  ;;  %12413 = vmatprep.mubr.bf16.mxu0 %v14861_v1  ;;  %v3665_v27 = vpop.permute.xlu0 %3664  ;;  %v14875_v54 = vld [vmem:[#allocation2 + $0xc0] sm:$0xff]   ;;  %v3804_v1 = vpop.permute.xlu1 %3803 }
 0x9c3   :  { %12427 = vmatprep.subr.bf16.mxu0 %v3530_v55 }
 0x9c6   :  { %12428 = vmatpush3.bf16.msra.mxu0 %v3530_v55  ;;  %v3669_v6 = vpop.permute.xlu0 %3668  ;;  %v14876_v55 = vld [vmem:[#allocation2 + $0xc8] sm:$0xff]  }
 0x9c7   :  { %12429 = vmatprep.subr.bf16.mxu0 %v3532_v56 }
 0x9c9   :  { %12414 = vmatmul.mubr.bf16.gmra.mrb[68].mxu0 %v14862_v63 }
 0x9ca   :  { %12430 = vmatpush3.bf16.msra.mxu0 %v3532_v56  ;;  %12417 = vmatprep.mubr.bf16.mxu0 %v14863_v16  ;;  %v3673_v17 = vpop.permute.xlu0 %3672  ;;  %v14877_v56 = vld [vmem:[#allocation2 + $0xd0] sm:$0xff]   ;;  %v3808_v16 = vpop.permute.xlu1 %3807 }
 0x9cb   :  { %12431 = vmatprep.subr.bf16.mxu0 %v3534_v59 }
 0x9ce   :  { %12432 = vmatpush3.bf16.msra.mxu0 %v3534_v59  ;;  %v3677_v53 = vpop.permute.xlu0 %3676  ;;  %v14878_v59 = vld [vmem:[#allocation2 + $0xd8] sm:$0xff]  }
 0x9cf   :  { %12433 = vmatprep.subr.bf16.mxu0 %v3536_v5 }
 0x9d1   :  { %12418 = vmatmul.mubr.bf16.gmra.mrb[72].mxu0 %v14864_v10 }
 0x9d2   :  { %12434 = vmatpush3.bf16.msra.mxu0 %v3536_v5  ;;  %12421 = vmatprep.mubr.bf16.mxu0 %v14865_v48  ;;  %v3802_v34 = vpop.permute.xlu0 %3801  ;;  %v14879_v5 = vld [vmem:[#allocation2 + $0xe0] sm:$0xff]   ;;  %v3812_v48 = vpop.permute.xlu1 %3811 }
 0x9d3   :  { %12435 = vmatprep.subr.bf16.mxu0 %v3538_v15 }
 0x9d6   :  { %12436 = vmatpush3.bf16.msra.mxu0 %v3538_v15  ;;  %v3806_v63 = vpop.permute.xlu0 %3805  ;;  %v14880_v15 = vld [vmem:[#allocation2 + $0xe8] sm:$0xff]  }
 0x9d7   :  { %12437 = vmatprep.subr.bf16.mxu0 %v3540_v31 }
 0x9d9   :  { %12422 = vmatmul.mubr.bf16.gmra.mrb[76].mxu0 %v14866_v20 }
 0x9da   :  { %12438 = vmatpush3.bf16.msra.mxu0 %v3540_v31  ;;  %12441 = vmatprep.mubr.bf16.mxu0 %v14867_v25  ;;  %v3810_v10 = vpop.permute.xlu0 %3809  ;;  %v14881_v31 = vld [vmem:[#allocation2 + $0xf0] sm:$0xff]   ;;  %v3816_v25 = vpop.permute.xlu1 %3815 }
 0x9db   :  { %12439 = vmatprep.subr.bf16.mxu0 %v3542_v24 }
 0x9de   :  { %12440 = vmatpush3.bf16.msra.mxu0 %v3542_v24  ;;  %v3814_v20 = vpop.permute.xlu0 %3813  ;;  %v14882_v24 = vld [vmem:[#allocation2 + $0xf8] sm:$0xff]  }
 0x9df   :  { %12457 = vmatprep.subr.bf16.mxu0 %v3665_v27 }
 0x9e1   :  { %12442 = vmatmul.mubr.bf16.vlgmr.msra.gmra.mrb[64].mxu0 %v14868_v39 }
 0x9e2   :  { %12458 = vmatpush3.bf16.msra.mxu0 %v3665_v27  ;;  %12445 = vmatprep.mubr.bf16.mxu0 %v14869_v52  ;;  %v14883_v27 = vld [vmem:[#allocation2 + $0x100] sm:$0xff]   ;;  %v3939_v39 = vpop.permute.xlu0 %3938  ;;  %v3941_v52 = vpop.permute.xlu1 %3940 }
 0x9e3   :  { %12459 = vmatprep.subr.bf16.mxu0 %v3667_v46 }
 0x9e6   :  { %12460 = vmatpush3.bf16.msra.mxu0 %v3667_v46  ;;  %v14884_v46 = vld [vmem:[#allocation2 + $0x108] sm:$0xff]  }
 0x9e7   :  { %12461 = vmatprep.subr.bf16.mxu0 %v3669_v6 }
 0x9e9   :  { %12446 = vmatmul.mubr.bf16.gmra.mrb[68].mxu0 %v14870_v28  ;;  %v3943_v28 = vpop.permute.xlu0 %3942 }
 0x9ea   :  { %12462 = vmatpush3.bf16.msra.mxu0 %v3669_v6  ;;  %12449 = vmatprep.mubr.bf16.mxu0 %v14871_v11  ;;  %v14885_v6 = vld [vmem:[#allocation2 + $0x110] sm:$0xff]   ;;  %v3945_v11 = vpop.permute.xlu1 %3944 }
 0x9eb   :  { %12463 = vmatprep.subr.bf16.mxu0 %v3671_v29 }
 0x9ee   :  { %12464 = vmatpush3.bf16.msra.mxu0 %v3671_v29  ;;  %v14886_v29 = vld [vmem:[#allocation2 + $0x118] sm:$0xff]  }
 0x9ef   :  { %12465 = vmatprep.subr.bf16.mxu0 %v3673_v17 }
 0x9f1   :  { %12450 = vmatmul.mubr.bf16.gmra.mrb[72].mxu0 %v14872_v38  ;;  %v3947_v38 = vpop.permute.xlu0 %3946 }
 0x9f2   :  { %12466 = vmatpush3.bf16.msra.mxu0 %v3673_v17  ;;  %12453 = vmatprep.mubr.bf16.mxu0 %v14873_v18  ;;  %v14887_v17 = vld [vmem:[#allocation2 + $0x120] sm:$0xff]   ;;  %v3949_v18 = vpop.permute.xlu1 %3948 }
 0x9f3   :  { %12467 = vmatprep.subr.bf16.mxu0 %v3675_v41 }
 0x9f6   :  { %12468 = vmatpush3.bf16.msra.mxu0 %v3675_v41  ;;  %v14888_v41 = vld [vmem:[#allocation2 + $0x128] sm:$0xff]  }
 0x9f7   :  { %12469 = vmatprep.subr.bf16.mxu0 %v3677_v53 }
 0x9f9   :  { %12454 = vmatmul.mubr.bf16.gmra.mrb[76].mxu0 %v14874_v23  ;;  %v3951_v23 = vpop.permute.xlu0 %3950 }
 0x9fa   :  { %12470 = vmatpush3.bf16.msra.mxu0 %v3677_v53  ;;  %12473 = vmatprep.mubr.bf16.mxu0 %v14875_v54  ;;  %v14889_v53 = vld [vmem:[#allocation2 + $0x130] sm:$0xff]   ;;  %v3953_v54 = vpop.permute.xlu1 %3952 }
 0x9fb   :  { %12471 = vmatprep.subr.bf16.mxu0 %v3679_v36 }
 0x9fe   :  { %12472 = vmatpush3.bf16.msra.mxu0 %v3679_v36  ;;  %v14890_v36 = vld [vmem:[#allocation2 + $0x138] sm:$0xff]  }
 0x9ff   :  { %12489 = vmatprep.subr.bf16.mxu0 %v3802_v34 }
 0xa01   :  { %12474 = vmatmul.mubr.bf16.vlgmr.msra.gmra.mrb[64].mxu0 %v14876_v55  ;;  %v4076_v55 = vpop.permute.xlu0 %4075 }
 0xa02   :  { %12490 = vmatpush3.bf16.msra.mxu0 %v3802_v34  ;;  %12477 = vmatprep.mubr.bf16.mxu0 %v14877_v56  ;;  %v14891_v34 = vld [vmem:[#allocation2 + $0x140] sm:$0xff]   ;;  %v4078_v56 = vpop.permute.xlu1 %4077 }
 0xa03   :  { %12491 = vmatprep.subr.bf16.mxu0 %v3804_v1 }
 0xa06   :  { %12492 = vmatpush3.bf16.msra.mxu0 %v3804_v1  ;;  %v14892_v1 = vld [vmem:[#allocation2 + $0x148] sm:$0xff]  }
 0xa07   :  { %12493 = vmatprep.subr.bf16.mxu0 %v3806_v63 }
 0xa09   :  { %12478 = vmatmul.mubr.bf16.gmra.mrb[68].mxu0 %v14878_v59  ;;  %v4080_v59 = vpop.permute.xlu0 %4079 }
 0xa0a   :  { %12494 = vmatpush3.bf16.msra.mxu0 %v3806_v63  ;;  %12481 = vmatprep.mubr.bf16.mxu0 %v14879_v5  ;;  %v14893_v63 = vld [vmem:[#allocation2 + $0x150] sm:$0xff]   ;;  %v4082_v5 = vpop.permute.xlu1 %4081 }
 0xa0b   :  { %12495 = vmatprep.subr.bf16.mxu0 %v3808_v16 }
 0xa0e   :  { %12496 = vmatpush3.bf16.msra.mxu0 %v3808_v16  ;;  %v14894_v16 = vld [vmem:[#allocation2 + $0x158] sm:$0xff]  }
 0xa0f   :  { %12497 = vmatprep.subr.bf16.mxu0 %v3810_v10 }
 0xa11   :  { %12482 = vmatmul.mubr.bf16.gmra.mrb[72].mxu0 %v14880_v15  ;;  %v4084_v15 = vpop.permute.xlu0 %4083 }
 0xa12   :  { %12498 = vmatpush3.bf16.msra.mxu0 %v3810_v10  ;;  %12485 = vmatprep.mubr.bf16.mxu0 %v14881_v31  ;;  %v14895_v10 = vld [vmem:[#allocation2 + $0x160] sm:$0xff]   ;;  %v4086_v31 = vpop.permute.xlu1 %4085 }
 0xa13   :  { %12499 = vmatprep.subr.bf16.mxu0 %v3812_v48 }
 0xa16   :  { %12500 = vmatpush3.bf16.msra.mxu0 %v3812_v48  ;;  %v14896_v48 = vld [vmem:[#allocation2 + $0x168] sm:$0xff]  }
 0xa17   :  { %12501 = vmatprep.subr.bf16.mxu0 %v3814_v20 }
 0xa19   :  { %12486 = vmatmul.mubr.bf16.gmra.mrb[76].mxu0 %v14882_v24  ;;  %v4088_v24 = vpop.permute.xlu0 %4087 }
 0xa1a   :  { %12502 = vmatpush3.bf16.msra.mxu0 %v3814_v20  ;;  %12505 = vmatprep.mubr.bf16.mxu0 %v14883_v27  ;;  %v14897_v20 = vld [vmem:[#allocation2 + $0x170] sm:$0xff]   ;;  %v4090_v27 = vpop.permute.xlu1 %4089 }
 0xa1b   :  { %12503 = vmatprep.subr.bf16.mxu0 %v3816_v25 }
 0xa1e   :  { %12504 = vmatpush3.bf16.msra.mxu0 %v3816_v25  ;;  %v14898_v25 = vld [vmem:[#allocation2 + $0x178] sm:$0xff]  }
 0xa1f   :  { %12521 = vmatprep.subr.bf16.mxu0 %v3939_v39 }
 0xa21   :  { %12506 = vmatmul.mubr.bf16.vlgmr.msra.gmra.mrb[64].mxu0 %v14884_v46  ;;  %v4213_v46 = vpop.permute.xlu0 %4212 }
 0xa22   :  { %12522 = vmatpush3.bf16.msra.mxu0 %v3939_v39  ;;  %12509 = vmatprep.mubr.bf16.mxu0 %v14885_v6  ;;  %v14899_v39 = vld [vmem:[#allocation2 + $0x180] sm:$0xff]   ;;  %v4215_v6 = vpop.permute.xlu1 %4214 }
 0xa23   :  { %12523 = vmatprep.subr.bf16.mxu0 %v3941_v52 }
 0xa26   :  { %12524 = vmatpush3.bf16.msra.mxu0 %v3941_v52  ;;  %v14900_v52 = vld [vmem:[#allocation2 + $0x188] sm:$0xff]  }
 0xa27   :  { %12525 = vmatprep.subr.bf16.mxu0 %v3943_v28 }
 0xa29   :  { %12510 = vmatmul.mubr.bf16.gmra.mrb[68].mxu0 %v14886_v29  ;;  %v4217_v29 = vpop.permute.xlu0 %4216 }
 0xa2a   :  { %12526 = vmatpush3.bf16.msra.mxu0 %v3943_v28  ;;  %12513 = vmatprep.mubr.bf16.mxu0 %v14887_v17  ;;  %v14901_v28 = vld [vmem:[#allocation2 + $0x190] sm:$0xff]   ;;  %v4219_v17 = vpop.permute.xlu1 %4218 }
 0xa2b   :  { %12527 = vmatprep.subr.bf16.mxu0 %v3945_v11 }
 0xa2e   :  { %12528 = vmatpush3.bf16.msra.mxu0 %v3945_v11  ;;  %v14902_v11 = vld [vmem:[#allocation2 + $0x198] sm:$0xff]  }
 0xa2f   :  { %12529 = vmatprep.subr.bf16.mxu0 %v3947_v38 }
 0xa31   :  { %12514 = vmatmul.mubr.bf16.gmra.mrb[72].mxu0 %v14888_v41  ;;  %v4221_v41 = vpop.permute.xlu0 %4220 }
 0xa32   :  { %12530 = vmatpush3.bf16.msra.mxu0 %v3947_v38  ;;  %12517 = vmatprep.mubr.bf16.mxu0 %v14889_v53  ;;  %v14903_v38 = vld [vmem:[#allocation2 + $0x1a0] sm:$0xff]   ;;  %v4223_v53 = vpop.permute.xlu1 %4222 }
 0xa33   :  { %12531 = vmatprep.subr.bf16.mxu0 %v3949_v18 }
 0xa36   :  { %12532 = vmatpush3.bf16.msra.mxu0 %v3949_v18  ;;  %v14904_v18 = vld [vmem:[#allocation2 + $0x1a8] sm:$0xff]  }
 0xa37   :  { %12533 = vmatprep.subr.bf16.mxu0 %v3951_v23 }
 0xa39   :  { %12518 = vmatmul.mubr.bf16.gmra.mrb[76].mxu0 %v14890_v36  ;;  %v4225_v36 = vpop.permute.xlu0 %4224 }
 0xa3a   :  { %12534 = vmatpush3.bf16.msra.mxu0 %v3951_v23  ;;  %12537 = vmatprep.mubr.bf16.mxu0 %v14891_v34  ;;  %v14905_v23 = vld [vmem:[#allocation2 + $0x1b0] sm:$0xff]   ;;  %v4227_v34 = vpop.permute.xlu1 %4226 }
 0xa3b   :  { %12535 = vmatprep.subr.bf16.mxu0 %v3953_v54 }
 0xa3e   :  { %12536 = vmatpush3.bf16.msra.mxu0 %v3953_v54  ;;  %v14906_v54 = vld [vmem:[#allocation2 + $0x1b8] sm:$0xff]  }
 0xa3f   :  { %12553 = vmatprep.subr.bf16.mxu0 %v4076_v55 }
 0xa41   :  { %12538 = vmatmul.mubr.bf16.vlgmr.msra.gmra.mrb[64].mxu0 %v14892_v1  ;;  %v14908_v1 = vld [vmem:[#allocation2 + $0x1c8] sm:$0xff]  }
 0xa42   :  { %12554 = vmatpush3.bf16.msra.mxu0 %v4076_v55  ;;  %12541 = vmatprep.mubr.bf16.mxu0 %v14893_v63  ;;  %v14907_v55 = vld [vmem:[#allocation2 + $0x1c0] sm:$0xff]   ;;  %v14910_v63 = vld [vmem:[#allocation2 + $0x1d8] sm:$0xff]  }
 0xa43   :  { %12555 = vmatprep.subr.bf16.mxu0 %v4078_v56 }
 0xa46   :  { %12556 = vmatpush3.bf16.msra.mxu0 %v4078_v56  ;;  %v14909_v56 = vld [vmem:[#allocation2 + $0x1d0] sm:$0xff]  }
 0xa47   :  { %12557 = vmatprep.subr.bf16.mxu0 %v4080_v59 }
 0xa49   :  { %12542 = vmatmul.mubr.bf16.gmra.mrb[68].mxu0 %v14894_v16  ;;  %v14913_v16 = vld [vmem:[#allocation2 + $0x1f0] sm:$0xff]  }
 0xa4a   :  { %12558 = vmatpush3.bf16.msra.mxu0 %v4080_v59  ;;  %12545 = vmatprep.mubr.bf16.mxu0 %v14895_v10  ;;  %v14911_v59 = vld [vmem:[#allocation2 + $0x1e0] sm:$0xff]   ;;  %v14920_v10 = vld [vmem:[#allocation2 + $0x228] sm:$0xff]  }
 0xa4b   :  { %12559 = vmatprep.subr.bf16.mxu0 %v4082_v5 }
 0xa4e   :  { %12560 = vmatpush3.bf16.msra.mxu0 %v4082_v5  ;;  %v14918_v5 = vld [vmem:[#allocation2 + $0x218] sm:$0xff]  }
 0xa4f   :  { %12561 = vmatprep.subr.bf16.mxu0 %v4084_v15 }
 0xa51   :  { %12546 = vmatmul.mubr.bf16.gmra.mrb[72].mxu0 %v14896_v48 }
 0xa52   :  { %12562 = vmatpush3.bf16.msra.mxu0 %v4084_v15  ;;  %12549 = vmatprep.mubr.bf16.mxu0 %v14897_v20  ;;  %v14921_v15 = vld [vmem:[#allocation2 + $0x230] sm:$0xff]  }
 0xa53   :  { %12563 = vmatprep.subr.bf16.mxu0 %v4086_v31 }
 0xa56   :  { %12564 = vmatpush3.bf16.msra.mxu0 %v4086_v31 }
 0xa57   :  { %12565 = vmatprep.subr.bf16.mxu0 %v4088_v24 }
 0xa59   :  { %12550 = vmatmul.mubr.bf16.gmra.mrb[76].mxu0 %v14898_v25 }
 0xa5a   :  { %12566 = vmatpush3.bf16.msra.mxu0 %v4088_v24  ;;  %12569 = vmatprep.mubr.bf16.mxu0 %v14899_v39 }
 0xa5b   :  { %12567 = vmatprep.subr.bf16.mxu0 %v4090_v27 }
 0xa5e   :  { %12568 = vmatpush3.bf16.msra.mxu0 %v4090_v27 }
 0xa5f   :  { %12585 = vmatprep.subr.bf16.mxu0 %v4213_v46 }
 0xa61   :  { %12570 = vmatmul.mubr.bf16.vlgmr.msra.gmra.mrb[64].mxu0 %v14900_v52 }
 0xa62   :  { %12586 = vmatpush3.bf16.msra.mxu0 %v4213_v46  ;;  %12573 = vmatprep.mubr.bf16.mxu0 %v14901_v28 }
 0xa63   :  { %12587 = vmatprep.subr.bf16.mxu0 %v4215_v6 }
 0xa66   :  { %12588 = vmatpush3.bf16.msra.mxu0 %v4215_v6 }
 0xa67   :  { %12589 = vmatprep.subr.bf16.mxu0 %v4217_v29 }
 0xa69   :  { %12574 = vmatmul.mubr.bf16.gmra.mrb[68].mxu0 %v14902_v11 }
 0xa6a   :  { %12590 = vmatpush3.bf16.msra.mxu0 %v4217_v29  ;;  %12577 = vmatprep.mubr.bf16.mxu0 %v14903_v38 }
 0xa6b   :  { %12591 = vmatprep.subr.bf16.mxu0 %v4219_v17 }
 0xa6e   :  { %12592 = vmatpush3.bf16.msra.mxu0 %v4219_v17 }
 0xa6f   :  { %12593 = vmatprep.subr.bf16.mxu0 %v4221_v41 }
 0xa71   :  { %12578 = vmatmul.mubr.bf16.gmra.mrb[72].mxu0 %v14904_v18 }
 0xa72   :  { %12594 = vmatpush3.bf16.msra.mxu0 %v4221_v41  ;;  %12581 = vmatprep.mubr.bf16.mxu0 %v14905_v23 }
 0xa73   :  { %12595 = vmatprep.subr.bf16.mxu0 %v4223_v53 }
 0xa76   :  { %12596 = vmatpush3.bf16.msra.mxu0 %v4223_v53 }
 0xa77   :  { %12597 = vmatprep.subr.bf16.mxu0 %v4225_v36 }
 0xa79   :  { %12582 = vmatmul.mubr.bf16.gmra.mrb[76].mxu0 %v14906_v54 }
 0xa7a   :  { %12598 = vmatpush3.bf16.msra.mxu0 %v4225_v36  ;;  %12601 = vmatprep.mubr.bf16.mxu0 %v14907_v55 }
 0xa7b   :  { %12599 = vmatprep.subr.bf16.mxu0 %v4227_v34 }
 0xa7e   :  { %12600 = vmatpush3.bf16.msra.mxu0 %v4227_v34 }
 0xa7f   :  { %12617 = vmatprep.subr.bf16.mxu0 %v16716_v19 }
 0xa81   :  { %12602 = vmatmul.mubr.bf16.vlgmr.msra.gmra.mrb[64].mxu0 %v14908_v1 }
 0xa82   :  { %12618 = vmatpush3.bf16.msra.mxu0 %v16716_v19  ;;  %12605 = vmatprep.mubr.bf16.mxu0 %v14909_v56  ;;  %v14912_v19 = vld [vmem:[#allocation2 + $0x1e8] sm:$0xff]  }
 0xa83   :  { %12619 = vmatprep.subr.bf16.mxu0 %v16722_v30 }
 0xa86   :  { %12620 = vmatpush3.bf16.msra.mxu0 %v16722_v30  ;;  %v14914_v30 = vld [vmem:[#allocation2 + $0x1f8] sm:$0xff]  }
 0xa87   :  { %12621 = vmatprep.subr.bf16.mxu0 %v16728_v44 }
 0xa89   :  { %12606 = vmatmul.mubr.bf16.gmra.mrb[68].mxu0 %v14910_v63 }
 0xa8a   :  { %12622 = vmatpush3.bf16.msra.mxu0 %v16728_v44  ;;  %12609 = vmatprep.mubr.bf16.mxu0 %v14911_v59  ;;  %v14915_v44 = vld [vmem:[#allocation2 + $0x200] sm:$0xff]  }
 0xa8b   :  { %12623 = vmatprep.subr.bf16.mxu0 %v16734_v3 }
 0xa8e   :  { %12624 = vmatpush3.bf16.msra.mxu0 %v16734_v3  ;;  %v14916_v3 = vld [vmem:[#allocation2 + $0x208] sm:$0xff]  }
 0xa8f   :  { %12625 = vmatprep.subr.bf16.mxu0 %v16740_v45 }
 0xa91   :  { %12610 = vmatmul.mubr.bf16.gmra.mrb[72].mxu0 %v14912_v19 }
 0xa92   :  { %12626 = vmatpush3.bf16.msra.mxu0 %v16740_v45  ;;  %12613 = vmatprep.mubr.bf16.mxu0 %v14913_v16  ;;  %v14917_v45 = vld [vmem:[#allocation2 + $0x210] sm:$0xff]  }
 0xa93   :  { %12627 = vmatprep.subr.bf16.mxu0 %v16746_v58 }
 0xa96   :  { %12628 = vmatpush3.bf16.msra.mxu0 %v16746_v58  ;;  %v14919_v58 = vld [vmem:[#allocation2 + $0x220] sm:$0xff]  }
 0xa97   :  { %12629 = vmatprep.subr.bf16.mxu0 %v16752_v9 }
 0xa99   :  { %12614 = vmatmul.mubr.bf16.gmra.mrb[76].mxu0 %v14914_v30 }
 0xa9a   :  { %12630 = vmatpush3.bf16.msra.mxu0 %v16752_v9  ;;  %12633 = vmatprep.mubr.bf16.mxu0 %v14915_v44  ;;  %v14922_v9 = vld [vmem:[#allocation2 + $0x238] sm:$0xff]  }
 0xa9b   :  { %12631 = vmatprep.subr.bf16.mxu0 %v16760_v35 }
 0xa9e   :  { %12632 = vmatpush3.bf16.msra.mxu0 %v16760_v35  ;;  %v16892_v35 = vld [vmem:[%s18418_s2] ss:$0 sm:$0xff] }
 0xaa1   :  { %12634 = vmatmul.mubr.bf16.vlgmr.msra.gmra.mrb[64].mxu0 %v14916_v3 }
 0xaa2   :  { %12637 = vmatprep.mubr.bf16.mxu0 %v14917_v45 }
 0xaa9   :  { %12638 = vmatmul.mubr.bf16.gmra.mrb[68].mxu0 %v14918_v5 }
 0xaaa   :  { %12641 = vmatprep.mubr.bf16.mxu0 %v14919_v58 }
 0xab1   :  { %12642 = vmatmul.mubr.bf16.gmra.mrb[72].mxu0 %v14920_v10 }
 0xab2   :  { %12645 = vmatprep.mubr.bf16.mxu0 %v14921_v15 }
 0xab9   :  { %12646 = vmatmul.mubr.bf16.gmra.mrb[76].mxu0 %v14922_v9 }
 0xaba   :  { %6656 = vmatprep.mubr.bf16.mxu0 %v18341_v0 }
 0xb74   :  { %v12635_v48 = vpop.f32.mrb[64].mxu0 }
 0xb75   :  { %v4391_v31 = vpop.f32.mrb[65].mxu0  ;;  %v16898_v27 = vadd.f32 %v16892_v35, %v12635_v48 }
 0xb76   :  { %v16895_v20 = vadd.f32 %v16892_v35, %v4391_v31  ;;  %v12636_v24 = vpop.f32.mrb[66].mxu0 }
 0xb77   :  { %v4394_v25 = vpop.f32.mrb[67].mxu0  ;;  %v16906_v6 = vadd.f32 %v16892_v35, %v12636_v24 }
 0xb78   :  { %14697 = vtanh.f32 %v16895_v20  ;;  %v16902_v39 = vadd.f32 %v16892_v35, %v4394_v25 }
 0xb79   :  { %14699 = vtanh.f32 %v16898_v27 }
 0xb7a   :  { %14701 = vtanh.f32 %v16902_v39 }
 0xb7c   :  { %v12639_v46 = vpop.f32.mrb[68].mxu0 }
 0xb7d   :  { %v4407_v52 = vpop.f32.mrb[69].mxu0  ;;  %v16913_v17 = vadd.f32 %v16892_v35, %v12639_v46 }
 0xb7e   :  { %v16910_v28 = vadd.f32 %v16892_v35, %v4407_v52  ;;  %v12640_v29 = vpop.f32.mrb[70].mxu0 }
 0xb7f   :  { %v4410_v11 = vpop.f32.mrb[71].mxu0  ;;  %v16924_v55 = vadd.f32 %v16892_v35, %v12640_v29 }
 0xb80   :  { %14703 = vtanh.f32 %v16910_v28  ;;  %v16920_v18 = vadd.f32 %v16892_v35, %v4410_v11 }
 0xb81   :  { %14705 = vtanh.f32 %v16906_v6 }
 0xb82   :  { %v14698_v38 = vpop.eup %14697  ;;  %14707 = vtanh.f32 %v16913_v17 }
 0xb83   :  { %4630 = vrot.lane.b32.xlu0 %v14698_v38, %s15769_s5  ;;  %v14700_v23 = vpop.eup %14699  ;;  %14709 = vtanh.f32 %v16920_v18 }
 0xb84   :  { %v12643_v41 = vpop.f32.mrb[72].mxu0  ;;  %v14702_v34 = vpop.eup %14701  ;;  %14711 = vtanh.f32 %v16924_v55 }
 0xb85   :  { %v4423_v53 = vpop.f32.mrb[73].mxu0  ;;  %4632 = vrot.lane.b32.xlu1 %v14702_v34, %s15769_s5  ;;  %v16936_v3 = vadd.f32 %v16892_v35, %v12643_v41  ;;  %v11064_v41 = vmul.f32 -1.442695, %v16895_v20  ;;  %v11070_v34 = vmul.f32 -1.442695, %v16913_v17 }
 0xb86   :  { %v12644_v36 = vpop.f32.mrb[74].mxu0  ;;  %v16931_v59 = vadd.f32 %v16892_v35, %v4423_v53  ;;  %v11066_v53 = vmul.f32 -1.442695, %v16898_v27 }
 0xb87   :  { %4634 = vrot.lane.b32.xlu0 %v14700_v23, %s15769_s5  ;;  %v4426_v54 = vpop.f32.mrb[75].mxu0  ;;  %v16945_v58 = vadd.f32 %v16892_v35, %v12644_v36  ;;  %v11065_v23 = vmul.f32 -1.442695, %v16902_v39  ;;  %v11068_v36 = vmul.f32 -1.442695, %v16910_v28 }
 0xb88   :  { %14713 = vtanh.f32 %v16931_v59  ;;  %v16940_v45 = vadd.f32 %v16892_v35, %v4426_v54  ;;  %v11067_v54 = vmul.f32 -1.442695, %v16906_v6  ;;  %v11072_v17 = vmul.f32 -1.442695, %v16931_v59 }
 0xb89   :  { %14715 = vtanh.f32 %v16936_v3 }
 0xb8a   :  { %v14704_v1 = vpop.eup %14703  ;;  %14717 = vtanh.f32 %v16940_v45 }
 0xb8b   :  { %4638 = vrot.lane.b32.xlu0 %v14704_v1, %s15769_s5  ;;  %v14706_v56 = vpop.eup %14705  ;;  %14719 = vtanh.f32 %v16945_v58 }
 0xb8c   :  { %v12647_v63 = vpop.f32.mrb[76].mxu0  ;;  %4636 = vrot.lane.b32.xlu1 %v14706_v56, %s15769_s5  ;;  %v14708_v16 = vpop.eup %14707  ;;  %v11069_v56 = vmul.f32 -1.442695, %v16920_v18  ;;  %v11074_v18 = vmul.f32 -1.442695, %v16936_v3 }
 0xb8d   :  { %v4439_v19 = vpop.f32.mrb[77].mxu0  ;;  %v14710_v5 = vpop.eup %14709  ;;  %v16954_v48 = vadd.f32 %v16892_v35, %v12647_v63 }
 0xb8e   :  { %v12648_v30 = vpop.f32.mrb[78].mxu0  ;;  %v14712_v10 = vpop.eup %14711  ;;  %v16949_v15 = vadd.f32 %v16892_v35, %v4439_v19  ;;  %v11071_v19 = vmul.f32 -1.442695, %v16924_v55 }
 0xb8f   :  { %4642 = vrot.lane.b32.xlu0 %v14708_v16, %s15769_s5  ;;  %v4442_v44 = vpop.f32.mrb[79].mxu0  ;;  %v16964_v46 = vadd.f32 %v16892_v35, %v12648_v30 }
 0xb90   :  { %4640 = vrot.lane.b32.xlu1 %v14710_v5, %s15769_s5  ;;  %14721 = vtanh.f32 %v16949_v15  ;;  %v16959_v31 = vadd.f32 %v16892_v35, %v4442_v44 }
 0xb91   :  { %14723 = vtanh.f32 %v16954_v48 }
 0xb92   :  { %v14714_v9 = vpop.eup %14713  ;;  %14725 = vtanh.f32 %v16959_v31 }
 0xb93   :  { %4646 = vrot.lane.b32.xlu0 %v14714_v9, %s15769_s5  ;;  %v14716_v24 = vpop.eup %14715  ;;  %14727 = vtanh.f32 %v16964_v46  ;;  %v11073_v9 = vmul.f32 -1.442695, %v16940_v45  ;;  %v11076_v45 = vmul.f32 -1.442695, %v16949_v15 }
 0xb94   :  { %4644 = vrot.lane.b32.xlu1 %v14712_v10, %s15769_s5  ;;  %v14718_v25 = vpop.eup %14717  ;;  %14729 = vpow2.f32 %v11064_v41 }
 0xb95   :  { %v14720_v52 = vpop.eup %14719  ;;  %14731 = vpow2.f32 %v11066_v53 }
 0xb96   :  { %14733 = vpow2.f32 %v11065_v23 }
 0xb97   :  { %4650 = vrot.lane.b32.xlu0 %v14716_v24, %s15769_s5  ;;  %14735 = vpow2.f32 %v11068_v36 }
 0xb98   :  { %4648 = vrot.lane.b32.xlu1 %v14718_v25, %s15769_s5  ;;  %14737 = vpow2.f32 %v11067_v54 }
 0xb99   :  { %14739 = vpow2.f32 %v11070_v34 }
 0xb9a   :  { %v14722_v29 = vpop.eup %14721  ;;  %14741 = vpow2.f32 %v11069_v56 }
 0xb9b   :  { %4654 = vrot.lane.b32.xlu0 %v14722_v29, %s15769_s5  ;;  %v14724_v11 = vpop.eup %14723 }
 0xb9c   :  { %4652 = vrot.lane.b32.xlu1 %v14720_v52, %s15769_s5  ;;  %v14726_v38 = vpop.eup %14725 }
 0xb9d   :  { %v14728_v35 = vpop.eup %14727 }
 0xb9e   :  { %v14730_v1 = vpop.eup %14729 }
 0xb9f   :  { %4658 = vrot.lane.b32.xlu0 %v14724_v11, %s15769_s5  ;;  %v4534_v20 = vadd.f32 1.0, %v14730_v1  ;;  %v14732_v63 = vpop.eup %14731  ;;  %v11075_v11 = vmul.f32 -1.442695, %v16945_v58  ;;  %v11078_v1 = vmul.f32 -1.442695, %v16954_v48 }
 0xba0   :  { %4656 = vrot.lane.b32.xlu1 %v14726_v38, %s15769_s5  ;;  %v14734_v27 = vpop.eup %14733  ;;  %v4536_v39 = vadd.f32 1.0, %v14732_v63 }
 0xba1   :  { %14743 = vrcp.f32 %v4534_v20  ;;  %v14736_v28 = vpop.eup %14735  ;;  %v4535_v16 = vadd.f32 1.0, %v14734_v27  ;;  %v11077_v20 = vmul.f32 -1.442695, %v16959_v31 }
 0xba2   :  { %v14738_v6 = vpop.eup %14737  ;;  %14745 = vpow2.f32 %v11071_v19  ;;  %v4538_v30 = vadd.f32 1.0, %v14736_v28 }
 0xba3   :  { %14747 = vrcp.f32 %v4536_v39  ;;  %v14740_v44 = vpop.eup %14739  ;;  %v4537_v5 = vadd.f32 1.0, %v14738_v6 }
 0xba4   :  { %4660 = vrot.lane.b32.xlu1 %v14728_v35, %s15769_s5  ;;  %14749 = vrcp.f32 %v4535_v16  ;;  %v4540_v10 = vadd.f32 1.0, %v14740_v44  ;;  %v14742_v55 = vpop.eup %14741 }
 0xba5   :  { %14751 = vpow2.f32 %v11072_v17  ;;  %v4539_v52 = vadd.f32 1.0, %v14742_v55  ;;  %v11079_v17 = vmul.f32 -1.442695, %v16964_v46 }
 0xba6   :  { %14753 = vrcp.f32 %v4538_v30 }
 0xba7   :  { %14755 = vrcp.f32 %v4537_v5 }
 0xba8   :  { %14757 = vpow2.f32 %v11074_v18 }
 0xba9   :  { %14759 = vrcp.f32 %v4540_v10 }
 0xbaa   :  { %14761 = vpow2.f32 %v11073_v9 }
 0xbab   :  { %v16985_v24 = vpop.eup %14743  ;;  %14763 = vrcp.f32 %v4539_v52 }
 0xbac   :  { %v14746_v29 = vpop.eup %14745  ;;  %14765 = vpow2.f32 %v11075_v11 }
 0xbad   :  { %v16990_v3 = vpop.eup %14747  ;;  %v4541_v36 = vadd.f32 1.0, %v14746_v29  ;;  %14767 = vpow2.f32 %v11076_v45 }
 0xbae   :  { %v16994_v41 = vpop.eup %14749 }
 0xbaf   :  { %v14752_v23 = vpop.eup %14751  ;;  %14769 = vrcp.f32 %v4541_v36 }
 0xbb0   :  { %v16998_v58 = vpop.eup %14753  ;;  %v4542_v19 = vadd.f32 1.0, %v14752_v23  ;;  %14771 = vpow2.f32 %v11078_v1 }
 0xbb1   :  { %v17003_v56 = vpop.eup %14755  ;;  %14773 = vpow2.f32 %v11077_v20 }
 0xbb2   :  { %v14758_v27 = vpop.eup %14757  ;;  %14775 = vrcp.f32 %v4542_v19 }
 0xbb3   :  { %v17008_v28 = vpop.eup %14759  ;;  %v4544_v31 = vadd.f32 1.0, %v14758_v27  ;;  %14777 = vpow2.f32 %v11079_v17 }
 0xbb4   :  { %v14762_v16 = vpop.eup %14761 }
 0xbb5   :  { %v17014_v30 = vpop.eup %14763  ;;  %v4543_v44 = vadd.f32 1.0, %v14762_v16  ;;  %14779 = vrcp.f32 %v4544_v31 }
 0xbb6   :  { %v14766_v5 = vpop.eup %14765 }
 0xbb7   :  { %v14768_v55 = vpop.eup %14767  ;;  %v4545_v9 = vadd.f32 1.0, %v14766_v5  ;;  %14781 = vrcp.f32 %v4543_v44 }
 0xbb9   :  { %v17018_v46 = vpop.eup %14769  ;;  %14783 = vrcp.f32 %v4545_v9 }
 0xbba   :  { %v14772_v29 = vpop.eup %14771 }
 0xbbb   :  { %v14774_v11 = vpop.eup %14773 }
 0xbbc   :  { %v4547_v23 = vadd.f32 1.0, %v14774_v11 }
 0xbf5   :  { %v4631_v25 = vpop.permute.xlu0 %4630 }
 0xbf6   :  { %v4678_v59 = vmul.f32 %v16985_v24, %v4631_v25 }
 0xbf7   :  { %v4633_v53 = vpop.permute.xlu1 %4632 }
 0xbf8   :  { %4710 = vrot.lane.b32.xlu0 %v4678_v59, %s15741_s20  ;;  %v4679_v54 = vmul.f32 %v16994_v41, %v4633_v53  ;;  %v4546_v59 = vadd.f32 1.0, %v14768_v55 }
 0xbf9   :  { %v4635_v38 = vpop.permute.xlu0 %4634 }
 0xbfa   :  { %v4680_v35 = vmul.f32 %v16990_v3, %v4635_v38  ;;  %4712 = vrot.lane.b32.xlu1 %v4679_v54, %s15741_s20  ;;  %v17022_v38 = vpop.eup %14775  ;;  %14785 = vrcp.f32 %v4546_v59 }
 0xbfb   :  { %v14778_v36 = vpop.eup %14777 }
 0xbfc   :  { %4714 = vrot.lane.b32.xlu0 %v4680_v35, %s15741_s20  ;;  %v4548_v35 = vadd.f32 1.0, %v14772_v29  ;;  %v17026_v54 = vpop.eup %14779 }
 0xbfd   :  { %v4639_v34 = vpop.permute.xlu0 %4638  ;;  %v17028_v1 = vpop.eup %14781 }
 0xbfe   :  { %v4682_v15 = vmul.f32 %v16998_v58, %v4639_v34  ;;  %v4637_v63 = vpop.permute.xlu1 %4636  ;;  %14787 = vrcp.f32 %v4548_v35  ;;  %v17034_v19 = vpop.eup %14783 }
 0xbff   :  { %v4681_v39 = vmul.f32 %v17003_v56, %v4637_v63  ;;  %v4549_v63 = vadd.f32 1.0, %v14778_v36  ;;  %14789 = vrcp.f32 %v4547_v23 }
 0xc00   :  { %4718 = vrot.lane.b32.xlu0 %v4682_v15, %s15741_s20 }
 0xc01   :  { %v4643_v48 = vpop.permute.xlu0 %4642  ;;  %4716 = vrot.lane.b32.xlu1 %v4681_v39, %s15741_s20  ;;  %14791 = vrcp.f32 %v4549_v63 }
 0xc02   :  { %v4684_v6 = vmul.f32 %v17008_v28, %v4643_v48  ;;  %v4641_v18 = vpop.permute.xlu1 %4640 }
 0xc03   :  { %v4683_v10 = vmul.f32 %v17014_v30, %v4641_v18 }
 0xc04   :  { %4722 = vrot.lane.b32.xlu0 %v4684_v6, %s15741_s20  ;;  %v17037_v16 = vpop.eup %14785 }
 0xc05   :  { %4720 = vrot.lane.b32.xlu1 %v4683_v10, %s15741_s20  ;;  %v4647_v45 = vpop.permute.xlu0 %4646 }
 0xc06   :  { %v4645_v25 = vpop.permute.xlu1 %4644  ;;  %v4686_v53 = vmul.f32 %v17022_v38, %v4647_v45  ;;  %v4600_v45 = vmul.f32 %v16990_v3, %v16542_v4  ;;  %v4604_v4 = vmul.f32 %v17008_v28, %v16557_v22  ;;  %v4605_v22 = vmul.f32 %v17018_v46, %v16568_v60 }
 0xc07   :  { %v4685_v52 = vmul.f32 %v17018_v46, %v4645_v25  ;;  %v4608_v60 = vmul.f32 %v17026_v54, %v16580_v40  ;;  %v4610_v40 = vmul.f32 %v17037_v16, %v16593_v57 }
 0xc08   :  { %4726 = vrot.lane.b32.xlu0 %v4686_v53, %s15741_s20  ;;  %v17042_v31 = vpop.eup %14787  ;;  %v4599_v53 = vmul.f32 %v16994_v41, %v16544_v7 }
 0xc09   :  { %4724 = vrot.lane.b32.xlu1 %v4685_v52, %s15741_s20  ;;  %v4651_v34 = vpop.permute.xlu0 %4650  ;;  %v17044_v5 = vpop.eup %14789  ;;  %v4598_v52 = vmul.f32 %v16985_v24, %v16537_v61  ;;  %v4601_v61 = vmul.f32 %v17003_v56, %v16552_v14 }
 0xc0a   :  { %v4649_v15 = vpop.permute.xlu1 %4648  ;;  %v4688_v20 = vmul.f32 %v17026_v54, %v4651_v34 }
 0xc0b   :  { %v4687_v27 = vmul.f32 %v17028_v1, %v4649_v15  ;;  %v17050_v9 = vpop.eup %14791  ;;  %v4602_v15 = vmul.f32 %v16998_v58, %v16550_v13  ;;  %v4603_v13 = vmul.f32 %v17014_v30, %v16562_v26  ;;  %v4606_v26 = vmul.f32 %v17022_v38, %v16574_v32 }
 0xc0c   :  { %4730 = vrot.lane.b32.xlu0 %v4688_v20, %s15741_s20  ;;  %v4609_v32 = vmul.f32 %v17034_v19, %v16588_v51  ;;  %v4611_v51 = vmul.f32 %v17044_v5, %v16601_v12 }
 0xc0d   :  { %4728 = vrot.lane.b32.xlu1 %v4687_v27, %s15741_s20  ;;  %v4655_v6 = vpop.permute.xlu0 %4654 }
 0xc0e   :  { %v4653_v39 = vpop.permute.xlu1 %4652  ;;  %v4690_v17 = vmul.f32 %v17037_v16, %v4655_v6 }
 0xc0f   :  { %v4689_v48 = vmul.f32 %v17034_v19, %v4653_v39 }
 0xc10   :  { %4734 = vrot.lane.b32.xlu0 %v4690_v17, %s15741_s20 }
 0xc11   :  { %4732 = vrot.lane.b32.xlu1 %v4689_v48, %s15741_s20  ;;  %v4659_v44 = vpop.permute.xlu0 %4658 }
 0xc12   :  { %v4657_v18 = vpop.permute.xlu1 %4656  ;;  %v4692_v10 = vmul.f32 %v17042_v31, %v4659_v44 }
 0xc13   :  { %v4691_v55 = vmul.f32 %v17044_v5, %v4657_v18 }
 0xc14   :  { %4738 = vrot.lane.b32.xlu0 %v4692_v10, %s15741_s20 }
 0xc15   :  { %4736 = vrot.lane.b32.xlu1 %v4691_v55, %s15741_s20 }
 0xc16   :  { %v4661_v25 = vpop.permute.xlu1 %4660 }
 0xc17   :  { %v4693_v59 = vmul.f32 %v17050_v9, %v4661_v25 }
 0xc19   :  { %4740 = vrot.lane.b32.xlu1 %v4693_v59, %s15741_s20 }
 0xc6a   :  { %v4711_v29 = vpop.permute.xlu0 %4710 }
 0xc6b   :  { %v4758_v11 = vadd.f32 %v4711_v29, %v4598_v52 }
 0xc6c   :  { %v4713_v36 = vpop.permute.xlu1 %4712 }
 0xc6d   :  { %14793 = vtanh.f32 %v4758_v11  ;;  %v4759_v34 = vadd.f32 %v4713_v36, %v4599_v53 }
 0xc6e   :  { %v4715_v35 = vpop.permute.xlu0 %4714 }
 0xc6f   :  { %v4760_v23 = vadd.f32 %v4715_v35, %v4600_v45  ;;  %v4607_v45 = vmul.f32 %v17028_v1, %v16582_v43 }
 0xc71   :  { %14795 = vtanh.f32 %v4760_v23 }
 0xc72   :  { %v4719_v20 = vpop.permute.xlu0 %4718  ;;  %14797 = vtanh.f32 %v4759_v34 }
 0xc73   :  { %v4762_v63 = vadd.f32 %v4719_v20, %v4602_v15  ;;  %v4717_v27 = vpop.permute.xlu1 %4716 }
 0xc74   :  { %v4761_v39 = vadd.f32 %v4717_v27, %v4601_v61 }
 0xc75   :  { %14799 = vtanh.f32 %v4762_v63 }
 0xc76   :  { %v4723_v7 = vpop.permute.xlu0 %4722  ;;  %14801 = vtanh.f32 %v4761_v39  ;;  %v4612_v39 = vmul.f32 %v17042_v31, %v16599_v8 }
 0xc77   :  { %v14794_v48 = vpop.eup %14793  ;;  %v4764_v6 = vadd.f32 %v4723_v7, %v4604_v4  ;;  %v4721_v44 = vpop.permute.xlu1 %4720 }
 0xc78   :  { %4806 = vrot.lane.b32.xlu0 %v14794_v48, %s15741_s20  ;;  %v4763_v14 = vadd.f32 %v4721_v44, %v4603_v13 }
 0xc79   :  { %14803 = vtanh.f32 %v4764_v6 }
 0xc7a   :  { %14805 = vtanh.f32 %v4763_v14  ;;  %v4727_v29 = vpop.permute.xlu0 %4726 }
 0xc7b   :  { %v14796_v17 = vpop.eup %14795  ;;  %v4725_v55 = vpop.permute.xlu1 %4724  ;;  %v4766_v11 = vadd.f32 %v4727_v29, %v4606_v26 }
 0xc7c   :  { %4810 = vrot.lane.b32.xlu0 %v14796_v17, %s15741_s20  ;;  %v14798_v18 = vpop.eup %14797  ;;  %v4765_v25 = vadd.f32 %v4725_v55, %v4605_v22  ;;  %v4613_v17 = vmul.f32 %v17050_v9, %v16608_v21  ;;  %v4870_v22 = vld [vmem:[#allocation8] sm:$0x3] }
 0xc7d   :  { %4808 = vrot.lane.b32.xlu1 %v14798_v18, %s15741_s20  ;;  %v4879_v18 = vld [vmem:[#allocation10] sm:$0x3]  ;;  %v5029_v21 = vsel %vm522_vm0, %v4870_v22, 0 }
 0xc7e   :  { %14807 = vtanh.f32 %v4765_v25  ;;  %v4731_v35 = vpop.permute.xlu0 %4730  ;;  %14341 = vmatprep.subr.msk.bf16.mxu1 %vm522_vm0, %v4879_v18 }
 0xc7f   :  { %v14800_v10 = vpop.eup %14799  ;;  %14809 = vtanh.f32 %v4766_v11  ;;  %v4729_v23 = vpop.permute.xlu1 %4728  ;;  %v4768_v36 = vadd.f32 %v4731_v35, %v4608_v60  ;;  %v11096_v35 = vld.sshfl [vmem:[#allocation13] sm:$0x33 pattern:$0x76325410] }
 0xc80   :  { %4814 = vrot.lane.b32.xlu0 %v14800_v10, %s15741_s20  ;;  %v14802_v59 = vpop.eup %14801  ;;  %v4767_v34 = vadd.f32 %v4729_v23, %v4607_v45  ;;  %v4881_v10 = vsel %vm522_vm0, %v4879_v18, 0  ;;  %v5138_v23 = vcombine.high %v11096_v35, %v11096_v35 }
 0xc81   :  { %4812 = vrot.lane.b32.xlu1 %v14802_v59, %s15741_s20  ;;  %14811 = vtanh.f32 %v4768_v36  ;;  %12650 = vmatpush3.bf16.msra.mxu1 %v4881_v10 }
 0xc82   :  { %14813 = vtanh.f32 %v4767_v34  ;;  %v4735_v43 = vpop.permute.xlu0 %4734  ;;  %14342 = vmatprep.subr.msk.bf16.mxu1 %vm522_vm0, %v4870_v22 }
 0xc83   :  { %v14804_v52 = vpop.eup %14803  ;;  %v4733_v20 = vpop.permute.xlu1 %4732  ;;  %v4770_v63 = vadd.f32 %v4735_v43, %v4610_v40 }
 0xc84   :  { %4818 = vrot.lane.b32.xlu0 %v14804_v52, %s15741_s20  ;;  %v14806_v53 = vpop.eup %14805  ;;  %v4769_v61 = vadd.f32 %v4733_v20, %v4609_v32  ;;  %12652 = vmatmul.mubr.msk.bf16.vlgmr.msra.gmra.mrb[16].mxu1 %vm518_vm1, %v16668_v33 }
 0xc85   :  { %4816 = vrot.lane.b32.xlu1 %v14806_v53, %s15741_s20  ;;  %12668 = vmatpush3.bf16.msra.mxu1 %v5029_v21 }
 0xc86   :  { %14815 = vtanh.f32 %v4769_v61  ;;  %v4739_v4 = vpop.permute.xlu0 %4738  ;;  %12655 = vmatprep.mubr.msk.bf16.mxu1 %vm518_vm1, %v16675_v37  ;;  %11097 = vmatprep.subr.msk.bf16.mxu1 %vm522_vm0, %v5138_v23 }
 0xc87   :  { %14817 = vtanh.f32 %v4770_v63  ;;  %v4737_v7 = vpop.permute.xlu1 %4736  ;;  %v4772_v48 = vadd.f32 %v4739_v4, %v4612_v39 }
 0xc88   :  { %v14808_v15 = vpop.eup %14807  ;;  %v4771_v57 = vadd.f32 %v4737_v7, %v4611_v51 }
 0xc89   :  { %4820 = vrot.lane.b32.xlu1 %v14808_v15, %s15741_s20  ;;  %v14810_v27 = vpop.eup %14809  ;;  %14819 = vtanh.f32 %v4772_v48 }
 0xc8a   :  { %4822 = vrot.lane.b32.xlu0 %v14810_v27, %s15741_s20  ;;  %14821 = vtanh.f32 %v4771_v57 }
 0xc8b   :  { %v14812_v6 = vpop.eup %14811  ;;  %v4741_v8 = vpop.permute.xlu1 %4740 }
 0xc8c   :  { %v14814_v13 = vpop.eup %14813  ;;  %v4773_v44 = vadd.f32 %v4741_v8, %v4613_v17  ;;  %12656 = vmatmul.mubr.msk.bf16.gmra.mrb[20].mxu1 %vm518_vm1, %v16682_v47 }
 0xc8d   :  { %4824 = vrot.lane.b32.xlu1 %v14814_v13, %s15741_s20  ;;  %12659 = vmatprep.mubr.msk.bf16.mxu1 %vm518_vm1, %v16689_v50 }
 0xc8e   :  { %4826 = vrot.lane.b32.xlu0 %v14812_v6, %s15741_s20  ;;  %14823 = vtanh.f32 %v4773_v44 }
 0xc90   :  { %v14816_v14 = vpop.eup %14815 }
 0xc91   :  { %4828 = vrot.lane.b32.xlu1 %v14816_v14, %s15741_s20  ;;  %v14818_v12 = vpop.eup %14817 }
 0xc92   :  { %4830 = vrot.lane.b32.xlu0 %v14818_v12, %s15741_s20  ;;  %v11106_v12 = vld.sshfl [vmem:[#allocation11] sm:$0x33 pattern:$0x76325410] }
 0xc93   :  { %v14820_v55 = vpop.eup %14819  ;;  %v5266_v18 = vcombine.high %v11106_v12, %v11106_v12 }
 0xc94   :  { %v14822_v25 = vpop.eup %14821  ;;  %12660 = vmatmul.mubr.msk.bf16.gmra.mrb[24].mxu1 %vm518_vm1, %v16696_v49 }
 0xc95   :  { %4832 = vrot.lane.b32.xlu1 %v14822_v25, %s15741_s20  ;;  %12663 = vmatprep.mubr.msk.bf16.mxu1 %vm518_vm1, %v16703_v62  ;;  %v5268_v25 = vsel %vm522_vm0, %v11106_v12, 0 }
 0xc96   :  { %4834 = vrot.lane.b32.xlu0 %v14820_v55, %s15741_s20 }
 0xc98   :  { %v14824_v59 = vpop.eup %14823 }
 0xc99   :  { %4836 = vrot.lane.b32.xlu1 %v14824_v59, %s15741_s20  ;;  %s18419_s20 = sld [smem:[#allocation76_spill]] }
 0xc9c   :  { %12664 = vmatmul.mubr.msk.bf16.gmra.mrb[28].mxu1 %vm518_vm1, %v16710_v2 }
 0xcea   :  { %v4807_v26 = vpop.permute.xlu0 %4806 }
 0xceb   :  { %v4854_v29 = vmul.f32 %v16985_v24, %v4807_v26 }
 0xcee   :  { %v4811_v60 = vpop.permute.xlu0 %4810 }
 0xcef   :  { %v4809_v52 = vpop.permute.xlu1 %4808  ;;  %v4856_v36 = vmul.f32 %v16990_v3, %v4811_v60 }
 0xcf0   :  { %v4855_v11 = vmul.f32 %v16994_v41, %v4809_v52 }
 0xcf2   :  { %v4871_v45 = vpack.c.bf16 %v4855_v11, %v4854_v29  ;;  %v4815_v15 = vpop.permute.xlu0 %4814 }
 0xcf3   :  { %v4813_v53 = vpop.permute.xlu1 %4812  ;;  %v4858_v41 = vmul.f32 %v16998_v58, %v4815_v15 }
 0xcf4   :  { %v4857_v34 = vmul.f32 %v17003_v56, %v4813_v53  ;;  %4988 = vrot.lane.b32.xlu0 %v4871_v45, %s15770_s4 }
 0xcf6   :  { %v4872_v32 = vpack.c.bf16 %v4857_v34, %v4856_v36  ;;  %v4819_v61 = vpop.permute.xlu0 %4818 }
 0xcf7   :  { %v4817_v24 = vpop.permute.xlu1 %4816  ;;  %v4860_v3 = vmul.f32 %v17008_v28, %v4819_v61 }
 0xcf8   :  { %4990 = vrot.lane.b32.xlu1 %v4872_v32, %s15770_s4  ;;  %v4859_v20 = vmul.f32 %v17014_v30, %v4817_v24 }
 0xcfa   :  { %v4873_v40 = vpack.c.bf16 %v4859_v20, %v4858_v41 }
 0xcfb   :  { %v4821_v43 = vpop.permute.xlu1 %4820 }
 0xcfc   :  { %v4861_v56 = vmul.f32 %v17018_v46, %v4821_v43  ;;  %4992 = vrot.lane.b32.xlu0 %v4873_v40, %s15770_s4  ;;  %v4823_v27 = vpop.permute.xlu0 %4822 }
 0xcfd   :  { %v4862_v51 = vmul.f32 %v17022_v38, %v4823_v27 }
 0xcfe   :  { %v4874_v63 = vpack.c.bf16 %v4861_v56, %v4860_v3 }
 0xcff   :  { %v4825_v39 = vpop.permute.xlu1 %4824 }
 0xd00   :  { %4994 = vrot.lane.b32.xlu1 %v4874_v63, %s15770_s4  ;;  %v4863_v58 = vmul.f32 %v17028_v1, %v4825_v39  ;;  %v4827_v4 = vpop.permute.xlu0 %4826 }
 0xd01   :  { %v4864_v48 = vmul.f32 %v17026_v54, %v4827_v4 }
 0xd02   :  { %v4875_v30 = vpack.c.bf16 %v4863_v58, %v4862_v51 }
 0xd03   :  { %v4829_v7 = vpop.permute.xlu1 %4828 }
 0xd04   :  { %v4865_v28 = vmul.f32 %v17034_v19, %v4829_v7  ;;  %4996 = vrot.lane.b32.xlu0 %v4875_v30, %s15770_s4  ;;  %v4831_v6 = vpop.permute.xlu0 %4830 }
 0xd05   :  { %v4866_v13 = vmul.f32 %v17037_v16, %v4831_v6  ;;  %v5140_v16 = vsel %vm522_vm0, %v11096_v35, 0 }
 0xd06   :  { %v4876_v46 = vpack.c.bf16 %v4865_v28, %v4864_v48 }
 0xd07   :  { %v4833_v57 = vpop.permute.xlu1 %4832 }
 0xd08   :  { %4998 = vrot.lane.b32.xlu1 %v4876_v46, %s15770_s4  ;;  %v4867_v38 = vmul.f32 %v17044_v5, %v4833_v57  ;;  %v4835_v17 = vpop.permute.xlu0 %4834 }
 0xd09   :  { %v4868_v44 = vmul.f32 %v17042_v31, %v4835_v17 }
 0xd0a   :  { %v4877_v1 = vpack.c.bf16 %v4867_v38, %v4866_v13 }
 0xd0b   :  { %v4837_v8 = vpop.permute.xlu1 %4836 }
 0xd0c   :  { %v4869_v54 = vmul.f32 %v17050_v9, %v4837_v8  ;;  %5000 = vrot.lane.b32.xlu0 %v4877_v1, %s15770_s4 }
 0xd0e   :  { %v4878_v19 = vpack.c.bf16 %v4869_v54, %v4868_v44 }
 0xd10   :  { %5002 = vrot.lane.b32.xlu1 %v4878_v19, %s15770_s4 }
 0xd66   :  { %v4989_v14 = vpop.permute.xlu0 %4988 }
 0xd67   :  { %12669 = vmatprep.mubr.msk.bf16.mxu1 %vm518_vm1, %v4989_v14 }
 0xd6a   :  { %v4991_v5 = vpop.permute.xlu1 %4990 }
 0xd6b   :  { %12670 = vmatmul.mubr.msk.bf16.vlgmr.msra.gmra.mrb[16].mxu1 %vm518_vm1, %v4991_v5 }
 0xd6c   :  { %5146 = vmatpush1.bf16.msra.mxu1 %v5140_v16 }
 0xd6d   :  { %11107 = vmatprep.subr.msk.bf16.mxu1 %vm522_vm0, %v5266_v18 }
 0xd6e   :  { %v4993_v31 = vpop.permute.xlu0 %4992 }
 0xd6f   :  { %12673 = vmatprep.mubr.msk.bf16.mxu1 %vm518_vm1, %v4993_v31 }
 0xd72   :  { %v4995_v9 = vpop.permute.xlu1 %4994 }
 0xd73   :  { %12674 = vmatmul.mubr.msk.bf16.gmra.mrb[20].mxu1 %vm518_vm1, %v4995_v9 }
 0xd76   :  { %v4997_v22 = vpop.permute.xlu0 %4996 }
 0xd77   :  { %12677 = vmatprep.mubr.msk.bf16.mxu1 %vm518_vm1, %v4997_v22 }
 0xd7a   :  { %v4999_v10 = vpop.permute.xlu1 %4998 }
 0xd7b   :  { %12678 = vmatmul.mubr.msk.bf16.gmra.mrb[24].mxu1 %vm518_vm1, %v4999_v10 }
 0xd7e   :  { %v5001_v55 = vpop.permute.xlu0 %5000 }
 0xd7f   :  { %12681 = vmatprep.mubr.msk.bf16.mxu1 %vm518_vm1, %v5001_v55 }
 0xd82   :  { %v5003_v21 = vpop.permute.xlu1 %5002 }
 0xd83   :  { %12682 = vmatmul.mubr.msk.bf16.gmra.mrb[28].mxu1 %vm518_vm1, %v5003_v21 }
 0xd84   :  { %5177 = vmatprep.mubr.bf16.mxu1 %v18341_v0 }
 0xd8b   :  { %11098 = vmatmul.mubr.msk.bf16.vlgmr.msra.gmra.mrb[32].mxu1 %vm518_vm1, %v16642_v42  ;;  %v17196_v42 = vld [vmem:[#allocation2 + $0x40] sm:$0xff]  }
 0xd8c   :  { %5274 = vmatpush1.bf16.msra.mxu1 %v5268_v25  ;;  %5187 = vmatprep.mubr.bf16.mxu1 %v18341_v0  ;;  %v17368_v25 = vld [vmem:[#allocation2 + $0x70] sm:$0xff]  }
 0xd93   :  { %11099 = vmatmul.mubr.msk.bf16.gmra.mrb[36].mxu1 %vm518_vm1, %v16668_v33 }
 0xd94   :  { %5197 = vmatprep.mubr.bf16.mxu1 %v18341_v0 }
 0xd9b   :  { %11100 = vmatmul.mubr.msk.bf16.gmra.mrb[40].mxu1 %vm518_vm1, %v16675_v37 }
 0xd9c   :  { %5207 = vmatprep.mubr.bf16.mxu1 %v18341_v0 }
 0xda3   :  { %11101 = vmatmul.mubr.msk.bf16.gmra.mrb[44].mxu1 %vm518_vm1, %v16682_v47 }
 0xda4   :  { %5217 = vmatprep.mubr.bf16.mxu1 %v18341_v0 }
 0xdab   :  { %11102 = vmatmul.mubr.msk.bf16.gmra.mrb[48].mxu1 %vm518_vm1, %v16689_v50 }
 0xdac   :  { %5227 = vmatprep.mubr.bf16.mxu1 %v18341_v0 }
 0xdb3   :  { %11103 = vmatmul.mubr.msk.bf16.gmra.mrb[52].mxu1 %vm518_vm1, %v16696_v49 }
 0xdb4   :  { %5237 = vmatprep.mubr.bf16.mxu1 %v18341_v0 }
 0xdbb   :  { %11104 = vmatmul.mubr.msk.bf16.gmra.mrb[56].mxu1 %vm518_vm1, %v16703_v62 }
 0xdbc   :  { %5247 = vmatprep.mubr.bf16.mxu1 %v18341_v0 }
 0xdc3   :  { %11105 = vmatmul.mubr.msk.bf16.gmra.mrb[60].mxu1 %vm518_vm1, %v16710_v2 }
 0xdc4   :  { %5305 = vmatprep.mubr.bf16.mxu1 %v18341_v0 }
 0xdcb   :  { %11108 = vmatmul.mubr.msk.bf16.vlgmr.msra.gmra.mrb[32].mxu1 %vm518_vm1, %v4989_v14 }
 0xdcc   :  { %5315 = vmatprep.mubr.bf16.mxu1 %v18341_v0 }
 0xdd3   :  { %11109 = vmatmul.mubr.msk.bf16.gmra.mrb[36].mxu1 %vm518_vm1, %v4991_v5 }
 0xdd4   :  { %5325 = vmatprep.mubr.bf16.mxu1 %v18341_v0 }
 0xddb   :  { %11110 = vmatmul.mubr.msk.bf16.gmra.mrb[40].mxu1 %vm518_vm1, %v4993_v31 }
 0xddc   :  { %5335 = vmatprep.mubr.bf16.mxu1 %v18341_v0 }
 0xde3   :  { %11111 = vmatmul.mubr.msk.bf16.gmra.mrb[44].mxu1 %vm518_vm1, %v4995_v9  ;;  %v17344_v9 = vld [vmem:[#allocation2 + $0x48] sm:$0xff]  }
 0xde4   :  { %5345 = vmatprep.mubr.bf16.mxu1 %v18341_v0 }
 0xdeb   :  { %11112 = vmatmul.mubr.msk.bf16.gmra.mrb[48].mxu1 %vm518_vm1, %v4997_v22  ;;  %v17348_v22 = vld [vmem:[#allocation2 + $0x50] sm:$0xff]  }
 0xdec   :  { %5355 = vmatprep.mubr.bf16.mxu1 %v18341_v0 }
 0xdf3   :  { %11113 = vmatmul.mubr.msk.bf16.gmra.mrb[52].mxu1 %vm518_vm1, %v4999_v10  ;;  %v17354_v10 = vld [vmem:[#allocation2 + $0x58] sm:$0xff]  }
 0xdf4   :  { %5365 = vmatprep.mubr.bf16.mxu1 %v18341_v0 }
 0xdfb   :  { %11114 = vmatmul.mubr.msk.bf16.gmra.mrb[56].mxu1 %vm518_vm1, %v5001_v55  ;;  %v17358_v55 = vld [vmem:[#allocation2 + $0x60] sm:$0xff]  }
 0xdfc   :  { %5375 = vmatprep.mubr.bf16.mxu1 %v18341_v0  ;;  %v17511_v0 = vld [vmem:[#allocation2 + $0x198] sm:$0xff]  }
 0xdfd   :  { %18428 = vst [vmem:[#allocation102_spill] sm:$0xff] %v17511_v0 }
 0xe03   :  { %11115 = vmatmul.mubr.msk.bf16.gmra.mrb[60].mxu1 %vm518_vm1, %v5003_v21  ;;  %v17364_v21 = vld [vmem:[#allocation2 + $0x68] sm:$0xff]  }
 0xe04   :  { %12701 = vmatprep.mubr.bf16.mxu1 %v17196_v42 }
 0xe9e   :  { %v5307_v33 = vpop.f32.mrb[32].mxu1 }
 0xe9f   :  { %v5309_v37 = vpop.f32.mrb[33].mxu1 }
 0xea0   :  { %v5311_v47 = vpop.f32.mrb[34].mxu1 }
 0xea1   :  { %v17199_v50 = vpack.c.bf16 %v5311_v47, %v5307_v33  ;;  %v5313_v49 = vpop.f32.mrb[35].mxu1  ;;  %v17374_v33 = vld [vmem:[#allocation2 + $0x78] sm:$0xff]  }
 0xea2   :  { %v17201_v62 = vpack.c.bf16 %v5313_v49, %v5309_v37  ;;  %v17378_v37 = vld [vmem:[#allocation2] sm:$0xff]  }
 0xea3   :  { %5402 = vrot.lane.b32.xlu0 %v17199_v50, %s15763_s0 }
 0xea6   :  { %v5317_v2 = vpop.f32.mrb[36].mxu1 }
 0xea7   :  { %v5319_v59 = vpop.f32.mrb[37].mxu1 }
 0xea8   :  { %v5321_v26 = vpop.f32.mrb[38].mxu1 }
 0xea9   :  { %v17205_v52 = vpack.c.bf16 %v5321_v26, %v5317_v2  ;;  %v5323_v29 = vpop.f32.mrb[39].mxu1  ;;  %v17386_v2 = vld [vmem:[#allocation2 + $0x10] sm:$0xff]   ;;  %v17389_v26 = vld [vmem:[#allocation2 + $0x18] sm:$0xff]  }
 0xeaa   :  { %v17207_v11 = vpack.c.bf16 %v5323_v29, %v5319_v59  ;;  %v17392_v29 = vld [vmem:[#allocation2 + $0x20] sm:$0xff]  }
 0xeab   :  { %5404 = vrot.lane.b32.xlu1 %v17205_v52, %s15763_s0 }
 0xeae   :  { %v5327_v60 = vpop.f32.mrb[40].mxu1 }
 0xeaf   :  { %v5329_v45 = vpop.f32.mrb[41].mxu1 }
 0xeb0   :  { %v5331_v35 = vpop.f32.mrb[42].mxu1 }
 0xeb1   :  { %v17211_v53 = vpack.c.bf16 %v5331_v35, %v5327_v60  ;;  %v5333_v23 = vpop.f32.mrb[43].mxu1 }
 0xeb2   :  { %v17213_v36 = vpack.c.bf16 %v5333_v23, %v5329_v45  ;;  %v17395_v45 = vld [vmem:[#allocation2 + $0x28] sm:$0xff]  }
 0xeb3   :  { %5406 = vrot.lane.b32.xlu0 %v17211_v53, %s15763_s0 }
 0xeb6   :  { %v5337_v34 = vpop.f32.mrb[44].mxu1 }
 0xeb7   :  { %v5339_v32 = vpop.f32.mrb[45].mxu1 }
 0xeb8   :  { %v5341_v15 = vpop.f32.mrb[46].mxu1 }
 0xeb9   :  { %v17217_v24 = vpack.c.bf16 %v5341_v15, %v5337_v34  ;;  %v5343_v41 = vpop.f32.mrb[47].mxu1  ;;  %v17401_v34 = vld [vmem:[#allocation2 + $0x38] sm:$0xff]   ;;  %v17404_v15 = vld [vmem:[#allocation2 + $0x80] sm:$0xff]  }
 0xeba   :  { %v17219_v20 = vpack.c.bf16 %v5343_v41, %v5339_v32  ;;  %v17407_v41 = vld [vmem:[#allocation2 + $0x88] sm:$0xff]  }
 0xebb   :  { %5408 = vrot.lane.b32.xlu1 %v17217_v24, %s15763_s0 }
 0xebe   :  { %v5347_v61 = vpop.f32.mrb[48].mxu1 }
 0xebf   :  { %v5349_v40 = vpop.f32.mrb[49].mxu1 }
 0xec0   :  { %v5351_v43 = vpop.f32.mrb[50].mxu1 }
 0xec1   :  { %v17223_v3 = vpack.c.bf16 %v5351_v43, %v5347_v61  ;;  %v5353_v56 = vpop.f32.mrb[51].mxu1 }
 0xec2   :  { %v17225_v63 = vpack.c.bf16 %v5353_v56, %v5349_v40  ;;  %v17410_v40 = vld [vmem:[#allocation2 + $0x90] sm:$0xff]  }
 0xec3   :  { %5410 = vrot.lane.b32.xlu0 %v17223_v3, %s15763_s0 }
 0xec6   :  { %v5357_v27 = vpop.f32.mrb[52].mxu1 }
 0xec7   :  { %v5359_v39 = vpop.f32.mrb[53].mxu1 }
 0xec8   :  { %v5361_v51 = vpop.f32.mrb[54].mxu1 }
 0xec9   :  { %v17229_v58 = vpack.c.bf16 %v5361_v51, %v5357_v27  ;;  %v5363_v4 = vpop.f32.mrb[55].mxu1  ;;  %v17416_v27 = vld [vmem:[#allocation2 + $0xa0] sm:$0xff]   ;;  %v17419_v51 = vld [vmem:[#allocation2 + $0xa8] sm:$0xff]  }
 0xeca   :  { %v17231_v30 = vpack.c.bf16 %v5363_v4, %v5359_v39  ;;  %v17422_v4 = vld [vmem:[#allocation2 + $0xb0] sm:$0xff]  }
 0xecb   :  { %5412 = vrot.lane.b32.xlu1 %v17229_v58, %s15763_s0 }
 0xece   :  { %v5367_v7 = vpop.f32.mrb[56].mxu1 }
 0xecf   :  { %v5369_v48 = vpop.f32.mrb[57].mxu1 }
 0xed0   :  { %v5371_v28 = vpop.f32.mrb[58].mxu1 }
 0xed1   :  { %v17235_v46 = vpack.c.bf16 %v5371_v28, %v5367_v7  ;;  %v5373_v6 = vpop.f32.mrb[59].mxu1 }
 0xed2   :  { %v17237_v57 = vpack.c.bf16 %v5373_v6, %v5369_v48  ;;  %v17425_v48 = vld [vmem:[#allocation2 + $0xb8] sm:$0xff]  }
 0xed3   :  { %5414 = vrot.lane.b32.xlu0 %v17235_v46, %s15763_s0 }
 0xed6   :  { %v5377_v13 = vpop.f32.mrb[60].mxu1 }
 0xed7   :  { %5620 = vrot.lane.b32.xlu0 %v17199_v50, %s15764_s22  ;;  %v5379_v38 = vpop.f32.mrb[61].mxu1 }
 0xed8   :  { %v5381_v17 = vpop.f32.mrb[62].mxu1 }
 0xed9   :  { %v17243_v1 = vpack.c.bf16 %v5381_v17, %v5377_v13  ;;  %v5383_v8 = vpop.f32.mrb[63].mxu1  ;;  %v17431_v13 = vld [vmem:[#allocation2 + $0xc8] sm:$0xff]   ;;  %v17434_v17 = vld [vmem:[#allocation2 + $0xd0] sm:$0xff]  }
 0xeda   :  { %v17245_v44 = vpack.c.bf16 %v5383_v8, %v5379_v38  ;;  %v17437_v8 = vld [vmem:[#allocation2 + $0xd8] sm:$0xff]  }
 0xedb   :  { %5624 = vrot.lane.b32.xlu0 %v17211_v53, %s15764_s22  ;;  %5416 = vrot.lane.b32.xlu1 %v17243_v1, %s15763_s0 }
 0xedf   :  { %5628 = vrot.lane.b32.xlu0 %v17223_v3, %s15764_s22  ;;  %5622 = vrot.lane.b32.xlu1 %v17205_v52, %s15764_s22 }
 0xee3   :  { %5632 = vrot.lane.b32.xlu0 %v17235_v46, %s15764_s22  ;;  %5626 = vrot.lane.b32.xlu1 %v17217_v24, %s15764_s22 }
 0xee7   :  { %5757 = vrot.lane.b32.xlu0 %v17199_v50, %s15765_s23  ;;  %5630 = vrot.lane.b32.xlu1 %v17229_v58, %s15764_s22 }
 0xeeb   :  { %5761 = vrot.lane.b32.xlu0 %v17211_v53, %s15765_s23  ;;  %5634 = vrot.lane.b32.xlu1 %v17243_v1, %s15764_s22 }
 0xeef   :  { %5765 = vrot.lane.b32.xlu0 %v17223_v3, %s15765_s23  ;;  %5759 = vrot.lane.b32.xlu1 %v17205_v52, %s15765_s23 }
 0xef3   :  { %5769 = vrot.lane.b32.xlu0 %v17235_v46, %s15765_s23  ;;  %5763 = vrot.lane.b32.xlu1 %v17217_v24, %s15765_s23 }
 0xef7   :  { %5894 = vrot.lane.b32.xlu0 %v17199_v50, %s15740_s26  ;;  %5767 = vrot.lane.b32.xlu1 %v17229_v58, %s15765_s23 }
 0xefb   :  { %5898 = vrot.lane.b32.xlu0 %v17211_v53, %s15740_s26  ;;  %5771 = vrot.lane.b32.xlu1 %v17243_v1, %s15765_s23 }
 0xeff   :  { %5902 = vrot.lane.b32.xlu0 %v17223_v3, %s15740_s26  ;;  %5896 = vrot.lane.b32.xlu1 %v17205_v52, %s15740_s26 }
 0xf03   :  { %5906 = vrot.lane.b32.xlu0 %v17235_v46, %s15740_s26  ;;  %5900 = vrot.lane.b32.xlu1 %v17217_v24, %s15740_s26 }
 0xf07   :  { %6031 = vrot.lane.b32.xlu0 %v17199_v50, %s15766_s28  ;;  %5904 = vrot.lane.b32.xlu1 %v17229_v58, %s15740_s26 }
 0xf0b   :  { %6035 = vrot.lane.b32.xlu0 %v17211_v53, %s15766_s28  ;;  %5908 = vrot.lane.b32.xlu1 %v17243_v1, %s15740_s26 }
 0xf0f   :  { %6039 = vrot.lane.b32.xlu0 %v17223_v3, %s15766_s28  ;;  %6033 = vrot.lane.b32.xlu1 %v17205_v52, %s15766_s28 }
 0xf13   :  { %6043 = vrot.lane.b32.xlu0 %v17235_v46, %s15766_s28  ;;  %6037 = vrot.lane.b32.xlu1 %v17217_v24, %s15766_s28 }
 0xf15   :  { %v5403_v54 = vpop.permute.xlu0 %5402 }
 0xf16   :  { %12685 = vmatprep.subr.bf16.mxu1 %v5403_v54 }
 0xf17   :  { %12686 = vmatpush3.bf16.msra.mxu1 %v5403_v54  ;;  %6168 = vrot.lane.b32.xlu0 %v17199_v50, %s15767_s1 }
 0xf18   :  { %6041 = vrot.lane.b32.xlu1 %v17229_v58, %s15766_s28 }
 0xf1b   :  { %6172 = vrot.lane.b32.xlu0 %v17211_v53, %s15767_s1 }
 0xf1c   :  { %6045 = vrot.lane.b32.xlu1 %v17243_v1, %s15766_s28 }
 0xf1d   :  { %v5405_v19 = vpop.permute.xlu1 %5404 }
 0xf1e   :  { %12687 = vmatprep.subr.bf16.mxu1 %v5405_v19 }
 0xf1f   :  { %12688 = vmatpush3.bf16.msra.mxu1 %v5405_v19  ;;  %6176 = vrot.lane.b32.xlu0 %v17223_v3, %s15767_s1  ;;  %v17440_v19 = vld [vmem:[#allocation2 + $0xe0] sm:$0xff]  }
 0xf20   :  { %6170 = vrot.lane.b32.xlu1 %v17205_v52, %s15767_s1 }
 0xf23   :  { %6180 = vrot.lane.b32.xlu0 %v17235_v46, %s15767_s1 }
 0xf24   :  { %6174 = vrot.lane.b32.xlu1 %v17217_v24, %s15767_s1 }
 0xf25   :  { %v5407_v14 = vpop.permute.xlu0 %5406 }
 0xf26   :  { %12689 = vmatprep.subr.bf16.mxu1 %v5407_v14 }
 0xf27   :  { %12690 = vmatpush3.bf16.msra.mxu1 %v5407_v14  ;;  %6305 = vrot.lane.b32.xlu0 %v17199_v50, %s15768_s8 }
 0xf28   :  { %6178 = vrot.lane.b32.xlu1 %v17229_v58, %s15767_s1 }
 0xf2b   :  { %6309 = vrot.lane.b32.xlu0 %v17211_v53, %s15768_s8 }
 0xf2c   :  { %6182 = vrot.lane.b32.xlu1 %v17243_v1, %s15767_s1 }
 0xf2d   :  { %v5409_v12 = vpop.permute.xlu1 %5408 }
 0xf2e   :  { %12691 = vmatprep.subr.bf16.mxu1 %v5409_v12 }
 0xf2f   :  { %12692 = vmatpush3.bf16.msra.mxu1 %v5409_v12  ;;  %6313 = vrot.lane.b32.xlu0 %v17223_v3, %s15768_s8  ;;  %v17443_v12 = vld [vmem:[#allocation2 + $0xe8] sm:$0xff]  }
 0xf30   :  { %6307 = vrot.lane.b32.xlu1 %v17205_v52, %s15768_s8 }
 0xf33   :  { %6317 = vrot.lane.b32.xlu0 %v17235_v46, %s15768_s8 }
 0xf34   :  { %6311 = vrot.lane.b32.xlu1 %v17217_v24, %s15768_s8 }
 0xf35   :  { %v5411_v16 = vpop.permute.xlu0 %5410 }
 0xf36   :  { %12693 = vmatprep.subr.bf16.mxu1 %v5411_v16 }
 0xf37   :  { %12694 = vmatpush3.bf16.msra.mxu1 %v5411_v16 }
 0xf38   :  { %6315 = vrot.lane.b32.xlu1 %v17229_v58, %s15768_s8 }
 0xf3c   :  { %6319 = vrot.lane.b32.xlu1 %v17243_v1, %s15768_s8 }
 0xf3d   :  { %v5413_v18 = vpop.permute.xlu1 %5412 }
 0xf3e   :  { %12695 = vmatprep.subr.bf16.mxu1 %v5413_v18 }
 0xf3f   :  { %12696 = vmatpush3.bf16.msra.mxu1 %v5413_v18  ;;  %v17446_v18 = vld [vmem:[#allocation2 + $0xf0] sm:$0xff]  }
 0xf45   :  { %v5415_v5 = vpop.permute.xlu0 %5414 }
 0xf46   :  { %12697 = vmatprep.subr.bf16.mxu1 %v5415_v5 }
 0xf47   :  { %12698 = vmatpush3.bf16.msra.mxu1 %v5415_v5 }
 0xf49   :  { %v5621_v47 = vpop.permute.xlu0 %5620 }
 0xf4d   :  { %v5417_v31 = vpop.permute.xlu1 %5416  ;;  %v5625_v59 = vpop.permute.xlu0 %5624 }
 0xf4e   :  { %12699 = vmatprep.subr.bf16.mxu1 %v5417_v31 }
 0xf4f   :  { %12700 = vmatpush3.bf16.msra.mxu1 %v5417_v31  ;;  %v17449_v31 = vld [vmem:[#allocation2 + $0xf8] sm:$0xff]  }
 0xf50   :  { %12717 = vmatprep.subr.bf16.mxu1 %v17199_v50 }
 0xf51   :  { %v5623_v49 = vpop.permute.xlu1 %5622  ;;  %v5629_v60 = vpop.permute.xlu0 %5628 }
 0xf52   :  { %12702 = vmatmul.mubr.bf16.vlgmr.msra.gmra.mrb[64].mxu1 %v17344_v9 }
 0xf53   :  { %12718 = vmatpush3.bf16.msra.mxu1 %v17199_v50  ;;  %12705 = vmatprep.mubr.bf16.mxu1 %v17348_v22  ;;  %v17383_v50 = vld [vmem:[#allocation2 + $0x8] sm:$0xff]  }
 0xf54   :  { %12719 = vmatprep.subr.bf16.mxu1 %v17205_v52 }
 0xf55   :  { %v5633_v23 = vpop.permute.xlu0 %5632 }
 0xf57   :  { %12720 = vmatpush3.bf16.msra.mxu1 %v17205_v52  ;;  %v5627_v52 = vpop.permute.xlu1 %5626 }
 0xf58   :  { %12721 = vmatprep.subr.bf16.mxu1 %v17211_v53 }
 0xf5a   :  { %12706 = vmatmul.mubr.bf16.gmra.mrb[68].mxu1 %v17354_v10 }
 0xf5b   :  { %12722 = vmatpush3.bf16.msra.mxu1 %v17211_v53  ;;  %12709 = vmatprep.mubr.bf16.mxu1 %v17358_v55  ;;  %v5631_v35 = vpop.permute.xlu1 %5630  ;;  %v17398_v53 = vld [vmem:[#allocation2 + $0x30] sm:$0xff]  }
 0xf5c   :  { %12723 = vmatprep.subr.bf16.mxu1 %v17217_v24 }
 0xf5f   :  { %12724 = vmatpush3.bf16.msra.mxu1 %v17217_v24  ;;  %v5635_v32 = vpop.permute.xlu1 %5634  ;;  %v5758_v24 = vpop.permute.xlu0 %5757 }
 0xf60   :  { %12725 = vmatprep.subr.bf16.mxu1 %v17223_v3 }
 0xf62   :  { %12710 = vmatmul.mubr.bf16.gmra.mrb[72].mxu1 %v17364_v21 }
 0xf63   :  { %12726 = vmatpush3.bf16.msra.mxu1 %v17223_v3  ;;  %12713 = vmatprep.mubr.bf16.mxu1 %v17368_v25  ;;  %v5760_v61 = vpop.permute.xlu1 %5759  ;;  %v5762_v43 = vpop.permute.xlu0 %5761  ;;  %v17413_v3 = vld [vmem:[#allocation2 + $0x98] sm:$0xff]  }
 0xf64   :  { %12727 = vmatprep.subr.bf16.mxu1 %v17229_v58 }
 0xf67   :  { %12728 = vmatpush3.bf16.msra.mxu1 %v17229_v58  ;;  %v5764_v56 = vpop.permute.xlu1 %5763  ;;  %v5766_v39 = vpop.permute.xlu0 %5765 }
 0xf68   :  { %12729 = vmatprep.subr.bf16.mxu1 %v17235_v46 }
 0xf6a   :  { %12714 = vmatmul.mubr.bf16.gmra.mrb[76].mxu1 %v17374_v33 }
 0xf6b   :  { %12730 = vmatpush3.bf16.msra.mxu1 %v17235_v46  ;;  %12733 = vmatprep.mubr.bf16.mxu1 %v17378_v37  ;;  %v5768_v58 = vpop.permute.xlu1 %5767  ;;  %v5770_v7 = vpop.permute.xlu0 %5769  ;;  %v17428_v46 = vld [vmem:[#allocation2 + $0xc0] sm:$0xff]  }
 0xf6c   :  { %12731 = vmatprep.subr.bf16.mxu1 %v17243_v1 }
 0xf6f   :  { %12732 = vmatpush3.bf16.msra.mxu1 %v17243_v1  ;;  %v5772_v28 = vpop.permute.xlu1 %5771  ;;  %v5895_v6 = vpop.permute.xlu0 %5894 }
 0xf70   :  { %12749 = vmatprep.subr.bf16.mxu1 %v5621_v47 }
 0xf72   :  { %12734 = vmatmul.mubr.bf16.vlgmr.msra.gmra.mrb[64].mxu1 %v17383_v50 }
 0xf73   :  { %12750 = vmatpush3.bf16.msra.mxu1 %v5621_v47  ;;  %12737 = vmatprep.mubr.bf16.mxu1 %v17386_v2  ;;  %v5897_v38 = vpop.permute.xlu1 %5896  ;;  %v5899_v1 = vpop.permute.xlu0 %5898 }
 0xf74   :  { %12751 = vmatprep.subr.bf16.mxu1 %v5623_v49 }
 0xf77   :  { %12752 = vmatpush3.bf16.msra.mxu1 %v5623_v49  ;;  %v5901_v54 = vpop.permute.xlu1 %5900  ;;  %v5903_v14 = vpop.permute.xlu0 %5902  ;;  %v17452_v49 = vld [vmem:[#allocation2 + $0x100] sm:$0xff]  }
 0xf78   :  { %12753 = vmatprep.subr.bf16.mxu1 %v5625_v59 }
 0xf7a   :  { %12738 = vmatmul.mubr.bf16.gmra.mrb[68].mxu1 %v17389_v26 }
 0xf7b   :  { %12754 = vmatpush3.bf16.msra.mxu1 %v5625_v59  ;;  %12741 = vmatprep.mubr.bf16.mxu1 %v17392_v29  ;;  %v5905_v16 = vpop.permute.xlu1 %5904  ;;  %v5907_v5 = vpop.permute.xlu0 %5906 }
 0xf7c   :  { %12755 = vmatprep.subr.bf16.mxu1 %v5627_v52 }
 0xf7f   :  { %12756 = vmatpush3.bf16.msra.mxu1 %v5627_v52  ;;  %v5909_v47 = vpop.permute.xlu1 %5908  ;;  %v6032_v59 = vpop.permute.xlu0 %6031  ;;  %v17455_v52 = vld [vmem:[#allocation2 + $0x108] sm:$0xff]  }
 0xf80   :  { %12757 = vmatprep.subr.bf16.mxu1 %v5629_v60 }
 0xf82   :  { %12742 = vmatmul.mubr.bf16.gmra.mrb[72].mxu1 %v17395_v45 }
 0xf83   :  { %12758 = vmatpush3.bf16.msra.mxu1 %v5629_v60  ;;  %12745 = vmatprep.mubr.bf16.mxu1 %v17398_v53  ;;  %v6034_v60 = vpop.permute.xlu1 %6033 }
 0xf84   :  { %12759 = vmatprep.subr.bf16.mxu1 %v5631_v35 }
 0xf87   :  { %12760 = vmatpush3.bf16.msra.mxu1 %v5631_v35  ;;  %v17458_v35 = vld [vmem:[#allocation2 + $0x110] sm:$0xff]  }
 0xf88   :  { %12761 = vmatprep.subr.bf16.mxu1 %v5633_v23 }
 0xf8a   :  { %12746 = vmatmul.mubr.bf16.gmra.mrb[76].mxu1 %v17401_v34 }
 0xf8b   :  { %12762 = vmatpush3.bf16.msra.mxu1 %v5633_v23  ;;  %12765 = vmatprep.mubr.bf16.mxu1 %v17404_v15  ;;  %v6036_v23 = vpop.permute.xlu0 %6035 }
 0xf8c   :  { %12763 = vmatprep.subr.bf16.mxu1 %v5635_v32 }
 0xf8f   :  { %12764 = vmatpush3.bf16.msra.mxu1 %v5635_v32  ;;  %v17461_v32 = vld [vmem:[#allocation2 + $0x118] sm:$0xff]  }
 0xf90   :  { %12781 = vmatprep.subr.bf16.mxu1 %v5758_v24 }
 0xf92   :  { %12766 = vmatmul.mubr.bf16.vlgmr.msra.gmra.mrb[64].mxu1 %v17407_v41 }
 0xf93   :  { %12782 = vmatpush3.bf16.msra.mxu1 %v5758_v24  ;;  %12769 = vmatprep.mubr.bf16.mxu1 %v17410_v40  ;;  %v6038_v24 = vpop.permute.xlu1 %6037 }
 0xf94   :  { %12783 = vmatprep.subr.bf16.mxu1 %v5760_v61 }
 0xf97   :  { %12784 = vmatpush3.bf16.msra.mxu1 %v5760_v61  ;;  %v17464_v61 = vld [vmem:[#allocation2 + $0x120] sm:$0xff]  }
 0xf98   :  { %12785 = vmatprep.subr.bf16.mxu1 %v5762_v43 }
 0xf9a   :  { %12770 = vmatmul.mubr.bf16.gmra.mrb[68].mxu1 %v17413_v3 }
 0xf9b   :  { %12786 = vmatpush3.bf16.msra.mxu1 %v5762_v43  ;;  %12773 = vmatprep.mubr.bf16.mxu1 %v17416_v27  ;;  %v6040_v43 = vpop.permute.xlu0 %6039 }
 0xf9c   :  { %12787 = vmatprep.subr.bf16.mxu1 %v5764_v56 }
 0xf9f   :  { %12788 = vmatpush3.bf16.msra.mxu1 %v5764_v56  ;;  %v17467_v56 = vld [vmem:[#allocation2 + $0x128] sm:$0xff]  }
 0xfa0   :  { %12789 = vmatprep.subr.bf16.mxu1 %v5766_v39 }
 0xfa2   :  { %12774 = vmatmul.mubr.bf16.gmra.mrb[72].mxu1 %v17419_v51 }
 0xfa3   :  { %12790 = vmatpush3.bf16.msra.mxu1 %v5766_v39  ;;  %12777 = vmatprep.mubr.bf16.mxu1 %v17422_v4  ;;  %v6042_v39 = vpop.permute.xlu1 %6041 }
 0xfa4   :  { %12791 = vmatprep.subr.bf16.mxu1 %v5768_v58 }
 0xfa7   :  { %12792 = vmatpush3.bf16.msra.mxu1 %v5768_v58  ;;  %v17470_v58 = vld [vmem:[#allocation2 + $0x130] sm:$0xff]  }
 0xfa8   :  { %12793 = vmatprep.subr.bf16.mxu1 %v5770_v7 }
 0xfaa   :  { %12778 = vmatmul.mubr.bf16.gmra.mrb[76].mxu1 %v17425_v48 }
 0xfab   :  { %12794 = vmatpush3.bf16.msra.mxu1 %v5770_v7  ;;  %12797 = vmatprep.mubr.bf16.mxu1 %v17428_v46  ;;  %v6044_v7 = vpop.permute.xlu0 %6043 }
 0xfac   :  { %12795 = vmatprep.subr.bf16.mxu1 %v5772_v28 }
 0xfaf   :  { %12796 = vmatpush3.bf16.msra.mxu1 %v5772_v28  ;;  %v17473_v28 = vld [vmem:[#allocation2 + $0x138] sm:$0xff]  }
 0xfb0   :  { %12813 = vmatprep.subr.bf16.mxu1 %v5895_v6 }
 0xfb2   :  { %12798 = vmatmul.mubr.bf16.vlgmr.msra.gmra.mrb[64].mxu1 %v17431_v13 }
 0xfb3   :  { %12814 = vmatpush3.bf16.msra.mxu1 %v5895_v6  ;;  %12801 = vmatprep.mubr.bf16.mxu1 %v17434_v17  ;;  %v14511_v6 = vld [vmem:[%s18419_s20] ss:$8 sps:$4 sm:$0xff]  }
 0xfb4   :  { %12815 = vmatprep.subr.bf16.mxu1 %v5897_v38 }
 0xfb7   :  { %12816 = vmatpush3.bf16.msra.mxu1 %v5897_v38  ;;  %v14513_v38 = vld [vmem:[%s18419_s20 + $0x4] ss:$8 sps:$4 sm:$0xff]  }
 0xfb8   :  { %12817 = vmatprep.subr.bf16.mxu1 %v5899_v1  ;;  %6624 = vmatprep.subr.bf16.mxu0 %v14513_v38 }
 0xfb9   :  { %6625 = vmatpush1.bf16.msra.mxu0 %v14511_v6  ;;  %v17496_v6 = vld [vmem:[#allocation2 + $0x170] sm:$0xff]  }
 0xfba   :  { %12802 = vmatmul.mubr.bf16.gmra.mrb[68].mxu1 %v17437_v8  ;;  %18423 = vst [vmem:[#allocation97_spill] sm:$0xff] %v17496_v6 }
 0xfbb   :  { %12818 = vmatpush3.bf16.msra.mxu1 %v5899_v1  ;;  %12805 = vmatprep.mubr.bf16.mxu1 %v17440_v19  ;;  %v6046_v1 = vpop.permute.xlu1 %6045 }
 0xfbc   :  { %12819 = vmatprep.subr.bf16.mxu1 %v5901_v54 }
 0xfbf   :  { %12820 = vmatpush3.bf16.msra.mxu1 %v5901_v54  ;;  %v17478_v54 = vld [vmem:[#allocation2 + $0x140] sm:$0xff]  }
 0xfc0   :  { %12821 = vmatprep.subr.bf16.mxu1 %v5903_v14 }
 0xfc2   :  { %12806 = vmatmul.mubr.bf16.gmra.mrb[72].mxu1 %v17443_v12 }
 0xfc3   :  { %12822 = vmatpush3.bf16.msra.mxu1 %v5903_v14  ;;  %12809 = vmatprep.mubr.bf16.mxu1 %v17446_v18  ;;  %v6169_v14 = vpop.permute.xlu0 %6168 }
 0xfc4   :  { %12823 = vmatprep.subr.bf16.mxu1 %v5905_v16 }
 0xfc7   :  { %12824 = vmatpush3.bf16.msra.mxu1 %v5905_v16  ;;  %v17481_v16 = vld [vmem:[#allocation2 + $0x148] sm:$0xff]  }
 0xfc8   :  { %12825 = vmatprep.subr.bf16.mxu1 %v5907_v5 }
 0xfca   :  { %12810 = vmatmul.mubr.bf16.gmra.mrb[76].mxu1 %v17449_v31 }
 0xfcb   :  { %12826 = vmatpush3.bf16.msra.mxu1 %v5907_v5  ;;  %12829 = vmatprep.mubr.bf16.mxu1 %v17452_v49  ;;  %v6171_v5 = vpop.permute.xlu1 %6170 }
 0xfcc   :  { %12827 = vmatprep.subr.bf16.mxu1 %v5909_v47 }
 0xfcf   :  { %12828 = vmatpush3.bf16.msra.mxu1 %v5909_v47  ;;  %v17484_v47 = vld [vmem:[#allocation2 + $0x150] sm:$0xff]  }
 0xfd0   :  { %12845 = vmatprep.subr.bf16.mxu1 %v6032_v59 }
 0xfd2   :  { %12830 = vmatmul.mubr.bf16.vlgmr.msra.gmra.mrb[64].mxu1 %v17455_v52 }
 0xfd3   :  { %12846 = vmatpush3.bf16.msra.mxu1 %v6032_v59  ;;  %12833 = vmatprep.mubr.bf16.mxu1 %v17458_v35  ;;  %v6173_v59 = vpop.permute.xlu0 %6172 }
 0xfd4   :  { %12847 = vmatprep.subr.bf16.mxu1 %v6034_v60 }
 0xfd7   :  { %12848 = vmatpush3.bf16.msra.mxu1 %v6034_v60  ;;  %v17487_v60 = vld [vmem:[#allocation2 + $0x158] sm:$0xff]  }
 0xfd8   :  { %12849 = vmatprep.subr.bf16.mxu1 %v6036_v23  ;;  %18420 = vst [vmem:[#allocation94_spill] sm:$0xff] %v17487_v60 }
 0xfda   :  { %12834 = vmatmul.mubr.bf16.gmra.mrb[68].mxu1 %v17461_v32 }
 0xfdb   :  { %12850 = vmatpush3.bf16.msra.mxu1 %v6036_v23  ;;  %12837 = vmatprep.mubr.bf16.mxu1 %v17464_v61  ;;  %v6175_v23 = vpop.permute.xlu1 %6174 }
 0xfdc   :  { %12851 = vmatprep.subr.bf16.mxu1 %v6038_v24 }
 0xfdf   :  { %12852 = vmatpush3.bf16.msra.mxu1 %v6038_v24  ;;  %v17490_v24 = vld [vmem:[#allocation2 + $0x160] sm:$0xff]  }
 0xfe0   :  { %12853 = vmatprep.subr.bf16.mxu1 %v6040_v43  ;;  %18421 = vst [vmem:[#allocation95_spill] sm:$0xff] %v17490_v24 }
 0xfe2   :  { %12838 = vmatmul.mubr.bf16.gmra.mrb[72].mxu1 %v17467_v56 }
 0xfe3   :  { %12854 = vmatpush3.bf16.msra.mxu1 %v6040_v43  ;;  %12841 = vmatprep.mubr.bf16.mxu1 %v17470_v58  ;;  %v6177_v43 = vpop.permute.xlu0 %6176 }
 0xfe4   :  { %12855 = vmatprep.subr.bf16.mxu1 %v6042_v39 }
 0xfe7   :  { %12856 = vmatpush3.bf16.msra.mxu1 %v6042_v39  ;;  %v17493_v39 = vld [vmem:[#allocation2 + $0x168] sm:$0xff]   ;;  %v6181_v38 = vpop.permute.xlu0 %6180 }
 0xfe8   :  { %12857 = vmatprep.subr.bf16.mxu1 %v6044_v7  ;;  %18422 = vst [vmem:[#allocation96_spill] sm:$0xff] %v17493_v39 }
 0xfea   :  { %12842 = vmatmul.mubr.bf16.gmra.mrb[76].mxu1 %v17473_v28 }
 0xfeb   :  { %12858 = vmatpush3.bf16.msra.mxu1 %v6044_v7  ;;  %12861 = vmatprep.mubr.bf16.mxu1 %v17478_v54  ;;  %v6179_v7 = vpop.permute.xlu1 %6178 }
 0xfec   :  { %12859 = vmatprep.subr.bf16.mxu1 %v6046_v1 }
 0xfef   :  { %12860 = vmatpush3.bf16.msra.mxu1 %v6046_v1  ;;  %v17499_v1 = vld [vmem:[#allocation2 + $0x178] sm:$0xff]  }
 0xff0   :  { %12877 = vmatprep.subr.bf16.mxu1 %v6169_v14  ;;  %18424 = vst [vmem:[#allocation98_spill] sm:$0xff] %v17499_v1 }
 0xff2   :  { %12862 = vmatmul.mubr.bf16.vlgmr.msra.gmra.mrb[64].mxu1 %v17481_v16 }
 0xff3   :  { %12878 = vmatpush3.bf16.msra.mxu1 %v6169_v14  ;;  %12865 = vmatprep.mubr.bf16.mxu1 %v17484_v47  ;;  %v6183_v14 = vpop.permute.xlu1 %6182 }
 0xff4   :  { %12879 = vmatprep.subr.bf16.mxu1 %v6171_v5 }
 0xff7   :  { %12880 = vmatpush3.bf16.msra.mxu1 %v6171_v5  ;;  %v17502_v5 = vld [vmem:[#allocation2 + $0x180] sm:$0xff]  }
 0xff8   :  { %12881 = vmatprep.subr.bf16.mxu1 %v6173_v59  ;;  %18425 = vst [vmem:[#allocation99_spill] sm:$0xff] %v17502_v5 }
 0xffa   :  { %12866 = vmatmul.mubr.bf16.gmra.mrb[68].mxu1 %v17487_v60 }
 0xffb   :  { %12882 = vmatpush3.bf16.msra.mxu1 %v6173_v59  ;;  %12869 = vmatprep.mubr.bf16.mxu1 %v17490_v24  ;;  %v6306_v59 = vpop.permute.xlu0 %6305 }
 0xffc   :  { %12883 = vmatprep.subr.bf16.mxu1 %v6175_v23 }
 0xfff   :  { %12884 = vmatpush3.bf16.msra.mxu1 %v6175_v23  ;;  %v17505_v23 = vld [vmem:[#allocation2 + $0x188] sm:$0xff]  }
0x1000   :  { %12885 = vmatprep.subr.bf16.mxu1 %v6177_v43  ;;  %18426 = vst [vmem:[#allocation100_spill] sm:$0xff] %v17505_v23 }
0x1002   :  { %12870 = vmatmul.mubr.bf16.gmra.mrb[72].mxu1 %v17493_v39 }
0x1003   :  { %12886 = vmatpush3.bf16.msra.mxu1 %v6177_v43  ;;  %12873 = vmatprep.mubr.bf16.mxu1 %v17496_v6  ;;  %v6308_v43 = vpop.permute.xlu1 %6307 }
0x1004   :  { %12887 = vmatprep.subr.bf16.mxu1 %v6179_v7 }
0x1007   :  { %12888 = vmatpush3.bf16.msra.mxu1 %v6179_v7  ;;  %v17508_v7 = vld [vmem:[#allocation2 + $0x190] sm:$0xff]  }
0x1008   :  { %12889 = vmatprep.subr.bf16.mxu1 %v6181_v38  ;;  %18427 = vst [vmem:[#allocation101_spill] sm:$0xff] %v17508_v7 }
0x100a   :  { %12874 = vmatmul.mubr.bf16.gmra.mrb[76].mxu1 %v17499_v1 }
0x100b   :  { %12890 = vmatpush3.bf16.msra.mxu1 %v6181_v38  ;;  %12893 = vmatprep.mubr.bf16.mxu1 %v17502_v5  ;;  %v6310_v38 = vpop.permute.xlu0 %6309  ;;  %v17514_v5 = vld [vmem:[#allocation2 + $0x1a0] sm:$0xff]  }
0x100c   :  { %12891 = vmatprep.subr.bf16.mxu1 %v6183_v14  ;;  %18429 = vst [vmem:[#allocation103_spill] sm:$0xff] %v17514_v5 }
0x100f   :  { %12892 = vmatpush3.bf16.msra.mxu1 %v6183_v14  ;;  %v6312_v14 = vpop.permute.xlu1 %6311 }
0x1010   :  { %12909 = vmatprep.subr.bf16.mxu1 %v6306_v59 }
0x1012   :  { %12894 = vmatmul.mubr.bf16.vlgmr.msra.gmra.mrb[64].mxu1 %v17505_v23  ;;  %v17517_v23 = vld [vmem:[#allocation2 + $0x1a8] sm:$0xff]  }
0x1013   :  { %12910 = vmatpush3.bf16.msra.mxu1 %v6306_v59  ;;  %12897 = vmatprep.mubr.bf16.mxu1 %v17508_v7  ;;  %v6314_v59 = vpop.permute.xlu0 %6313  ;;  %18430 = vst [vmem:[#allocation104_spill] sm:$0xff] %v17517_v23  ;;  %v17520_v7 = vld [vmem:[#allocation2 + $0x1b0] sm:$0xff]  }
0x1014   :  { %12911 = vmatprep.subr.bf16.mxu1 %v6308_v43  ;;  %18431 = vst [vmem:[#allocation105_spill] sm:$0xff] %v17520_v7 }
0x1017   :  { %12912 = vmatpush3.bf16.msra.mxu1 %v6308_v43  ;;  %v6316_v43 = vpop.permute.xlu1 %6315 }
0x1018   :  { %12913 = vmatprep.subr.bf16.mxu1 %v6310_v38 }
0x101a   :  { %12898 = vmatmul.mubr.bf16.gmra.mrb[68].mxu1 %v17511_v0  ;;  %v17523_v0 = vld [vmem:[#allocation2 + $0x1b8] sm:$0xff]  }
0x101b   :  { %12914 = vmatpush3.bf16.msra.mxu1 %v6310_v38  ;;  %12901 = vmatprep.mubr.bf16.mxu1 %v17514_v5  ;;  %v6318_v38 = vpop.permute.xlu0 %6317  ;;  %18432 = vst [vmem:[#allocation106_spill] sm:$0xff] %v17523_v0  ;;  %v17526_v5 = vld [vmem:[#allocation2 + $0x1c0] sm:$0xff]  }
0x101c   :  { %12915 = vmatprep.subr.bf16.mxu1 %v6312_v14  ;;  %18433 = vst [vmem:[#allocation107_spill] sm:$0xff] %v17526_v5 }
0x101f   :  { %12916 = vmatpush3.bf16.msra.mxu1 %v6312_v14  ;;  %v6320_v14 = vpop.permute.xlu1 %6319 }
0x1020   :  { %12917 = vmatprep.subr.bf16.mxu1 %v6314_v59 }
0x1022   :  { %12902 = vmatmul.mubr.bf16.gmra.mrb[72].mxu1 %v17517_v23 }
0x1023   :  { %12918 = vmatpush3.bf16.msra.mxu1 %v6314_v59  ;;  %12905 = vmatprep.mubr.bf16.mxu1 %v17520_v7  ;;  %v17530_v59 = vld [vmem:[#allocation2 + $0x1c8] sm:$0xff]  }
0x1024   :  { %12919 = vmatprep.subr.bf16.mxu1 %v6316_v43  ;;  %18434 = vst [vmem:[#allocation108_spill] sm:$0xff] %v17530_v59 }
0x1027   :  { %12920 = vmatpush3.bf16.msra.mxu1 %v6316_v43  ;;  %v17534_v43 = vld [vmem:[#allocation2 + $0x1d0] sm:$0xff]  }
0x1028   :  { %12921 = vmatprep.subr.bf16.mxu1 %v6318_v38  ;;  %18435 = vst [vmem:[#allocation109_spill] sm:$0xff] %v17534_v43 }
0x102a   :  { %12906 = vmatmul.mubr.bf16.gmra.mrb[76].mxu1 %v17523_v0  ;;  %v18449_v0 = vmov 0  }
0x102b   :  { %12922 = vmatpush3.bf16.msra.mxu1 %v6318_v38  ;;  %12925 = vmatprep.mubr.bf16.mxu1 %v17526_v5  ;;  %v17540_v38 = vld [vmem:[#allocation2 + $0x1d8] sm:$0xff]  }
0x102c   :  { %12923 = vmatprep.subr.bf16.mxu1 %v6320_v14  ;;  %18436 = vst [vmem:[#allocation110_spill] sm:$0xff] %v17540_v38 }
0x102f   :  { %12924 = vmatpush3.bf16.msra.mxu1 %v6320_v14  ;;  %v17544_v14 = vld [vmem:[#allocation2 + $0x1e0] sm:$0xff]  }
0x1030   :  { %12941 = vmatprep.subr.bf16.mxu1 %v17201_v62  ;;  %18437 = vst [vmem:[#allocation111_spill] sm:$0xff] %v17544_v14 }
0x1032   :  { %12926 = vmatmul.mubr.bf16.vlgmr.msra.gmra.mrb[64].mxu1 %v17530_v59 }
0x1033   :  { %12942 = vmatpush3.bf16.msra.mxu1 %v17201_v62  ;;  %12929 = vmatprep.mubr.bf16.mxu1 %v17534_v43  ;;  %v17550_v62 = vld [vmem:[#allocation2 + $0x1e8] sm:$0xff]  }
0x1034   :  { %12943 = vmatprep.subr.bf16.mxu1 %v17207_v11  ;;  %18438 = vst [vmem:[#allocation112_spill] sm:$0xff] %v17550_v62 }
0x1037   :  { %12944 = vmatpush3.bf16.msra.mxu1 %v17207_v11  ;;  %v17554_v11 = vld [vmem:[#allocation2 + $0x1f0] sm:$0xff]  }
0x1038   :  { %12945 = vmatprep.subr.bf16.mxu1 %v17213_v36  ;;  %18439 = vst [vmem:[#allocation113_spill] sm:$0xff] %v17554_v11 }
0x103a   :  { %12930 = vmatmul.mubr.bf16.gmra.mrb[68].mxu1 %v17540_v38 }
0x103b   :  { %12946 = vmatpush3.bf16.msra.mxu1 %v17213_v36  ;;  %12933 = vmatprep.mubr.bf16.mxu1 %v17544_v14  ;;  %v17560_v36 = vld [vmem:[#allocation2 + $0x1f8] sm:$0xff]  }
0x103c   :  { %12947 = vmatprep.subr.bf16.mxu1 %v17219_v20  ;;  %18440 = vst [vmem:[#allocation114_spill] sm:$0xff] %v17560_v36 }
0x103f   :  { %12948 = vmatpush3.bf16.msra.mxu1 %v17219_v20  ;;  %v17564_v20 = vld [vmem:[#allocation2 + $0x200] sm:$0xff]  }
0x1040   :  { %12949 = vmatprep.subr.bf16.mxu1 %v17225_v63  ;;  %18441 = vst [vmem:[#allocation115_spill] sm:$0xff] %v17564_v20 }
0x1042   :  { %12934 = vmatmul.mubr.bf16.gmra.mrb[72].mxu1 %v17550_v62 }
0x1043   :  { %12950 = vmatpush3.bf16.msra.mxu1 %v17225_v63  ;;  %12937 = vmatprep.mubr.bf16.mxu1 %v17554_v11  ;;  %v17569_v63 = vld [vmem:[#allocation2 + $0x208] sm:$0xff]   ;;  %v17575_v11 = vld [vmem:[#allocation2 + $0x218] sm:$0xff]  }
0x1044   :  { %12951 = vmatprep.subr.bf16.mxu1 %v17231_v30  ;;  %18442 = vst [vmem:[#allocation116_spill] sm:$0xff] %v17569_v63  ;;  %18444 = vst [vmem:[#allocation118_spill] sm:$0xff] %v17575_v11 }
0x1047   :  { %12952 = vmatpush3.bf16.msra.mxu1 %v17231_v30  ;;  %v17572_v30 = vld [vmem:[#allocation2 + $0x210] sm:$0xff]  }
0x1048   :  { %12953 = vmatprep.subr.bf16.mxu1 %v17237_v57  ;;  %18443 = vst [vmem:[#allocation117_spill] sm:$0xff] %v17572_v30 }
0x104a   :  { %12938 = vmatmul.mubr.bf16.gmra.mrb[76].mxu1 %v17560_v36 }
0x104b   :  { %12954 = vmatpush3.bf16.msra.mxu1 %v17237_v57  ;;  %12957 = vmatprep.mubr.bf16.mxu1 %v17564_v20  ;;  %v17578_v57 = vld [vmem:[#allocation2 + $0x220] sm:$0xff]   ;;  %v17581_v20 = vld [vmem:[#allocation2 + $0x228] sm:$0xff]  }
0x104c   :  { %12955 = vmatprep.subr.bf16.mxu1 %v17245_v44  ;;  %18445 = vst [vmem:[#allocation119_spill] sm:$0xff] %v17578_v57  ;;  %18446 = vst [vmem:[#allocation120_spill] sm:$0xff] %v17581_v20 }
0x104f   :  { %12956 = vmatpush3.bf16.msra.mxu1 %v17245_v44  ;;  %v17584_v44 = vld [vmem:[#allocation2 + $0x230] sm:$0xff]  }
0x1050   :  { %18447 = vst [vmem:[#allocation121_spill] sm:$0xff] %v17584_v44 }
0x1052   :  { %12958 = vmatmul.mubr.bf16.vlgmr.msra.gmra.mrb[64].mxu1 %v17569_v63  ;;  %v17587_v63 = vld [vmem:[#allocation2 + $0x238] sm:$0xff]  }
0x1053   :  { %12961 = vmatprep.mubr.bf16.mxu1 %v17572_v30  ;;  %18448 = vst [vmem:[#allocation122_spill] sm:$0xff] %v17587_v63 }
0x105a   :  { %12962 = vmatmul.mubr.bf16.gmra.mrb[68].mxu1 %v17575_v11 }
0x105b   :  { %12965 = vmatprep.mubr.bf16.mxu1 %v17578_v57 }
0x1062   :  { %12966 = vmatmul.mubr.bf16.gmra.mrb[72].mxu1 %v17581_v20 }
0x1063   :  { %12969 = vmatprep.mubr.bf16.mxu1 %v17584_v44 }
0x106a   :  { %12970 = vmatmul.mubr.bf16.gmra.mrb[76].mxu1 %v17587_v63 }
0x106b   :  { %12989 = vmatprep.mubr.bf16.mxu1 %v17196_v42 }
0x1125   :  { %v12959_v30 = vpop.f32.mrb[64].mxu1 }
0x1126   :  { %v6484_v11 = vpop.f32.mrb[65].mxu1  ;;  %v6565_v62 = vmax.f32 %v12959_v30, 0.0 }
0x1127   :  { %v12960_v36 = vpop.f32.mrb[66].mxu1  ;;  %v6563_v38 = vmax.f32 %v6484_v11, 0.0 }
0x1128   :  { %v6566_v14 = vmax.f32 %v12960_v36, 0.0  ;;  %v6487_v57 = vpop.f32.mrb[67].mxu1 }
0x1129   :  { %v6564_v43 = vmax.f32 %v6487_v57, 0.0 }
0x112a   :  { %v6582_v59 = vpack.c.bf16 %v6566_v14, %v6565_v62 }
0x112b   :  { %v6581_v20 = vpack.c.bf16 %v6564_v43, %v6563_v38 }
0x112d   :  { %v12963_v5 = vpop.f32.mrb[68].mxu1  ;;  %11118 = vmatmul.mubr.msk.bf16.vlgmr.msra.gmra.mrb[80].mxu0 %vm6599_vm2, %v6581_v20 }
0x112e   :  { %v6500_v44 = vpop.f32.mrb[69].mxu1  ;;  %6666 = vmatprep.mubr.bf16.mxu0 %v18449_v0  ;;  %v6569_v7 = vmax.f32 %v12963_v5, 0.0 }
0x112f   :  { %v12964_v63 = vpop.f32.mrb[70].mxu1  ;;  %v6567_v1 = vmax.f32 %v6500_v44, 0.0 }
0x1130   :  { %v6570_v42 = vmax.f32 %v12964_v63, 0.0  ;;  %v6503_v23 = vpop.f32.mrb[71].mxu1 }
0x1131   :  { %v6568_v6 = vmax.f32 %v6503_v23, 0.0 }
0x1132   :  { %v6584_v30 = vpack.c.bf16 %v6570_v42, %v6569_v7 }
0x1133   :  { %v6583_v36 = vpack.c.bf16 %v6568_v6, %v6567_v1 }
0x1135   :  { %v12967_v39 = vpop.f32.mrb[72].mxu1  ;;  %11119 = vmatmul.mubr.msk.bf16.gmra.mrb[84].mxu0 %vm6599_vm2, %v6582_v59 }
0x1136   :  { %v6516_v14 = vpop.f32.mrb[73].mxu1  ;;  %6676 = vmatprep.mubr.bf16.mxu0 %v18449_v0  ;;  %v6573_v38 = vmax.f32 %v12967_v39, 0.0 }
0x1137   :  { %v12968_v43 = vpop.f32.mrb[74].mxu1  ;;  %v6571_v20 = vmax.f32 %v6516_v14, 0.0 }
0x1138   :  { %v6574_v62 = vmax.f32 %v12968_v43, 0.0  ;;  %v6519_v11 = vpop.f32.mrb[75].mxu1 }
0x1139   :  { %v6572_v57 = vmax.f32 %v6519_v11, 0.0 }
0x113a   :  { %v6586_v24 = vpack.c.bf16 %v6574_v62, %v6573_v38 }
0x113b   :  { %v6585_v5 = vpack.c.bf16 %v6572_v57, %v6571_v20 }
0x113d   :  { %v12971_v63 = vpop.f32.mrb[76].mxu1  ;;  %11120 = vmatmul.mubr.msk.bf16.gmra.mrb[88].mxu0 %vm6599_vm2, %v6583_v36 }
0x113e   :  { %v6532_v23 = vpop.f32.mrb[77].mxu1  ;;  %6686 = vmatprep.mubr.bf16.mxu0 %v18449_v0  ;;  %v6577_v1 = vmax.f32 %v12971_v63, 0.0 }
0x113f   :  { %v12972_v6 = vpop.f32.mrb[78].mxu1  ;;  %v6575_v44 = vmax.f32 %v6532_v23, 0.0 }
0x1140   :  { %v6578_v7 = vmax.f32 %v12972_v6, 0.0  ;;  %v6535_v59 = vpop.f32.mrb[79].mxu1 }
0x1141   :  { %v6576_v42 = vmax.f32 %v6535_v59, 0.0 }
0x1142   :  { %v6588_v60 = vpack.c.bf16 %v6578_v7, %v6577_v1 }
0x1143   :  { %v6587_v39 = vpack.c.bf16 %v6576_v42, %v6575_v44 }
0x1145   :  { %11121 = vmatmul.mubr.msk.bf16.gmra.mrb[92].mxu0 %vm6599_vm2, %v6584_v30 }
0x1146   :  { %6696 = vmatprep.mubr.bf16.mxu0 %v18449_v0 }
0x114d   :  { %11122 = vmatmul.mubr.msk.bf16.gmra.mrb[96].mxu0 %vm6599_vm2, %v6585_v5 }
0x114e   :  { %6706 = vmatprep.mubr.bf16.mxu0 %v18449_v0 }
0x1155   :  { %11123 = vmatmul.mubr.msk.bf16.gmra.mrb[100].mxu0 %vm6599_vm2, %v6586_v24 }
0x1156   :  { %6716 = vmatprep.mubr.bf16.mxu0 %v18449_v0 }
0x115d   :  { %11124 = vmatmul.mubr.msk.bf16.gmra.mrb[104].mxu0 %vm6599_vm2, %v6587_v39 }
0x115e   :  { %6726 = vmatprep.mubr.bf16.mxu0 %v18449_v0 }
0x1165   :  { %11125 = vmatmul.mubr.msk.bf16.gmra.mrb[108].mxu0 %vm6599_vm2, %v6588_v60 }
0x1200   :  { %v6658_v36 = vpop.f32.mrb[80].mxu0 }
0x1201   :  { %v6660_v14 = vpop.f32.mrb[81].mxu0 }
0x1202   :  { %v6662_v43 = vpop.f32.mrb[82].mxu0 }
0x1203   :  { %v17606_v30 = vpack.c.bf16 %v6662_v43, %v6658_v36  ;;  %v6664_v38 = vpop.f32.mrb[83].mxu0 }
0x1204   :  { %v17608_v62 = vpack.c.bf16 %v6664_v38, %v6660_v14 }
0x1205   :  { %6753 = vrot.lane.b32.xlu0 %v17606_v30, %s15763_s0 }
0x1208   :  { %v6668_v24 = vpop.f32.mrb[84].mxu0 }
0x1209   :  { %v6670_v11 = vpop.f32.mrb[85].mxu0 }
0x120a   :  { %v6672_v20 = vpop.f32.mrb[86].mxu0 }
0x120b   :  { %v17612_v57 = vpack.c.bf16 %v6672_v20, %v6668_v24  ;;  %v6674_v5 = vpop.f32.mrb[87].mxu0 }
0x120c   :  { %v17614_v63 = vpack.c.bf16 %v6674_v5, %v6670_v11 }
0x120d   :  { %6755 = vrot.lane.b32.xlu1 %v17612_v57, %s15763_s0 }
0x1210   :  { %v6678_v60 = vpop.f32.mrb[88].mxu0 }
0x1211   :  { %v6680_v23 = vpop.f32.mrb[89].mxu0 }
0x1212   :  { %v6682_v6 = vpop.f32.mrb[90].mxu0 }
0x1213   :  { %v17618_v1 = vpack.c.bf16 %v6682_v6, %v6678_v60  ;;  %v6684_v7 = vpop.f32.mrb[91].mxu0 }
0x1214   :  { %v17620_v59 = vpack.c.bf16 %v6684_v7, %v6680_v23 }
0x1215   :  { %6757 = vrot.lane.b32.xlu0 %v17618_v1, %s15763_s0 }
0x1218   :  { %v6688_v44 = vpop.f32.mrb[92].mxu0 }
0x1219   :  { %v6690_v42 = vpop.f32.mrb[93].mxu0 }
0x121a   :  { %v6692_v39 = vpop.f32.mrb[94].mxu0 }
0x121b   :  { %v17624_v36 = vpack.c.bf16 %v6692_v39, %v6688_v44  ;;  %v6694_v14 = vpop.f32.mrb[95].mxu0 }
0x121c   :  { %v17626_v43 = vpack.c.bf16 %v6694_v14, %v6690_v42 }
0x121d   :  { %6759 = vrot.lane.b32.xlu1 %v17624_v36, %s15763_s0 }
0x1220   :  { %v6698_v38 = vpop.f32.mrb[96].mxu0 }
0x1221   :  { %v6700_v24 = vpop.f32.mrb[97].mxu0 }
0x1222   :  { %v6702_v11 = vpop.f32.mrb[98].mxu0 }
0x1223   :  { %v17630_v20 = vpack.c.bf16 %v6702_v11, %v6698_v38  ;;  %v6704_v5 = vpop.f32.mrb[99].mxu0 }
0x1224   :  { %v17632_v60 = vpack.c.bf16 %v6704_v5, %v6700_v24 }
0x1225   :  { %6761 = vrot.lane.b32.xlu0 %v17630_v20, %s15763_s0 }
0x1226   :  { %18450 = vst [vmem:[#allocation123_spill] sm:$0xff] %v17632_v60 }
0x1228   :  { %v6708_v23 = vpop.f32.mrb[100].mxu0 }
0x1229   :  { %v6710_v6 = vpop.f32.mrb[101].mxu0 }
0x122a   :  { %v6712_v7 = vpop.f32.mrb[102].mxu0 }
0x122b   :  { %v17636_v44 = vpack.c.bf16 %v6712_v7, %v6708_v23  ;;  %v6714_v42 = vpop.f32.mrb[103].mxu0 }
0x122c   :  { %v17638_v39 = vpack.c.bf16 %v6714_v42, %v6710_v6 }
0x122d   :  { %6763 = vrot.lane.b32.xlu1 %v17636_v44, %s15763_s0 }
0x122e   :  { %18451 = vst [vmem:[#allocation124_spill] sm:$0xff] %v17638_v39 }
0x1230   :  { %v6718_v14 = vpop.f32.mrb[104].mxu0 }
0x1231   :  { %v6720_v38 = vpop.f32.mrb[105].mxu0 }
0x1232   :  { %v6722_v11 = vpop.f32.mrb[106].mxu0 }
0x1233   :  { %v17642_v0 = vpack.c.bf16 %v6722_v11, %v6718_v14  ;;  %v6724_v24 = vpop.f32.mrb[107].mxu0 }
0x1234   :  { %v17644_v5 = vpack.c.bf16 %v6724_v24, %v6720_v38 }
0x1235   :  { %6765 = vrot.lane.b32.xlu0 %v17642_v0, %s15763_s0 }
0x1238   :  { %v6728_v60 = vpop.f32.mrb[108].mxu0 }
0x1239   :  { %6971 = vrot.lane.b32.xlu0 %v17606_v30, %s15764_s22  ;;  %v6730_v23 = vpop.f32.mrb[109].mxu0 }
0x123a   :  { %v6732_v6 = vpop.f32.mrb[110].mxu0 }
0x123b   :  { %v17650_v7 = vpack.c.bf16 %v6732_v6, %v6728_v60  ;;  %v6734_v42 = vpop.f32.mrb[111].mxu0 }
0x123c   :  { %v17652_v39 = vpack.c.bf16 %v6734_v42, %v6730_v23 }
0x123d   :  { %6975 = vrot.lane.b32.xlu0 %v17618_v1, %s15764_s22  ;;  %6767 = vrot.lane.b32.xlu1 %v17650_v7, %s15763_s0 }
0x1241   :  { %6979 = vrot.lane.b32.xlu0 %v17630_v20, %s15764_s22  ;;  %6973 = vrot.lane.b32.xlu1 %v17612_v57, %s15764_s22 }
0x1245   :  { %6983 = vrot.lane.b32.xlu0 %v17642_v0, %s15764_s22  ;;  %6977 = vrot.lane.b32.xlu1 %v17624_v36, %s15764_s22 }
0x1249   :  { %7108 = vrot.lane.b32.xlu0 %v17606_v30, %s15765_s23  ;;  %6981 = vrot.lane.b32.xlu1 %v17636_v44, %s15764_s22 }
0x124d   :  { %7112 = vrot.lane.b32.xlu0 %v17618_v1, %s15765_s23  ;;  %6985 = vrot.lane.b32.xlu1 %v17650_v7, %s15764_s22 }
0x1251   :  { %7116 = vrot.lane.b32.xlu0 %v17630_v20, %s15765_s23  ;;  %7110 = vrot.lane.b32.xlu1 %v17612_v57, %s15765_s23 }
0x1255   :  { %7120 = vrot.lane.b32.xlu0 %v17642_v0, %s15765_s23  ;;  %7114 = vrot.lane.b32.xlu1 %v17624_v36, %s15765_s23 }
0x1259   :  { %7245 = vrot.lane.b32.xlu0 %v17606_v30, %s15740_s26  ;;  %7118 = vrot.lane.b32.xlu1 %v17636_v44, %s15765_s23 }
0x125d   :  { %7249 = vrot.lane.b32.xlu0 %v17618_v1, %s15740_s26  ;;  %7122 = vrot.lane.b32.xlu1 %v17650_v7, %s15765_s23 }
0x1261   :  { %7253 = vrot.lane.b32.xlu0 %v17630_v20, %s15740_s26  ;;  %7247 = vrot.lane.b32.xlu1 %v17612_v57, %s15740_s26 }
0x1265   :  { %7257 = vrot.lane.b32.xlu0 %v17642_v0, %s15740_s26  ;;  %7251 = vrot.lane.b32.xlu1 %v17624_v36, %s15740_s26 }
0x1269   :  { %7382 = vrot.lane.b32.xlu0 %v17606_v30, %s15766_s28  ;;  %7255 = vrot.lane.b32.xlu1 %v17636_v44, %s15740_s26 }
0x126d   :  { %7386 = vrot.lane.b32.xlu0 %v17618_v1, %s15766_s28  ;;  %7259 = vrot.lane.b32.xlu1 %v17650_v7, %s15740_s26 }
0x1271   :  { %7390 = vrot.lane.b32.xlu0 %v17630_v20, %s15766_s28  ;;  %7384 = vrot.lane.b32.xlu1 %v17612_v57, %s15766_s28 }
0x1275   :  { %7394 = vrot.lane.b32.xlu0 %v17642_v0, %s15766_s28  ;;  %7388 = vrot.lane.b32.xlu1 %v17624_v36, %s15766_s28 }
0x1277   :  { %v6754_v60 = vpop.permute.xlu0 %6753 }
0x1278   :  { %12973 = vmatprep.subr.bf16.mxu1 %v6754_v60 }
0x1279   :  { %12974 = vmatpush3.bf16.msra.mxu1 %v6754_v60  ;;  %7519 = vrot.lane.b32.xlu0 %v17606_v30, %s15767_s1  ;;  %v18459_v60 = vld [vmem:[#allocation101_spill] sm:$0xff] }
0x127a   :  { %7392 = vrot.lane.b32.xlu1 %v17636_v44, %s15766_s28 }
0x127d   :  { %7523 = vrot.lane.b32.xlu0 %v17618_v1, %s15767_s1 }
0x127e   :  { %7396 = vrot.lane.b32.xlu1 %v17650_v7, %s15766_s28 }
0x127f   :  { %v6756_v14 = vpop.permute.xlu1 %6755 }
0x1280   :  { %12975 = vmatprep.subr.bf16.mxu1 %v6756_v14 }
0x1281   :  { %12976 = vmatpush3.bf16.msra.mxu1 %v6756_v14  ;;  %7527 = vrot.lane.b32.xlu0 %v17630_v20, %s15767_s1 }
0x1282   :  { %7521 = vrot.lane.b32.xlu1 %v17612_v57, %s15767_s1 }
0x1285   :  { %7531 = vrot.lane.b32.xlu0 %v17642_v0, %s15767_s1 }
0x1286   :  { %7525 = vrot.lane.b32.xlu1 %v17624_v36, %s15767_s1 }
0x1287   :  { %v6758_v38 = vpop.permute.xlu0 %6757 }
0x1288   :  { %12977 = vmatprep.subr.bf16.mxu1 %v6758_v38 }
0x1289   :  { %12978 = vmatpush3.bf16.msra.mxu1 %v6758_v38  ;;  %7656 = vrot.lane.b32.xlu0 %v17606_v30, %s15768_s8  ;;  %v18460_v38 = vld [vmem:[#allocation102_spill] sm:$0xff] }
0x128a   :  { %7529 = vrot.lane.b32.xlu1 %v17636_v44, %s15767_s1 }
0x128d   :  { %7660 = vrot.lane.b32.xlu0 %v17618_v1, %s15768_s8 }
0x128e   :  { %7533 = vrot.lane.b32.xlu1 %v17650_v7, %s15767_s1 }
0x128f   :  { %v6760_v11 = vpop.permute.xlu1 %6759 }
0x1290   :  { %12979 = vmatprep.subr.bf16.mxu1 %v6760_v11 }
0x1291   :  { %12980 = vmatpush3.bf16.msra.mxu1 %v6760_v11  ;;  %7664 = vrot.lane.b32.xlu0 %v17630_v20, %s15768_s8 }
0x1292   :  { %7658 = vrot.lane.b32.xlu1 %v17612_v57, %s15768_s8 }
0x1295   :  { %7668 = vrot.lane.b32.xlu0 %v17642_v0, %s15768_s8 }
0x1296   :  { %7662 = vrot.lane.b32.xlu1 %v17624_v36, %s15768_s8 }
0x1297   :  { %v6762_v24 = vpop.permute.xlu0 %6761 }
0x1298   :  { %12981 = vmatprep.subr.bf16.mxu1 %v6762_v24 }
0x1299   :  { %12982 = vmatpush3.bf16.msra.mxu1 %v6762_v24  ;;  %v18461_v24 = vld [vmem:[#allocation103_spill] sm:$0xff] }
0x129a   :  { %7666 = vrot.lane.b32.xlu1 %v17636_v44, %s15768_s8 }
0x129e   :  { %7670 = vrot.lane.b32.xlu1 %v17650_v7, %s15768_s8 }
0x129f   :  { %v6764_v23 = vpop.permute.xlu1 %6763 }
0x12a0   :  { %12983 = vmatprep.subr.bf16.mxu1 %v6764_v23 }
0x12a1   :  { %12984 = vmatpush3.bf16.msra.mxu1 %v6764_v23 }
0x12a7   :  { %v6766_v6 = vpop.permute.xlu0 %6765 }
0x12a8   :  { %12985 = vmatprep.subr.bf16.mxu1 %v6766_v6 }
0x12a9   :  { %12986 = vmatpush3.bf16.msra.mxu1 %v6766_v6  ;;  %v18462_v6 = vld [vmem:[#allocation104_spill] sm:$0xff] }
0x12af   :  { %v6768_v42 = vpop.permute.xlu1 %6767 }
0x12b0   :  { %12987 = vmatprep.subr.bf16.mxu1 %v6768_v42 }
0x12b1   :  { %12988 = vmatpush3.bf16.msra.mxu1 %v6768_v42 }
0x12b2   :  { %13005 = vmatprep.subr.bf16.mxu1 %v17606_v30 }
0x12b4   :  { %12990 = vmatmul.mubr.bf16.vlgmr.msra.gmra.mrb[16].mxu1 %v17344_v9  ;;  %v6972_v9 = vpop.permute.xlu0 %6971 }
0x12b5   :  { %13006 = vmatpush3.bf16.msra.mxu1 %v17606_v30  ;;  %12993 = vmatprep.mubr.bf16.mxu1 %v17348_v22  ;;  %v6974_v22 = vpop.permute.xlu1 %6973  ;;  %v18455_v30 = vld [vmem:[#allocation97_spill] sm:$0xff] }
0x12b6   :  { %13007 = vmatprep.subr.bf16.mxu1 %v17612_v57 }
0x12b9   :  { %13008 = vmatpush3.bf16.msra.mxu1 %v17612_v57  ;;  %v18456_v57 = vld [vmem:[#allocation98_spill] sm:$0xff] }
0x12ba   :  { %13009 = vmatprep.subr.bf16.mxu1 %v17618_v1 }
0x12bc   :  { %12994 = vmatmul.mubr.bf16.gmra.mrb[20].mxu1 %v17354_v10  ;;  %v6976_v10 = vpop.permute.xlu0 %6975 }
0x12bd   :  { %13010 = vmatpush3.bf16.msra.mxu1 %v17618_v1  ;;  %12997 = vmatprep.mubr.bf16.mxu1 %v17358_v55 }
0x12be   :  { %13011 = vmatprep.subr.bf16.mxu1 %v17624_v36 }
0x12c0   :  { %v6980_v55 = vpop.permute.xlu0 %6979 }
0x12c1   :  { %13012 = vmatpush3.bf16.msra.mxu1 %v17624_v36  ;;  %v18457_v36 = vld [vmem:[#allocation99_spill] sm:$0xff] }
0x12c2   :  { %13013 = vmatprep.subr.bf16.mxu1 %v17630_v20 }
0x12c4   :  { %12998 = vmatmul.mubr.bf16.gmra.mrb[24].mxu1 %v17364_v21 }
0x12c5   :  { %13014 = vmatpush3.bf16.msra.mxu1 %v17630_v20  ;;  %13001 = vmatprep.mubr.bf16.mxu1 %v17368_v25  ;;  %v6984_v25 = vpop.permute.xlu0 %6983 }
0x12c6   :  { %13015 = vmatprep.subr.bf16.mxu1 %v17636_v44 }
0x12c9   :  { %13016 = vmatpush3.bf16.msra.mxu1 %v17636_v44  ;;  %v18458_v44 = vld [vmem:[#allocation100_spill] sm:$0xff] }
0x12ca   :  { %13017 = vmatprep.subr.bf16.mxu1 %v17642_v0 }
0x12cc   :  { %13002 = vmatmul.mubr.bf16.gmra.mrb[28].mxu1 %v17374_v33 }
0x12cd   :  { %13018 = vmatpush3.bf16.msra.mxu1 %v17642_v0  ;;  %13021 = vmatprep.mubr.bf16.mxu1 %v17378_v37  ;;  %v6978_v0 = vpop.permute.xlu1 %6977  ;;  %v7109_v37 = vpop.permute.xlu0 %7108 }
0x12ce   :  { %13019 = vmatprep.subr.bf16.mxu1 %v17650_v7 }
0x12d1   :  { %13020 = vmatpush3.bf16.msra.mxu1 %v17650_v7  ;;  %v6982_v21 = vpop.permute.xlu1 %6981 }
0x12d2   :  { %13037 = vmatprep.subr.bf16.mxu1 %v6972_v9 }
0x12d4   :  { %13022 = vmatmul.mubr.bf16.vlgmr.msra.gmra.mrb[16].mxu1 %v17383_v50 }
0x12d5   :  { %13038 = vmatpush3.bf16.msra.mxu1 %v6972_v9  ;;  %13025 = vmatprep.mubr.bf16.mxu1 %v17386_v2  ;;  %v6986_v33 = vpop.permute.xlu1 %6985  ;;  %v7113_v2 = vpop.permute.xlu0 %7112  ;;  %v18463_v9 = vld [vmem:[#allocation105_spill] sm:$0xff] }
0x12d6   :  { %13039 = vmatprep.subr.bf16.mxu1 %v6974_v22 }
0x12d9   :  { %13040 = vmatpush3.bf16.msra.mxu1 %v6974_v22  ;;  %v7111_v50 = vpop.permute.xlu1 %7110 }
0x12da   :  { %13041 = vmatprep.subr.bf16.mxu1 %v6976_v10 }
0x12dc   :  { %13026 = vmatmul.mubr.bf16.gmra.mrb[20].mxu1 %v17389_v26 }
0x12dd   :  { %13042 = vmatpush3.bf16.msra.mxu1 %v6976_v10  ;;  %13029 = vmatprep.mubr.bf16.mxu1 %v17392_v29  ;;  %v7115_v26 = vpop.permute.xlu1 %7114  ;;  %v7117_v29 = vpop.permute.xlu0 %7116  ;;  %v18464_v10 = vld [vmem:[#allocation106_spill] sm:$0xff] }
0x12de   :  { %13043 = vmatprep.subr.bf16.mxu1 %v6978_v0 }
0x12e1   :  { %13044 = vmatpush3.bf16.msra.mxu1 %v6978_v0 }
0x12e2   :  { %13045 = vmatprep.subr.bf16.mxu1 %v6980_v55 }
0x12e4   :  { %13030 = vmatmul.mubr.bf16.gmra.mrb[24].mxu1 %v17395_v45  ;;  %v7119_v45 = vpop.permute.xlu1 %7118 }
0x12e5   :  { %13046 = vmatpush3.bf16.msra.mxu1 %v6980_v55  ;;  %13033 = vmatprep.mubr.bf16.mxu1 %v17398_v53  ;;  %v7121_v53 = vpop.permute.xlu0 %7120  ;;  %v18465_v55 = vld [vmem:[#allocation107_spill] sm:$0xff] }
0x12e6   :  { %13047 = vmatprep.subr.bf16.mxu1 %v6982_v21 }
0x12e9   :  { %13048 = vmatpush3.bf16.msra.mxu1 %v6982_v21  ;;  %v18466_v21 = vld [vmem:[#allocation108_spill] sm:$0xff] }
0x12ea   :  { %13049 = vmatprep.subr.bf16.mxu1 %v6984_v25 }
0x12ec   :  { %13034 = vmatmul.mubr.bf16.gmra.mrb[28].mxu1 %v17401_v34  ;;  %v7123_v34 = vpop.permute.xlu1 %7122 }
0x12ed   :  { %13050 = vmatpush3.bf16.msra.mxu1 %v6984_v25  ;;  %13053 = vmatprep.mubr.bf16.mxu1 %v17404_v15  ;;  %v7246_v15 = vpop.permute.xlu0 %7245  ;;  %v18467_v25 = vld [vmem:[#allocation109_spill] sm:$0xff] }
0x12ee   :  { %13051 = vmatprep.subr.bf16.mxu1 %v6986_v33 }
0x12f1   :  { %13052 = vmatpush3.bf16.msra.mxu1 %v6986_v33  ;;  %v18468_v33 = vld [vmem:[#allocation110_spill] sm:$0xff] }
0x12f2   :  { %13069 = vmatprep.subr.bf16.mxu1 %v7109_v37 }
0x12f4   :  { %13054 = vmatmul.mubr.bf16.vlgmr.msra.gmra.mrb[16].mxu1 %v17407_v41  ;;  %v7248_v41 = vpop.permute.xlu1 %7247 }
0x12f5   :  { %13070 = vmatpush3.bf16.msra.mxu1 %v7109_v37  ;;  %13057 = vmatprep.mubr.bf16.mxu1 %v17410_v40  ;;  %v7250_v40 = vpop.permute.xlu0 %7249  ;;  %v18469_v37 = vld [vmem:[#allocation111_spill] sm:$0xff] }
0x12f6   :  { %13071 = vmatprep.subr.bf16.mxu1 %v7111_v50 }
0x12f9   :  { %13072 = vmatpush3.bf16.msra.mxu1 %v7111_v50  ;;  %v18470_v50 = vld [vmem:[#allocation123_spill] sm:$0xff] }
0x12fa   :  { %13073 = vmatprep.subr.bf16.mxu1 %v7113_v2 }
0x12fc   :  { %13058 = vmatmul.mubr.bf16.gmra.mrb[20].mxu1 %v17413_v3  ;;  %v7252_v3 = vpop.permute.xlu1 %7251 }
0x12fd   :  { %13074 = vmatpush3.bf16.msra.mxu1 %v7113_v2  ;;  %13061 = vmatprep.mubr.bf16.mxu1 %v17416_v27  ;;  %v7254_v27 = vpop.permute.xlu0 %7253  ;;  %v18472_v2 = vld [vmem:[#allocation113_spill] sm:$0xff] }
0x12fe   :  { %13075 = vmatprep.subr.bf16.mxu1 %v7115_v26 }
0x1301   :  { %13076 = vmatpush3.bf16.msra.mxu1 %v7115_v26  ;;  %v18475_v26 = vld [vmem:[#allocation115_spill] sm:$0xff] }
0x1302   :  { %13077 = vmatprep.subr.bf16.mxu1 %v7117_v29 }
0x1304   :  { %13062 = vmatmul.mubr.bf16.gmra.mrb[24].mxu1 %v17419_v51  ;;  %v7256_v51 = vpop.permute.xlu1 %7255 }
0x1305   :  { %13078 = vmatpush3.bf16.msra.mxu1 %v7117_v29  ;;  %13065 = vmatprep.mubr.bf16.mxu1 %v17422_v4  ;;  %v7258_v4 = vpop.permute.xlu0 %7257  ;;  %v18477_v29 = vld [vmem:[#allocation117_spill] sm:$0xff] }
0x1306   :  { %13079 = vmatprep.subr.bf16.mxu1 %v7119_v45 }
0x1309   :  { %13080 = vmatpush3.bf16.msra.mxu1 %v7119_v45  ;;  %v18478_v45 = vld [vmem:[#allocation118_spill] sm:$0xff] }
0x130a   :  { %13081 = vmatprep.subr.bf16.mxu1 %v7121_v53 }
0x130c   :  { %13066 = vmatmul.mubr.bf16.gmra.mrb[28].mxu1 %v17425_v48  ;;  %v7260_v48 = vpop.permute.xlu1 %7259 }
0x130d   :  { %13082 = vmatpush3.bf16.msra.mxu1 %v7121_v53  ;;  %13085 = vmatprep.mubr.bf16.mxu1 %v17428_v46  ;;  %v7383_v46 = vpop.permute.xlu0 %7382  ;;  %v18479_v53 = vld [vmem:[#allocation119_spill] sm:$0xff] }
0x130e   :  { %13083 = vmatprep.subr.bf16.mxu1 %v7123_v34 }
0x1311   :  { %13084 = vmatpush3.bf16.msra.mxu1 %v7123_v34  ;;  %v18480_v34 = vld [vmem:[#allocation120_spill] sm:$0xff] }
0x1312   :  { %13101 = vmatprep.subr.bf16.mxu1 %v7246_v15 }
0x1314   :  { %13086 = vmatmul.mubr.bf16.vlgmr.msra.gmra.mrb[16].mxu1 %v17431_v13  ;;  %v7385_v13 = vpop.permute.xlu1 %7384 }
0x1315   :  { %13102 = vmatpush3.bf16.msra.mxu1 %v7246_v15  ;;  %13089 = vmatprep.mubr.bf16.mxu1 %v17434_v17  ;;  %v7387_v17 = vpop.permute.xlu0 %7386  ;;  %v18481_v15 = vld [vmem:[#allocation121_spill] sm:$0xff] }
0x1316   :  { %13103 = vmatprep.subr.bf16.mxu1 %v7248_v41 }
0x1319   :  { %13104 = vmatpush3.bf16.msra.mxu1 %v7248_v41  ;;  %v18482_v41 = vld [vmem:[#allocation122_spill] sm:$0xff] }
0x131a   :  { %13105 = vmatprep.subr.bf16.mxu1 %v7250_v40 }
0x131c   :  { %13090 = vmatmul.mubr.bf16.gmra.mrb[20].mxu1 %v17437_v8  ;;  %v7389_v8 = vpop.permute.xlu1 %7388 }
0x131d   :  { %13106 = vmatpush3.bf16.msra.mxu1 %v7250_v40  ;;  %13093 = vmatprep.mubr.bf16.mxu1 %v17440_v19  ;;  %v7391_v19 = vpop.permute.xlu0 %7390 }
0x131e   :  { %13107 = vmatprep.subr.bf16.mxu1 %v7252_v3 }
0x1321   :  { %13108 = vmatpush3.bf16.msra.mxu1 %v7252_v3 }
0x1322   :  { %13109 = vmatprep.subr.bf16.mxu1 %v7254_v27 }
0x1324   :  { %13094 = vmatmul.mubr.bf16.gmra.mrb[24].mxu1 %v17443_v12  ;;  %v7393_v12 = vpop.permute.xlu1 %7392 }
0x1325   :  { %13110 = vmatpush3.bf16.msra.mxu1 %v7254_v27  ;;  %13097 = vmatprep.mubr.bf16.mxu1 %v17446_v18  ;;  %v7395_v18 = vpop.permute.xlu0 %7394 }
0x1326   :  { %13111 = vmatprep.subr.bf16.mxu1 %v7256_v51 }
0x1329   :  { %13112 = vmatpush3.bf16.msra.mxu1 %v7256_v51 }
0x132a   :  { %13113 = vmatprep.subr.bf16.mxu1 %v7258_v4 }
0x132c   :  { %13098 = vmatmul.mubr.bf16.gmra.mrb[28].mxu1 %v17449_v31  ;;  %v14514_v31 = vld [vmem:[#allocation14] sm:$0xff]  }
0x132d   :  { %13114 = vmatpush3.bf16.msra.mxu1 %v7258_v4  ;;  %13117 = vmatprep.mubr.bf16.mxu1 %v17452_v49  ;;  %v7397_v49 = vpop.permute.xlu1 %7396 }
0x132e   :  { %13115 = vmatprep.subr.bf16.mxu1 %v7260_v48  ;;  %13261 = vmatprep.subr.bf16.mxu0 %v14514_v31 }
0x132f   :  { %13262 = vmatpush3.bf16.msra.mxu0 %v14514_v31 }
0x1331   :  { %13116 = vmatpush3.bf16.msra.mxu1 %v7260_v48 }
0x1332   :  { %13133 = vmatprep.subr.bf16.mxu1 %v7383_v46 }
0x1334   :  { %13118 = vmatmul.mubr.bf16.vlgmr.msra.gmra.mrb[16].mxu1 %v17455_v52  ;;  %v7520_v52 = vpop.permute.xlu0 %7519 }
0x1335   :  { %13134 = vmatpush3.bf16.msra.mxu1 %v7383_v46  ;;  %13121 = vmatprep.mubr.bf16.mxu1 %v17458_v35  ;;  %v7522_v35 = vpop.permute.xlu1 %7521 }
0x1336   :  { %13135 = vmatprep.subr.bf16.mxu1 %v7385_v13 }
0x1339   :  { %13136 = vmatpush3.bf16.msra.mxu1 %v7385_v13 }
0x133a   :  { %13137 = vmatprep.subr.bf16.mxu1 %v7387_v17 }
0x133c   :  { %13122 = vmatmul.mubr.bf16.gmra.mrb[20].mxu1 %v17461_v32  ;;  %v7524_v32 = vpop.permute.xlu0 %7523 }
0x133d   :  { %13138 = vmatpush3.bf16.msra.mxu1 %v7387_v17  ;;  %13125 = vmatprep.mubr.bf16.mxu1 %v17464_v61  ;;  %v18452_v61 = vld [vmem:[#allocation94_spill] sm:$0xff] }
0x133e   :  { %13139 = vmatprep.subr.bf16.mxu1 %v7389_v8 }
0x1341   :  { %13140 = vmatpush3.bf16.msra.mxu1 %v7389_v8 }
0x1342   :  { %13141 = vmatprep.subr.bf16.mxu1 %v7391_v19 }
0x1344   :  { %13126 = vmatmul.mubr.bf16.gmra.mrb[24].mxu1 %v17467_v56  ;;  %v7526_v56 = vpop.permute.xlu1 %7525 }
0x1345   :  { %13142 = vmatpush3.bf16.msra.mxu1 %v7391_v19  ;;  %13129 = vmatprep.mubr.bf16.mxu1 %v17470_v58  ;;  %v18453_v58 = vld [vmem:[#allocation95_spill] sm:$0xff] }
0x1346   :  { %13143 = vmatprep.subr.bf16.mxu1 %v7393_v12 }
0x1349   :  { %13144 = vmatpush3.bf16.msra.mxu1 %v7393_v12 }
0x134a   :  { %13145 = vmatprep.subr.bf16.mxu1 %v7395_v18 }
0x134c   :  { %13130 = vmatmul.mubr.bf16.gmra.mrb[28].mxu1 %v17473_v28  ;;  %v7528_v28 = vpop.permute.xlu0 %7527 }
0x134d   :  { %13146 = vmatpush3.bf16.msra.mxu1 %v7395_v18  ;;  %13149 = vmatprep.mubr.bf16.mxu1 %v17478_v54  ;;  %v18454_v54 = vld [vmem:[#allocation96_spill] sm:$0xff] }
0x134e   :  { %13147 = vmatprep.subr.bf16.mxu1 %v7397_v49 }
0x1351   :  { %13148 = vmatpush3.bf16.msra.mxu1 %v7397_v49 }
0x1352   :  { %13165 = vmatprep.subr.bf16.mxu1 %v7520_v52 }
0x1354   :  { %13150 = vmatmul.mubr.bf16.vlgmr.msra.gmra.mrb[16].mxu1 %v17481_v16  ;;  %v7530_v16 = vpop.permute.xlu1 %7529 }
0x1355   :  { %13166 = vmatpush3.bf16.msra.mxu1 %v7520_v52  ;;  %13153 = vmatprep.mubr.bf16.mxu1 %v17484_v47  ;;  %v7532_v47 = vpop.permute.xlu0 %7531 }
0x1356   :  { %13167 = vmatprep.subr.bf16.mxu1 %v7522_v35 }
0x1358   :  { %v7534_v1 = vpop.permute.xlu1 %7533 }
0x1359   :  { %13168 = vmatpush3.bf16.msra.mxu1 %v7522_v35  ;;  %v7657_v20 = vpop.permute.xlu0 %7656 }
0x135a   :  { %13169 = vmatprep.subr.bf16.mxu1 %v7524_v32 }
0x135c   :  { %13154 = vmatmul.mubr.bf16.gmra.mrb[20].mxu1 %v18452_v61  ;;  %v7659_v7 = vpop.permute.xlu1 %7658 }
0x135d   :  { %13170 = vmatpush3.bf16.msra.mxu1 %v7524_v32  ;;  %13157 = vmatprep.mubr.bf16.mxu1 %v18453_v58  ;;  %v7661_v14 = vpop.permute.xlu0 %7660 }
0x135e   :  { %13171 = vmatprep.subr.bf16.mxu1 %v7526_v56 }
0x1360   :  { %v7663_v11 = vpop.permute.xlu1 %7662 }
0x1361   :  { %13172 = vmatpush3.bf16.msra.mxu1 %v7526_v56  ;;  %v7665_v23 = vpop.permute.xlu0 %7664 }
0x1362   :  { %13173 = vmatprep.subr.bf16.mxu1 %v7528_v28 }
0x1364   :  { %13158 = vmatmul.mubr.bf16.gmra.mrb[24].mxu1 %v18454_v54  ;;  %v7667_v42 = vpop.permute.xlu1 %7666 }
0x1365   :  { %13174 = vmatpush3.bf16.msra.mxu1 %v7528_v28  ;;  %13161 = vmatprep.mubr.bf16.mxu1 %v18455_v30  ;;  %v7669_v22 = vpop.permute.xlu0 %7668 }
0x1366   :  { %13175 = vmatprep.subr.bf16.mxu1 %v7530_v16 }
0x1368   :  { %v7671_v0 = vpop.permute.xlu1 %7670 }
0x1369   :  { %13176 = vmatpush3.bf16.msra.mxu1 %v7530_v16 }
0x136a   :  { %13177 = vmatprep.subr.bf16.mxu1 %v7532_v47 }
0x136c   :  { %13162 = vmatmul.mubr.bf16.gmra.mrb[28].mxu1 %v18456_v57 }
0x136d   :  { %13178 = vmatpush3.bf16.msra.mxu1 %v7532_v47  ;;  %13181 = vmatprep.mubr.bf16.mxu1 %v18457_v36 }
0x136e   :  { %13179 = vmatprep.subr.bf16.mxu1 %v7534_v1 }
0x1371   :  { %13180 = vmatpush3.bf16.msra.mxu1 %v7534_v1 }
0x1372   :  { %13197 = vmatprep.subr.bf16.mxu1 %v7657_v20 }
0x1374   :  { %13182 = vmatmul.mubr.bf16.vlgmr.msra.gmra.mrb[16].mxu1 %v18458_v44 }
0x1375   :  { %13198 = vmatpush3.bf16.msra.mxu1 %v7657_v20  ;;  %13185 = vmatprep.mubr.bf16.mxu1 %v18459_v60 }
0x1376   :  { %13199 = vmatprep.subr.bf16.mxu1 %v7659_v7 }
0x1379   :  { %13200 = vmatpush3.bf16.msra.mxu1 %v7659_v7 }
0x137a   :  { %13201 = vmatprep.subr.bf16.mxu1 %v7661_v14 }
0x137c   :  { %13186 = vmatmul.mubr.bf16.gmra.mrb[20].mxu1 %v18460_v38 }
0x137d   :  { %13202 = vmatpush3.bf16.msra.mxu1 %v7661_v14  ;;  %13189 = vmatprep.mubr.bf16.mxu1 %v18461_v24 }
0x137e   :  { %13203 = vmatprep.subr.bf16.mxu1 %v7663_v11 }
0x1381   :  { %13204 = vmatpush3.bf16.msra.mxu1 %v7663_v11 }
0x1382   :  { %13205 = vmatprep.subr.bf16.mxu1 %v7665_v23 }
0x1384   :  { %13190 = vmatmul.mubr.bf16.gmra.mrb[24].mxu1 %v18462_v6  ;;  %v17886_v6 = vld [vmem:[%s18483_s17 + $0x40] sm:$0xff]  }
0x1385   :  { %13206 = vmatpush3.bf16.msra.mxu1 %v7665_v23  ;;  %13193 = vmatprep.mubr.bf16.mxu1 %v18463_v9 }
0x1386   :  { %13207 = vmatprep.subr.bf16.mxu1 %v7667_v42 }
0x1389   :  { %13208 = vmatpush3.bf16.msra.mxu1 %v7667_v42 }
0x138a   :  { %13209 = vmatprep.subr.bf16.mxu1 %v7669_v22 }
0x138c   :  { %13194 = vmatmul.mubr.bf16.gmra.mrb[28].mxu1 %v18464_v10 }
0x138d   :  { %13210 = vmatpush3.bf16.msra.mxu1 %v7669_v22  ;;  %13213 = vmatprep.mubr.bf16.mxu1 %v18465_v55 }
0x138e   :  { %13211 = vmatprep.subr.bf16.mxu1 %v7671_v0 }
0x1391   :  { %13212 = vmatpush3.bf16.msra.mxu1 %v7671_v0 }
0x1392   :  { %13229 = vmatprep.subr.bf16.mxu1 %v17608_v62 }
0x1394   :  { %13214 = vmatmul.mubr.bf16.vlgmr.msra.gmra.mrb[16].mxu1 %v18466_v21 }
0x1395   :  { %13230 = vmatpush3.bf16.msra.mxu1 %v17608_v62  ;;  %13217 = vmatprep.mubr.bf16.mxu1 %v18467_v25  ;;  %v18471_v62 = vld [vmem:[#allocation112_spill] sm:$0xff] }
0x1396   :  { %13231 = vmatprep.subr.bf16.mxu1 %v17614_v63 }
0x1399   :  { %13232 = vmatpush3.bf16.msra.mxu1 %v17614_v63  ;;  %v18473_v63 = vld [vmem:[#allocation124_spill] sm:$0xff] }
0x139a   :  { %13233 = vmatprep.subr.bf16.mxu1 %v17620_v59 }
0x139c   :  { %13218 = vmatmul.mubr.bf16.gmra.mrb[20].mxu1 %v18468_v33 }
0x139d   :  { %13234 = vmatpush3.bf16.msra.mxu1 %v17620_v59  ;;  %13221 = vmatprep.mubr.bf16.mxu1 %v18469_v37  ;;  %v18474_v59 = vld [vmem:[#allocation114_spill] sm:$0xff] }
0x139e   :  { %13235 = vmatprep.subr.bf16.mxu1 %v17626_v43 }
0x13a1   :  { %13236 = vmatpush3.bf16.msra.mxu1 %v17626_v43  ;;  %v18476_v43 = vld [vmem:[#allocation116_spill] sm:$0xff] }
0x13a2   :  { %13237 = vmatprep.subr.bf16.mxu1 %v18470_v50 }
0x13a4   :  { %13222 = vmatmul.mubr.bf16.gmra.mrb[24].mxu1 %v18471_v62 }
0x13a5   :  { %13238 = vmatpush3.bf16.msra.mxu1 %v18470_v50  ;;  %13225 = vmatprep.mubr.bf16.mxu1 %v18472_v2 }
0x13a6   :  { %13239 = vmatprep.subr.bf16.mxu1 %v18473_v63 }
0x13a9   :  { %13240 = vmatpush3.bf16.msra.mxu1 %v18473_v63 }
0x13aa   :  { %13241 = vmatprep.subr.bf16.mxu1 %v17644_v5 }
0x13ac   :  { %13226 = vmatmul.mubr.bf16.gmra.mrb[28].mxu1 %v18474_v59 }
0x13ad   :  { %13242 = vmatpush3.bf16.msra.mxu1 %v17644_v5  ;;  %13245 = vmatprep.mubr.bf16.mxu1 %v18475_v26 }
0x13ae   :  { %13243 = vmatprep.subr.bf16.mxu1 %v17652_v39 }
0x13b1   :  { %13244 = vmatpush3.bf16.msra.mxu1 %v17652_v39 }
0x13b4   :  { %13246 = vmatmul.mubr.bf16.vlgmr.msra.gmra.mrb[16].mxu1 %v18476_v43 }
0x13b5   :  { %13249 = vmatprep.mubr.bf16.mxu1 %v18477_v29 }
0x13bc   :  { %13250 = vmatmul.mubr.bf16.gmra.mrb[20].mxu1 %v18478_v45 }
0x13bd   :  { %13253 = vmatprep.mubr.bf16.mxu1 %v18479_v53 }
0x13c4   :  { %13254 = vmatmul.mubr.bf16.gmra.mrb[24].mxu1 %v18480_v34 }
0x13c5   :  { %13257 = vmatprep.mubr.bf16.mxu1 %v18481_v15 }
0x13cc   :  { %13258 = vmatmul.mubr.bf16.gmra.mrb[28].mxu1 %v18482_v41 }
0x1487   :  { %v13247_v5 = vpop.f32.mrb[16].mxu1 }
0x1488   :  { %v7835_v40 = vpop.f32.mrb[17].mxu1  ;;  %v7932_v27 = vmax.f32 %v13247_v5, 0.0 }
0x1489   :  { %v13248_v3 = vpop.f32.mrb[18].mxu1  ;;  %v7930_v4 = vmax.f32 %v7835_v40, 0.0  ;;  %v14519_v40 = vld [vmem:[%s18484_s7 + $0x4] ss:$8 sps:$4 sm:$0xff]  }
0x148a   :  { %v7933_v51 = vmax.f32 %v13248_v3, 0.0  ;;  %v7838_v39 = vpop.f32.mrb[19].mxu1  ;;  %v17891_v3 = vld [vmem:[%s18483_s17 + $0x48] sm:$0xff]  }
0x148b   :  { %v7931_v48 = vmax.f32 %v7838_v39, 0.0 }
0x148c   :  { %v17853_v46 = vpack.c.bf16 %v7933_v51, %v7932_v27  ;;  %v14517_v27 = vld [vmem:[%s18484_s7] ss:$8 sps:$4 sm:$0xff]   ;;  %v18485_v51 = vmov 0  }
0x148d   :  { %v17855_v13 = vpack.c.bf16 %v7931_v48, %v7930_v4 }
0x148f   :  { %v13251_v17 = vpop.f32.mrb[20].mxu1  ;;  %13263 = vmatprep.mubr.msk.bf16.mxu0 %vm6599_vm2, %v17855_v13 }
0x1490   :  { %v7851_v8 = vpop.f32.mrb[21].mxu1  ;;  %13264 = vmatmul.mubr.msk.bf16.vlgmr.msra.gmra.mrb[112].mxu0 %vm6599_vm2, %v17853_v46  ;;  %v7936_v12 = vmax.f32 %v13251_v17, 0.0 }
0x1491   :  { %v13252_v19 = vpop.f32.mrb[22].mxu1  ;;  %v7934_v49 = vmax.f32 %v7851_v8, 0.0 }
0x1492   :  { %v7937_v18 = vmax.f32 %v13252_v19, 0.0  ;;  %v7854_v31 = vpop.f32.mrb[23].mxu1 }
0x1493   :  { %v7935_v52 = vmax.f32 %v7854_v31, 0.0 }
0x1494   :  { %v17861_v35 = vpack.c.bf16 %v7937_v18, %v7936_v12 }
0x1495   :  { %v17863_v32 = vpack.c.bf16 %v7935_v52, %v7934_v49 }
0x1497   :  { %v13255_v61 = vpop.f32.mrb[24].mxu1  ;;  %13267 = vmatprep.mubr.msk.bf16.mxu0 %vm6599_vm2, %v17863_v32 }
0x1498   :  { %v7867_v56 = vpop.f32.mrb[25].mxu1  ;;  %13268 = vmatmul.mubr.msk.bf16.gmra.mrb[116].mxu0 %vm6599_vm2, %v17861_v35  ;;  %v7940_v28 = vmax.f32 %v13255_v61, 0.0 }
0x1499   :  { %v13256_v58 = vpop.f32.mrb[26].mxu1  ;;  %v7938_v30 = vmax.f32 %v7867_v56, 0.0 }
0x149a   :  { %v7941_v54 = vmax.f32 %v13256_v58, 0.0  ;;  %v7870_v16 = vpop.f32.mrb[27].mxu1 }
0x149b   :  { %v7939_v47 = vmax.f32 %v7870_v16, 0.0 }
0x149c   :  { %v17869_v57 = vpack.c.bf16 %v7941_v54, %v7940_v28 }
0x149d   :  { %v17871_v1 = vpack.c.bf16 %v7939_v47, %v7938_v30 }
0x149f   :  { %v13259_v36 = vpop.f32.mrb[28].mxu1  ;;  %13271 = vmatprep.mubr.msk.bf16.mxu0 %vm6599_vm2, %v17871_v1 }
0x14a0   :  { %v7883_v20 = vpop.f32.mrb[29].mxu1  ;;  %13272 = vmatmul.mubr.msk.bf16.gmra.mrb[120].mxu0 %vm6599_vm2, %v17869_v57  ;;  %v7944_v7 = vmax.f32 %v13259_v36, 0.0 }
0x14a1   :  { %v13260_v44 = vpop.f32.mrb[30].mxu1  ;;  %v7942_v38 = vmax.f32 %v7883_v20, 0.0 }
0x14a2   :  { %v7945_v60 = vmax.f32 %v13260_v44, 0.0  ;;  %v7886_v14 = vpop.f32.mrb[31].mxu1 }
0x14a3   :  { %v7943_v11 = vmax.f32 %v7886_v14, 0.0 }
0x14a4   :  { %v17877_v24 = vpack.c.bf16 %v7945_v60, %v7944_v7 }
0x14a5   :  { %v17879_v23 = vpack.c.bf16 %v7943_v11, %v7942_v38 }
0x14a7   :  { %13275 = vmatprep.mubr.msk.bf16.mxu0 %vm6599_vm2, %v17879_v23 }
0x14a8   :  { %13276 = vmatmul.mubr.msk.bf16.gmra.mrb[124].mxu0 %vm6599_vm2, %v17877_v24 }
0x14a9   :  { %13295 = vmatprep.mubr.bf16.mxu0 %v17886_v6 }
0x1563   :  { %v13265_v42 = vpop.f32.mrb[112].mxu0 }
0x1564   :  { %v8025_v9 = vpop.f32.mrb[113].mxu0 }
0x1565   :  { %v13266_v22 = vpop.f32.mrb[114].mxu0 }
0x1566   :  { %v8089_v10 = vpack.c.bf16 %v13266_v22, %v13265_v42  ;;  %v8028_v0 = vpop.f32.mrb[115].mxu0 }
0x1567   :  { %v8088_v55 = vpack.c.bf16 %v8028_v0, %v8025_v9 }
0x1569   :  { %13279 = vmatprep.subr.bf16.mxu0 %v8088_v55 }
0x156a   :  { %13280 = vmatpush3.bf16.msra.mxu0 %v8088_v55 }
0x156b   :  { %v13269_v21 = vpop.f32.mrb[116].mxu0  ;;  %13281 = vmatprep.subr.bf16.mxu0 %v8089_v10 }
0x156c   :  { %v8041_v25 = vpop.f32.mrb[117].mxu0 }
0x156d   :  { %v13270_v33 = vpop.f32.mrb[118].mxu0 }
0x156e   :  { %v8091_v37 = vpack.c.bf16 %v13270_v33, %v13269_v21  ;;  %v8044_v50 = vpop.f32.mrb[119].mxu0  ;;  %13282 = vmatpush3.bf16.msra.mxu0 %v8089_v10  ;;  %v14520_v21 = vld [vmem:[%s18483_s17 + $0x10] sm:$0xff]  }
0x156f   :  { %v8090_v62 = vpack.c.bf16 %v8044_v50, %v8041_v25 }
0x1571   :  { %13283 = vmatprep.subr.bf16.mxu0 %v8090_v62 }
0x1572   :  { %13284 = vmatpush3.bf16.msra.mxu0 %v8090_v62 }
0x1573   :  { %v13273_v2 = vpop.f32.mrb[120].mxu0  ;;  %13285 = vmatprep.subr.bf16.mxu0 %v8091_v37 }
0x1574   :  { %v8057_v63 = vpop.f32.mrb[121].mxu0 }
0x1575   :  { %v13274_v59 = vpop.f32.mrb[122].mxu0 }
0x1576   :  { %v8093_v26 = vpack.c.bf16 %v13274_v59, %v13273_v2  ;;  %v8060_v43 = vpop.f32.mrb[123].mxu0  ;;  %13286 = vmatpush3.bf16.msra.mxu0 %v8091_v37 }
0x1577   :  { %v8092_v29 = vpack.c.bf16 %v8060_v43, %v8057_v63 }
0x1579   :  { %13287 = vmatprep.subr.bf16.mxu0 %v8092_v29 }
0x157a   :  { %13288 = vmatpush3.bf16.msra.mxu0 %v8092_v29 }
0x157b   :  { %v13277_v45 = vpop.f32.mrb[124].mxu0  ;;  %13289 = vmatprep.subr.bf16.mxu0 %v8093_v26 }
0x157c   :  { %v8073_v53 = vpop.f32.mrb[125].mxu0 }
0x157d   :  { %v13278_v34 = vpop.f32.mrb[126].mxu0 }
0x157e   :  { %v8095_v15 = vpack.c.bf16 %v13278_v34, %v13277_v45  ;;  %v8076_v41 = vpop.f32.mrb[127].mxu0  ;;  %13290 = vmatpush3.bf16.msra.mxu0 %v8093_v26 }
0x157f   :  { %v8094_v5 = vpack.c.bf16 %v8076_v41, %v8073_v53  ;;  %v14521_v41 = vld [vmem:[%s18483_s17 + $0x18] sm:$0xff]  }
0x1581   :  { %13291 = vmatprep.subr.bf16.mxu0 %v8094_v5 }
0x1582   :  { %13292 = vmatpush3.bf16.msra.mxu0 %v8094_v5  ;;  %v14522_v5 = vld [vmem:[%s18483_s17] sm:$0xff]  }
0x1583   :  { %13293 = vmatprep.subr.bf16.mxu0 %v8095_v15 }
0x1586   :  { %13294 = vmatpush3.bf16.msra.mxu0 %v8095_v15 }
0x1587   :  { %8169 = vmatprep.subr.bf16.mxu0 %v14519_v40  ;;  %v14523_v40 = vld [vmem:[%s18483_s17 + $0x8] sm:$0xff]  }
0x1589   :  { %13296 = vmatmul.mubr.bf16.vlgmr.msra.gmra.mrb[128].mxu0 %v17891_v3 }
0x158a   :  { %8170 = vmatpush1.bf16.msra.mxu0 %v14517_v27  ;;  %8201 = vmatprep.mubr.bf16.mxu0 %v18485_v51 }
0x1591   :  { %11143 = vmatmul.mubr.msk.bf16.vlgmr.msra.gmra.mrb[132].mxu0 %vm6599_vm2, %v17855_v13 }
0x1592   :  { %8211 = vmatprep.mubr.bf16.mxu0 %v18485_v51 }
0x1599   :  { %11144 = vmatmul.mubr.msk.bf16.gmra.mrb[136].mxu0 %vm6599_vm2, %v17853_v46 }
0x159a   :  { %8221 = vmatprep.mubr.bf16.mxu0 %v18485_v51 }
0x15a1   :  { %11145 = vmatmul.mubr.msk.bf16.gmra.mrb[140].mxu0 %vm6599_vm2, %v17863_v32 }
0x15a2   :  { %8231 = vmatprep.mubr.bf16.mxu0 %v18485_v51 }
0x15a9   :  { %11146 = vmatmul.mubr.msk.bf16.gmra.mrb[144].mxu0 %vm6599_vm2, %v17861_v35 }
0x15aa   :  { %8241 = vmatprep.mubr.bf16.mxu0 %v18485_v51 }
0x15b1   :  { %11147 = vmatmul.mubr.msk.bf16.gmra.mrb[148].mxu0 %vm6599_vm2, %v17871_v1 }
0x15b2   :  { %8251 = vmatprep.mubr.bf16.mxu0 %v18485_v51 }
0x15b9   :  { %11148 = vmatmul.mubr.msk.bf16.gmra.mrb[152].mxu0 %vm6599_vm2, %v17869_v57 }
0x15ba   :  { %8261 = vmatprep.mubr.bf16.mxu0 %v18485_v51 }
0x15c1   :  { %11149 = vmatmul.mubr.msk.bf16.gmra.mrb[156].mxu0 %vm6599_vm2, %v17879_v23 }
0x15c2   :  { %8271 = vmatprep.mubr.bf16.mxu0 %v18485_v51 }
0x15c9   :  { %11150 = vmatmul.mubr.msk.bf16.gmra.mrb[160].mxu0 %vm6599_vm2, %v17877_v24 }
0x15ca   :  { %13315 = vmatprep.mubr.bf16.mxu0 %v14520_v21 }
0x1664   :  { %v8203_v39 = vpop.f32.mrb[132].mxu0 }
0x1665   :  { %v8205_v4 = vpop.f32.mrb[133].mxu0 }
0x1666   :  { %v8207_v48 = vpop.f32.mrb[134].mxu0 }
0x1667   :  { %v17919_v46 = vpack.c.bf16 %v8207_v48, %v8203_v39  ;;  %v8209_v13 = vpop.f32.mrb[135].mxu0  ;;  %v14524_v39 = vld [vmem:[%s18483_s17 + $0x20] sm:$0xff]  }
0x1668   :  { %v17921_v17 = vpack.c.bf16 %v8209_v13, %v8205_v4 }
0x1669   :  { %8319 = vrot.lane.b32.xlu0 %v17919_v46, %s15771_s30 }
0x166c   :  { %v8213_v8 = vpop.f32.mrb[136].mxu0 }
0x166d   :  { %v8215_v19 = vpop.f32.mrb[137].mxu0 }
0x166e   :  { %v8217_v12 = vpop.f32.mrb[138].mxu0 }
0x166f   :  { %v17925_v18 = vpack.c.bf16 %v8217_v12, %v8213_v8  ;;  %v8219_v31 = vpop.f32.mrb[139].mxu0 }
0x1670   :  { %v17927_v49 = vpack.c.bf16 %v8219_v31, %v8215_v19 }
0x1671   :  { %8321 = vrot.lane.b32.xlu1 %v17925_v18, %s15771_s30 }
0x1674   :  { %v8223_v52 = vpop.f32.mrb[140].mxu0 }
0x1675   :  { %v8225_v35 = vpop.f32.mrb[141].mxu0 }
0x1676   :  { %v8227_v32 = vpop.f32.mrb[142].mxu0 }
0x1677   :  { %v17931_v61 = vpack.c.bf16 %v8227_v32, %v8223_v52  ;;  %v8229_v56 = vpop.f32.mrb[143].mxu0 }
0x1678   :  { %v17933_v58 = vpack.c.bf16 %v8229_v56, %v8225_v35 }
0x1679   :  { %8323 = vrot.lane.b32.xlu0 %v17931_v61, %s15771_s30 }
0x167c   :  { %v8233_v28 = vpop.f32.mrb[144].mxu0 }
0x167d   :  { %v8235_v54 = vpop.f32.mrb[145].mxu0 }
0x167e   :  { %v8237_v16 = vpop.f32.mrb[146].mxu0 }
0x167f   :  { %v17937_v30 = vpack.c.bf16 %v8237_v16, %v8233_v28  ;;  %v8239_v47 = vpop.f32.mrb[147].mxu0 }
0x1680   :  { %v17939_v57 = vpack.c.bf16 %v8239_v47, %v8235_v54  ;;  %v14527_v47 = vld [vmem:[%s18483_s17 + $0x38] sm:$0xff]  }
0x1681   :  { %8325 = vrot.lane.b32.xlu1 %v17937_v30, %s15771_s30 }
0x1684   :  { %v8243_v1 = vpop.f32.mrb[148].mxu0 }
0x1685   :  { %v8245_v36 = vpop.f32.mrb[149].mxu0 }
0x1686   :  { %v8247_v20 = vpop.f32.mrb[150].mxu0 }
0x1687   :  { %v17943_v44 = vpack.c.bf16 %v8247_v20, %v8243_v1  ;;  %v8249_v7 = vpop.f32.mrb[151].mxu0 }
0x1688   :  { %v17945_v60 = vpack.c.bf16 %v8249_v7, %v8245_v36 }
0x1689   :  { %8327 = vrot.lane.b32.xlu0 %v17943_v44, %s15771_s30 }
0x168c   :  { %v8253_v14 = vpop.f32.mrb[152].mxu0 }
0x168d   :  { %v8255_v38 = vpop.f32.mrb[153].mxu0 }
0x168e   :  { %v8257_v11 = vpop.f32.mrb[154].mxu0 }
0x168f   :  { %v17949_v24 = vpack.c.bf16 %v8257_v11, %v8253_v14  ;;  %v8259_v23 = vpop.f32.mrb[155].mxu0 }
0x1690   :  { %v17951_v42 = vpack.c.bf16 %v8259_v23, %v8255_v38 }
0x1691   :  { %8329 = vrot.lane.b32.xlu1 %v17949_v24, %s15771_s30 }
0x1694   :  { %v8263_v9 = vpop.f32.mrb[156].mxu0 }
0x1695   :  { %v8265_v22 = vpop.f32.mrb[157].mxu0 }
0x1696   :  { %v8267_v10 = vpop.f32.mrb[158].mxu0 }
0x1697   :  { %v17955_v0 = vpack.c.bf16 %v8267_v10, %v8263_v9  ;;  %v8269_v55 = vpop.f32.mrb[159].mxu0 }
0x1698   :  { %v17958_v25 = vpack.c.bf16 %v8269_v55, %v8265_v22 }
0x1699   :  { %8331 = vrot.lane.b32.xlu0 %v17955_v0, %s15771_s30 }
0x169c   :  { %v8273_v33 = vpop.f32.mrb[160].mxu0 }
0x169d   :  { %8470 = vrot.lane.b32.xlu0 %v17919_v46, %s15765_s23  ;;  %v8275_v37 = vpop.f32.mrb[161].mxu0 }
0x169e   :  { %v8277_v50 = vpop.f32.mrb[162].mxu0 }
0x169f   :  { %v17964_v62 = vpack.c.bf16 %v8277_v50, %v8273_v33  ;;  %v8279_v2 = vpop.f32.mrb[163].mxu0 }
0x16a0   :  { %v17966_v63 = vpack.c.bf16 %v8279_v2, %v8275_v37 }
0x16a1   :  { %8474 = vrot.lane.b32.xlu0 %v17931_v61, %s15765_s23  ;;  %8333 = vrot.lane.b32.xlu1 %v17964_v62, %s15771_s30 }
0x16a5   :  { %8478 = vrot.lane.b32.xlu0 %v17943_v44, %s15765_s23  ;;  %8472 = vrot.lane.b32.xlu1 %v17925_v18, %s15765_s23 }
0x16a9   :  { %8482 = vrot.lane.b32.xlu0 %v17955_v0, %s15765_s23  ;;  %8476 = vrot.lane.b32.xlu1 %v17937_v30, %s15765_s23 }
0x16ad   :  { %8564 = vrot.lane.b32.xlu0 %v17919_v46, %s15772_s10  ;;  %8480 = vrot.lane.b32.xlu1 %v17949_v24, %s15765_s23 }
0x16b1   :  { %8568 = vrot.lane.b32.xlu0 %v17931_v61, %s15772_s10  ;;  %8484 = vrot.lane.b32.xlu1 %v17964_v62, %s15765_s23 }
0x16b5   :  { %8572 = vrot.lane.b32.xlu0 %v17943_v44, %s15772_s10  ;;  %8566 = vrot.lane.b32.xlu1 %v17925_v18, %s15772_s10 }
0x16b9   :  { %8576 = vrot.lane.b32.xlu0 %v17955_v0, %s15772_s10  ;;  %8570 = vrot.lane.b32.xlu1 %v17937_v30, %s15772_s10 }
0x16bd   :  { %8641 = vrot.lane.b32.xlu0 %v17919_v46, %s15767_s1  ;;  %8574 = vrot.lane.b32.xlu1 %v17949_v24, %s15772_s10 }
0x16c1   :  { %8645 = vrot.lane.b32.xlu0 %v17931_v61, %s15767_s1  ;;  %8578 = vrot.lane.b32.xlu1 %v17964_v62, %s15772_s10 }
0x16c5   :  { %8649 = vrot.lane.b32.xlu0 %v17943_v44, %s15767_s1  ;;  %8643 = vrot.lane.b32.xlu1 %v17925_v18, %s15767_s1 }
0x16c9   :  { %8653 = vrot.lane.b32.xlu0 %v17955_v0, %s15767_s1  ;;  %8647 = vrot.lane.b32.xlu1 %v17937_v30, %s15767_s1 }
0x16cd   :  { %8751 = vrot.lane.b32.xlu0 %v17919_v46, %s15773_s11  ;;  %8651 = vrot.lane.b32.xlu1 %v17949_v24, %s15767_s1 }
0x16d1   :  { %8755 = vrot.lane.b32.xlu0 %v17925_v18, %s15773_s11  ;;  %8655 = vrot.lane.b32.xlu1 %v17964_v62, %s15767_s1 }
0x16d5   :  { %8759 = vrot.lane.b32.xlu0 %v17931_v61, %s15773_s11  ;;  %8753 = vrot.lane.b32.xlu1 %v17921_v17, %s15773_s11 }
0x16d9   :  { %8763 = vrot.lane.b32.xlu0 %v17937_v30, %s15773_s11  ;;  %8757 = vrot.lane.b32.xlu1 %v17927_v49, %s15773_s11 }
0x16db   :  { %v8320_v59 = vpop.permute.xlu0 %8319 }
0x16dc   :  { %13299 = vmatprep.subr.bf16.mxu0 %v8320_v59 }
0x16dd   :  { %13300 = vmatpush3.bf16.msra.mxu0 %v8320_v59  ;;  %8767 = vrot.lane.b32.xlu0 %v17943_v44, %s15773_s11 }
0x16de   :  { %8761 = vrot.lane.b32.xlu1 %v17933_v58, %s15773_s11 }
0x16e1   :  { %8771 = vrot.lane.b32.xlu0 %v17949_v24, %s15773_s11 }
0x16e2   :  { %8765 = vrot.lane.b32.xlu1 %v17939_v57, %s15773_s11 }
0x16e3   :  { %v8322_v26 = vpop.permute.xlu1 %8321 }
0x16e4   :  { %13301 = vmatprep.subr.bf16.mxu0 %v8322_v26 }
0x16e5   :  { %13302 = vmatpush3.bf16.msra.mxu0 %v8322_v26  ;;  %8775 = vrot.lane.b32.xlu0 %v17955_v0, %s15773_s11  ;;  %v14529_v26 = vld [vmem:[%s18483_s17 + $0x58] sm:$0xff]  }
0x16e6   :  { %8769 = vrot.lane.b32.xlu1 %v17945_v60, %s15773_s11 }
0x16e9   :  { %8779 = vrot.lane.b32.xlu0 %v17964_v62, %s15773_s11 }
0x16ea   :  { %8773 = vrot.lane.b32.xlu1 %v17951_v42, %s15773_s11 }
0x16eb   :  { %v8324_v43 = vpop.permute.xlu0 %8323 }
0x16ec   :  { %13303 = vmatprep.subr.bf16.mxu0 %v8324_v43 }
0x16ed   :  { %13304 = vmatpush3.bf16.msra.mxu0 %v8324_v43  ;;  %8870 = vrot.lane.b32.xlu0 %v17921_v17, %s15763_s0 }
0x16ee   :  { %8777 = vrot.lane.b32.xlu1 %v17958_v25, %s15773_s11 }
0x16f1   :  { %8874 = vrot.lane.b32.xlu0 %v17933_v58, %s15763_s0 }
0x16f2   :  { %8781 = vrot.lane.b32.xlu1 %v17966_v63, %s15773_s11 }
0x16f3   :  { %v8326_v29 = vpop.permute.xlu1 %8325 }
0x16f4   :  { %13305 = vmatprep.subr.bf16.mxu0 %v8326_v29 }
0x16f5   :  { %13306 = vmatpush3.bf16.msra.mxu0 %v8326_v29  ;;  %8878 = vrot.lane.b32.xlu0 %v17945_v60, %s15763_s0  ;;  %v14530_v29 = vld [vmem:[%s18483_s17 + $0x60] sm:$0xff]  }
0x16f6   :  { %8872 = vrot.lane.b32.xlu1 %v17927_v49, %s15763_s0 }
0x16f9   :  { %8882 = vrot.lane.b32.xlu0 %v17958_v25, %s15763_s0 }
0x16fa   :  { %8876 = vrot.lane.b32.xlu1 %v17939_v57, %s15763_s0 }
0x16fb   :  { %v8328_v45 = vpop.permute.xlu0 %8327 }
0x16fc   :  { %13307 = vmatprep.subr.bf16.mxu0 %v8328_v45 }
0x16fd   :  { %13308 = vmatpush3.bf16.msra.mxu0 %v8328_v45  ;;  %8964 = vrot.lane.b32.xlu0 %v17921_v17, %s15774_s21 }
0x16fe   :  { %8880 = vrot.lane.b32.xlu1 %v17951_v42, %s15763_s0 }
0x1701   :  { %8968 = vrot.lane.b32.xlu0 %v17933_v58, %s15774_s21 }
0x1702   :  { %8884 = vrot.lane.b32.xlu1 %v17966_v63, %s15763_s0 }
0x1703   :  { %v8330_v53 = vpop.permute.xlu1 %8329 }
0x1704   :  { %13309 = vmatprep.subr.bf16.mxu0 %v8330_v53 }
0x1705   :  { %13310 = vmatpush3.bf16.msra.mxu0 %v8330_v53  ;;  %8972 = vrot.lane.b32.xlu0 %v17945_v60, %s15774_s21 }
0x1706   :  { %8966 = vrot.lane.b32.xlu1 %v17927_v49, %s15774_s21 }
0x1709   :  { %8976 = vrot.lane.b32.xlu0 %v17958_v25, %s15774_s21 }
0x170a   :  { %8970 = vrot.lane.b32.xlu1 %v17939_v57, %s15774_s21 }
0x170b   :  { %v8332_v34 = vpop.permute.xlu0 %8331 }
0x170c   :  { %13311 = vmatprep.subr.bf16.mxu0 %v8332_v34 }
0x170d   :  { %13312 = vmatpush3.bf16.msra.mxu0 %v8332_v34  ;;  %9058 = vrot.lane.b32.xlu0 %v17921_v17, %s15740_s26 }
0x170e   :  { %8974 = vrot.lane.b32.xlu1 %v17951_v42, %s15774_s21 }
0x170f   :  { %v8471_v27 = vpop.permute.xlu0 %8470 }
0x1711   :  { %9062 = vrot.lane.b32.xlu0 %v17933_v58, %s15740_s26 }
0x1712   :  { %8978 = vrot.lane.b32.xlu1 %v17966_v63, %s15774_s21 }
0x1713   :  { %v8334_v15 = vpop.permute.xlu1 %8333  ;;  %v8475_v48 = vpop.permute.xlu0 %8474 }
0x1714   :  { %13313 = vmatprep.subr.bf16.mxu0 %v8334_v15 }
0x1715   :  { %9066 = vrot.lane.b32.xlu0 %v17945_v60, %s15740_s26  ;;  %13314 = vmatpush3.bf16.msra.mxu0 %v8334_v15 }
0x1716   :  { %9060 = vrot.lane.b32.xlu1 %v17927_v49, %s15740_s26  ;;  %13319 = vmatprep.subr.bf16.mxu0 %v17919_v46  ;;  %v14526_v49 = vld [vmem:[%s18483_s17 + $0x30] sm:$0xff]  }
0x1717   :  { %v8473_v4 = vpop.permute.xlu1 %8472  ;;  %v8479_v13 = vpop.permute.xlu0 %8478 }
0x1718   :  { %13316 = vmatmul.mubr.bf16.vlgmr.msra.gmra.mrb[164].mxu0 %v14521_v41 }
0x1719   :  { %9070 = vrot.lane.b32.xlu0 %v17958_v25, %s15740_s26  ;;  %13320 = vmatpush3.bf16.msra.mxu0 %v17919_v46 }
0x171a   :  { %9064 = vrot.lane.b32.xlu1 %v17939_v57, %s15740_s26  ;;  %13321 = vmatprep.subr.bf16.mxu0 %v17925_v18 }
0x171b   :  { %13335 = vmatprep.mubr.bf16.mxu0 %v14522_v5  ;;  %v8477_v46 = vpop.permute.xlu1 %8476  ;;  %v8483_v8 = vpop.permute.xlu0 %8482 }
0x171d   :  { %13322 = vmatpush3.bf16.msra.mxu0 %v17925_v18  ;;  %v14525_v18 = vld [vmem:[%s18483_s17 + $0x28] sm:$0xff]  }
0x171e   :  { %9068 = vrot.lane.b32.xlu1 %v17951_v42, %s15740_s26  ;;  %13323 = vmatprep.subr.bf16.mxu0 %v17931_v61 }
0x171f   :  { %v8481_v17 = vpop.permute.xlu1 %8480  ;;  %v8565_v31 = vpop.permute.xlu0 %8564 }
0x1721   :  { %13324 = vmatpush3.bf16.msra.mxu0 %v17931_v61 }
0x1722   :  { %9072 = vrot.lane.b32.xlu1 %v17966_v63, %s15740_s26  ;;  %13325 = vmatprep.subr.bf16.mxu0 %v17937_v30 }
0x1723   :  { %v8485_v19 = vpop.permute.xlu1 %8484  ;;  %v8569_v35 = vpop.permute.xlu0 %8568 }
0x1725   :  { %13326 = vmatpush3.bf16.msra.mxu0 %v17937_v30 }
0x1726   :  { %13327 = vmatprep.subr.bf16.mxu0 %v17943_v44 }
0x1727   :  { %v8567_v12 = vpop.permute.xlu1 %8566  ;;  %v8573_v61 = vpop.permute.xlu0 %8572 }
0x1729   :  { %13328 = vmatpush3.bf16.msra.mxu0 %v17943_v44 }
0x172a   :  { %13329 = vmatprep.subr.bf16.mxu0 %v17949_v24 }
0x172b   :  { %v8571_v52 = vpop.permute.xlu1 %8570  ;;  %v8577_v58 = vpop.permute.xlu0 %8576 }
0x172d   :  { %13330 = vmatpush3.bf16.msra.mxu0 %v17949_v24  ;;  %v14528_v24 = vld [vmem:[%s18483_s17 + $0x50] sm:$0xff]  }
0x172e   :  { %13331 = vmatprep.subr.bf16.mxu0 %v17955_v0 }
0x172f   :  { %v8575_v32 = vpop.permute.xlu1 %8574  ;;  %v8642_v54 = vpop.permute.xlu0 %8641 }
0x1731   :  { %13332 = vmatpush3.bf16.msra.mxu0 %v17955_v0 }
0x1732   :  { %13333 = vmatprep.subr.bf16.mxu0 %v17964_v62 }
0x1733   :  { %v8579_v56 = vpop.permute.xlu1 %8578  ;;  %v8646_v30 = vpop.permute.xlu0 %8645 }
0x1735   :  { %13334 = vmatpush3.bf16.msra.mxu0 %v17964_v62 }
0x1736   :  { %13339 = vmatprep.subr.bf16.mxu0 %v8471_v27 }
0x1737   :  { %v8644_v28 = vpop.permute.xlu1 %8643  ;;  %v8650_v1 = vpop.permute.xlu0 %8649 }
0x1738   :  { %13336 = vmatmul.mubr.bf16.vlgmr.msra.gmra.mrb[164].mxu0 %v14523_v40 }
0x1739   :  { %13340 = vmatpush3.bf16.msra.mxu0 %v8471_v27  ;;  %13355 = vmatprep.mubr.bf16.mxu0 %v14524_v39  ;;  %v14531_v27 = vld [vmem:[%s18483_s17 + $0x68] sm:$0xff]  }
0x173a   :  { %13341 = vmatprep.subr.bf16.mxu0 %v8473_v4 }
0x173b   :  { %v8648_v16 = vpop.permute.xlu1 %8647  ;;  %v8654_v20 = vpop.permute.xlu0 %8653 }
0x173d   :  { %13342 = vmatpush3.bf16.msra.mxu0 %v8473_v4  ;;  %v14532_v4 = vld [vmem:[%s18483_s17 + $0x70] sm:$0xff]  }
0x173e   :  { %13343 = vmatprep.subr.bf16.mxu0 %v8475_v48 }
0x173f   :  { %v8652_v57 = vpop.permute.xlu1 %8651  ;;  %v8752_v7 = vpop.permute.xlu0 %8751 }
0x1741   :  { %13344 = vmatpush3.bf16.msra.mxu0 %v8475_v48 }
0x1742   :  { %13345 = vmatprep.subr.bf16.mxu0 %v8477_v46 }
0x1743   :  { %v8656_v36 = vpop.permute.xlu1 %8655  ;;  %v8756_v14 = vpop.permute.xlu0 %8755 }
0x1745   :  { %13346 = vmatpush3.bf16.msra.mxu0 %v8477_v46 }
0x1746   :  { %13347 = vmatprep.subr.bf16.mxu0 %v8479_v13 }
0x1747   :  { %v8754_v44 = vpop.permute.xlu1 %8753 }
0x1748   :  { %v8784_v11 = vsel %vm8783_vm3, %v8752_v7, %v8754_v44 }
0x1749   :  { %13348 = vmatpush3.bf16.msra.mxu0 %v8479_v13 }
0x174a   :  { %13349 = vmatprep.subr.bf16.mxu0 %v8481_v17 }
0x174b   :  { %v8758_v60 = vpop.permute.xlu1 %8757 }
0x174c   :  { %v8785_v9 = vsel %vm8783_vm3, %v8756_v14, %v8758_v60 }
0x174d   :  { %13350 = vmatpush3.bf16.msra.mxu0 %v8481_v17 }
0x174e   :  { %13351 = vmatprep.subr.bf16.mxu0 %v8483_v8 }
0x1750   :  { %v8762_v38 = vpop.permute.xlu1 %8761 }
0x1751   :  { %13352 = vmatpush3.bf16.msra.mxu0 %v8483_v8 }
0x1752   :  { %13353 = vmatprep.subr.bf16.mxu0 %v8485_v19 }
0x1754   :  { %v8766_v23 = vpop.permute.xlu1 %8765 }
0x1755   :  { %13354 = vmatpush3.bf16.msra.mxu0 %v8485_v19 }
0x1756   :  { %13359 = vmatprep.subr.bf16.mxu0 %v8565_v31 }
0x1758   :  { %13356 = vmatmul.mubr.bf16.vlgmr.msra.gmra.mrb[164].mxu0 %v14525_v18  ;;  %v8770_v22 = vpop.permute.xlu1 %8769  ;;  %v14533_v18 = vld [vmem:[%s18483_s17 + $0x78] sm:$0xff]  }
0x1759   :  { %13360 = vmatpush3.bf16.msra.mxu0 %v8565_v31  ;;  %13375 = vmatprep.mubr.bf16.mxu0 %v14526_v49  ;;  %v14534_v49 = vld [vmem:[%s18483_s17 + $0x80] sm:$0xff]  }
0x175a   :  { %13361 = vmatprep.subr.bf16.mxu0 %v8567_v12 }
0x175c   :  { %v8774_v21 = vpop.permute.xlu1 %8773 }
0x175d   :  { %13362 = vmatpush3.bf16.msra.mxu0 %v8567_v12 }
0x175e   :  { %13363 = vmatprep.subr.bf16.mxu0 %v8569_v35 }
0x1760   :  { %v8778_v33 = vpop.permute.xlu1 %8777 }
0x1761   :  { %13364 = vmatpush3.bf16.msra.mxu0 %v8569_v35 }
0x1762   :  { %13365 = vmatprep.subr.bf16.mxu0 %v8571_v52 }
0x1764   :  { %v8782_v2 = vpop.permute.xlu1 %8781 }
0x1765   :  { %13366 = vmatpush3.bf16.msra.mxu0 %v8571_v52 }
0x1766   :  { %13367 = vmatprep.subr.bf16.mxu0 %v8573_v61 }
0x1768   :  { %v8873_v45 = vpop.permute.xlu1 %8872 }
0x1769   :  { %13368 = vmatpush3.bf16.msra.mxu0 %v8573_v61 }
0x176a   :  { %13369 = vmatprep.subr.bf16.mxu0 %v8575_v32 }
0x176c   :  { %v8877_v34 = vpop.permute.xlu1 %8876 }
0x176d   :  { %13370 = vmatpush3.bf16.msra.mxu0 %v8575_v32 }
0x176e   :  { %13371 = vmatprep.subr.bf16.mxu0 %v8577_v58 }
0x1770   :  { %v8881_v41 = vpop.permute.xlu1 %8880 }
0x1771   :  { %13372 = vmatpush3.bf16.msra.mxu0 %v8577_v58 }
0x1772   :  { %13373 = vmatprep.subr.bf16.mxu0 %v8579_v56 }
0x1774   :  { %v8885_v40 = vpop.permute.xlu1 %8884 }
0x1775   :  { %13374 = vmatpush3.bf16.msra.mxu0 %v8579_v56 }
0x1776   :  { %13379 = vmatprep.subr.bf16.mxu0 %v8642_v54 }
0x1778   :  { %13376 = vmatmul.mubr.bf16.vlgmr.msra.gmra.mrb[164].mxu0 %v14527_v47  ;;  %v8967_v48 = vpop.permute.xlu1 %8966  ;;  %v9141_v47 = vld [vmem:[%s18486_s3 + $0x10] sm:$0xff] }
0x1779   :  { %13380 = vmatpush3.bf16.msra.mxu0 %v8642_v54  ;;  %13395 = vmatprep.mubr.bf16.mxu0 %v17886_v6  ;;  %v8760_v6 = vpop.permute.xlu0 %8759  ;;  %v14535_v54 = vld [vmem:[%s18483_s17 + $0x88] sm:$0xff]  }
0x177a   :  { %13381 = vmatprep.subr.bf16.mxu0 %v8644_v28  ;;  %v8786_v0 = vsel %vm8783_vm3, %v8760_v6, %v8762_v38 }
0x177c   :  { %v8971_v13 = vpop.permute.xlu1 %8970 }
0x177d   :  { %13382 = vmatpush3.bf16.msra.mxu0 %v8644_v28  ;;  %v8764_v42 = vpop.permute.xlu0 %8763 }
0x177e   :  { %13383 = vmatprep.subr.bf16.mxu0 %v8646_v30  ;;  %v8787_v55 = vsel %vm8783_vm3, %v8764_v42, %v8766_v23 }
0x1780   :  { %v8975_v8 = vpop.permute.xlu1 %8974 }
0x1781   :  { %13384 = vmatpush3.bf16.msra.mxu0 %v8646_v30  ;;  %v8768_v10 = vpop.permute.xlu0 %8767  ;;  %v14536_v30 = vld [vmem:[%s18486_s3] ss:$8 sps:$4 sm:$0xff]  }
0x1782   :  { %13385 = vmatprep.subr.bf16.mxu0 %v8648_v16 }
0x1784   :  { %v8979_v12 = vpop.permute.xlu1 %8978 }
0x1785   :  { %13386 = vmatpush3.bf16.msra.mxu0 %v8648_v16  ;;  %v8772_v25 = vpop.permute.xlu0 %8771  ;;  %v14538_v16 = vld [vmem:[%s18486_s3 + $0x4] ss:$8 sps:$4 sm:$0xff]  }
0x1786   :  { %13387 = vmatprep.subr.bf16.mxu0 %v8650_v1  ;;  %v8789_v50 = vsel %vm8783_vm3, %v8772_v25, %v8774_v21 }
0x1788   :  { %v9061_v52 = vpop.permute.xlu1 %9060 }
0x1789   :  { %13388 = vmatpush3.bf16.msra.mxu0 %v8650_v1  ;;  %v8776_v37 = vpop.permute.xlu0 %8775  ;;  %v11197_v1 = vcombine.low %v9141_v47, %v9141_v47 }
0x178a   :  { %13389 = vmatprep.subr.bf16.mxu0 %v8652_v57  ;;  %v8790_v62 = vsel %vm8783_vm3, %v8776_v37, %v8778_v33 }
0x178c   :  { %v9065_v32 = vpop.permute.xlu1 %9064 }
0x178d   :  { %13390 = vmatpush3.bf16.msra.mxu0 %v8652_v57  ;;  %v8780_v63 = vpop.permute.xlu0 %8779  ;;  %v11198_v57 = vcombine.high %v9141_v47, %v9141_v47 }
0x178e   :  { %13391 = vmatprep.subr.bf16.mxu0 %v8654_v20  ;;  %v8791_v59 = vsel %vm8783_vm3, %v8780_v63, %v8782_v2 }
0x1790   :  { %v9069_v56 = vpop.permute.xlu1 %9068 }
0x1791   :  { %13392 = vmatpush3.bf16.msra.mxu0 %v8654_v20  ;;  %v8871_v43 = vpop.permute.xlu0 %8870 }
0x1792   :  { %13393 = vmatprep.subr.bf16.mxu0 %v8656_v36 }
0x1794   :  { %v9073_v28 = vpop.permute.xlu1 %9072 }
0x1795   :  { %13394 = vmatpush3.bf16.msra.mxu0 %v8656_v36  ;;  %v8875_v53 = vpop.permute.xlu0 %8874  ;;  %v9168_v36 = vsel %vm9166_vm4, %v11197_v1, 0 }
0x1796   :  { %13399 = vmatprep.subr.bf16.mxu0 %v8784_v11 }
0x1798   :  { %13396 = vmatmul.mubr.bf16.vlgmr.msra.gmra.mrb[164].mxu0 %v17891_v3  ;;  %v8788_v3 = vsel %vm8783_vm3, %v8768_v10, %v8770_v22  ;;  %v14541_v10 = vld [vmem:[%s18487_s15 + $0x10] sm:$0xff]  }
0x1799   :  { %13400 = vmatpush3.bf16.msra.mxu0 %v8784_v11  ;;  %13415 = vmatprep.mubr.bf16.mxu0 %v14528_v24  ;;  %v8879_v15 = vpop.permute.xlu0 %8878 }
0x179a   :  { %13401 = vmatprep.subr.bf16.mxu0 %v8785_v9 }
0x179d   :  { %13402 = vmatpush3.bf16.msra.mxu0 %v8785_v9  ;;  %v8883_v5 = vpop.permute.xlu0 %8882 }
0x179e   :  { %13403 = vmatprep.subr.bf16.mxu0 %v8786_v0 }
0x17a1   :  { %13404 = vmatpush3.bf16.msra.mxu0 %v8786_v0  ;;  %v8965_v39 = vpop.permute.xlu0 %8964 }
0x17a2   :  { %13405 = vmatprep.subr.bf16.mxu0 %v8787_v55 }
0x17a5   :  { %13406 = vmatpush3.bf16.msra.mxu0 %v8787_v55  ;;  %v8969_v46 = vpop.permute.xlu0 %8968 }
0x17a6   :  { %13407 = vmatprep.subr.bf16.mxu0 %v8788_v3 }
0x17a9   :  { %13408 = vmatpush3.bf16.msra.mxu0 %v8788_v3  ;;  %v8973_v17 = vpop.permute.xlu0 %8972 }
0x17aa   :  { %13409 = vmatprep.subr.bf16.mxu0 %v8789_v50 }
0x17ad   :  { %13410 = vmatpush3.bf16.msra.mxu0 %v8789_v50  ;;  %v8977_v19 = vpop.permute.xlu0 %8976 }
0x17ae   :  { %13411 = vmatprep.subr.bf16.mxu0 %v8790_v62 }
0x17b1   :  { %13412 = vmatpush3.bf16.msra.mxu0 %v8790_v62  ;;  %v9059_v31 = vpop.permute.xlu0 %9058  ;;  %v18167_v62 = vld [vmem:[%s18488_s6] sm:$0x3] }
0x17b2   :  { %13413 = vmatprep.subr.bf16.mxu0 %v8791_v59  ;;  %v10063_v2 = vsel %vm10062_vm7, %v18167_v62, 0.0 }
0x17b5   :  { %13414 = vmatpush3.bf16.msra.mxu0 %v8791_v59  ;;  %v9063_v35 = vpop.permute.xlu0 %9062 }
0x17b6   :  { %13419 = vmatprep.subr.bf16.mxu0 %v8871_v43 }
0x17b8   :  { %13416 = vmatmul.mubr.bf16.vlgmr.msra.gmra.mrb[164].mxu0 %v14529_v26  ;;  %v14542_v26 = vld [vmem:[%s18487_s15 + $0x18] sm:$0xff]  }
0x17b9   :  { %13420 = vmatpush3.bf16.msra.mxu0 %v8871_v43  ;;  %13435 = vmatprep.mubr.bf16.mxu0 %v14530_v29  ;;  %v9067_v61 = vpop.permute.xlu0 %9066  ;;  %v14543_v43 = vld [vmem:[%s18487_s15] sm:$0xff]  }
0x17ba   :  { %13421 = vmatprep.subr.bf16.mxu0 %v8873_v45 }
0x17bd   :  { %13422 = vmatpush3.bf16.msra.mxu0 %v8873_v45  ;;  %v9071_v58 = vpop.permute.xlu0 %9070  ;;  %v14544_v45 = vld [vmem:[%s18487_s15 + $0x8] sm:$0xff]  }
0x17be   :  { %13423 = vmatprep.subr.bf16.mxu0 %v8875_v53 }
0x17c1   :  { %13424 = vmatpush3.bf16.msra.mxu0 %v8875_v53  ;;  %v14545_v53 = vld [vmem:[%s18487_s15 + $0x20] sm:$0xff]  }
0x17c2   :  { %13425 = vmatprep.subr.bf16.mxu0 %v8877_v34 }
0x17c5   :  { %13426 = vmatpush3.bf16.msra.mxu0 %v8877_v34 }
0x17c6   :  { %13427 = vmatprep.subr.bf16.mxu0 %v8879_v15 }
0x17c9   :  { %13428 = vmatpush3.bf16.msra.mxu0 %v8879_v15 }
0x17ca   :  { %13429 = vmatprep.subr.bf16.mxu0 %v8881_v41 }
0x17cd   :  { %13430 = vmatpush3.bf16.msra.mxu0 %v8881_v41  ;;  %v14546_v41 = vld [vmem:[%s18487_s15 + $0x28] sm:$0xff]  }
0x17ce   :  { %13431 = vmatprep.subr.bf16.mxu0 %v8883_v5 }
0x17d1   :  { %13432 = vmatpush3.bf16.msra.mxu0 %v8883_v5  ;;  %v14547_v5 = vld [vmem:[%s18487_s15 + $0x30] sm:$0xff]  }
0x17d2   :  { %13433 = vmatprep.subr.bf16.mxu0 %v8885_v40 }
0x17d5   :  { %13434 = vmatpush3.bf16.msra.mxu0 %v8885_v40 }
0x17d6   :  { %13439 = vmatprep.subr.bf16.mxu0 %v8965_v39 }
0x17d8   :  { %13436 = vmatmul.mubr.bf16.vlgmr.msra.gmra.mrb[164].mxu0 %v14531_v27 }
0x17d9   :  { %13440 = vmatpush3.bf16.msra.mxu0 %v8965_v39  ;;  %13455 = vmatprep.mubr.bf16.mxu0 %v14532_v4  ;;  %v14548_v4 = vld [vmem:[%s18487_s15 + $0x38] sm:$0xff]  }
0x17da   :  { %13441 = vmatprep.subr.bf16.mxu0 %v8967_v48 }
0x17dd   :  { %13442 = vmatpush3.bf16.msra.mxu0 %v8967_v48  ;;  %v14549_v48 = vld [vmem:[%s18487_s15 + $0x40] sm:$0xff]  }
0x17de   :  { %13443 = vmatprep.subr.bf16.mxu0 %v8969_v46 }
0x17e1   :  { %13444 = vmatpush3.bf16.msra.mxu0 %v8969_v46 }
0x17e2   :  { %13445 = vmatprep.subr.bf16.mxu0 %v8971_v13 }
0x17e5   :  { %13446 = vmatpush3.bf16.msra.mxu0 %v8971_v13 }
0x17e6   :  { %13447 = vmatprep.subr.bf16.mxu0 %v8973_v17 }
0x17e9   :  { %13448 = vmatpush3.bf16.msra.mxu0 %v8973_v17 }
0x17ea   :  { %13449 = vmatprep.subr.bf16.mxu0 %v8975_v8 }
0x17ed   :  { %13450 = vmatpush3.bf16.msra.mxu0 %v8975_v8  ;;  %v14550_v8 = vld [vmem:[%s18487_s15 + $0x48] sm:$0xff]  }
0x17ee   :  { %13451 = vmatprep.subr.bf16.mxu0 %v8977_v19 }
0x17f1   :  { %13452 = vmatpush3.bf16.msra.mxu0 %v8977_v19  ;;  %v14551_v19 = vld [vmem:[%s18487_s15 + $0x50] sm:$0xff]  }
0x17f2   :  { %13453 = vmatprep.subr.bf16.mxu0 %v8979_v12 }
0x17f5   :  { %13454 = vmatpush3.bf16.msra.mxu0 %v8979_v12 }
0x17f6   :  { %13459 = vmatprep.subr.bf16.mxu0 %v9059_v31 }
0x17f8   :  { %13456 = vmatmul.mubr.bf16.vlgmr.msra.gmra.mrb[164].mxu0 %v14533_v18 }
0x17f9   :  { %13460 = vmatpush3.bf16.msra.mxu0 %v9059_v31  ;;  %13475 = vmatprep.mubr.bf16.mxu0 %v14534_v49 }
0x17fa   :  { %13461 = vmatprep.subr.bf16.mxu0 %v9061_v52 }
0x17fd   :  { %13462 = vmatpush3.bf16.msra.mxu0 %v9061_v52  ;;  %v14552_v52 = vld [vmem:[%s18487_s15 + $0x58] sm:$0xff]  }
0x17fe   :  { %13463 = vmatprep.subr.bf16.mxu0 %v9063_v35 }
0x1801   :  { %13464 = vmatpush3.bf16.msra.mxu0 %v9063_v35  ;;  %v14553_v35 = vld [vmem:[%s18487_s15 + $0x60] sm:$0xff]  }
0x1802   :  { %13465 = vmatprep.subr.bf16.mxu0 %v9065_v32 }
0x1805   :  { %13466 = vmatpush3.bf16.msra.mxu0 %v9065_v32 }
0x1806   :  { %13467 = vmatprep.subr.bf16.mxu0 %v9067_v61 }
0x1809   :  { %13468 = vmatpush3.bf16.msra.mxu0 %v9067_v61 }
0x180a   :  { %13469 = vmatprep.subr.bf16.mxu0 %v9069_v56 }
0x180d   :  { %13470 = vmatpush3.bf16.msra.mxu0 %v9069_v56  ;;  %v14554_v56 = vld [vmem:[%s18487_s15 + $0x68] sm:$0xff]  }
0x180e   :  { %13471 = vmatprep.subr.bf16.mxu0 %v9071_v58 }
0x1811   :  { %13472 = vmatpush3.bf16.msra.mxu0 %v9071_v58  ;;  %v14555_v58 = vld [vmem:[%s18487_s15 + $0x70] sm:$0xff]  }
0x1812   :  { %13473 = vmatprep.subr.bf16.mxu0 %v9073_v28 }
0x1815   :  { %13474 = vmatpush3.bf16.msra.mxu0 %v9073_v28 }
0x1816   :  { %9173 = vmatprep.subr.bf16.mxu0 %v14538_v16 }
0x1818   :  { %13476 = vmatmul.mubr.bf16.vlgmr.msra.gmra.mrb[164].mxu0 %v14535_v54 }
0x1819   :  { %9205 = vmatprep.mubr.bf16.mxu0 %v18485_v51  ;;  %9174 = vmatpush1.bf16.msra.mxu0 %v14536_v30 }
0x181a   :  { %11199 = vmatprep.subr.msk.bf16.mxu0 %vm9166_vm4, %v11198_v57  ;;  %v14556_v57 = vld [vmem:[%s18487_s15 + $0x78] sm:$0xff]  }
0x181d   :  { %9176 = vmatpush1.bf16.msra.mxu0 %v9168_v36  ;;  %v14557_v36 = vld [vmem:[%s18487_s15 + $0x80] sm:$0xff]  }
0x18eb   :  { %v13477_v20 = vpop.f32.mrb[164].mxu0 }
0x18ec   :  { %v9116_v44 = vpop.f32.mrb[165].mxu0  ;;  %v9137_v60 = vmax.f32 %v13477_v20, 0.0 }
0x18ed   :  { %v13478_v7 = vpop.f32.mrb[166].mxu0  ;;  %v9135_v6 = vmax.f32 %v9116_v44, 0.0 }
0x18ee   :  { %v9138_v14 = vmax.f32 %v13478_v7, 0.0  ;;  %v9119_v38 = vpop.f32.mrb[167].mxu0  ;;  %v14558_v7 = vld [vmem:[%s18487_s15 + $0x88] sm:$0xff]  }
0x18ef   :  { %v9136_v11 = vmax.f32 %v9119_v38, 0.0 }
0x18f0   :  { %v9143_v24 = vpack.c.bf16 %v9138_v14, %v9137_v60  ;;  %v15775_v60 = vmov 0.0|0.0   ;;  %v15777_v14 = vmov 0.0  }
0x18f1   :  { %v9142_v23 = vpack.c.bf16 %v9136_v11, %v9135_v6  ;;  %13582 = vmatprep.subr.bf16.mxu1 %v15777_v14  ;;  %13586 = vmatprep.mubr.msk.bf16.mxu1 %vm15776_vm8, %v15777_v14 }
0x18f3   :  { %11200 = vmatmul.mubr.msk.bf16.vlgmr.msra.gmra.mrb[168].mxu0 %vm9159_vm5, %v9142_v23 }
0x18f4   :  { %9215 = vmatprep.mubr.bf16.mxu0 %v18485_v51 }
0x18fb   :  { %11201 = vmatmul.mubr.msk.bf16.gmra.mrb[172].mxu0 %vm9159_vm5, %v9143_v24 }
0x18fc   :  { %13483 = vmatprep.mubr.msk.bf16.mxu0 %vm9255_vm6, %v14541_v10 }
0x19c6   :  { %v9207_v42 = vpop.f32.mrb[168].mxu0 }
0x19c7   :  { %v9209_v9 = vpop.f32.mrb[169].mxu0 }
0x19c8   :  { %v9211_v22 = vpop.f32.mrb[170].mxu0 }
0x19c9   :  { %v9230_v0 = vpack.c.bf16 %v9211_v22, %v9207_v42  ;;  %v9213_v55 = vpop.f32.mrb[171].mxu0 }
0x19ca   :  { %v9621_v21 = vpack.c.bf16 %v9213_v55, %v9209_v9 }
0x19cb   :  { %9249 = vrot.lane.b32.xlu0 %v9230_v0, %s15771_s30 }
0x19ce   :  { %v9217_v25 = vpop.f32.mrb[172].mxu0 }
0x19cf   :  { %9391 = vrot.lane.b32.xlu0 %v9230_v0, %s15765_s23  ;;  %v9219_v3 = vpop.f32.mrb[173].mxu0 }
0x19d0   :  { %v9221_v33 = vpop.f32.mrb[174].mxu0 }
0x19d1   :  { %v9231_v51 = vpack.c.bf16 %v9221_v33, %v9217_v25  ;;  %v9223_v37 = vpop.f32.mrb[175].mxu0 }
0x19d2   :  { %v9622_v50 = vpack.c.bf16 %v9223_v37, %v9219_v3 }
0x19d3   :  { %9471 = vrot.lane.b32.xlu0 %v9230_v0, %s15772_s10  ;;  %9251 = vrot.lane.b32.xlu1 %v9231_v51, %s15771_s30 }
0x19d7   :  { %9551 = vrot.lane.b32.xlu0 %v9230_v0, %s15767_s1  ;;  %9393 = vrot.lane.b32.xlu1 %v9231_v51, %s15765_s23  ;;  %s15779_s23 = smov [#allocation45]  }
0x19d8   :  { %s10835_s28 = sshll.u32 %s15779_s23, 4  ;;  %s10836_s28 = int_to_ptr.vmem [resolvable:$true] %s10835_s28 }
0x19d9   :  { %p15551_p5 = scmp.lt.s32.totalorder %s10836_s28, %s10836_s28 }
0x19db   :  { %9635 = vrot.lane.b32.xlu0 %v9230_v0, %s15773_s11  ;;  %9473 = vrot.lane.b32.xlu1 %v9231_v51, %s15772_s10 }
0x19df   :  { %9639 = vrot.lane.b32.xlu0 %v9231_v51, %s15773_s11  ;;  %9553 = vrot.lane.b32.xlu1 %v9231_v51, %s15767_s1 }
0x19e3   :  { %9721 = vrot.lane.b32.xlu0 %v9621_v21, %s15763_s0  ;;  %9637 = vrot.lane.b32.xlu1 %v9621_v21, %s15773_s11 }
0x19e7   :  { %9801 = vrot.lane.b32.xlu0 %v9621_v21, %s15774_s21  ;;  %9641 = vrot.lane.b32.xlu1 %v9622_v50, %s15773_s11 }
0x19eb   :  { %9881 = vrot.lane.b32.xlu0 %v9621_v21, %s15740_s26  ;;  %9723 = vrot.lane.b32.xlu1 %v9622_v50, %s15763_s0  ;;  %s18496_s0 = sld [smem:[#allocation90_spill]] }
0x19ef   :  { %9803 = vrot.lane.b32.xlu1 %v9622_v50, %s15774_s21 }
0x19f3   :  { %9883 = vrot.lane.b32.xlu1 %v9622_v50, %s15740_s26  ;;  %v10091_v50 = vld [vmem:[#allocation16] sm:$0xf] }
0x1a0a   :  { %10064 = vadd.xlane.f32.xlu0 %v10063_v2  ;;  %v9954_v2 = vld [vmem:[#allocation5] sm:$0x3] }
0x1a3d   :  { %v9250_v63 = vpop.permute.xlu0 %9249 }
0x1a3e   :  { %13479 = vmatprep.subr.bf16.mxu0 %v9250_v63 }
0x1a3f   :  { %13480 = vmatpush3.bf16.msra.mxu0 %v9250_v63  ;;  %v10105_v63 = vsel %vm9166_vm4, %v10091_v50, 0 }
0x1a41   :  { %v9392_v29 = vpop.permute.xlu0 %9391 }
0x1a45   :  { %v9252_v59 = vpop.permute.xlu1 %9251  ;;  %v9472_v15 = vpop.permute.xlu0 %9471 }
0x1a46   :  { %13481 = vmatprep.subr.bf16.mxu0 %v9252_v59 }
0x1a47   :  { %13482 = vmatpush3.bf16.msra.mxu0 %v9252_v59 }
0x1a48   :  { %13487 = vmatprep.subr.bf16.mxu0 %v9230_v0 }
0x1a49   :  { %v9394_v34 = vpop.permute.xlu1 %9393  ;;  %v9552_v27 = vpop.permute.xlu0 %9551 }
0x1a4a   :  { %13484 = vmatmul.mubr.msk.bf16.vlgmr.msra.gmra.mrb[128].mxu0 %vm9255_vm6, %v14542_v26 }
0x1a4b   :  { %13488 = vmatpush3.bf16.msra.mxu0 %v9230_v0  ;;  %13491 = vmatprep.mubr.msk.bf16.mxu0 %vm9255_vm6, %v14543_v43 }
0x1a4c   :  { %13489 = vmatprep.subr.bf16.mxu0 %v9231_v51 }
0x1a4d   :  { %v9474_v40 = vpop.permute.xlu1 %9473  ;;  %v9636_v13 = vpop.permute.xlu0 %9635 }
0x1a4f   :  { %13490 = vmatpush3.bf16.msra.mxu0 %v9231_v51  ;;  %v11273_v51 = vld [vmem:[#allocation22] ss:$0 sm:$0xff] }
0x1a50   :  { %13495 = vmatprep.subr.bf16.mxu0 %v9392_v29 }
0x1a51   :  { %v9554_v39 = vpop.permute.xlu1 %9553  ;;  %v9640_v18 = vpop.permute.xlu0 %9639 }
0x1a55   :  { %v9638_v46 = vpop.permute.xlu1 %9637  ;;  %v9722_v49 = vpop.permute.xlu0 %9721 }
0x1a56   :  { %13492 = vmatmul.mubr.msk.bf16.vlgmr.msra.gmra.mrb[128].mxu0 %vm9255_vm6, %v14544_v45  ;;  %v9643_v17 = vsel %vm8783_vm3, %v9636_v13, %v9638_v46  ;;  %v11275_v45 = vld [vmem:[#allocation17] ss:$0 sm:$0xff] }
0x1a57   :  { %13496 = vmatpush3.bf16.msra.mxu0 %v9392_v29  ;;  %13499 = vmatprep.mubr.msk.bf16.mxu0 %vm9255_vm6, %v14545_v53 }
0x1a58   :  { %13497 = vmatprep.subr.bf16.mxu0 %v9394_v34 }
0x1a59   :  { %v9642_v12 = vpop.permute.xlu1 %9641  ;;  %v9802_v61 = vpop.permute.xlu0 %9801 }
0x1a5a   :  { %v9644_v31 = vsel %vm8783_vm3, %v9640_v18, %v9642_v12 }
0x1a5b   :  { %13498 = vmatpush3.bf16.msra.mxu0 %v9394_v34 }
0x1a5c   :  { %13503 = vmatprep.subr.bf16.mxu0 %v9472_v15 }
0x1a5d   :  { %v9724_v32 = vpop.permute.xlu1 %9723  ;;  %v9882_v28 = vpop.permute.xlu0 %9881 }
0x1a61   :  { %v9804_v54 = vpop.permute.xlu1 %9803 }
0x1a62   :  { %13500 = vmatmul.mubr.msk.bf16.vlgmr.msra.gmra.mrb[128].mxu0 %vm9255_vm6, %v14546_v41 }
0x1a63   :  { %13504 = vmatpush3.bf16.msra.mxu0 %v9472_v15  ;;  %13507 = vmatprep.mubr.msk.bf16.mxu0 %vm9255_vm6, %v14547_v5 }
0x1a64   :  { %13505 = vmatprep.subr.bf16.mxu0 %v9474_v40 }
0x1a65   :  { %v9884_v44 = vpop.permute.xlu1 %9883 }
0x1a67   :  { %13506 = vmatpush3.bf16.msra.mxu0 %v9474_v40 }
0x1a68   :  { %13511 = vmatprep.subr.bf16.mxu0 %v9552_v27 }
0x1a6e   :  { %13508 = vmatmul.mubr.msk.bf16.vlgmr.msra.gmra.mrb[128].mxu0 %vm9255_vm6, %v14548_v4 }
0x1a6f   :  { %13512 = vmatpush3.bf16.msra.mxu0 %v9552_v27  ;;  %13515 = vmatprep.mubr.msk.bf16.mxu0 %vm9255_vm6, %v14549_v48 }
0x1a70   :  { %13513 = vmatprep.subr.bf16.mxu0 %v9554_v39 }
0x1a73   :  { %13514 = vmatpush3.bf16.msra.mxu0 %v9554_v39 }
0x1a74   :  { %13519 = vmatprep.subr.bf16.mxu0 %v9643_v17 }
0x1a7a   :  { %13516 = vmatmul.mubr.msk.bf16.vlgmr.msra.gmra.mrb[128].mxu0 %vm9255_vm6, %v14550_v8 }
0x1a7b   :  { %13520 = vmatpush3.bf16.msra.mxu0 %v9643_v17  ;;  %13523 = vmatprep.mubr.msk.bf16.mxu0 %vm9255_vm6, %v14551_v19 }
0x1a7c   :  { %13521 = vmatprep.subr.bf16.mxu0 %v9644_v31 }
0x1a7f   :  { %13522 = vmatpush3.bf16.msra.mxu0 %v9644_v31 }
0x1a80   :  { %13527 = vmatprep.subr.bf16.mxu0 %v9722_v49 }
0x1a86   :  { %13524 = vmatmul.mubr.msk.bf16.vlgmr.msra.gmra.mrb[128].mxu0 %vm9255_vm6, %v14552_v52  ;;  %v14559_v52 = vld [vmem:[%s18490_s9] sm:$0xff]  }
0x1a87   :  { %13528 = vmatpush3.bf16.msra.mxu0 %v9722_v49  ;;  %13531 = vmatprep.mubr.msk.bf16.mxu0 %vm9255_vm6, %v14553_v35  ;;  %v10180_v49 = vld [vmem:[%s18489_s24] sm:$0xff]  ;;  %v14560_v35 = vld [vmem:[%s18490_s9 + $0x8] sm:$0xff]  }
0x1a88   :  { %13529 = vmatprep.subr.bf16.mxu0 %v9724_v32  ;;  %13583 = vmatpush3.bf16.msra.mxu1 %v14559_v52 }
0x1a89   :  { %13584 = vmatprep.subr.bf16.mxu1 %v15777_v14 }
0x1a8b   :  { %13530 = vmatpush3.bf16.msra.mxu0 %v9724_v32 }
0x1a8c   :  { %13535 = vmatprep.subr.bf16.mxu0 %v9802_v61  ;;  %13585 = vmatpush3.bf16.msra.mxu1 %v14560_v35  ;;  %v11290_v35 = vld [vmem:[#allocation32] ss:$0 sm:$0xff] }
0x1a8d   :  { %13598 = vmatprep.subr.bf16.mxu1 %v15777_v14 }
0x1a92   :  { %13532 = vmatmul.mubr.msk.bf16.vlgmr.msra.gmra.mrb[128].mxu0 %vm9255_vm6, %v14554_v56 }
0x1a93   :  { %13536 = vmatpush3.bf16.msra.mxu0 %v9802_v61  ;;  %13539 = vmatprep.mubr.msk.bf16.mxu0 %vm9255_vm6, %v14555_v58 }
0x1a94   :  { %13537 = vmatprep.subr.bf16.mxu0 %v9804_v54 }
0x1a97   :  { %13538 = vmatpush3.bf16.msra.mxu0 %v9804_v54  ;;  %v10065_v16 = vpop.xlane.xlu0 %10064 }
0x1a98   :  { %v10067_v30 = vmul.f32 0.125, %v10065_v16  ;;  %13543 = vmatprep.subr.bf16.mxu0 %v9882_v28 }
0x1a9a   :  { %v10068_v47 = vsub.f32 %v18167_v62, %v10067_v30  ;;  %v11274_v62 = vld [vmem:[#allocation23] ss:$0 sm:$0xff]  ;;  %v11277_v30 = vld [vmem:[#allocation28] ss:$0 sm:$0xff] }
0x1a9c   :  { %v10069_v1 = vmul.f32 %v10068_v47, %v10068_v47 }
0x1a9e   :  { %13540 = vmatmul.mubr.msk.bf16.vlgmr.msra.gmra.mrb[128].mxu0 %vm9255_vm6, %v14556_v57  ;;  %v10070_v20 = vsel %vm10062_vm7, %v10069_v1, 0.0  ;;  %v10177_v57 = vld [vmem:[%s18491_s19] sm:$0xff]  ;;  %v10178_v1 = vld [vmem:[%s18491_s19 + $0x8] sm:$0xff] }
0x1a9f   :  { %13544 = vmatpush3.bf16.msra.mxu0 %v9882_v28  ;;  %10071 = vadd.xlane.f32.xlu1 %v10070_v20 }
0x1aa0   :  { %13545 = vmatprep.subr.bf16.mxu0 %v9884_v44  ;;  %13547 = vmatprep.mubr.msk.bf16.mxu0 %vm9255_vm6, %v14557_v36  ;;  %v11278_v36 = vld [vmem:[#allocation29] ss:$0 sm:$0xff] }
0x1aa3   :  { %13546 = vmatpush3.bf16.msra.mxu0 %v9884_v44 }
0x1aa4   :  { %13622 = vmatprep.subr.bf16.mxu0 %v15775_v60 }
0x1aaa   :  { %13548 = vmatmul.mubr.msk.bf16.vlgmr.msra.gmra.mrb[128].mxu0 %vm9255_vm6, %v14558_v7  ;;  %v13629_v7 = vpack.c.bf16 %v10178_v1, %v10177_v57 }
0x1aab   :  { %13559 = vmatprep.mubr.msk.f32.mxu0 %vm15776_vm8, %v15777_v14 }
0x1b2c   :  { %v10072_v38 = vpop.xlane.xlu1 %10071 }
0x1b2d   :  { %v10073_v6 = vmul.f32 0.125, %v10072_v38 }
0x1b2f   :  { %v10074_v11 = vadd.f32 1e-05, %v10073_v6  ;;  %v11271_v6 = vld [vmem:[#allocation25] ss:$0 sm:$0xff] }
0x1b31   :  { %14825 = vrsqrt.f32 %v10074_v11  ;;  %v10179_v11 = vld [vmem:[%s18491_s19 + $0x10] sm:$0xff] }
0x1b3b   :  { %v14826_v42 = vpop.eup %14825 }
0x1b3c   :  { %v10076_v25 = vmul.f32 %v14826_v42, %v10068_v47 }
0x1b3e   :  { %v10083_v37 = vmul.f32 %v11273_v51, %v10076_v25 }
0x1b40   :  { %v10090_v59 = vadd.f32 %v11274_v62, %v10083_v37 }
0x1b42   :  { %v10092_v26 = vpack.c.bf16 %v10090_v59, %v10090_v59 }
0x1b7d   :  { %v13549_v24 = vpop.f32.mrb[128].mxu0 }
0x1b7e   :  { %v9927_v23 = vpop.f32.mrb[129].mxu0  ;;  %v9952_v22 = vmax.f32 %v13549_v24, 0.0 }
0x1b7f   :  { %v13550_v9 = vpop.f32.mrb[130].mxu0  ;;  %v9950_v55 = vmax.f32 %v9927_v23, 0.0  ;;  %v11272_v23 = vld [vmem:[#allocation26] ss:$0 sm:$0xff] }
0x1b80   :  { %v9953_v10 = vmax.f32 %v13550_v9, 0.0  ;;  %v9930_v0 = vpop.f32.mrb[131].mxu0 }
0x1b81   :  { %v9951_v21 = vmax.f32 %v9930_v0, 0.0  ;;  %v14561_v0 = vld [vmem:[%s18492_s16] sm:$0xff]  }
0x1b82   :  { %v13626_v3 = vpack.c.bf16 %v9953_v10, %v9952_v22 }
0x1b83   :  { %v13623_v33 = vpack.c.bf16 %v9951_v21, %v9950_v55  ;;  %v14562_v55 = vld [vmem:[%s18492_s16 + $0x8] sm:$0xff]   ;;  %v11281_v21 = vld [vmem:[#allocation19] ss:$0 sm:$0xff] }
0x1b85   :  { %13624 = vmatpush3.bf16.msra.mxu0 %v13623_v33 }
0x1b86   :  { %13625 = vmatprep.subr.bf16.mxu0 %v15775_v60 }
0x1b89   :  { %13627 = vmatpush3.bf16.msra.mxu0 %v13626_v3 }
0x1b8a   :  { %13562 = vmatprep.subr.bf16.mxu0 %v15777_v14 }
0x1b8c   :  { %13560 = vmatmul.mubr.msk.f32.vlgmr.msra.gmra.mrb[176].mxu0 %vm9255_vm6, %v9954_v2  ;;  %v11285_v2 = vld [vmem:[#allocation20] ss:$0 sm:$0xff] }
0x1b8d   :  { %13563 = vmatpush3.bf16.msra.mxu0 %v10105_v63  ;;  %13564 = vmatprep.mubr.msk.bf16.mxu0 %vm15776_vm8, %v15777_v14 }
0x1b8e   :  { %13568 = vmatprep.subr.mxu0 %v15777_v14 }
0x1b90   :  { %13565 = vmatmul.mubr.msk.bf16.vlgmr.msra.gmra.mrb[180].mxu0 %vm8783_vm3, %v10092_v26 }
0x1b91   :  { %13570 = vmatprep.mubr.msk.f32.mxu0 %vm15776_vm8, %v15777_v14  ;;  %13569 = vmatpush3.msra.mxu0 %v10180_v49  ;;  %v11289_v49 = vld [vmem:[#allocation31] ss:$0 sm:$0xff] }
0x1b92   :  { %13628 = vmatprep.subr.bf16.mxu0 %v15775_v60 }
0x1c5f   :  { %v10024_v43 = vpop.f32.mrb[176].mxu0 }
0x1c60   :  { %v13561_v29 = vpop.f32.mrb[177].mxu0  ;;  %v10031_v39 = vsel %vm10030_vm9, %v10024_v43, 0.0 }
0x1c63   :  { %v10141_v53 = vpop.f32.mrb[180].mxu0 }
0x1c64   :  { %v10142_v34 = vadd.f32 %v11275_v45, %v10141_v53  ;;  %v13566_v15 = vpop.f32.mrb[181].mxu0 }
0x1c65   :  { %v10144_v41 = vpop.f32.mrb[182].mxu0 }
0x1c66   :  { %v10147_v5 = vmax.f32 %v10142_v34, 0.0  ;;  %v13567_v40 = vpop.f32.mrb[183].mxu0 }
0x1c68   :  { %v10150_v27 = vsel %vm10062_vm7, %v10147_v5, 0.0 }
0x1c69   :  { %10151 = vadd.xlane.f32.xlu0 %v10150_v27 }
0x1c6d   :  { %10032 = vadd.xlane.f32.xlu0 %v10031_v39  ;;  %v14563_v39 = vld [vmem:[#allocation37] sm:$0xff]  }
0x1cf6   :  { %v10152_v4 = vpop.xlane.xlu0 %10151 }
0x1cf7   :  { %v10153_v48 = vmul.f32 0.125, %v10152_v4  ;;  %v14564_v4 = vld [vmem:[%s18493_s18] sm:$0xff]  }
0x1cf9   :  { %v10154_v46 = vsub.f32 %v10147_v5, %v10153_v48  ;;  %v14565_v48 = vld [vmem:[#allocation37 + $0x8] sm:$0xff]  }
0x1cfa   :  { %v10033_v13 = vpop.xlane.xlu0 %10032 }
0x1cfb   :  { %v10035_v17 = vmul.f32 0.041666668, %v10033_v13  ;;  %v10155_v8 = vmul.f32 %v10154_v46, %v10154_v46  ;;  %v14566_v13 = vld [vmem:[%s18493_s18 + $0x8] sm:$0xff]  }
0x1cfd   :  { %v10036_v19 = vsub.f32 %v10024_v43, %v10035_v17  ;;  %v10156_v12 = vsel %vm10062_vm7, %v10155_v8, 0.0  ;;  %v10631_v8 = vld [vmem:[%s18495_s25] sm:$0x3] }
0x1cfe   :  { %10157 = vadd.xlane.f32.xlu1 %v10156_v12 }
0x1cff   :  { %v10037_v18 = vmul.f32 %v10036_v19, %v10036_v19 }
0x1d01   :  { %v10038_v31 = vsel %vm10030_vm9, %v10037_v18, 0.0 }
0x1d02   :  { %10039 = vadd.xlane.f32.xlu0 %v10038_v31 }
0x1d8b   :  { %v10158_v32 = vpop.xlane.xlu1 %10157 }
0x1d8c   :  { %v10159_v61 = vmul.f32 0.125, %v10158_v32 }
0x1d8e   :  { %v10160_v56 = vadd.f32 1e-05, %v10159_v61 }
0x1d8f   :  { %v10040_v58 = vpop.xlane.xlu0 %10039 }
0x1d90   :  { %14827 = vrsqrt.f32 %v10160_v56  ;;  %v10041_v28 = vmul.f32 0.041666668, %v10040_v58 }
0x1d92   :  { %v10042_v54 = vadd.f32 1e-05, %v10041_v28 }
0x1d94   :  { %14829 = vrsqrt.f32 %v10042_v54 }
0x1d9a   :  { %v14828_v16 = vpop.eup %14827 }
0x1d9b   :  { %v10162_v47 = vmul.f32 %v14828_v16, %v10154_v46  ;;  %v10500_v46 = vld [vmem:[%s18494_s29] sm:$0x3] }
0x1d9c   :  { %v10505_v17 = vpack.c.bf16 %v10500_v46, %v10500_v46 }
0x1d9d   :  { %v10169_v20 = vmul.f32 %v11277_v30, %v10162_v47  ;;  %v11297_v47 = vld [vmem:[#allocation38] ss:$0 sm:$0xff] }
0x1d9e   :  { %v14830_v44 = vpop.eup %14829 }
0x1d9f   :  { %v10044_v60 = vmul.f32 %v14830_v44, %v10036_v19  ;;  %v10176_v38 = vadd.f32 %v11278_v36, %v10169_v20 }
0x1da1   :  { %13571 = vmatmul.mubr.msk.f32.vlgmr.msra.gmra.mrb[178].mxu0 %vm8783_vm3, %v10176_v38  ;;  %v10051_v24 = vmul.f32 %v11271_v6, %v10044_v60 }
0x1da2   :  { %13630 = vmatpush3.bf16.msra.mxu0 %v13629_v7  ;;  %13579 = vmatprep.mubr.msk.f32.mxu0 %vm15776_vm8, %v15777_v14 }
0x1da3   :  { %13577 = vmatprep.subr.mxu0 %v15777_v14  ;;  %v10058_v42 = vadd.f32 %v11272_v23, %v10051_v24 }
0x1da6   :  { %13578 = vmatpush3.msra.mxu0 %v10179_v11 }
0x1da7   :  { %13590 = vmatprep.subr.bf16.mxu0 %v15777_v14 }
0x1da9   :  { %13580 = vmatmul.mubr.msk.f32.vlgmr.msra.gmra.mrb[178].mxu0 %vm9159_vm5, %v10058_v42 }
0x1daa   :  { %13594 = vmatprep.mubr.msk.bf16.mxu0 %vm15776_vm8, %v15777_v14  ;;  %13591 = vmatpush3.bf16.msra.mxu0 %v14561_v0 }
0x1dab   :  { %13592 = vmatprep.subr.bf16.mxu0 %v15777_v14 }
0x1dae   :  { %13593 = vmatpush3.bf16.msra.mxu0 %v14562_v55 }
0x1daf   :  { %13606 = vmatprep.subr.bf16.mxu0 %v15777_v14 }
0x1e7c   :  { %v10323_v9 = vpop.f32.mrb[178].mxu0 }
0x1e7d   :  { %v10331_v22 = vpack.c.bf16 %v10323_v9, %v10323_v9  ;;  %v13581_v10 = vpop.f32.mrb[179].mxu0 }
0x1e7f   :  { %13587 = vmatmul.mubr.msk.bf16.vlgmr.msra.gmra.mrb[80].mxu1 %vm9255_vm6, %v10331_v22 }
0x1e80   :  { %13602 = vmatprep.mubr.msk.bf16.mxu1 %vm15776_vm8, %v15777_v14  ;;  %13599 = vmatpush3.bf16.msra.mxu1 %v14563_v39 }
0x1e81   :  { %13600 = vmatprep.subr.bf16.mxu1 %v15777_v14 }
0x1e84   :  { %13601 = vmatpush3.bf16.msra.mxu1 %v14565_v48  ;;  %v11301_v48 = vld [vmem:[#allocation40] ss:$0 sm:$0xff] }
0x1e85   :  { %13614 = vmatprep.subr.bf16.mxu1 %v15777_v14 }
0x1e87   :  { %13603 = vmatmul.mubr.msk.bf16.vlgmr.msra.gmra.mrb[84].mxu1 %vm9255_vm6, %v10505_v17 }
0x1e88   :  { %13618 = vmatprep.mubr.msk.bf16.mxu1 %vm15776_vm8, %v15777_v14 }
0x1f52   :  { %v10388_v25 = vpop.f32.mrb[80].mxu1 }
0x1f53   :  { %v10389_v3 = vadd.f32 %v11281_v21, %v10388_v25  ;;  %v13588_v33 = vpop.f32.mrb[81].mxu1 }
0x1f54   :  { %v10391_v51 = vpop.f32.mrb[82].mxu1  ;;  %v11299_v33 = vld [vmem:[#allocation34] ss:$0 sm:$0xff] }
0x1f55   :  { %v10394_v37 = vmax.f32 %v10389_v3, 0.0  ;;  %v13589_v50 = vpop.f32.mrb[83].mxu1 }
0x1f57   :  { %v10399_v62 = vpack.c.bf16 %v10394_v37, %v10394_v37 }
0x1f59   :  { %13595 = vmatmul.mubr.msk.bf16.vlgmr.msra.gmra.mrb[184].mxu0 %vm9255_vm6, %v10399_v62 }
0x1f5a   :  { %13610 = vmatprep.mubr.msk.bf16.mxu0 %vm15776_vm8, %v15777_v14  ;;  %13607 = vmatpush3.bf16.msra.mxu0 %v14564_v4  ;;  %v10555_v58 = vpop.f32.mrb[84].mxu1 }
0x1f5b   :  { %13608 = vmatprep.subr.bf16.mxu0 %v15777_v14  ;;  %v13604_v28 = vpop.f32.mrb[85].mxu1 }
0x1f5c   :  { %v10558_v54 = vpop.f32.mrb[86].mxu1 }
0x1f5d   :  { %v13605_v16 = vpop.f32.mrb[87].mxu1 }
0x1f5e   :  { %13609 = vmatpush3.bf16.msra.mxu0 %v14566_v13 }
0x202c   :  { %v10456_v63 = vpop.f32.mrb[184].mxu0 }
0x202d   :  { %v10457_v59 = vadd.f32 %v11285_v2, %v10456_v63  ;;  %v13596_v26 = vpop.f32.mrb[185].mxu0 }
0x202e   :  { %v10459_v43 = vpop.f32.mrb[186].mxu0  ;;  %v14567_v26 = vld [vmem:[%s18496_s0] sm:$0xff]  }
0x202f   :  { %v10462_v29 = vadd.f32 %v10457_v59, %v10323_v9  ;;  %v13597_v45 = vpop.f32.mrb[187].mxu0  ;;  %v11300_v59 = vld [vmem:[#allocation35] ss:$0 sm:$0xff]  ;;  %13615 = vmatpush3.bf16.msra.mxu1 %v14567_v26  ;;  %v14568_v43 = vld [vmem:[%s18496_s0 + $0x8] sm:$0xff]  }
0x2030   :  { %13616 = vmatprep.subr.bf16.mxu1 %v15777_v14 }
0x2031   :  { %v10463_v53 = vmax.f32 %v10462_v29, 0.0 }
0x2033   :  { %v10467_v34 = vsel %vm10466_vm10, %v10463_v53, 0.0  ;;  %13617 = vmatpush3.bf16.msra.mxu1 %v14568_v43 }
0x2034   :  { %10468 = vadd.xlane.f32.xlu1 %v10467_v34 }
0x20c1   :  { %v10469_v15 = vpop.xlane.xlu1 %10468 }
0x20c2   :  { %v10471_v41 = vmul.f32 0.03125, %v10469_v15 }
0x20c4   :  { %v10472_v5 = vsub.f32 %v10463_v53, %v10471_v41 }
0x20c6   :  { %v10473_v40 = vmul.f32 %v10472_v5, %v10472_v5 }
0x20c8   :  { %v10474_v27 = vsel %vm10466_vm10, %v10473_v40, 0.0 }
0x20c9   :  { %10475 = vadd.xlane.f32.xlu0 %v10474_v27 }
0x20df   :  { %10633 = vrot.lane.b32.xlu0 %v10631_v8, %s15767_s1 }
0x2156   :  { %v10476_v19 = vpop.xlane.xlu0 %10475 }
0x2157   :  { %v10477_v12 = vmul.f32 0.03125, %v10476_v19 }
0x2159   :  { %v10478_v18 = vadd.f32 1e-05, %v10477_v12 }
0x215a   :  { %v10634_v42 = vpop.permute.xlu0 %10633 }
0x215b   :  { %14831 = vrsqrt.f32 %v10478_v18 }
0x2165   :  { %v14832_v31 = vpop.eup %14831 }
0x2166   :  { %v10480_v52 = vmul.f32 %v14832_v31, %v10472_v5 }
0x2168   :  { %v10487_v32 = vmul.f32 %v11289_v49, %v10480_v52 }
0x216a   :  { %v10494_v61 = vadd.f32 %v11290_v35, %v10487_v32 }
0x216c   :  { %v10499_v56 = vpack.c.bf16 %v10494_v61, %v10494_v61 }
0x216e   :  { %13611 = vmatmul.mubr.msk.bf16.vlgmr.msra.gmra.mrb[188].mxu0 %vm9255_vm6, %v10499_v56 }
0x2241   :  { %v10610_v30 = vpop.f32.mrb[188].mxu0 }
0x2242   :  { %v10611_v57 = vadd.f32 %v10610_v30, %v10555_v58  ;;  %v13612_v1 = vpop.f32.mrb[189].mxu0 }
0x2243   :  { %v10613_v36 = vpop.f32.mrb[190].mxu0 }
0x2244   :  { %v10623_v20 = vadd.f32 %v11297_v47, %v10611_v57  ;;  %v13613_v44 = vpop.f32.mrb[191].mxu0 }
0x2246   :  { %14833 = vtanh.f32 %v10623_v20  ;;  %v11298_v60 = vmul.f32 -1.442695, %v10623_v20 }
0x2248   :  { %14835 = vpow2.f32 %v11298_v60 }
0x2250   :  { %v14834_v7 = vpop.eup %14833 }
0x2251   :  { %10638 = vrot.lane.b32.xlu1 %v14834_v7, %s15740_s26 }
0x2252   :  { %v14836_v38 = vpop.eup %14835 }
0x2253   :  { %v10627_v6 = vadd.f32 1.0, %v14836_v38 }
0x2255   :  { %14837 = vrcp.f32 %v10627_v6 }
0x225f   :  { %v14838_v11 = vpop.eup %14837 }
0x2260   :  { %v10636_v9 = vmul.f32 %v14838_v11, %v10634_v42 }
0x22c3   :  { %v10639_v24 = vpop.permute.xlu1 %10638 }
0x22c4   :  { %v10641_v23 = vmul.f32 %v14838_v11, %v10639_v24 }
0x22c6   :  { %10643 = vrot.lane.b32.xlu1 %v10641_v23, %s15767_s1 }
0x2338   :  { %v10644_v22 = vpop.permute.xlu1 %10643 }
0x2339   :  { %v18270_v10 = vadd.f32 %v10644_v22, %v10636_v9 }
0x233b   :  { %14839 = vtanh.f32 %v18270_v10 }
0x2345   :  { %v14840_v0 = vpop.eup %14839 }
0x2346   :  { %10649 = vrot.lane.b32.xlu1 %v14840_v0, %s15740_s26  ;;  %s15778_s26 = smov 123  }
0x23b8   :  { %v10650_v55 = vpop.permute.xlu1 %10649 }
0x23b9   :  { %v10652_v21 = vmul.f32 %v14838_v11, %v10650_v55 }
0x23bb   :  { %10654 = vrot.lane.b32.xlu0 %v10652_v21, %s15767_s1 }
0x242d   :  { %v10655_v25 = vpop.permute.xlu0 %10654 }
0x242e   :  { %10657 = vst.msk [vmem:[#allocation45] sm:$0x3] %vm10466_vm10, %v10655_v25  ;;  %v10665_v3 = vsel %vm10466_vm10, %v10655_v25, 0.0 }
0x242f   :  { %10666 = vadd.xlane.f32.xlu1 %v10665_v3 }
0x2440   :  { %10687 = vrot.lane.b32.xlu1 %v11299_v33, %s15764_s22 }
0x24bc   :  { %v10667_v51 = vpop.xlane.xlu1 %10666 }
0x24bd   :  { %v10668_v37 = vmul.f32 0.03125, %v10667_v51 }
0x24bf   :  { %v10669_v50 = vsub.f32 %v10652_v21, %v10668_v37 }
0x24c0   :  { %v10688_v15 = vpop.permute.xlu1 %10687 }
0x24c1   :  { %v10670_v62 = vmul.f32 %v10669_v50, %v10669_v50 }
0x24c3   :  { %10672 = vrot.lane.b32.xlu0 %v10670_v62, %s15767_s1 }
0x2535   :  { %v10673_v2 = vpop.permute.xlu0 %10672 }
0x2536   :  { %v10675_v63 = vsel %vm10466_vm10, %v10673_v2, 0.0 }
0x2537   :  { %10676 = vadd.xlane.f32.xlu0 %v10675_v63 }
0x254d   :  { %10696 = vrot.lane.b32.xlu0 %v11300_v59, %s15764_s22 }
0x25c4   :  { %v10677_v29 = vpop.xlane.xlu0 %10676 }
0x25c5   :  { %v10678_v45 = vmul.f32 0.03125, %v10677_v29 }
0x25c7   :  { %v10679_v53 = vadd.f32 1e-05, %v10678_v45 }
0x25c8   :  { %v10697_v5 = vpop.permute.xlu0 %10696 }
0x25c9   :  { %14841 = vrsqrt.f32 %v10679_v53 }
0x25d3   :  { %v14842_v34 = vpop.eup %14841 }
0x25d4   :  { %v10681_v41 = vmul.f32 %v14842_v34, %v10669_v50 }
0x25d6   :  { %v10690_v40 = vmul.f32 %v10688_v15, %v10681_v41 }
0x25d8   :  { %v10699_v27 = vadd.f32 %v10697_v5, %v10690_v40 }
0x25da   :  { %v10704_v39 = vpack.c.bf16 %v10699_v27, %v10699_v27 }
0x25dc   :  { %10713 = vrot.lane.b32.xlu1 %v10704_v39, %s15767_s1  ;;  %s15546_s1 = scalar_lea.vmem %s10836_s28, 32 }
0x25dd   :  { %p15547_p4 = scmp.ne.s32.totalorder %s10836_s28, %s15546_s1  ;;  %p15552_p6 = scmp.lt.s32.totalorder %s15546_s1, %s15546_s1 }
0x25df   :  { %p15553_p7 = por %p15552_p6, %p15551_p5 }
0x25e1   :  { %p15554_p8 = pnand %p15553_p7, %p15547_p4 }
0x264e   :  { %v10714_v4 = vpop.permute.xlu1 %10713 }
0x264f   :  { %13619 = vmatmul.mubr.msk.bf16.vlgmr.msra.gmra.mrb[88].mxu1 %vm9255_vm6, %v10714_v4 }
0x2722   :  { %v10764_v46 = vpop.f32.mrb[88].mxu1 }
0x2723   :  { %v10765_v14 = vadd.f32 %v11301_v48, %v10764_v46  ;;  %v13620_v13 = vpop.f32.mrb[89].mxu1 }
0x2724   :  { %v10767_v17 = vpop.f32.mrb[90].mxu1 }
0x2725   :  { %v11305_v8 = vmul.f32 -1.442695, %v10765_v14  ;;  %v13621_v19 = vpop.f32.mrb[91].mxu1  ;;  %v10772_v12 = vsel %vm10770_vm11, %v10765_v14, -inf  ;;  %10771 = vst.msk [vmem:[#allocation41] sm:$0x3] %vm10770_vm11, %v10765_v14 }
0x2726   :  { %10773 = vmax.xlane.f32.xlu1 %v10772_v12 }
0x2727   :  { %14843 = vpow2.f32 %v11305_v8 }
0x2731   :  { %v14844_v18 = vpop.eup %14843 }
0x2732   :  { %v10787_v31 = vadd.f32 1.0, %v14844_v18 }
0x2734   :  { %14845 = vrcp.f32 %v10787_v31 }
0x2737   :  { %10792 = vrot.lane.b32.xlu1 %v10765_v14, %s15778_s26 }
0x273e   :  { %v14846_v49 = vpop.eup %14845 }
0x273f   :  { %10790 = vst.msk [vmem:[#allocation44] sm:$0x3] %vm10770_vm11, %v14846_v49 }
0x27b3   :  { %v10774_v52 = vpop.xlane.xlu1 %10773 }
0x27b4   :  { %v10775_v35 = vsub.f32 %v10765_v14, %v10774_v52 }
0x27b6   :  { %v10776_v32 = vmul.f32 1.442695, %v10775_v35 }
0x27b7   :  { %v10793_v61 = vpop.permute.xlu1 %10792 }
0x27b8   :  { %14847 = vpow2.f32 %v10776_v32  ;;  %10796 = vst.msk [vmem:[%s16017_s13] sm:$0x3] %vm10795_vm12, %v10793_v61 }
0x27c2   :  { %v14848_v56 = vpop.eup %14847 }
0x27c3   :  { %v10778_v58 = vsel %vm10770_vm11, %v14848_v56, 0.0 }
0x27c4   :  { %10779 = vadd.xlane.f32.xlu0 %v10778_v58 }
0x27da   :  { %10659 = vrot.lane.b32.xlu0 %v18270_v10, %s15764_s22 }
0x27db   :  { %15557 = shalt.err (!%p15554_p8)
}
0x27dc   :  { %s15558_s13 = scalar_lea.hbm %s16022_s14, 32 }
0x27dd   :  { %p15559_p9 = scmp.ne.s32.totalorder %s16022_s14, %s15558_s13  ;;  %p15562_p10 = scmp.lt.u32.totalorder %s15558_s13, %s16022_s14 }
0x27df   :  { %p15564_p11 = pnand %p15562_p10, %p15559_p9 }
0x27e1   :  { %15567 = shalt.err (!%p15564_p11)
}
0x27e2   :  { %10838 = dma.vmem_to_hbm [thread:$0]  %s10836_s28, 32, %s16022_s14, [#allocation46]  }
0x27e3   :  { %s15780_s22 = smov [#allocation41]  }
0x27e4   :  { %s10803_s8 = sshll.u32 %s15780_s22, 4  ;;  %s10804_s8 = int_to_ptr.vmem [resolvable:$true] %s10803_s8 }
0x27e5   :  { %s15568_s2 = scalar_lea.vmem %s10804_s8, 32  ;;  %p15573_p13 = scmp.lt.s32.totalorder %s10804_s8, %s10804_s8 }
0x27e6   :  { %p15569_p12 = scmp.ne.s32.totalorder %s10804_s8, %s15568_s2  ;;  %p15574_p0 = scmp.lt.s32.totalorder %s15568_s2, %s15568_s2 }
0x27e8   :  { %p15575_p1 = por %p15574_p0, %p15573_p13 }
0x27ea   :  { %p15576_p2 = pnand %p15575_p1, %p15569_p12 }
0x27ec   :  { %15579 = shalt.err (!%p15576_p2)
}
0x27ed   :  { %s18497_s5 = sld [smem:[#allocation92_spill]] }
0x27f3   :  { %s15580_s4 = scalar_lea.hbm %s18497_s5, 32 }
0x27f4   :  { %p15581_p3 = scmp.ne.s32.totalorder %s18497_s5, %s15580_s4  ;;  %p15584_p4 = scmp.lt.u32.totalorder %s15580_s4, %s18497_s5 }
0x27f6   :  { %p15586_p5 = pnand %p15584_p4, %p15581_p3 }
0x27f8   :  { %15589 = shalt.err (!%p15586_p5)
}
0x27f9   :  { %10806 = dma.vmem_to_hbm [thread:$0]  %s10804_s8, 32, %s18497_s5, [#allocation4]  }
0x27fa   :  { %s15781_s14 = smov [#allocation47]  }
0x27fb   :  { %s10845_s20 = sshll.u32 %s15781_s14, 4  ;;  %s10846_s20 = int_to_ptr.vmem [resolvable:$true] %s10845_s20 }
0x27fc   :  { %s15590_s17 = scalar_lea.vmem %s10846_s20, 32  ;;  %p15595_p7 = scmp.lt.s32.totalorder %s10846_s20, %s10846_s20 }
0x27fd   :  { %p15591_p6 = scmp.ne.s32.totalorder %s10846_s20, %s15590_s17  ;;  %p15596_p8 = scmp.lt.s32.totalorder %s15590_s17, %s15590_s17 }
0x27ff   :  { %p15597_p9 = por %p15596_p8, %p15595_p7 }
0x2801   :  { %p15598_p10 = pnand %p15597_p9, %p15591_p6 }
0x2851   :  { %v10780_v28 = vpop.xlane.xlu0 %10779 }
0x2852   :  { %14849 = vrcp.f32 %v10780_v28 }
0x2855   :  { %v10660_v54 = vpop.permute.xlu0 %10659 }
0x2856   :  { %10662 = vst.msk [vmem:[#allocation47] sm:$0x3] %vm10466_vm10, %v10660_v54 }
0x2857   :  { %15601 = shalt.err (!%p15598_p10)
}
0x2858   :  { %s15602_s7 = scalar_lea.hbm %s16027_s12, 32 }
0x2859   :  { %p15603_p11 = scmp.ne.s32.totalorder %s16027_s12, %s15602_s7  ;;  %p15606_p12 = scmp.lt.u32.totalorder %s15602_s7, %s16027_s12 }
0x285b   :  { %p15608_p13 = pnand %p15606_p12, %p15603_p11 }
0x285d   :  { %15611 = shalt.err (!%p15608_p13)
}
0x285e   :  { %10848 = dma.vmem_to_hbm [thread:$0]  %s10846_s20, 32, %s16027_s12, [#allocation46]   ;;  %v14850_v16 = vpop.eup %14849 }
0x285f   :  { %s15782_s30 = smov [#allocation42]   ;;  %s15783_s11 = smov [#allocation44]   ;;  %v10782_v30 = vmul.f32 %v14850_v16, %v14848_v56 }
0x2860   :  { %s10813_s10 = sshll.u32 %s15782_s30, 4  ;;  %s10823_s21 = sshll.u32 %s15783_s11, 4  ;;  %s10814_s10 = int_to_ptr.vmem [resolvable:$true] %s10813_s10  ;;  %s10824_s21 = int_to_ptr.vmem [resolvable:$true] %s10823_s21 }
0x2861   :  { %10783 = vst.msk [vmem:[#allocation42] sm:$0x3] %vm10770_vm11, %v10782_v30  ;;  %s15612_s3 = scalar_lea.vmem %s10814_s10, 32  ;;  %p15617_p1 = scmp.lt.s32.totalorder %s10814_s10, %s10814_s10 }
0x2862   :  { %p15613_p0 = scmp.ne.s32.totalorder %s10814_s10, %s15612_s3  ;;  %p15618_p2 = scmp.lt.s32.totalorder %s15612_s3, %s15612_s3 }
0x2864   :  { %p15619_p3 = por %p15618_p2, %p15617_p1 }
0x2866   :  { %p15620_p4 = pnand %p15619_p3, %p15613_p0 }
0x2868   :  { %15623 = shalt.err (!%p15620_p4)
}
0x2869   :  { %s18498_s15 = sld [smem:[#allocation93_spill]] }
0x286f   :  { %s15624_s12 = scalar_lea.hbm %s18498_s15, 32 }
0x2870   :  { %p15625_p5 = scmp.ne.s32.totalorder %s18498_s15, %s15624_s12  ;;  %p15628_p6 = scmp.lt.u32.totalorder %s15624_s12, %s18498_s15 }
0x2872   :  { %p15630_p7 = pnand %p15628_p6, %p15625_p5 }
0x2874   :  { %15633 = shalt.err (!%p15630_p7)
}
0x2875   :  { %10816 = dma.vmem_to_hbm [thread:$0]  %s10814_s10, 32, %s18498_s15, [#allocation43]  }
0x2876   :  { %s15634_s6 = scalar_lea.vmem %s10824_s21, 32  ;;  %p15639_p9 = scmp.lt.s32.totalorder %s10824_s21, %s10824_s21 }
0x2877   :  { %p15635_p8 = scmp.ne.s32.totalorder %s10824_s21, %s15634_s6  ;;  %p15640_p10 = scmp.lt.s32.totalorder %s15634_s6, %s15634_s6 }
0x2879   :  { %p15641_p11 = por %p15640_p10, %p15639_p9 }
0x287b   :  { %p15642_p12 = pnand %p15641_p11, %p15635_p8 }
0x287d   :  { %15645 = shalt.err (!%p15642_p12)
}
0x287e   :  { %s15646_s24 = scalar_lea.hbm %s16012_s27, 32 }
0x287f   :  { %p15647_p13 = scmp.ne.s32.totalorder %s16012_s27, %s15646_s24  ;;  %p15650_p0 = scmp.lt.u32.totalorder %s15646_s24, %s16012_s27 }
0x2881   :  { %p15652_p1 = pnand %p15650_p0, %p15647_p13 }
0x2883   :  { %15655 = shalt.err (!%p15652_p1)
}
0x2884   :  { %10826 = dma.vmem_to_hbm [thread:$0]  %s10824_s21, 32, %s16012_s27, [#allocation43]  }
0x2885   :  { %15682 = dma.done.wait [#allocation4], 32  }
0x2886   :  { %15683 = vsyncadd [#allocation4], 4294967264 }
0x2887   :  { %15684 = dma.done.wait [#allocation43], 64  }
0x2888   :  { %15685 = vsyncadd [#allocation43], 4294967232 }
0x2889   :  { %15686 = dma.done.wait [#allocation46], 64  }
0x288a   :  { %15687 = vsyncadd [#allocation46], 4294967232 }
0x288b   :  { %10866 = vsyncpa [#allocation3], 1 }
0x288c   :  { %10867 = vsyncpa [#allocation6], 1 }
0x288d   :  { %10868 = vsyncpa [#allocation9], 1 }
0x288e   :  { %10869 = vsyncpa [#allocation12], 1 }
0x288f   :  { %10870 = vsyncpa [#allocation15], 1 }
0x2890   :  { %10871 = vsyncpa [#allocation18], 1 }
0x2891   :  { %10872 = vsyncpa [#allocation21], 1 }
0x2892   :  { %10873 = vsyncpa [#allocation24], 1 }
0x2893   :  { %10874 = vsyncpa [#allocation27], 1 }
0x2894   :  { %10875 = vsyncpa [#allocation30], 1 }
0x2895   :  { %10876 = vsyncpa [#allocation33], 1 }
0x2896   :  { %10877 = vsyncpa [#allocation36], 1 }
0x2897   :  { %10878 = vsyncpa [#allocation39], 1 }
0x2898   :  { %10879 = vsyncpa [#allocation4], 1 }
0x2899   :  { %10880 = vsyncpa [#allocation43], 1 }
0x289a   :  { %10881 = vsyncpa [#allocation46], 1 }

</bundles_post_ra>
